<compile_context>
chip_gen: v7x
topology: tpu7x:2x2x1
jax: 0.10.0
libtpu: 0.0.40
codegen_flags: <defaults>
</compile_context>

<pallas_src>
import functools
import math

import jax
import jax.numpy as jnp
from jax.experimental import pallas as pl
from jax.experimental.pallas import tpu as pltpu

EPS = 1e-5
LANE = 128

_TAPS = tuple((kh, kw) for kh in range(3) for kw in range(3))


def _round_up(x, m):
    return (x + m - 1) // m * m


def _bytes(shape, dtype):
    return math.prod(shape) * jnp.dtype(dtype).itemsize


def _vmem_cap_bytes():
    # Generation-aware physical VMEM query; conservative (v7x) fallback.
    try:
        info = pltpu.get_tpu_info()
        for attr in ("vmem_capacity_bytes", "vmem_size_bytes", "vmem_bytes"):
            v = getattr(info, attr, None)
            if v:
                return int(v)
    except Exception:
        pass
    return 64 << 20


def _compiler_params(double_buffered_bytes, scratch_bytes):
    # double-buffered in/out blocks + persistent scratch + headroom, capped at
    # ~3/4 of physical VMEM (≈96 MiB on v5e/v6e, ≈48 MiB on v7x).
    cap = (_vmem_cap_bytes() * 3) // 4
    need = 2 * double_buffered_bytes + scratch_bytes + (4 << 20)
    return pltpu.CompilerParams(
        dimension_semantics=("parallel",),
        vmem_limit_bytes=int(min(max(need, 16 << 20), cap)),
    )


def _pick_ht(H, W, k_width, elem_bytes, budget=8 << 20):
    # Largest divisor of H whose (HT*W, k_width) im2col chunk fits the budget.
    best = 1
    for d in range(1, H + 1):
        if H % d == 0 and d * W * k_width * elem_bytes <= budget:
            best = d
    return best


# ------------- pass 1: conv1 (3x3) + shortcut stats (no ysc writeback) -------------
def _k1_conv1_and_shortcut(x_ref, w1_ref, b1_ref, wsc_ref,
                           y1_ref, s1_ref, ssc_ref,
                           xpad_ref, cols_ref, *, H, W, HT):
    Cpi = xpad_ref.shape[-1]
    Cp = w1_ref.shape[-1]
    Hp, Wp = H + 2, W + 2
    cdt = xpad_ref.dtype

    # halo scratch: zero only the 1-px border; interior rewritten each step.
    xpad_ref[0:1, :, :] = jnp.zeros((1, Wp, Cpi), cdt)
    xpad_ref[Hp - 1:Hp, :, :] = jnp.zeros((1, Wp, Cpi), cdt)
    xpad_ref[:, 0:1, :] = jnp.zeros((Hp, 1, Cpi), cdt)
    xpad_ref[:, Wp - 1:Wp, :] = jnp.zeros((Hp, 1, Cpi), cdt)
    xpad_ref[1:H + 1, 1:W + 1, :] = x_ref[0].reshape(H, W, Cpi)

    b1 = b1_ref[...]
    s1_sum = jnp.zeros((1, Cp), jnp.float32)
    s1_sq = jnp.zeros((1, Cp), jnp.float32)
    ssc_sum = jnp.zeros((1, Cp), jnp.float32)
    ssc_sq = jnp.zeros((1, Cp), jnp.float32)

    # im2col per H-chunk into VMEM, one fused K = 9*Cpi MXU matmul per chunk.
    for c in range(H // HT):
        r0 = c * HT
        for t, (kh, kw) in enumerate(_TAPS):
            cols_ref[:, t * Cpi:(t + 1) * Cpi] = (
                xpad_ref[r0 + kh:r0 + kh + HT, kw:kw + W, :]
                .reshape(HT * W, Cpi))
        z1 = jnp.dot(cols_ref[...], w1_ref[...],
                     preferred_element_type=jnp.float32)
        y1_ref[0, r0 * W:(r0 + HT) * W, :] = (z1 + b1).astype(y1_ref.dtype)
        s1_sum += jnp.sum(z1, axis=0, keepdims=True)
        s1_sq += jnp.sum(z1 * z1, axis=0, keepdims=True)

        # shortcut branch: reuse the center tap (kh=kw=1) as the 1x1 conv LHS.
        zsc = jnp.dot(cols_ref[:, 4 * Cpi:5 * Cpi], wsc_ref[...],
                      preferred_element_type=jnp.float32)
        ssc_sum += jnp.sum(zsc, axis=0, keepdims=True)
        ssc_sq += jnp.sum(zsc * zsc, axis=0, keepdims=True)

    s1_ref[0, 0:1, :] = s1_sum
    s1_ref[0, 1:2, :] = s1_sq
    ssc_ref[0, 0:1, :] = ssc_sum
    ssc_ref[0, 1:2, :] = ssc_sq


# ------------- pass 2: bn1 + relu + conv2 (3x3) + bias-free stats -------------
def _k2_bn1_relu_conv2(y1_ref, sc1_ref, sh1_ref, w2_ref, b2_ref,
                       y2_ref, s2_ref, hpad_ref, cols_ref, *, H, W, HT):
    Cp = w2_ref.shape[-1]
    Hp, Wp = H + 2, W + 2
    cdt = hpad_ref.dtype

    hpad_ref[0:1, :, :] = jnp.zeros((1, Wp, Cp), cdt)
    hpad_ref[Hp - 1:Hp, :, :] = jnp.zeros((1, Wp, Cp), cdt)
    hpad_ref[:, 0:1, :] = jnp.zeros((Hp, 1, Cp), cdt)
    hpad_ref[:, Wp - 1:Wp, :] = jnp.zeros((Hp, 1, Cp), cdt)

    sc1 = sc1_ref[...]
    sh1 = sh1_ref[...]
    # bn1 folded to scale/shift (batch stats precomputed) + relu, per H-chunk
    # (keeps the f32 temporary small).
    for c in range(H // HT):
        r0 = c * HT
        h1 = jnp.maximum(
            y1_ref[0, r0 * W:(r0 + HT) * W, :].astype(jnp.float32) * sc1 + sh1,
            0.0)
        hpad_ref[r0 + 1:r0 + 1 + HT, 1:W + 1, :] = (
            h1.reshape(HT, W, Cp).astype(cdt))

    b2 = b2_ref[...]
    s_sum = jnp.zeros((1, Cp), jnp.float32)
    s_sq = jnp.zeros((1, Cp), jnp.float32)
    for c in range(H // HT):
        r0 = c * HT
        for t, (kh, kw) in enumerate(_TAPS):
            cols_ref[:, t * Cp:(t + 1) * Cp] = (
                hpad_ref[r0 + kh:r0 + kh + HT, kw:kw + W, :]
                .reshape(HT * W, Cp))
        z2 = jnp.dot(cols_ref[...], w2_ref[...],
                     preferred_element_type=jnp.float32)
        y2_ref[0, r0 * W:(r0 + HT) * W, :] = (z2 + b2).astype(y2_ref.dtype)
        s_sum += jnp.sum(z2, axis=0, keepdims=True)
        s_sq += jnp.sum(z2 * z2, axis=0, keepdims=True)

    s2_ref[0, 0:1, :] = s_sum
    s2_ref[0, 1:2, :] = s_sq


# ------------- pass 3: bn2 + folded-BN 1x1 shortcut + residual add -------------
def _k3_bn2_shortcut_add(y2_ref, x_ref, sc2_ref, wscf_ref, shift_ref, out_ref):
    shortcut = jnp.dot(x_ref[0], wscf_ref[...],
                       preferred_element_type=jnp.float32)
    out_ref[0] = (y2_ref[0].astype(jnp.float32) * sc2_ref[...]
                  + shift_ref[...] + shortcut).astype(out_ref.dtype)


def resblk_forward_nhwc(x_nhwc, params, *, mxu_dtype=jnp.bfloat16):
    """x_nhwc: (N, H, W, Cin) f32 -> (N, H, W, Cout) f32 (NHWC end-to-end).

    mxu_dtype: bf16 by default (full MXU rate on v5e/v6e/v7x); accumulation,
    BN statistics and normalization always stay in float32.  Pass
    jnp.float32 for a bit-accurate (~5e-4) path.
    """
    (w1, b1, g1, be1, w2, b2, g2, be2, wsc, bsc, gsc, besc) = params
    N, H, W, Cin = x_nhwc.shape
    Cout = w1.shape[0]
    HW = H * W
    Cpi = _round_up(Cin, LANE)
    Cp = _round_up(Cout, LANE)
    cdt = jnp.dtype(mxu_dtype)
    cbytes = cdt.itemsize

    # channels zero-padded to 128 lanes; cast once to the MXU operand dtype.
    x = jnp.pad(x_nhwc.astype(jnp.float32),
                ((0, 0), (0, 0), (0, 0), (0, Cpi - Cin)))
    x = x.astype(cdt).reshape(N, HW, Cpi)

    def pad_vec(v):                          # per-channel vector -> (1, Cp) f32
        return jnp.pad(v.astype(jnp.float32), (0, Cp - Cout)).reshape(1, Cp)

    def conv_w(w, cin, cin_p):               # (Cout, cin, 3, 3) -> (9*cin_p, Cp)
        wt = jnp.transpose(w.astype(jnp.float32), (2, 3, 1, 0))
        wt = jnp.pad(wt, ((0, 0), (0, 0), (0, cin_p - cin), (0, Cp - Cout)))
        return wt.reshape(9 * cin_p, Cp).astype(cdt)

    w1_m = conv_w(w1, Cin, Cpi)
    w2_m = conv_w(w2, Cout, Cp)
    wsc_f32 = jnp.pad(jnp.transpose(wsc[:, :, 0, 0].astype(jnp.float32), (1, 0)),
                      ((0, Cpi - Cin), (0, Cp - Cout)))          # (Cpi, Cp)
    wsc_m = wsc_f32.astype(cdt)
    b1_r, b2_r, bsc_r = pad_vec(b1), pad_vec(b2), pad_vec(bsc)
    g1_r, g2_r, gsc_r = pad_vec(g1), pad_vec(g2), pad_vec(gsc)    # padded gamma = 0
    be1_r, be2_r, besc_r = pad_vec(be1), pad_vec(be2), pad_vec(besc)

    HT1 = _pick_ht(H, W, 9 * Cpi, cbytes)
    HT2 = _pick_ht(H, W, 9 * Cp, cbytes)

    # ----------------------------- pass 1 -----------------------------
    blk_io1 = (_bytes((HW, Cpi), cdt) + _bytes((9 * Cpi, Cp), cdt)
               + _bytes((Cpi, Cp), cdt) + _bytes((1, Cp), jnp.float32)
               + _bytes((HW, Cp), cdt) + 2 * _bytes((2, Cp), jnp.float32))
    scr1 = (_bytes((H + 2, W + 2, Cpi), cdt) + _bytes((HT1 * W, 9 * Cpi), cdt))
    cost1 = pl.CostEstimate(
        flops=int(2 * N * HW * Cp * (9 * Cpi + Cpi)), transcendentals=0,
        bytes_accessed=int(N * _bytes((HW, Cpi), cdt)
                           + _bytes((9 * Cpi, Cp), cdt) + _bytes((Cpi, Cp), cdt)
                           + N * _bytes((HW, Cp), cdt)))

    y1, s1p, sscp = pl.pallas_call(
        functools.partial(_k1_conv1_and_shortcut, H=H, W=W, HT=HT1),
        out_shape=(jax.ShapeDtypeStruct((N, HW, Cp), cdt),
                   jax.ShapeDtypeStruct((N, 2, Cp), jnp.float32),
                   jax.ShapeDtypeStruct((N, 2, Cp), jnp.float32)),
        grid_spec=pltpu.PrefetchScalarGridSpec(
            num_scalar_prefetch=0, grid=(N,),
            in_specs=[
                pl.BlockSpec((1, HW, Cpi), lambda n: (n, 0, 0)),
                pl.BlockSpec((9 * Cpi, Cp), lambda n: (0, 0)),
                pl.BlockSpec((1, Cp), lambda n: (0, 0)),
                pl.BlockSpec((Cpi, Cp), lambda n: (0, 0)),
            ],
            out_specs=[
                pl.BlockSpec((1, HW, Cp), lambda n: (n, 0, 0)),
                pl.BlockSpec((1, 2, Cp), lambda n: (n, 0, 0)),
                pl.BlockSpec((1, 2, Cp), lambda n: (n, 0, 0)),
            ],
            scratch_shapes=[pltpu.VMEM((H + 2, W + 2, Cpi), cdt),
                            pltpu.VMEM((HT1 * W, 9 * Cpi), cdt)]),
        compiler_params=_compiler_params(blk_io1, scr1),
        cost_estimate=cost1,
    )(x, w1_m, b1_r, wsc_m)

    # tiny cross-tile reduction + BN fold (scale/shift) in plain JAX.  Stats
    # are of the bias-free matmul output; the bias is folded back here (keeps
    # the E[z^2]-E[z]^2 cancellation away from large conv biases).
    count = float(N * HW)

    def fold_bn(stats_part, gamma, beta, bias):
        s = jnp.sum(stats_part, axis=0)                       # (2, Cp)
        mean_z = s[0] / count
        var = jnp.maximum(s[1] / count - mean_z * mean_z, 0.0)
        scale = gamma[0] * jax.lax.rsqrt(var + EPS)           # (Cp,)
        shift = beta[0] - (mean_z + bias[0]) * scale
        return scale.reshape(1, Cp), shift.reshape(1, Cp)

    sc1, sh1 = fold_bn(s1p, g1_r, be1_r, b1_r)
    scs, shs = fold_bn(sscp, gsc_r, besc_r, bsc_r)

    # ----------------------------- pass 2 -----------------------------
    blk_io2 = (2 * _bytes((HW, Cp), cdt) + _bytes((9 * Cp, Cp), cdt)
               + 3 * _bytes((1, Cp), jnp.float32)
               + _bytes((2, Cp), jnp.float32))
    scr2 = (_bytes((H + 2, W + 2, Cp), cdt) + _bytes((HT2 * W, 9 * Cp), cdt))
    cost2 = pl.CostEstimate(
        flops=int(2 * N * HW * 9 * Cp * Cp), transcendentals=0,
        bytes_accessed=int(2 * N * _bytes((HW, Cp), cdt)
                           + _bytes((9 * Cp, Cp), cdt)))

    y2, s2p = pl.pallas_call(
        functools.partial(_k2_bn1_relu_conv2, H=H, W=W, HT=HT2),
        out_shape=(jax.ShapeDtypeStruct((N, HW, Cp), cdt),
                   jax.ShapeDtypeStruct((N, 2, Cp), jnp.float32)),
        grid_spec=pltpu.PrefetchScalarGridSpec(
            num_scalar_prefetch=0, grid=(N,),
            in_specs=[
                pl.BlockSpec((1, HW, Cp), lambda n: (n, 0, 0)),
                pl.BlockSpec((1, Cp), lambda n: (0, 0)),
                pl.BlockSpec((1, Cp), lambda n: (0, 0)),
                pl.BlockSpec((9 * Cp, Cp), lambda n: (0, 0)),
                pl.BlockSpec((1, Cp), lambda n: (0, 0)),
            ],
            out_specs=[
                pl.BlockSpec((1, HW, Cp), lambda n: (n, 0, 0)),
                pl.BlockSpec((1, 2, Cp), lambda n: (n, 0, 0)),
            ],
            scratch_shapes=[pltpu.VMEM((H + 2, W + 2, Cp), cdt),
                            pltpu.VMEM((HT2 * W, 9 * Cp), cdt)]),
        compiler_params=_compiler_params(blk_io2, scr2),
        cost_estimate=cost2,
    )(y1, sc1, sh1, w2_m, b2_r)

    sc2, sh2 = fold_bn(s2p, g2_r, be2_r, b2_r)

    # shortcut BN folded into the 1x1 weight + a single combined shift vector:
    #   bn_sc(x@Wsc + bsc) = x@(Wsc*scs) + (bsc*scs + shs)
    wsc_fold = (wsc_f32 * scs).astype(cdt)
    shift3 = sh2 + bsc_r * scs + shs

    # ----------------------------- pass 3 -----------------------------
    blk_io3 = (_bytes((HW, Cp), cdt) + _bytes((HW, Cpi), cdt)
               + _bytes((Cpi, Cp), cdt) + 2 * _bytes((1, Cp), jnp.float32)
               + _bytes((HW, Cp), jnp.float32))
    cost3 = pl.CostEstimate(
        flops=int(2 * N * HW * Cp * Cpi + 4 * N * HW * Cp), transcendentals=0,
        bytes_accessed=int(N * (_bytes((HW, Cp), cdt) + _bytes((HW, Cpi), cdt)
                                + _bytes((HW, Cp), jnp.float32))))

    out = pl.pallas_call(
        _k3_bn2_shortcut_add,
        out_shape=jax.ShapeDtypeStruct((N, HW, Cp), jnp.float32),
        grid_spec=pltpu.PrefetchScalarGridSpec(
            num_scalar_prefetch=0, grid=(N,),
            in_specs=[
                pl.BlockSpec((1, HW, Cp), lambda n: (n, 0, 0)),
                pl.BlockSpec((1, HW, Cpi), lambda n: (n, 0, 0)),
                pl.BlockSpec((1, Cp), lambda n: (0, 0)),
                pl.BlockSpec((Cpi, Cp), lambda n: (0, 0)),
                pl.BlockSpec((1, Cp), lambda n: (0, 0)),
            ],
            out_specs=pl.BlockSpec((1, HW, Cp), lambda n: (n, 0, 0))),
        compiler_params=_compiler_params(blk_io3, 0),
        cost_estimate=cost3,
    )(y2, x, sc2, wsc_fold, shift3)

    # drop channel padding; stay NHWC.
    return out.reshape(N, H, W, Cp)[:, :, :, :Cout]


def resblk_forward(x_nchw, params, *, mxu_dtype=jnp.bfloat16):
    """NCHW wrapper matching the PyTorch module interface."""
    x = jnp.transpose(x_nchw, (0, 2, 3, 1))
    out = resblk_forward_nhwc(x, params, mxu_dtype=mxu_dtype)
    return jnp.transpose(out, (0, 3, 1, 2))


# ----------------------------- pure-JAX reference -----------------------------
def _ref_resblk(x_nchw, params):
    (w1, b1, g1, be1, w2, b2, g2, be2, wsc, bsc, gsc, besc) = params
    N, Cin, H, W = x_nchw.shape
    Cout = w1.shape[0]
    x = jnp.transpose(x_nchw, (0, 2, 3, 1))

    def conv3x3(x_nhwc, w, b):
        cin = x_nhwc.shape[-1]
        xp = jnp.pad(x_nhwc, ((0, 0), (1, 1), (1, 1), (0, 0)))
        wm = jnp.transpose(w, (2, 3, 1, 0)).reshape(9 * cin, Cout)
        cols = [xp[:, kh:kh + H, kw:kw + W, :]
                for kh in range(3) for kw in range(3)]
        patches = jnp.concatenate(cols, axis=-1).reshape(N * H * W, 9 * cin)
        return patches @ wm + b[None, :]

    def bn(y, g, be):
        m = jnp.mean(y, axis=0, keepdims=True)
        v = jnp.mean((y - m) ** 2, axis=0, keepdims=True)
        return (y - m) * jax.lax.rsqrt(v + EPS) * g[None, :] + be[None, :]

    h1 = jnp.maximum(bn(conv3x3(x, w1, b1), g1, be1), 0.0)
    h2 = bn(conv3x3(h1.reshape(N, H, W, Cout), w2, b2), g2, be2)
    xs = x.reshape(N * H * W, Cin)
    hs = bn(xs @ jnp.transpose(wsc[:, :, 0, 0], (1, 0)) + bsc[None, :], gsc, besc)
    out = (hs + h2).reshape(N, H, W, Cout)
    return jnp.transpose(out, (0, 3, 1, 2))


if __name__ == "__main__":
    N, Cin, Cout, H, W = 2, 4, 8, 16, 16

    key = jax.random.PRNGKey(0)
    ks = jax.random.split(key, 13)
    w1 = jax.random.normal(ks[0], (Cout, Cin, 3, 3), jnp.float32) * 0.1
    b1 = jax.random.normal(ks[1], (Cout,), jnp.float32) * 0.1
    g1 = 1.0 + jax.random.normal(ks[2], (Cout,), jnp.float32) * 0.1
    be1 = jax.random.normal(ks[3], (Cout,), jnp.float32) * 0.1
    w2 = jax.random.normal(ks[4], (Cout, Cout, 3, 3), jnp.float32) * 0.1
    b2 = jax.random.normal(ks[5], (Cout,), jnp.float32) * 0.1
    g2 = 1.0 + jax.random.normal(ks[6], (Cout,), jnp.float32) * 0.1
    be2 = jax.random.normal(ks[7], (Cout,), jnp.float32) * 0.1
    wsc = jax.random.normal(ks[8], (Cout, Cin, 1, 1), jnp.float32) * 0.1
    bsc = jax.random.normal(ks[9], (Cout,), jnp.float32) * 0.1
    gsc = 1.0 + jax.random.normal(ks[10], (Cout,), jnp.float32) * 0.1
    besc = jax.random.normal(ks[11], (Cout,), jnp.float32) * 0.1
    params = (w1, b1, g1, be1, w2, b2, g2, be2, wsc, bsc, gsc, besc)

    x = jax.random.normal(ks[12], (N, Cin, H, W), jnp.float32)
    ref = jax.block_until_ready(_ref_resblk(x, params))

    # bit-accurate path (f32 MXU operands) -> strict tolerance.
    fwd_f32 = jax.jit(functools.partial(resblk_forward, mxu_dtype=jnp.float32))
    out_f32 = jax.block_until_ready(fwd_f32(x, params))
    assert out_f32.shape == (N, Cout, H, W)
    err_f32 = float(jnp.max(jnp.abs(out_f32 - ref)))
    assert err_f32 < 5e-4, err_f32

    # default performance path (bf16 MXU operands / activations, f32 accum
    # and BN stats) -> relaxed tolerance.
    fwd = jax.jit(resblk_forward)
    out = jax.block_until_ready(fwd(x, params))
    assert out.shape == (N, Cout, H, W)
    err_max = float(jnp.max(jnp.abs(out - ref)))
    err_mean = float(jnp.mean(jnp.abs(out - ref)))
    assert err_max < 3e-1 and err_mean < 5e-2, (err_max, err_mean)

    print("KERNEL_OK")
</pallas_src>

<mosaic_0001>
module attributes {stable_mosaic.version = 11 : i64} {
  func.func @_k1_conv1_and_shortcut(%arg0: i32, %arg1: memref<1x256x128xf32, #tpu.memory_space<vmem>>, %arg2: memref<1152x128xf32, #tpu.memory_space<vmem>>, %arg3: memref<1x128xf32, #tpu.memory_space<vmem>>, %arg4: memref<128x128xf32, #tpu.memory_space<vmem>>, %arg5: memref<1x256x128xf32, #tpu.memory_space<vmem>>, %arg6: memref<1x2x128xf32, #tpu.memory_space<vmem>>, %arg7: memref<1x2x128xf32, #tpu.memory_space<vmem>>, %arg8: memref<18x18x128xf32, #tpu.memory_space<vmem>>, %arg9: memref<256x1152xf32, #tpu.memory_space<vmem>>) attributes {dimension_semantics = [#tpu.dimension_semantics<parallel>], iteration_bounds = array<i64: 2>, scalar_prefetch = 0 : i64, scratch_operands = 2 : i64, tpu.core_type = #tpu.core_type<tc>, window_params = [{transform_indices = @transform_0, window_bounds = array<i64: 1, 256, 128>}, {pipeline_mode = #tpu.pipeline_mode<synchronous>, transform_indices = @transform_1, window_bounds = array<i64: 1152, 128>}, {pipeline_mode = #tpu.pipeline_mode<synchronous>, transform_indices = @transform_2, window_bounds = array<i64: 1, 128>}, {pipeline_mode = #tpu.pipeline_mode<synchronous>, transform_indices = @transform_3, window_bounds = array<i64: 128, 128>}, {transform_indices = @transform_4, window_bounds = array<i64: 1, 256, 128>}, {transform_indices = @transform_5, window_bounds = array<i64: 1, 2, 128>}, {transform_indices = @transform_6, window_bounds = array<i64: 1, 2, 128>}]} {
    %cst = arith.constant 0.000000e+00 : f32
    %0 = vector.broadcast %cst : f32 to vector<1x18x128xf32>
    %c0 = arith.constant 0 : index
    %c0_0 = arith.constant 0 : index
    %c0_1 = arith.constant 0 : index
    %1 = vector.load %arg8[%c0, %c0_0, %c0_1] : memref<18x18x128xf32, #tpu.memory_space<vmem>>, vector<1x18x128xf32>
    tpu.vector_store %arg8[%c0, %c0_0, %c0_1], %0 {strides = array<i32>} : memref<18x18x128xf32, #tpu.memory_space<vmem>>, vector<1x18x128xf32>,
    %cst_2 = arith.constant 0.000000e+00 : f32
    %2 = vector.broadcast %cst_2 : f32 to vector<1x18x128xf32>
    %c17 = arith.constant 17 : index
    %c0_3 = arith.constant 0 : index
    %c0_4 = arith.constant 0 : index
    %3 = vector.load %arg8[%c17, %c0_3, %c0_4] : memref<18x18x128xf32, #tpu.memory_space<vmem>>, vector<1x18x128xf32>
    tpu.vector_store %arg8[%c17, %c0_3, %c0_4], %2 {strides = array<i32>} : memref<18x18x128xf32, #tpu.memory_space<vmem>>, vector<1x18x128xf32>,
    %cst_5 = arith.constant 0.000000e+00 : f32
    %4 = vector.broadcast %cst_5 : f32 to vector<18x1x128xf32>
    %c0_6 = arith.constant 0 : index
    %c0_7 = arith.constant 0 : index
    %c0_8 = arith.constant 0 : index
    %5 = vector.load %arg8[%c0_6, %c0_7, %c0_8] : memref<18x18x128xf32, #tpu.memory_space<vmem>>, vector<18x1x128xf32>
    tpu.vector_store %arg8[%c0_6, %c0_7, %c0_8], %4 {strides = array<i32>} : memref<18x18x128xf32, #tpu.memory_space<vmem>>, vector<18x1x128xf32>,
    %cst_9 = arith.constant 0.000000e+00 : f32
    %6 = vector.broadcast %cst_9 : f32 to vector<18x1x128xf32>
    %c0_10 = arith.constant 0 : index
    %c17_11 = arith.constant 17 : index
    %c0_12 = arith.constant 0 : index
    %7 = vector.load %arg8[%c0_10, %c17_11, %c0_12] : memref<18x18x128xf32, #tpu.memory_space<vmem>>, vector<18x1x128xf32>
    tpu.vector_store %arg8[%c0_10, %c17_11, %c0_12], %6 {strides = array<i32>} : memref<18x18x128xf32, #tpu.memory_space<vmem>>, vector<18x1x128xf32>,
    %c0_13 = arith.constant 0 : index
    %c0_14 = arith.constant 0 : index
    %c0_15 = arith.constant 0 : index
    %8 = vector.load %arg1[%c0_13, %c0_14, %c0_15] : memref<1x256x128xf32, #tpu.memory_space<vmem>>, vector<1x256x128xf32>
    %9 = vector.shape_cast %8 : vector<1x256x128xf32> to vector<256x128xf32>
    %10 = vector.shape_cast %9 : vector<256x128xf32> to vector<16x16x128xf32>
    %c1 = arith.constant 1 : index
    %c1_16 = arith.constant 1 : index
    %c0_17 = arith.constant 0 : index
    %11 = vector.load %arg8[%c1, %c1_16, %c0_17] : memref<18x18x128xf32, #tpu.memory_space<vmem>>, vector<16x16x128xf32>
    tpu.vector_store %arg8[%c1, %c1_16, %c0_17], %10 {strides = array<i32>} : memref<18x18x128xf32, #tpu.memory_space<vmem>>, vector<16x16x128xf32>,
    %c0_18 = arith.constant 0 : index
    %c0_19 = arith.constant 0 : index
    %12 = vector.load %arg3[%c0_18, %c0_19] : memref<1x128xf32, #tpu.memory_space<vmem>>, vector<1x128xf32>
    %cst_20 = arith.constant 0.000000e+00 : f32
    %13 = vector.broadcast %cst_20 : f32 to vector<1x128xf32>
    %cst_21 = arith.constant 0.000000e+00 : f32
    %14 = vector.broadcast %cst_21 : f32 to vector<1x128xf32>
    %cst_22 = arith.constant 0.000000e+00 : f32
    %15 = vector.broadcast %cst_22 : f32 to vector<1x128xf32>
    %cst_23 = arith.constant 0.000000e+00 : f32
    %16 = vector.broadcast %cst_23 : f32 to vector<1x128xf32>
    %c0_24 = arith.constant 0 : index
    %c0_25 = arith.constant 0 : index
    %c0_26 = arith.constant 0 : index
    %17 = vector.load %arg8[%c0_24, %c0_25, %c0_26] : memref<18x18x128xf32, #tpu.memory_space<vmem>>, vector<16x16x128xf32>
    %18 = vector.shape_cast %17 : vector<16x16x128xf32> to vector<256x128xf32>
    %c0_27 = arith.constant 0 : index
    %c0_28 = arith.constant 0 : index
    %19 = vector.load %arg9[%c0_27, %c0_28] : memref<256x1152xf32, #tpu.memory_space<vmem>>, vector<256x128xf32>
    tpu.vector_store %arg9[%c0_27, %c0_28], %18 {strides = array<i32>} : memref<256x1152xf32, #tpu.memory_space<vmem>>, vector<256x128xf32>,
    %c0_29 = arith.constant 0 : index
    %c1_30 = arith.constant 1 : index
    %c0_31 = arith.constant 0 : index
    %20 = vector.load %arg8[%c0_29, %c1_30, %c0_31] : memref<18x18x128xf32, #tpu.memory_space<vmem>>, vector<16x16x128xf32>
    %21 = vector.shape_cast %20 : vector<16x16x128xf32> to vector<256x128xf32>
    %c0_32 = arith.constant 0 : index
    %c128 = arith.constant 128 : index
    %22 = vector.load %arg9[%c0_32, %c128] : memref<256x1152xf32, #tpu.memory_space<vmem>>, vector<256x128xf32>
    tpu.vector_store %arg9[%c0_32, %c128], %21 {strides = array<i32>} : memref<256x1152xf32, #tpu.memory_space<vmem>>, vector<256x128xf32>,
    %c0_33 = arith.constant 0 : index
    %c2 = arith.constant 2 : index
    %c0_34 = arith.constant 0 : index
    %23 = vector.load %arg8[%c0_33, %c2, %c0_34] : memref<18x18x128xf32, #tpu.memory_space<vmem>>, vector<16x16x128xf32>
    %24 = vector.shape_cast %23 : vector<16x16x128xf32> to vector<256x128xf32>
    %c0_35 = arith.constant 0 : index
    %c256 = arith.constant 256 : index
    %25 = vector.load %arg9[%c0_35, %c256] : memref<256x1152xf32, #tpu.memory_space<vmem>>, vector<256x128xf32>
    tpu.vector_store %arg9[%c0_35, %c256], %24 {strides = array<i32>} : memref<256x1152xf32, #tpu.memory_space<vmem>>, vector<256x128xf32>,
    %c1_36 = arith.constant 1 : index
    %c0_37 = arith.constant 0 : index
    %c0_38 = arith.constant 0 : index
    %26 = vector.load %arg8[%c1_36, %c0_37, %c0_38] : memref<18x18x128xf32, #tpu.memory_space<vmem>>, vector<16x16x128xf32>
    %27 = vector.shape_cast %26 : vector<16x16x128xf32> to vector<256x128xf32>
    %c0_39 = arith.constant 0 : index
    %c384 = arith.constant 384 : index
    %28 = vector.load %arg9[%c0_39, %c384] : memref<256x1152xf32, #tpu.memory_space<vmem>>, vector<256x128xf32>
    tpu.vector_store %arg9[%c0_39, %c384], %27 {strides = array<i32>} : memref<256x1152xf32, #tpu.memory_space<vmem>>, vector<256x128xf32>,
    %c1_40 = arith.constant 1 : index
    %c1_41 = arith.constant 1 : index
    %c0_42 = arith.constant 0 : index
    %29 = vector.load %arg8[%c1_40, %c1_41, %c0_42] : memref<18x18x128xf32, #tpu.memory_space<vmem>>, vector<16x16x128xf32>
    %30 = vector.shape_cast %29 : vector<16x16x128xf32> to vector<256x128xf32>
    %c0_43 = arith.constant 0 : index
    %c512 = arith.constant 512 : index
    %31 = vector.load %arg9[%c0_43, %c512] : memref<256x1152xf32, #tpu.memory_space<vmem>>, vector<256x128xf32>
    tpu.vector_store %arg9[%c0_43, %c512], %30 {strides = array<i32>} : memref<256x1152xf32, #tpu.memory_space<vmem>>, vector<256x128xf32>,
    %c1_44 = arith.constant 1 : index
    %c2_45 = arith.constant 2 : index
    %c0_46 = arith.constant 0 : index
    %32 = vector.load %arg8[%c1_44, %c2_45, %c0_46] : memref<18x18x128xf32, #tpu.memory_space<vmem>>, vector<16x16x128xf32>
    %33 = vector.shape_cast %32 : vector<16x16x128xf32> to vector<256x128xf32>
    %c0_47 = arith.constant 0 : index
    %c640 = arith.constant 640 : index
    %34 = vector.load %arg9[%c0_47, %c640] : memref<256x1152xf32, #tpu.memory_space<vmem>>, vector<256x128xf32>
    tpu.vector_store %arg9[%c0_47, %c640], %33 {strides = array<i32>} : memref<256x1152xf32, #tpu.memory_space<vmem>>, vector<256x128xf32>,
    %c2_48 = arith.constant 2 : index
    %c0_49 = arith.constant 0 : index
    %c0_50 = arith.constant 0 : index
    %35 = vector.load %arg8[%c2_48, %c0_49, %c0_50] : memref<18x18x128xf32, #tpu.memory_space<vmem>>, vector<16x16x128xf32>
    %36 = vector.shape_cast %35 : vector<16x16x128xf32> to vector<256x128xf32>
    %c0_51 = arith.constant 0 : index
    %c768 = arith.constant 768 : index
    %37 = vector.load %arg9[%c0_51, %c768] : memref<256x1152xf32, #tpu.memory_space<vmem>>, vector<256x128xf32>
    tpu.vector_store %arg9[%c0_51, %c768], %36 {strides = array<i32>} : memref<256x1152xf32, #tpu.memory_space<vmem>>, vector<256x128xf32>,
    %c2_52 = arith.constant 2 : index
    %c1_53 = arith.constant 1 : index
    %c0_54 = arith.constant 0 : index
    %38 = vector.load %arg8[%c2_52, %c1_53, %c0_54] : memref<18x18x128xf32, #tpu.memory_space<vmem>>, vector<16x16x128xf32>
    %39 = vector.shape_cast %38 : vector<16x16x128xf32> to vector<256x128xf32>
    %c0_55 = arith.constant 0 : index
    %c896 = arith.constant 896 : index
    %40 = vector.load %arg9[%c0_55, %c896] : memref<256x1152xf32, #tpu.memory_space<vmem>>, vector<256x128xf32>
    tpu.vector_store %arg9[%c0_55, %c896], %39 {strides = array<i32>} : memref<256x1152xf32, #tpu.memory_space<vmem>>, vector<256x128xf32>,
    %c2_56 = arith.constant 2 : index
    %c2_57 = arith.constant 2 : index
    %c0_58 = arith.constant 0 : index
    %41 = vector.load %arg8[%c2_56, %c2_57, %c0_58] : memref<18x18x128xf32, #tpu.memory_space<vmem>>, vector<16x16x128xf32>
    %42 = vector.shape_cast %41 : vector<16x16x128xf32> to vector<256x128xf32>
    %c0_59 = arith.constant 0 : index
    %c1024 = arith.constant 1024 : index
    %43 = vector.load %arg9[%c0_59, %c1024] : memref<256x1152xf32, #tpu.memory_space<vmem>>, vector<256x128xf32>
    tpu.vector_store %arg9[%c0_59, %c1024], %42 {strides = array<i32>} : memref<256x1152xf32, #tpu.memory_space<vmem>>, vector<256x128xf32>,
    %c0_60 = arith.constant 0 : index
    %c0_61 = arith.constant 0 : index
    %44 = vector.load %arg9[%c0_60, %c0_61] : memref<256x1152xf32, #tpu.memory_space<vmem>>, vector<256x1152xf32>
    %c0_62 = arith.constant 0 : index
    %c0_63 = arith.constant 0 : index
    %45 = vector.load %arg2[%c0_62, %c0_63] : memref<1152x128xf32, #tpu.memory_space<vmem>>, vector<1152x128xf32>
    %cst_64 = arith.constant dense<0.000000e+00> : vector<256x128xf32>
    %46 = tpu.matmul %44, %45, %cst_64 {dimension_numbers = #tpu.dot_dimension_numbers<[1], [0], [0], [1], [0, 0, 1, 1], [], []>} : vector<256x1152xf32>, vector<1152x128xf32>, vector<256x128xf32> -> vector<256x128xf32>
    %47 = vector.broadcast %12 : vector<1x128xf32> to vector<256x128xf32>
    %48 = arith.addf %46, %47 : vector<256x128xf32>
    %c0_65 = arith.constant 0 : index
    %c0_66 = arith.constant 0 : index
    %c0_67 = arith.constant 0 : index
    %49 = vector.load %arg5[%c0_65, %c0_66, %c0_67] : memref<1x256x128xf32, #tpu.memory_space<vmem>>, vector<1x256x128xf32>
    %50 = vector.shape_cast %49 : vector<1x256x128xf32> to vector<256x128xf32>
    %51 = vector.shape_cast %48 : vector<256x128xf32> to vector<1x256x128xf32>
    tpu.vector_store %arg5[%c0_65, %c0_66, %c0_67], %51 {strides = array<i32>} : memref<1x256x128xf32, #tpu.memory_space<vmem>>, vector<1x256x128xf32>,
    %cst_68 = arith.constant dense<0.000000e+00> : vector<128xf32>
    %52 = vector.multi_reduction <add>, %46, %cst_68 [0] : vector<256x128xf32> to vector<128xf32>
    %53 = vector.shape_cast %52 : vector<128xf32> to vector<1x128xf32>
    %54 = arith.addf %13, %53 : vector<1x128xf32>
    %55 = arith.mulf %46, %46 : vector<256x128xf32>
    %cst_69 = arith.constant dense<0.000000e+00> : vector<128xf32>
    %56 = vector.multi_reduction <add>, %55, %cst_69 [0] : vector<256x128xf32> to vector<128xf32>
    %57 = vector.shape_cast %56 : vector<128xf32> to vector<1x128xf32>
    %58 = arith.addf %14, %57 : vector<1x128xf32>
    %c0_70 = arith.constant 0 : index
    %c512_71 = arith.constant 512 : index
    %59 = vector.load %arg9[%c0_70, %c512_71] : memref<256x1152xf32, #tpu.memory_space<vmem>>, vector<256x128xf32>
    %c0_72 = arith.constant 0 : index
    %c0_73 = arith.constant 0 : index
    %60 = vector.load %arg4[%c0_72, %c0_73] : memref<128x128xf32, #tpu.memory_space<vmem>>, vector<128x128xf32>
    %cst_74 = arith.constant dense<0.000000e+00> : vector<256x128xf32>
    %61 = tpu.matmul %59, %60, %cst_74 {dimension_numbers = #tpu.dot_dimension_numbers<[1], [0], [0], [1], [0, 0, 1, 1], [], []>} : vector<256x128xf32>, vector<128x128xf32>, vector<256x128xf32> -> vector<256x128xf32>
    %cst_75 = arith.constant dense<0.000000e+00> : vector<128xf32>
    %62 = vector.multi_reduction <add>, %61, %cst_75 [0] : vector<256x128xf32> to vector<128xf32>
    %63 = vector.shape_cast %62 : vector<128xf32> to vector<1x128xf32>
    %64 = arith.addf %15, %63 : vector<1x128xf32>
    %65 = arith.mulf %61, %61 : vector<256x128xf32>
    %cst_76 = arith.constant dense<0.000000e+00> : vector<128xf32>
    %66 = vector.multi_reduction <add>, %65, %cst_76 [0] : vector<256x128xf32> to vector<128xf32>
    %67 = vector.shape_cast %66 : vector<128xf32> to vector<1x128xf32>
    %68 = arith.addf %16, %67 : vector<1x128xf32>
    %c0_77 = arith.constant 0 : index
    %c0_78 = arith.constant 0 : index
    %c0_79 = arith.constant 0 : index
    %69 = vector.load %arg6[%c0_77, %c0_78, %c0_79] : memref<1x2x128xf32, #tpu.memory_space<vmem>>, vector<1x1x128xf32>
    %70 = vector.shape_cast %69 : vector<1x1x128xf32> to vector<1x128xf32>
    %71 = vector.shape_cast %54 : vector<1x128xf32> to vector<1x1x128xf32>
    tpu.vector_store %arg6[%c0_77, %c0_78, %c0_79], %71 {strides = array<i32>} : memref<1x2x128xf32, #tpu.memory_space<vmem>>, vector<1x1x128xf32>,
    %c0_80 = arith.constant 0 : index
    %c1_81 = arith.constant 1 : index
    %c0_82 = arith.constant 0 : index
    %72 = vector.load %arg6[%c0_80, %c1_81, %c0_82] : memref<1x2x128xf32, #tpu.memory_space<vmem>>, vector<1x1x128xf32>
    %73 = vector.shape_cast %72 : vector<1x1x128xf32> to vector<1x128xf32>
    %74 = vector.shape_cast %58 : vector<1x128xf32> to vector<1x1x128xf32>
    tpu.vector_store %arg6[%c0_80, %c1_81, %c0_82], %74 {strides = array<i32>} : memref<1x2x128xf32, #tpu.memory_space<vmem>>, vector<1x1x128xf32>,
    %c0_83 = arith.constant 0 : index
    %c0_84 = arith.constant 0 : index
    %c0_85 = arith.constant 0 : index
    %75 = vector.load %arg7[%c0_83, %c0_84, %c0_85] : memref<1x2x128xf32, #tpu.memory_space<vmem>>, vector<1x1x128xf32>
    %76 = vector.shape_cast %75 : vector<1x1x128xf32> to vector<1x128xf32>
    %77 = vector.shape_cast %64 : vector<1x128xf32> to vector<1x1x128xf32>
    tpu.vector_store %arg7[%c0_83, %c0_84, %c0_85], %77 {strides = array<i32>} : memref<1x2x128xf32, #tpu.memory_space<vmem>>, vector<1x1x128xf32>,
    %c0_86 = arith.constant 0 : index
    %c1_87 = arith.constant 1 : index
    %c0_88 = arith.constant 0 : index
    %78 = vector.load %arg7[%c0_86, %c1_87, %c0_88] : memref<1x2x128xf32, #tpu.memory_space<vmem>>, vector<1x1x128xf32>
    %79 = vector.shape_cast %78 : vector<1x1x128xf32> to vector<1x128xf32>
    %80 = vector.shape_cast %68 : vector<1x128xf32> to vector<1x1x128xf32>
    tpu.vector_store %arg7[%c0_86, %c1_87, %c0_88], %80 {strides = array<i32>} : memref<1x2x128xf32, #tpu.memory_space<vmem>>, vector<1x1x128xf32>,
    return
  }
  func.func @transform_0(%arg0: i32) -> (i32, i32, i32) {
    %c0_i32 = arith.constant 0 : i32
    %c0_i32_0 = arith.constant 0 : i32
    %c0_i32_1 = arith.constant 0 : i32
    return %arg0, %c0_i32, %c0_i32_0 : i32, i32, i32
  }
  func.func @transform_1(%arg0: i32) -> (i32, i32) {
    %c0_i32 = arith.constant 0 : i32
    %c0_i32_0 = arith.constant 0 : i32
    %c0_i32_1 = arith.constant 0 : i32
    return %c0_i32, %c0_i32_0 : i32, i32
  }
  func.func @transform_2(%arg0: i32) -> (i32, i32) {
    %c0_i32 = arith.constant 0 : i32
    %c0_i32_0 = arith.constant 0 : i32
    %c0_i32_1 = arith.constant 0 : i32
    return %c0_i32, %c0_i32_0 : i32, i32
  }
  func.func @transform_3(%arg0: i32) -> (i32, i32) {
    %c0_i32 = arith.constant 0 : i32
    %c0_i32_0 = arith.constant 0 : i32
    %c0_i32_1 = arith.constant 0 : i32
    return %c0_i32, %c0_i32_0 : i32, i32
  }
  func.func @transform_4(%arg0: i32) -> (i32, i32, i32) {
    %c0_i32 = arith.constant 0 : i32
    %c0_i32_0 = arith.constant 0 : i32
    %c0_i32_1 = arith.constant 0 : i32
    return %arg0, %c0_i32, %c0_i32_0 : i32, i32, i32
  }
  func.func @transform_5(%arg0: i32) -> (i32, i32, i32) {
    %c0_i32 = arith.constant 0 : i32
    %c0_i32_0 = arith.constant 0 : i32
    %c0_i32_1 = arith.constant 0 : i32
    return %arg0, %c0_i32, %c0_i32_0 : i32, i32, i32
  }
  func.func @transform_6(%arg0: i32) -> (i32, i32, i32) {
    %c0_i32 = arith.constant 0 : i32
    %c0_i32_0 = arith.constant 0 : i32
    %c0_i32_1 = arith.constant 0 : i32
    return %arg0, %c0_i32, %c0_i32_0 : i32, i32, i32
  }
}

module attributes {stable_mosaic.version = 11 : i64} {
  func.func @_k2_bn1_relu_conv2(%arg0: i32, %arg1: memref<1x256x128xf32, #tpu.memory_space<vmem>>, %arg2: memref<1x128xf32, #tpu.memory_space<vmem>>, %arg3: memref<1x128xf32, #tpu.memory_space<vmem>>, %arg4: memref<1152x128xf32, #tpu.memory_space<vmem>>, %arg5: memref<1x128xf32, #tpu.memory_space<vmem>>, %arg6: memref<1x256x128xf32, #tpu.memory_space<vmem>>, %arg7: memref<1x2x128xf32, #tpu.memory_space<vmem>>, %arg8: memref<18x18x128xf32, #tpu.memory_space<vmem>>, %arg9: memref<256x1152xf32, #tpu.memory_space<vmem>>) attributes {dimension_semantics = [#tpu.dimension_semantics<parallel>], iteration_bounds = array<i64: 2>, scalar_prefetch = 0 : i64, scratch_operands = 2 : i64, tpu.core_type = #tpu.core_type<tc>, window_params = [{transform_indices = @transform_0, window_bounds = array<i64: 1, 256, 128>}, {pipeline_mode = #tpu.pipeline_mode<synchronous>, transform_indices = @transform_1, window_bounds = array<i64: 1, 128>}, {pipeline_mode = #tpu.pipeline_mode<synchronous>, transform_indices = @transform_2, window_bounds = array<i64: 1, 128>}, {pipeline_mode = #tpu.pipeline_mode<synchronous>, transform_indices = @transform_3, window_bounds = array<i64: 1152, 128>}, {pipeline_mode = #tpu.pipeline_mode<synchronous>, transform_indices = @transform_4, window_bounds = array<i64: 1, 128>}, {transform_indices = @transform_5, window_bounds = array<i64: 1, 256, 128>}, {transform_indices = @transform_6, window_bounds = array<i64: 1, 2, 128>}]} {
    %cst = arith.constant 0.000000e+00 : f32
    %0 = vector.broadcast %cst : f32 to vector<1x18x128xf32>
    %c0 = arith.constant 0 : index
    %c0_0 = arith.constant 0 : index
    %c0_1 = arith.constant 0 : index
    %1 = vector.load %arg8[%c0, %c0_0, %c0_1] : memref<18x18x128xf32, #tpu.memory_space<vmem>>, vector<1x18x128xf32>
    tpu.vector_store %arg8[%c0, %c0_0, %c0_1], %0 {strides = array<i32>} : memref<18x18x128xf32, #tpu.memory_space<vmem>>, vector<1x18x128xf32>,
    %cst_2 = arith.constant 0.000000e+00 : f32
    %2 = vector.broadcast %cst_2 : f32 to vector<1x18x128xf32>
    %c17 = arith.constant 17 : index
    %c0_3 = arith.constant 0 : index
    %c0_4 = arith.constant 0 : index
    %3 = vector.load %arg8[%c17, %c0_3, %c0_4] : memref<18x18x128xf32, #tpu.memory_space<vmem>>, vector<1x18x128xf32>
    tpu.vector_store %arg8[%c17, %c0_3, %c0_4], %2 {strides = array<i32>} : memref<18x18x128xf32, #tpu.memory_space<vmem>>, vector<1x18x128xf32>,
    %cst_5 = arith.constant 0.000000e+00 : f32
    %4 = vector.broadcast %cst_5 : f32 to vector<18x1x128xf32>
    %c0_6 = arith.constant 0 : index
    %c0_7 = arith.constant 0 : index
    %c0_8 = arith.constant 0 : index
    %5 = vector.load %arg8[%c0_6, %c0_7, %c0_8] : memref<18x18x128xf32, #tpu.memory_space<vmem>>, vector<18x1x128xf32>
    tpu.vector_store %arg8[%c0_6, %c0_7, %c0_8], %4 {strides = array<i32>} : memref<18x18x128xf32, #tpu.memory_space<vmem>>, vector<18x1x128xf32>,
    %cst_9 = arith.constant 0.000000e+00 : f32
    %6 = vector.broadcast %cst_9 : f32 to vector<18x1x128xf32>
    %c0_10 = arith.constant 0 : index
    %c17_11 = arith.constant 17 : index
    %c0_12 = arith.constant 0 : index
    %7 = vector.load %arg8[%c0_10, %c17_11, %c0_12] : memref<18x18x128xf32, #tpu.memory_space<vmem>>, vector<18x1x128xf32>
    tpu.vector_store %arg8[%c0_10, %c17_11, %c0_12], %6 {strides = array<i32>} : memref<18x18x128xf32, #tpu.memory_space<vmem>>, vector<18x1x128xf32>,
    %c0_13 = arith.constant 0 : index
    %c0_14 = arith.constant 0 : index
    %8 = vector.load %arg2[%c0_13, %c0_14] : memref<1x128xf32, #tpu.memory_space<vmem>>, vector<1x128xf32>
    %c0_15 = arith.constant 0 : index
    %c0_16 = arith.constant 0 : index
    %9 = vector.load %arg3[%c0_15, %c0_16] : memref<1x128xf32, #tpu.memory_space<vmem>>, vector<1x128xf32>
    %c0_17 = arith.constant 0 : index
    %c0_18 = arith.constant 0 : index
    %c0_19 = arith.constant 0 : index
    %10 = vector.load %arg1[%c0_17, %c0_18, %c0_19] : memref<1x256x128xf32, #tpu.memory_space<vmem>>, vector<1x256x128xf32>
    %11 = vector.shape_cast %10 : vector<1x256x128xf32> to vector<256x128xf32>
    %12 = vector.broadcast %8 : vector<1x128xf32> to vector<256x128xf32>
    %13 = arith.mulf %11, %12 : vector<256x128xf32>
    %14 = vector.broadcast %9 : vector<1x128xf32> to vector<256x128xf32>
    %15 = arith.addf %13, %14 : vector<256x128xf32>
    %cst_20 = arith.constant 0.000000e+00 : f32
    %16 = vector.broadcast %cst_20 : f32 to vector<256x128xf32>
    %17 = arith.maximumf %15, %16 : vector<256x128xf32>
    %18 = vector.shape_cast %17 : vector<256x128xf32> to vector<16x16x128xf32>
    %c1 = arith.constant 1 : index
    %c1_21 = arith.constant 1 : index
    %c0_22 = arith.constant 0 : index
    %19 = vector.load %arg8[%c1, %c1_21, %c0_22] : memref<18x18x128xf32, #tpu.memory_space<vmem>>, vector<16x16x128xf32>
    tpu.vector_store %arg8[%c1, %c1_21, %c0_22], %18 {strides = array<i32>} : memref<18x18x128xf32, #tpu.memory_space<vmem>>, vector<16x16x128xf32>,
    %c0_23 = arith.constant 0 : index
    %c0_24 = arith.constant 0 : index
    %20 = vector.load %arg5[%c0_23, %c0_24] : memref<1x128xf32, #tpu.memory_space<vmem>>, vector<1x128xf32>
    %cst_25 = arith.constant 0.000000e+00 : f32
    %21 = vector.broadcast %cst_25 : f32 to vector<1x128xf32>
    %cst_26 = arith.constant 0.000000e+00 : f32
    %22 = vector.broadcast %cst_26 : f32 to vector<1x128xf32>
    %c0_27 = arith.constant 0 : index
    %c0_28 = arith.constant 0 : index
    %c0_29 = arith.constant 0 : index
    %23 = vector.load %arg8[%c0_27, %c0_28, %c0_29] : memref<18x18x128xf32, #tpu.memory_space<vmem>>, vector<16x16x128xf32>
    %24 = vector.shape_cast %23 : vector<16x16x128xf32> to vector<256x128xf32>
    %c0_30 = arith.constant 0 : index
    %c0_31 = arith.constant 0 : index
    %25 = vector.load %arg9[%c0_30, %c0_31] : memref<256x1152xf32, #tpu.memory_space<vmem>>, vector<256x128xf32>
    tpu.vector_store %arg9[%c0_30, %c0_31], %24 {strides = array<i32>} : memref<256x1152xf32, #tpu.memory_space<vmem>>, vector<256x128xf32>,
    %c0_32 = arith.constant 0 : index
    %c1_33 = arith.constant 1 : index
    %c0_34 = arith.constant 0 : index
    %26 = vector.load %arg8[%c0_32, %c1_33, %c0_34] : memref<18x18x128xf32, #tpu.memory_space<vmem>>, vector<16x16x128xf32>
    %27 = vector.shape_cast %26 : vector<16x16x128xf32> to vector<256x128xf32>
    %c0_35 = arith.constant 0 : index
    %c128 = arith.constant 128 : index
    %28 = vector.load %arg9[%c0_35, %c128] : memref<256x1152xf32, #tpu.memory_space<vmem>>, vector<256x128xf32>
    tpu.vector_store %arg9[%c0_35, %c128], %27 {strides = array<i32>} : memref<256x1152xf32, #tpu.memory_space<vmem>>, vector<256x128xf32>,
    %c0_36 = arith.constant 0 : index
    %c2 = arith.constant 2 : index
    %c0_37 = arith.constant 0 : index
    %29 = vector.load %arg8[%c0_36, %c2, %c0_37] : memref<18x18x128xf32, #tpu.memory_space<vmem>>, vector<16x16x128xf32>
    %30 = vector.shape_cast %29 : vector<16x16x128xf32> to vector<256x128xf32>
    %c0_38 = arith.constant 0 : index
    %c256 = arith.constant 256 : index
    %31 = vector.load %arg9[%c0_38, %c256] : memref<256x1152xf32, #tpu.memory_space<vmem>>, vector<256x128xf32>
    tpu.vector_store %arg9[%c0_38, %c256], %30 {strides = array<i32>} : memref<256x1152xf32, #tpu.memory_space<vmem>>, vector<256x128xf32>,
    %c1_39 = arith.constant 1 : index
    %c0_40 = arith.constant 0 : index
    %c0_41 = arith.constant 0 : index
    %32 = vector.load %arg8[%c1_39, %c0_40, %c0_41] : memref<18x18x128xf32, #tpu.memory_space<vmem>>, vector<16x16x128xf32>
    %33 = vector.shape_cast %32 : vector<16x16x128xf32> to vector<256x128xf32>
    %c0_42 = arith.constant 0 : index
    %c384 = arith.constant 384 : index
    %34 = vector.load %arg9[%c0_42, %c384] : memref<256x1152xf32, #tpu.memory_space<vmem>>, vector<256x128xf32>
    tpu.vector_store %arg9[%c0_42, %c384], %33 {strides = array<i32>} : memref<256x1152xf32, #tpu.memory_space<vmem>>, vector<256x128xf32>,
    %c1_43 = arith.constant 1 : index
    %c1_44 = arith.constant 1 : index
    %c0_45 = arith.constant 0 : index
    %35 = vector.load %arg8[%c1_43, %c1_44, %c0_45] : memref<18x18x128xf32, #tpu.memory_space<vmem>>, vector<16x16x128xf32>
    %36 = vector.shape_cast %35 : vector<16x16x128xf32> to vector<256x128xf32>
    %c0_46 = arith.constant 0 : index
    %c512 = arith.constant 512 : index
    %37 = vector.load %arg9[%c0_46, %c512] : memref<256x1152xf32, #tpu.memory_space<vmem>>, vector<256x128xf32>
    tpu.vector_store %arg9[%c0_46, %c512], %36 {strides = array<i32>} : memref<256x1152xf32, #tpu.memory_space<vmem>>, vector<256x128xf32>,
    %c1_47 = arith.constant 1 : index
    %c2_48 = arith.constant 2 : index
    %c0_49 = arith.constant 0 : index
    %38 = vector.load %arg8[%c1_47, %c2_48, %c0_49] : memref<18x18x128xf32, #tpu.memory_space<vmem>>, vector<16x16x128xf32>
    %39 = vector.shape_cast %38 : vector<16x16x128xf32> to vector<256x128xf32>
    %c0_50 = arith.constant 0 : index
    %c640 = arith.constant 640 : index
    %40 = vector.load %arg9[%c0_50, %c640] : memref<256x1152xf32, #tpu.memory_space<vmem>>, vector<256x128xf32>
    tpu.vector_store %arg9[%c0_50, %c640], %39 {strides = array<i32>} : memref<256x1152xf32, #tpu.memory_space<vmem>>, vector<256x128xf32>,
    %c2_51 = arith.constant 2 : index
    %c0_52 = arith.constant 0 : index
    %c0_53 = arith.constant 0 : index
    %41 = vector.load %arg8[%c2_51, %c0_52, %c0_53] : memref<18x18x128xf32, #tpu.memory_space<vmem>>, vector<16x16x128xf32>
    %42 = vector.shape_cast %41 : vector<16x16x128xf32> to vector<256x128xf32>
    %c0_54 = arith.constant 0 : index
    %c768 = arith.constant 768 : index
    %43 = vector.load %arg9[%c0_54, %c768] : memref<256x1152xf32, #tpu.memory_space<vmem>>, vector<256x128xf32>
    tpu.vector_store %arg9[%c0_54, %c768], %42 {strides = array<i32>} : memref<256x1152xf32, #tpu.memory_space<vmem>>, vector<256x128xf32>,
    %c2_55 = arith.constant 2 : index
    %c1_56 = arith.constant 1 : index
    %c0_57 = arith.constant 0 : index
    %44 = vector.load %arg8[%c2_55, %c1_56, %c0_57] : memref<18x18x128xf32, #tpu.memory_space<vmem>>, vector<16x16x128xf32>
    %45 = vector.shape_cast %44 : vector<16x16x128xf32> to vector<256x128xf32>
    %c0_58 = arith.constant 0 : index
    %c896 = arith.constant 896 : index
    %46 = vector.load %arg9[%c0_58, %c896] : memref<256x1152xf32, #tpu.memory_space<vmem>>, vector<256x128xf32>
    tpu.vector_store %arg9[%c0_58, %c896], %45 {strides = array<i32>} : memref<256x1152xf32, #tpu.memory_space<vmem>>, vector<256x128xf32>,
    %c2_59 = arith.constant 2 : index
    %c2_60 = arith.constant 2 : index
    %c0_61 = arith.constant 0 : index
    %47 = vector.load %arg8[%c2_59, %c2_60, %c0_61] : memref<18x18x128xf32, #tpu.memory_space<vmem>>, vector<16x16x128xf32>
    %48 = vector.shape_cast %47 : vector<16x16x128xf32> to vector<256x128xf32>
    %c0_62 = arith.constant 0 : index
    %c1024 = arith.constant 1024 : index
    %49 = vector.load %arg9[%c0_62, %c1024] : memref<256x1152xf32, #tpu.memory_space<vmem>>, vector<256x128xf32>
    tpu.vector_store %arg9[%c0_62, %c1024], %48 {strides = array<i32>} : memref<256x1152xf32, #tpu.memory_space<vmem>>, vector<256x128xf32>,
    %c0_63 = arith.constant 0 : index
    %c0_64 = arith.constant 0 : index
    %50 = vector.load %arg9[%c0_63, %c0_64] : memref<256x1152xf32, #tpu.memory_space<vmem>>, vector<256x1152xf32>
    %c0_65 = arith.constant 0 : index
    %c0_66 = arith.constant 0 : index
    %51 = vector.load %arg4[%c0_65, %c0_66] : memref<1152x128xf32, #tpu.memory_space<vmem>>, vector<1152x128xf32>
    %cst_67 = arith.constant dense<0.000000e+00> : vector<256x128xf32>
    %52 = tpu.matmul %50, %51, %cst_67 {dimension_numbers = #tpu.dot_dimension_numbers<[1], [0], [0], [1], [0, 0, 1, 1], [], []>} : vector<256x1152xf32>, vector<1152x128xf32>, vector<256x128xf32> -> vector<256x128xf32>
    %53 = vector.broadcast %20 : vector<1x128xf32> to vector<256x128xf32>
    %54 = arith.addf %52, %53 : vector<256x128xf32>
    %c0_68 = arith.constant 0 : index
    %c0_69 = arith.constant 0 : index
    %c0_70 = arith.constant 0 : index
    %55 = vector.load %arg6[%c0_68, %c0_69, %c0_70] : memref<1x256x128xf32, #tpu.memory_space<vmem>>, vector<1x256x128xf32>
    %56 = vector.shape_cast %55 : vector<1x256x128xf32> to vector<256x128xf32>
    %57 = vector.shape_cast %54 : vector<256x128xf32> to vector<1x256x128xf32>
    tpu.vector_store %arg6[%c0_68, %c0_69, %c0_70], %57 {strides = array<i32>} : memref<1x256x128xf32, #tpu.memory_space<vmem>>, vector<1x256x128xf32>,
    %cst_71 = arith.constant dense<0.000000e+00> : vector<128xf32>
    %58 = vector.multi_reduction <add>, %52, %cst_71 [0] : vector<256x128xf32> to vector<128xf32>
    %59 = vector.shape_cast %58 : vector<128xf32> to vector<1x128xf32>
    %60 = arith.addf %21, %59 : vector<1x128xf32>
    %61 = arith.mulf %52, %52 : vector<256x128xf32>
    %cst_72 = arith.constant dense<0.000000e+00> : vector<128xf32>
    %62 = vector.multi_reduction <add>, %61, %cst_72 [0] : vector<256x128xf32> to vector<128xf32>
    %63 = vector.shape_cast %62 : vector<128xf32> to vector<1x128xf32>
    %64 = arith.addf %22, %63 : vector<1x128xf32>
    %c0_73 = arith.constant 0 : index
    %c0_74 = arith.constant 0 : index
    %c0_75 = arith.constant 0 : index
    %65 = vector.load %arg7[%c0_73, %c0_74, %c0_75] : memref<1x2x128xf32, #tpu.memory_space<vmem>>, vector<1x1x128xf32>
    %66 = vector.shape_cast %65 : vector<1x1x128xf32> to vector<1x128xf32>
    %67 = vector.shape_cast %60 : vector<1x128xf32> to vector<1x1x128xf32>
    tpu.vector_store %arg7[%c0_73, %c0_74, %c0_75], %67 {strides = array<i32>} : memref<1x2x128xf32, #tpu.memory_space<vmem>>, vector<1x1x128xf32>,
    %c0_76 = arith.constant 0 : index
    %c1_77 = arith.constant 1 : index
    %c0_78 = arith.constant 0 : index
    %68 = vector.load %arg7[%c0_76, %c1_77, %c0_78] : memref<1x2x128xf32, #tpu.memory_space<vmem>>, vector<1x1x128xf32>
    %69 = vector.shape_cast %68 : vector<1x1x128xf32> to vector<1x128xf32>
    %70 = vector.shape_cast %64 : vector<1x128xf32> to vector<1x1x128xf32>
    tpu.vector_store %arg7[%c0_76, %c1_77, %c0_78], %70 {strides = array<i32>} : memref<1x2x128xf32, #tpu.memory_space<vmem>>, vector<1x1x128xf32>,
    return
  }
  func.func @transform_0(%arg0: i32) -> (i32, i32, i32) {
    %c0_i32 = arith.constant 0 : i32
    %c0_i32_0 = arith.constant 0 : i32
    %c0_i32_1 = arith.constant 0 : i32
    return %arg0, %c0_i32, %c0_i32_0 : i32, i32, i32
  }
  func.func @transform_1(%arg0: i32) -> (i32, i32) {
    %c0_i32 = arith.constant 0 : i32
    %c0_i32_0 = arith.constant 0 : i32
    %c0_i32_1 = arith.constant 0 : i32
    return %c0_i32, %c0_i32_0 : i32, i32
  }
  func.func @transform_2(%arg0: i32) -> (i32, i32) {
    %c0_i32 = arith.constant 0 : i32
    %c0_i32_0 = arith.constant 0 : i32
    %c0_i32_1 = arith.constant 0 : i32
    return %c0_i32, %c0_i32_0 : i32, i32
  }
  func.func @transform_3(%arg0: i32) -> (i32, i32) {
    %c0_i32 = arith.constant 0 : i32
    %c0_i32_0 = arith.constant 0 : i32
    %c0_i32_1 = arith.constant 0 : i32
    return %c0_i32, %c0_i32_0 : i32, i32
  }
  func.func @transform_4(%arg0: i32) -> (i32, i32) {
    %c0_i32 = arith.constant 0 : i32
    %c0_i32_0 = arith.constant 0 : i32
    %c0_i32_1 = arith.constant 0 : i32
    return %c0_i32, %c0_i32_0 : i32, i32
  }
  func.func @transform_5(%arg0: i32) -> (i32, i32, i32) {
    %c0_i32 = arith.constant 0 : i32
    %c0_i32_0 = arith.constant 0 : i32
    %c0_i32_1 = arith.constant 0 : i32
    return %arg0, %c0_i32, %c0_i32_0 : i32, i32, i32
  }
  func.func @transform_6(%arg0: i32) -> (i32, i32, i32) {
    %c0_i32 = arith.constant 0 : i32
    %c0_i32_0 = arith.constant 0 : i32
    %c0_i32_1 = arith.constant 0 : i32
    return %arg0, %c0_i32, %c0_i32_0 : i32, i32, i32
  }
}

module attributes {stable_mosaic.version = 11 : i64} {
  func.func @_k3_bn2_shortcut_add(%arg0: i32, %arg1: memref<1x256x128xf32, #tpu.memory_space<vmem>>, %arg2: memref<1x256x128xf32, #tpu.memory_space<vmem>>, %arg3: memref<1x128xf32, #tpu.memory_space<vmem>>, %arg4: memref<128x128xf32, #tpu.memory_space<vmem>>, %arg5: memref<1x128xf32, #tpu.memory_space<vmem>>, %arg6: memref<1x256x128xf32, #tpu.memory_space<vmem>>) attributes {dimension_semantics = [#tpu.dimension_semantics<parallel>], iteration_bounds = array<i64: 2>, scalar_prefetch = 0 : i64, scratch_operands = 0 : i64, tpu.core_type = #tpu.core_type<tc>, window_params = [{transform_indices = @transform_0, window_bounds = array<i64: 1, 256, 128>}, {transform_indices = @transform_1, window_bounds = array<i64: 1, 256, 128>}, {pipeline_mode = #tpu.pipeline_mode<synchronous>, transform_indices = @transform_2, window_bounds = array<i64: 1, 128>}, {pipeline_mode = #tpu.pipeline_mode<synchronous>, transform_indices = @transform_3, window_bounds = array<i64: 128, 128>}, {pipeline_mode = #tpu.pipeline_mode<synchronous>, transform_indices = @transform_4, window_bounds = array<i64: 1, 128>}, {transform_indices = @transform_5, window_bounds = array<i64: 1, 256, 128>}]} {
    %c0 = arith.constant 0 : index
    %c0_0 = arith.constant 0 : index
    %c0_1 = arith.constant 0 : index
    %0 = vector.load %arg2[%c0, %c0_0, %c0_1] : memref<1x256x128xf32, #tpu.memory_space<vmem>>, vector<1x256x128xf32>
    %1 = vector.shape_cast %0 : vector<1x256x128xf32> to vector<256x128xf32>
    %c0_2 = arith.constant 0 : index
    %c0_3 = arith.constant 0 : index
    %2 = vector.load %arg4[%c0_2, %c0_3] : memref<128x128xf32, #tpu.memory_space<vmem>>, vector<128x128xf32>
    %cst = arith.constant dense<0.000000e+00> : vector<256x128xf32>
    %3 = tpu.matmul %1, %2, %cst {dimension_numbers = #tpu.dot_dimension_numbers<[1], [0], [0], [1], [0, 0, 1, 1], [], []>} : vector<256x128xf32>, vector<128x128xf32>, vector<256x128xf32> -> vector<256x128xf32>
    %c0_4 = arith.constant 0 : index
    %c0_5 = arith.constant 0 : index
    %c0_6 = arith.constant 0 : index
    %4 = vector.load %arg1[%c0_4, %c0_5, %c0_6] : memref<1x256x128xf32, #tpu.memory_space<vmem>>, vector<1x256x128xf32>
    %5 = vector.shape_cast %4 : vector<1x256x128xf32> to vector<256x128xf32>
    %c0_7 = arith.constant 0 : index
    %c0_8 = arith.constant 0 : index
    %6 = vector.load %arg3[%c0_7, %c0_8] : memref<1x128xf32, #tpu.memory_space<vmem>>, vector<1x128xf32>
    %7 = vector.broadcast %6 : vector<1x128xf32> to vector<256x128xf32>
    %8 = arith.mulf %5, %7 : vector<256x128xf32>
    %c0_9 = arith.constant 0 : index
    %c0_10 = arith.constant 0 : index
    %9 = vector.load %arg5[%c0_9, %c0_10] : memref<1x128xf32, #tpu.memory_space<vmem>>, vector<1x128xf32>
    %10 = vector.broadcast %9 : vector<1x128xf32> to vector<256x128xf32>
    %11 = arith.addf %8, %10 : vector<256x128xf32>
    %12 = arith.addf %11, %3 : vector<256x128xf32>
    %c0_11 = arith.constant 0 : index
    %c0_12 = arith.constant 0 : index
    %c0_13 = arith.constant 0 : index
    %13 = vector.load %arg6[%c0_11, %c0_12, %c0_13] : memref<1x256x128xf32, #tpu.memory_space<vmem>>, vector<1x256x128xf32>
    %14 = vector.shape_cast %13 : vector<1x256x128xf32> to vector<256x128xf32>
    %15 = vector.shape_cast %12 : vector<256x128xf32> to vector<1x256x128xf32>
    tpu.vector_store %arg6[%c0_11, %c0_12, %c0_13], %15 {strides = array<i32>} : memref<1x256x128xf32, #tpu.memory_space<vmem>>, vector<1x256x128xf32>,
    return
  }
  func.func @transform_0(%arg0: i32) -> (i32, i32, i32) {
    %c0_i32 = arith.constant 0 : i32
    %c0_i32_0 = arith.constant 0 : i32
    %c0_i32_1 = arith.constant 0 : i32
    return %arg0, %c0_i32, %c0_i32_0 : i32, i32, i32
  }
  func.func @transform_1(%arg0: i32) -> (i32, i32, i32) {
    %c0_i32 = arith.constant 0 : i32
    %c0_i32_0 = arith.constant 0 : i32
    %c0_i32_1 = arith.constant 0 : i32
    return %arg0, %c0_i32, %c0_i32_0 : i32, i32, i32
  }
  func.func @transform_2(%arg0: i32) -> (i32, i32) {
    %c0_i32 = arith.constant 0 : i32
    %c0_i32_0 = arith.constant 0 : i32
    %c0_i32_1 = arith.constant 0 : i32
    return %c0_i32, %c0_i32_0 : i32, i32
  }
  func.func @transform_3(%arg0: i32) -> (i32, i32) {
    %c0_i32 = arith.constant 0 : i32
    %c0_i32_0 = arith.constant 0 : i32
    %c0_i32_1 = arith.constant 0 : i32
    return %c0_i32, %c0_i32_0 : i32, i32
  }
  func.func @transform_4(%arg0: i32) -> (i32, i32) {
    %c0_i32 = arith.constant 0 : i32
    %c0_i32_0 = arith.constant 0 : i32
    %c0_i32_1 = arith.constant 0 : i32
    return %c0_i32, %c0_i32_0 : i32, i32
  }
  func.func @transform_5(%arg0: i32) -> (i32, i32, i32) {
    %c0_i32 = arith.constant 0 : i32
    %c0_i32_0 = arith.constant 0 : i32
    %c0_i32_1 = arith.constant 0 : i32
    return %arg0, %c0_i32, %c0_i32_0 : i32, i32, i32
  }
}

</mosaic_0001>

<bundles_post_ra>
// kernel: resblk_forward.5
= control target key start
LH: loop header
LB: loop body
LE: loop exit
PB: predicated region body
PF: predicated region fallthrough
CT: control target
= control target key end

     0   :  { %s999_s18 = smov 0   ;;  %s1248_s0 = inlined_call_operand.vmem [shape: f32[2,256,128], index: 0, kind: input, shape index: {}]   ;;  %s1249_s1 = inlined_call_operand.vmem [shape: f32[2,256,128], index: 1, kind: input, shape index: {}]   ;;  %s1250_s2 = inlined_call_operand.vmem [shape: f32[1,128], index: 2, kind: input, shape index: {}]   ;;  %s1251_s3 = inlined_call_operand.vmem [shape: f32[128,128], index: 3, kind: input, shape index: {}]   ;;  %s1252_s4 = inlined_call_operand.vmem [shape: f32[1,128], index: 4, kind: input, shape index: {}]   ;;  %s1253_s5 = inlined_call_operand.vmem [shape: f32[2,256,128], index: 5, kind: output, shape index: {}]  }
   0x1 LB: > { %s759_s19 = sadd.s32 4294967295, %s967_s18   ;;  %p763_p0 = scmp.ge.s32.totalorder %s967_s18, 1  ;;  %s967_s18 = sphi %s999_s18, %s15_s18  }
   0x2   : > { %p197_p1 = scmp.lt.s32.totalorder %s967_s18, 3 }
   0x4   : > { %p198_p2 = pnand %p763_p0, %p197_p1 }
   0x5   : > { %v277_v0 = vld [vmem:[%s1251_s3] sm:$0xff] (!%p198_p2)  ;;  %v278_v1 = vld [vmem:[%s1251_s3 + $0x8] sm:$0xff] (!%p198_p2)  ;;  %v279_v2 = vld [vmem:[%s1251_s3 + $0x10] sm:$0xff] (!%p198_p2)  ;;  %p230_p3 = scmp.lt.s32.totalorder (!%p198_p2), %s759_s19, 1 }
   0x6   : > { %201 = sbr.rel (%p198_p2) target bundleno = 285 (0x11d), region = 40  ;;  %v905_v3 = vpack.c.bf16 (!%p198_p2), %v278_v1, %v277_v0  ;;  %v280_v4 = vld [vmem:[%s1251_s3 + $0x18] sm:$0xff] (!%p198_p2)  ;;  %v281_v6 = vld [vmem:[%s1251_s3 + $0x20] sm:$0xff] (!%p198_p2)  ;;  %v282_v7 = vld [vmem:[%s1251_s3 + $0x28] sm:$0xff] (!%p198_p2) }
   0x7   : > { %v909_v5 = vpack.c.bf16 (!%p198_p2), %v280_v4, %v279_v2  ;;  %v913_v8 = vpack.c.bf16 (!%p198_p2), %v282_v7, %v281_v6  ;;  %v283_v9 = vld [vmem:[%s1251_s3 + $0x30] sm:$0xff] (!%p198_p2)  ;;  %v284_v10 = vld [vmem:[%s1251_s3 + $0x38] sm:$0xff] (!%p198_p2)  ;;  %v285_v14 = vld [vmem:[%s1251_s3 + $0x40] sm:$0xff] (!%p198_p2) }
   0x8   : > { %906 = vmatprep.subr.bf16.mxu0 (!%p198_p2), %v905_v3  ;;  %937 = vmatprep.subr.bf16.mxu1 (!%p198_p2), %v905_v3  ;;  %v917_v13 = vpack.c.bf16 (!%p198_p2), %v284_v10, %v283_v9  ;;  %v286_v15 = vld [vmem:[%s1251_s3 + $0x48] sm:$0xff] (!%p198_p2)  ;;  %v287_v17 = vld [vmem:[%s1251_s3 + $0x50] sm:$0xff] (!%p198_p2)  ;;  %v288_v18 = vld [vmem:[%s1251_s3 + $0x58] sm:$0xff] (!%p198_p2) }
   0x9   : > { %908 = vmatpush3.bf16.msra.mxu0 (!%p198_p2), %v905_v3  ;;  %945 = vmatpush3.bf16.msra.mxu1 (!%p198_p2), %v905_v3  ;;  %v921_v16 = vpack.c.bf16 (!%p198_p2), %v286_v15, %v285_v14  ;;  %v925_v19 = vpack.c.bf16 (!%p198_p2), %v288_v18, %v287_v17  ;;  %v289_v20 = vld [vmem:[%s1251_s3 + $0x60] sm:$0xff] (!%p198_p2)  ;;  %v290_v21 = vld [vmem:[%s1251_s3 + $0x68] sm:$0xff] (!%p198_p2)  ;;  %v291_v23 = vld [vmem:[%s1251_s3 + $0x70] sm:$0xff] (!%p198_p2) }
   0xa   : > { %910 = vmatprep.subr.bf16.mxu0 (!%p198_p2), %v909_v5  ;;  %938 = vmatprep.subr.bf16.mxu1 (!%p198_p2), %v909_v5  ;;  %v929_v22 = vpack.c.bf16 (!%p198_p2), %v290_v21, %v289_v20  ;;  %v292_v24 = vld [vmem:[%s1251_s3 + $0x78] sm:$0xff] (!%p198_p2)  ;;  %v1105_v57 = vld [vmem:[%s1250_s2] ss:$0 sm:$0xff] (!%p198_p2) }
   0xb   : > { %v933_v25 = vpack.c.bf16 (!%p198_p2), %v292_v24, %v291_v23  ;;  %v1115_v63 = vld [vmem:[%s1252_s4] ss:$0 sm:$0xff] (!%p198_p2) }
   0xd   : > { %s1255_s19 = smov (!%p230_p3, %s759_s19), 1  ;;  %912 = vmatpush3.bf16.msra.mxu0 %v909_v5  ;;  %946 = vmatpush3.bf16.msra.mxu1 %v909_v5 }
   0xe   : > { %s1025_s7 = sshll.u32 %s1255_s19, 8  ;;  %914 = vmatprep.subr.bf16.mxu0 %v913_v8  ;;  %939 = vmatprep.subr.bf16.mxu1 %v913_v8 }
   0xf   : > { %s1034_s12 = scalar_lea.vmem %s1249_s1, %s1025_s7  ;;  %s1099_s10 = scalar_lea.vmem %s1248_s0, %s1025_s7 }
  0x10   : > { %v245_v11 = vld [vmem:[%s1034_s12] sm:$0xff]  ;;  %v246_v26 = vld [vmem:[%s1034_s12 + $0x8] sm:$0xff]  ;;  %v247_v28 = vld [vmem:[%s1034_s12 + $0x10] sm:$0xff]  ;;  %s1139_s17 = scalar_lea.vmem %s1253_s5, %s1025_s7 }
  0x11   : > { %v261_v12 = vld [vmem:[%s1034_s12 + $0x80] sm:$0xff]  ;;  %857 = vmatprep.mubr.f32.mxu0 %v245_v11  ;;  %916 = vmatpush3.bf16.msra.mxu0 %v913_v8  ;;  %v262_v27 = vld [vmem:[%s1034_s12 + $0x88] sm:$0xff]  ;;  %v263_v29 = vld [vmem:[%s1034_s12 + $0x90] sm:$0xff] }
  0x12   : > { %881 = vmatprep.mubr.f32.mxu1 %v261_v12  ;;  %947 = vmatpush3.bf16.msra.mxu1 %v913_v8  ;;  %v248_v30 = vld [vmem:[%s1034_s12 + $0x18] sm:$0xff]  ;;  %v249_v32 = vld [vmem:[%s1034_s12 + $0x20] sm:$0xff]  ;;  %v250_v34 = vld [vmem:[%s1034_s12 + $0x28] sm:$0xff] }
  0x13   : > { %918 = vmatprep.subr.bf16.mxu0 %v917_v13  ;;  %940 = vmatprep.subr.bf16.mxu1 %v917_v13  ;;  %v264_v31 = vld [vmem:[%s1034_s12 + $0x98] sm:$0xff]  ;;  %v265_v33 = vld [vmem:[%s1034_s12 + $0xa0] sm:$0xff]  ;;  %v266_v35 = vld [vmem:[%s1034_s12 + $0xa8] sm:$0xff] }
  0x14   : > { %v251_v36 = vld [vmem:[%s1034_s12 + $0x30] sm:$0xff]  ;;  %v252_v38 = vld [vmem:[%s1034_s12 + $0x38] sm:$0xff]  ;;  %v253_v40 = vld [vmem:[%s1034_s12 + $0x40] sm:$0xff] }
  0x15   : > { %920 = vmatpush3.bf16.msra.mxu0 %v917_v13  ;;  %v267_v37 = vld [vmem:[%s1034_s12 + $0xb0] sm:$0xff]  ;;  %v268_v39 = vld [vmem:[%s1034_s12 + $0xb8] sm:$0xff]  ;;  %v269_v41 = vld [vmem:[%s1034_s12 + $0xc0] sm:$0xff] }
  0x16   : > { %948 = vmatpush3.bf16.msra.mxu1 %v917_v13  ;;  %922 = vmatprep.subr.bf16.mxu0 %v921_v16  ;;  %v254_v42 = vld [vmem:[%s1034_s12 + $0x48] sm:$0xff]  ;;  %v255_v44 = vld [vmem:[%s1034_s12 + $0x50] sm:$0xff]  ;;  %v256_v46 = vld [vmem:[%s1034_s12 + $0x58] sm:$0xff] }
  0x17   : > { %941 = vmatprep.subr.bf16.mxu1 %v921_v16  ;;  %v270_v43 = vld [vmem:[%s1034_s12 + $0xc8] sm:$0xff]  ;;  %v271_v45 = vld [vmem:[%s1034_s12 + $0xd0] sm:$0xff]  ;;  %v272_v47 = vld [vmem:[%s1034_s12 + $0xd8] sm:$0xff] }
  0x18   : > { %v257_v48 = vld [vmem:[%s1034_s12 + $0x60] sm:$0xff]  ;;  %v258_v50 = vld [vmem:[%s1034_s12 + $0x68] sm:$0xff]  ;;  %v259_v52 = vld [vmem:[%s1034_s12 + $0x70] sm:$0xff] }
  0x19   : > { %924 = vmatpush3.bf16.msra.mxu0 %v921_v16  ;;  %v273_v49 = vld [vmem:[%s1034_s12 + $0xe0] sm:$0xff]  ;;  %v274_v51 = vld [vmem:[%s1034_s12 + $0xe8] sm:$0xff]  ;;  %v275_v53 = vld [vmem:[%s1034_s12 + $0xf0] sm:$0xff] }
  0x1a   : > { %949 = vmatpush3.bf16.msra.mxu1 %v921_v16  ;;  %926 = vmatprep.subr.bf16.mxu0 %v925_v19  ;;  %v260_v54 = vld [vmem:[%s1034_s12 + $0x78] sm:$0xff]  ;;  %v519_v56 = vld [vmem:[%s1099_s10 + $0x8] sm:$0xff]  ;;  %v518_v59 = vld [vmem:[%s1099_s10] sm:$0xff] }
  0x1b   : > { %942 = vmatprep.subr.bf16.mxu1 %v925_v19  ;;  %v276_v55 = vld [vmem:[%s1034_s12 + $0xf8] sm:$0xff]  ;;  %v535_v58 = vld [vmem:[%s1099_s10 + $0x88] sm:$0xff]  ;;  %v534_v60 = vld [vmem:[%s1099_s10 + $0x80] sm:$0xff]  ;;  %v558_v61 = vmul.f32 %v1105_v57, %v519_v56  ;;  %v557_v0 = vmul.f32 %v1105_v57, %v518_v59 }
  0x1c   : > { %v574_v62 = vmul.f32 %v1105_v57, %v535_v58  ;;  %v573_v1 = vmul.f32 %v1105_v57, %v534_v60  ;;  %v521_v2 = vld [vmem:[%s1099_s10 + $0x18] sm:$0xff]  ;;  %v520_v4 = vld [vmem:[%s1099_s10 + $0x10] sm:$0xff]  ;;  %v523_v6 = vld [vmem:[%s1099_s10 + $0x28] sm:$0xff] }
  0x1d   : > { %928 = vmatpush3.bf16.msra.mxu0 %v925_v19  ;;  %v537_v3 = vld [vmem:[%s1099_s10 + $0x98] sm:$0xff]  ;;  %v536_v5 = vld [vmem:[%s1099_s10 + $0x90] sm:$0xff]  ;;  %v597_v7 = vadd.f32 %v1115_v63, %v558_v61  ;;  %v560_v9 = vmul.f32 %v1105_v57, %v521_v2  ;;  %v539_v11 = vld [vmem:[%s1099_s10 + $0xa8] sm:$0xff]  ;;  %v596_v14 = vadd.f32 %v1115_v63, %v557_v0  ;;  %v559_v16 = vmul.f32 %v1105_v57, %v520_v4 }
  0x1e   : > { %950 = vmatpush3.bf16.msra.mxu1 %v925_v19  ;;  %930 = vmatprep.subr.bf16.mxu0 %v929_v22  ;;  %v613_v8 = vadd.f32 %v1115_v63, %v574_v62  ;;  %v576_v10 = vmul.f32 %v1105_v57, %v537_v3  ;;  %v522_v12 = vld [vmem:[%s1099_s10 + $0x20] sm:$0xff]  ;;  %v612_v15 = vadd.f32 %v1115_v63, %v573_v1 }
  0x1f   : > { %943 = vmatprep.subr.bf16.mxu1 %v929_v22  ;;  %v538_v13 = vld [vmem:[%s1099_s10 + $0xa0] sm:$0xff]  ;;  %v575_v17 = vmul.f32 %v1105_v57, %v536_v5  ;;  %v562_v20 = vmul.f32 %v1105_v57, %v523_v6  ;;  %v578_v21 = vmul.f32 %v1105_v57, %v539_v11 }
  0x20   : > { %v577_v23 = vmul.f32 %v1105_v57, %v538_v13  ;;  %v545_v13 = vld [vmem:[%s1099_s10 + $0xd8] sm:$0xff] }
  0x21   : > { %932 = vmatpush3.bf16.msra.mxu0 %v929_v22 }
  0x22   : > { %951 = vmatpush3.bf16.msra.mxu1 %v929_v22  ;;  %934 = vmatprep.subr.bf16.mxu0 %v933_v25  ;;  %v561_v22 = vmul.f32 %v1105_v57, %v522_v12  ;;  %v529_v12 = vld [vmem:[%s1099_s10 + $0x58] sm:$0xff] }
  0x23   : > { %944 = vmatprep.subr.bf16.mxu1 %v933_v25 }
  0x25   : > { %936 = vmatpush3.bf16.msra.mxu0 %v933_v25 }
  0x26   : > { %952 = vmatpush3.bf16.msra.mxu1 %v933_v25 }
  0x28   : > { %858 = vmatmul.mubr.f32.vlgmr.msra.gmra.mrb[0].mxu0 %v246_v26 }
  0x29   : > { %882 = vmatmul.mubr.f32.vlgmr.msra.gmra.mrb[0].mxu1 %v262_v27  ;;  %860 = vmatprep.mubr.f32.mxu0 %v247_v28  ;;  %v599_v28 = vadd.f32 %v1115_v63, %v560_v9 }
  0x2a   : > { %884 = vmatprep.mubr.f32.mxu1 %v263_v29  ;;  %v615_v29 = vadd.f32 %v1115_v63, %v576_v10 }
  0x2c   : > { %861 = vmatmul.mubr.f32.gmra.mrb[2].mxu0 %v248_v30 }
  0x2d   : > { %885 = vmatmul.mubr.f32.gmra.mrb[2].mxu1 %v264_v31  ;;  %863 = vmatprep.mubr.f32.mxu0 %v249_v32  ;;  %v598_v32 = vadd.f32 %v1115_v63, %v559_v16 }
  0x2e   : > { %887 = vmatprep.mubr.f32.mxu1 %v265_v33  ;;  %v614_v33 = vadd.f32 %v1115_v63, %v575_v17 }
  0x30   : > { %864 = vmatmul.mubr.f32.gmra.mrb[4].mxu0 %v250_v34  ;;  %v525_v34 = vld [vmem:[%s1099_s10 + $0x38] sm:$0xff] }
  0x31   : > { %888 = vmatmul.mubr.f32.gmra.mrb[4].mxu1 %v266_v35  ;;  %866 = vmatprep.mubr.f32.mxu0 %v251_v36  ;;  %v541_v35 = vld [vmem:[%s1099_s10 + $0xb8] sm:$0xff]  ;;  %v524_v36 = vld [vmem:[%s1099_s10 + $0x30] sm:$0xff] }
  0x32   : > { %890 = vmatprep.mubr.f32.mxu1 %v267_v37  ;;  %v540_v37 = vld [vmem:[%s1099_s10 + $0xb0] sm:$0xff]  ;;  %v563_v56 = vmul.f32 %v1105_v57, %v524_v36 }
  0x33   : > { %v579_v58 = vmul.f32 %v1105_v57, %v540_v37 }
  0x34   : > { %867 = vmatmul.mubr.f32.gmra.mrb[6].mxu0 %v252_v38  ;;  %v602_v10 = vadd.f32 %v1115_v63, %v563_v56 }
  0x35   : > { %891 = vmatmul.mubr.f32.gmra.mrb[6].mxu1 %v268_v39  ;;  %869 = vmatprep.mubr.f32.mxu0 %v253_v40  ;;  %v601_v40 = vadd.f32 %v1115_v63, %v562_v20  ;;  %v618_v11 = vadd.f32 %v1115_v63, %v579_v58 }
  0x36   : > { %893 = vmatprep.mubr.f32.mxu1 %v269_v41  ;;  %v617_v41 = vadd.f32 %v1115_v63, %v578_v21 }
  0x38   : > { %870 = vmatmul.mubr.f32.gmra.mrb[8].mxu0 %v254_v42  ;;  %v600_v42 = vadd.f32 %v1115_v63, %v561_v22  ;;  %v531_v22 = vld [vmem:[%s1099_s10 + $0x68] sm:$0xff] }
  0x39   : > { %894 = vmatmul.mubr.f32.gmra.mrb[8].mxu1 %v270_v43  ;;  %872 = vmatprep.mubr.f32.mxu0 %v255_v44  ;;  %v616_v43 = vadd.f32 %v1115_v63, %v577_v23  ;;  %v527_v44 = vld [vmem:[%s1099_s10 + $0x48] sm:$0xff] }
  0x3a   : > { %896 = vmatprep.mubr.f32.mxu1 %v271_v45  ;;  %v566_v61 = vmul.f32 %v1105_v57, %v527_v44 }
  0x3c   : > { %873 = vmatmul.mubr.f32.gmra.mrb[10].mxu0 %v256_v46 }
  0x3d   : > { %897 = vmatmul.mubr.f32.gmra.mrb[10].mxu1 %v272_v47  ;;  %875 = vmatprep.mubr.f32.mxu0 %v257_v48 }
  0x3e   : > { %899 = vmatprep.mubr.f32.mxu1 %v273_v49  ;;  %v564_v49 = vmul.f32 %v1105_v57, %v525_v34 }
  0x40   : > { %876 = vmatmul.mubr.f32.gmra.mrb[12].mxu0 %v258_v50  ;;  %v580_v50 = vmul.f32 %v1105_v57, %v541_v35  ;;  %v603_v6 = vadd.f32 %v1115_v63, %v564_v49 }
  0x41   : > { %900 = vmatmul.mubr.f32.gmra.mrb[12].mxu1 %v274_v51  ;;  %878 = vmatprep.mubr.f32.mxu0 %v259_v52  ;;  %v543_v51 = vld [vmem:[%s1099_s10 + $0xc8] sm:$0xff]  ;;  %v526_v52 = vld [vmem:[%s1099_s10 + $0x40] sm:$0xff] }
  0x42   : > { %902 = vmatprep.mubr.f32.mxu1 %v275_v53  ;;  %v542_v53 = vld [vmem:[%s1099_s10 + $0xc0] sm:$0xff]  ;;  %v582_v62 = vmul.f32 %v1105_v57, %v543_v51  ;;  %v565_v0 = vmul.f32 %v1105_v57, %v526_v52  ;;  %v533_v52 = vld [vmem:[%s1099_s10 + $0x78] sm:$0xff] }
  0x43   : > { %v581_v1 = vmul.f32 %v1105_v57, %v542_v53  ;;  %v549_v53 = vld [vmem:[%s1099_s10 + $0xf8] sm:$0xff] }
  0x44   : > { %879 = vmatmul.mubr.f32.gmra.mrb[14].mxu0 %v260_v54  ;;  %v604_v20 = vadd.f32 %v1115_v63, %v565_v0 }
  0x45   : > { %903 = vmatmul.mubr.f32.gmra.mrb[14].mxu1 %v276_v55  ;;  %v620_v21 = vadd.f32 %v1115_v63, %v581_v1 }
  0xfb   : > { %v859_v18 = vpop.f32.mrb[0].mxu0 }
  0xfc   : > { %v883_v19 = vpop.f32.mrb[0].mxu1  ;;  %v629_v24 = vadd.f32 %v859_v18, %v597_v7  ;;  %v359_v26 = vpop.f32.mrb[1].mxu0  ;;  %v619_v7 = vadd.f32 %v1115_v63, %v580_v50  ;;  %v605_v18 = vadd.f32 %v1115_v63, %v566_v61 }
  0xfd   : > { %v645_v25 = vadd.f32 %v883_v19, %v613_v8  ;;  %v439_v27 = vpop.f32.mrb[1].mxu1  ;;  %v628_v30 = vadd.f32 %v596_v14, %v359_v26  ;;  %v528_v14 = vld [vmem:[%s1099_s10 + $0x50] sm:$0xff]  ;;  %v621_v19 = vadd.f32 %v1115_v63, %v582_v62 }
  0xfe   : > { %v644_v31 = vadd.f32 %v612_v15, %v439_v27  ;;  %661 = vst [vmem:[%s1139_s17 + $0x8] sm:$0xff] %v629_v24  ;;  %v544_v15 = vld [vmem:[%s1099_s10 + $0xd0] sm:$0xff]  ;;  %v568_v27 = vmul.f32 %v1105_v57, %v529_v12  ;;  %v567_v34 = vmul.f32 %v1105_v57, %v528_v14 }
  0xff   : > { %677 = vst [vmem:[%s1139_s17 + $0x88] sm:$0xff] %v645_v25  ;;  %660 = vst [vmem:[%s1139_s17] sm:$0xff] %v628_v30  ;;  %v862_v38 = vpop.f32.mrb[2].mxu0  ;;  %v530_v30 = vld [vmem:[%s1099_s10 + $0x60] sm:$0xff]  ;;  %v583_v35 = vmul.f32 %v1105_v57, %v544_v15 }
 0x100   : > { %676 = vst [vmem:[%s1139_s17 + $0x80] sm:$0xff] %v644_v31  ;;  %v886_v39 = vpop.f32.mrb[2].mxu1  ;;  %v631_v45 = vadd.f32 %v862_v38, %v599_v28  ;;  %v369_v47 = vpop.f32.mrb[3].mxu0  ;;  %v584_v28 = vmul.f32 %v1105_v57, %v545_v13  ;;  %v546_v31 = vld [vmem:[%s1099_s10 + $0xe0] sm:$0xff]  ;;  %v570_v38 = vmul.f32 %v1105_v57, %v531_v22  ;;  %v606_v50 = vadd.f32 %v1115_v63, %v567_v34 }
 0x101   : > { %v647_v46 = vadd.f32 %v886_v39, %v615_v29  ;;  %v449_v48 = vpop.f32.mrb[3].mxu1  ;;  %v630_v54 = vadd.f32 %v598_v32, %v369_v47  ;;  %v547_v29 = vld [vmem:[%s1099_s10 + $0xe8] sm:$0xff]  ;;  %v622_v51 = vadd.f32 %v1115_v63, %v583_v35 }
 0x102   : > { %v646_v55 = vadd.f32 %v614_v33, %v449_v48  ;;  %663 = vst [vmem:[%s1139_s17 + $0x18] sm:$0xff] %v631_v45  ;;  %v586_v39 = vmul.f32 %v1105_v57, %v547_v29  ;;  %v623_v47 = vadd.f32 %v1115_v63, %v584_v28 }
 0x103   : > { %679 = vst [vmem:[%s1139_s17 + $0x98] sm:$0xff] %v647_v46  ;;  %662 = vst [vmem:[%s1139_s17 + $0x10] sm:$0xff] %v630_v54  ;;  %v865_v59 = vpop.f32.mrb[4].mxu0  ;;  %v607_v46 = vadd.f32 %v1115_v63, %v568_v27  ;;  %v532_v54 = vld [vmem:[%s1099_s10 + $0x70] sm:$0xff] }
 0x104   : > { %678 = vst [vmem:[%s1139_s17 + $0x90] sm:$0xff] %v646_v55  ;;  %v889_v60 = vpop.f32.mrb[4].mxu1  ;;  %v633_v2 = vadd.f32 %v865_v59, %v601_v40  ;;  %v379_v4 = vpop.f32.mrb[5].mxu0  ;;  %v569_v40 = vmul.f32 %v1105_v57, %v530_v30  ;;  %v548_v55 = vld [vmem:[%s1099_s10 + $0xf0] sm:$0xff]  ;;  %v609_v59 = vadd.f32 %v1115_v63, %v570_v38 }
 0x105   : > { %v649_v3 = vadd.f32 %v889_v60, %v617_v41  ;;  %v459_v5 = vpop.f32.mrb[5].mxu1  ;;  %v632_v8 = vadd.f32 %v600_v42, %v379_v4  ;;  %v585_v41 = vmul.f32 %v1105_v57, %v546_v31  ;;  %v625_v60 = vadd.f32 %v1115_v63, %v586_v39 }
 0x106   : > { %v648_v9 = vadd.f32 %v616_v43, %v459_v5  ;;  %665 = vst [vmem:[%s1139_s17 + $0x28] sm:$0xff] %v633_v2  ;;  %v608_v61 = vadd.f32 %v1115_v63, %v569_v40  ;;  %v572_v4 = vmul.f32 %v1105_v57, %v533_v52  ;;  %v588_v5 = vmul.f32 %v1105_v57, %v549_v53 }
 0x107   : > { %681 = vst [vmem:[%s1139_s17 + $0xa8] sm:$0xff] %v649_v3  ;;  %664 = vst [vmem:[%s1139_s17 + $0x20] sm:$0xff] %v632_v8  ;;  %v868_v16 = vpop.f32.mrb[6].mxu0  ;;  %v624_v62 = vadd.f32 %v1115_v63, %v585_v41  ;;  %v571_v8 = vmul.f32 %v1105_v57, %v532_v54 }
 0x108   : > { %680 = vst [vmem:[%s1139_s17 + $0xa0] sm:$0xff] %v648_v9  ;;  %v892_v17 = vpop.f32.mrb[6].mxu1  ;;  %v635_v23 = vadd.f32 %v868_v16, %v603_v6  ;;  %v389_v25 = vpop.f32.mrb[7].mxu0  ;;  %v587_v9 = vmul.f32 %v1105_v57, %v548_v55  ;;  %v611_v16 = vadd.f32 %v1115_v63, %v572_v4 }
 0x109   : > { %v651_v24 = vadd.f32 %v892_v17, %v619_v7  ;;  %v469_v26 = vpop.f32.mrb[7].mxu1  ;;  %v634_v32 = vadd.f32 %v602_v10, %v389_v25  ;;  %v627_v17 = vadd.f32 %v1115_v63, %v588_v5 }
 0x10a   : > { %v650_v33 = vadd.f32 %v618_v11, %v469_v26  ;;  %667 = vst [vmem:[%s1139_s17 + $0x38] sm:$0xff] %v635_v23 }
 0x10b   : > { %683 = vst [vmem:[%s1139_s17 + $0xb8] sm:$0xff] %v651_v24  ;;  %666 = vst [vmem:[%s1139_s17 + $0x30] sm:$0xff] %v634_v32  ;;  %v871_v36 = vpop.f32.mrb[8].mxu0 }
 0x10c   : > { %682 = vst [vmem:[%s1139_s17 + $0xb0] sm:$0xff] %v650_v33  ;;  %v895_v37 = vpop.f32.mrb[8].mxu1  ;;  %v637_v42 = vadd.f32 %v871_v36, %v605_v18  ;;  %v399_v44 = vpop.f32.mrb[9].mxu0 }
 0x10d   : > { %v653_v43 = vadd.f32 %v895_v37, %v621_v19  ;;  %v479_v45 = vpop.f32.mrb[9].mxu1  ;;  %v636_v48 = vadd.f32 %v604_v20, %v399_v44  ;;  %v610_v19 = vadd.f32 %v1115_v63, %v571_v8  ;;  %v626_v20 = vadd.f32 %v1115_v63, %v587_v9 }
 0x10e   : > { %v652_v49 = vadd.f32 %v620_v21, %v479_v45  ;;  %669 = vst [vmem:[%s1139_s17 + $0x48] sm:$0xff] %v637_v42 }
 0x10f   : > { %685 = vst [vmem:[%s1139_s17 + $0xc8] sm:$0xff] %v653_v43  ;;  %668 = vst [vmem:[%s1139_s17 + $0x40] sm:$0xff] %v636_v48  ;;  %v874_v56 = vpop.f32.mrb[10].mxu0 }
 0x110   : > { %684 = vst [vmem:[%s1139_s17 + $0xc0] sm:$0xff] %v652_v49  ;;  %v898_v58 = vpop.f32.mrb[10].mxu1  ;;  %v639_v0 = vadd.f32 %v874_v56, %v607_v46  ;;  %v409_v2 = vpop.f32.mrb[11].mxu0 }
 0x111   : > { %v655_v1 = vadd.f32 %v898_v58, %v623_v47  ;;  %v489_v3 = vpop.f32.mrb[11].mxu1  ;;  %v638_v6 = vadd.f32 %v606_v50, %v409_v2 }
 0x112   : > { %v654_v7 = vadd.f32 %v622_v51, %v489_v3  ;;  %671 = vst [vmem:[%s1139_s17 + $0x58] sm:$0xff] %v639_v0 }
 0x113   : > { %687 = vst [vmem:[%s1139_s17 + $0xd8] sm:$0xff] %v655_v1  ;;  %670 = vst [vmem:[%s1139_s17 + $0x50] sm:$0xff] %v638_v6  ;;  %v877_v10 = vpop.f32.mrb[12].mxu0 }
 0x114   : > { %686 = vst [vmem:[%s1139_s17 + $0xd0] sm:$0xff] %v654_v7  ;;  %v901_v11 = vpop.f32.mrb[12].mxu1  ;;  %v641_v12 = vadd.f32 %v877_v10, %v609_v59  ;;  %v419_v14 = vpop.f32.mrb[13].mxu0 }
 0x115   : > { %v657_v13 = vadd.f32 %v901_v11, %v625_v60  ;;  %v499_v15 = vpop.f32.mrb[13].mxu1  ;;  %v640_v18 = vadd.f32 %v608_v61, %v419_v14 }
 0x116   : > { %v656_v57 = vadd.f32 %v624_v62, %v499_v15  ;;  %673 = vst [vmem:[%s1139_s17 + $0x68] sm:$0xff] %v641_v12 }
 0x117   : > { %689 = vst [vmem:[%s1139_s17 + $0xe8] sm:$0xff] %v657_v13  ;;  %672 = vst [vmem:[%s1139_s17 + $0x60] sm:$0xff] %v640_v18  ;;  %v880_v21 = vpop.f32.mrb[14].mxu0 }
 0x118   : > { %688 = vst [vmem:[%s1139_s17 + $0xe0] sm:$0xff] %v656_v57  ;;  %v904_v22 = vpop.f32.mrb[14].mxu1  ;;  %v643_v23 = vadd.f32 %v880_v21, %v611_v16  ;;  %v429_v25 = vpop.f32.mrb[15].mxu0 }
 0x119   : > { %v659_v24 = vadd.f32 %v904_v22, %v627_v17  ;;  %v509_v26 = vpop.f32.mrb[15].mxu1  ;;  %v642_v27 = vadd.f32 %v610_v19, %v429_v25 }
 0x11a   : > { %v658_v28 = vadd.f32 %v626_v20, %v509_v26  ;;  %675 = vst [vmem:[%s1139_s17 + $0x78] sm:$0xff] %v643_v23 }
 0x11b   : > { %691 = vst [vmem:[%s1139_s17 + $0xf8] sm:$0xff] %v659_v24  ;;  %674 = vst [vmem:[%s1139_s17 + $0x70] sm:$0xff] %v642_v27 }
 0x11c   : > { %690 = vst [vmem:[%s1139_s17 + $0xf0] sm:$0xff] %v658_v28 }
 0x11d PF: > { %s15_s18 = sadd.s32 1, %s967_s18  }
 0x11e   : > { %p12_p4 = scmp.ge.s32.totalorder %s15_s18, 4  }
 0x120   :  { %14 = sbr.rel (!%p12_p4) target bundleno = 1 (0x1), region = 73 }

// kernel: resblk_forward.3
= control target key start
LH: loop header
LB: loop body
LE: loop exit
PB: predicated region body
PF: predicated region fallthrough
CT: control target
= control target key end

     0   :  { %s4004_s21 = smov 0   ;;  %s5357_s0 = inlined_call_operand.vmem [shape: f32[2,256,128], index: 0, kind: input, shape index: {}]   ;;  %s5358_s1 = inlined_call_operand.vmem [shape: f32[1152,128], index: 1, kind: input, shape index: {}]   ;;  %s5359_s2 = inlined_call_operand.vmem [shape: f32[1,128], index: 2, kind: input, shape index: {}]   ;;  %s5360_s3 = inlined_call_operand.vmem [shape: f32[128,128], index: 3, kind: input, shape index: {}]   ;;  %s5361_s4 = inlined_call_operand.vmem [shape: f32[2,256,128], index: 4, kind: output, shape index: {0}]   ;;  %s5362_s5 = inlined_call_operand.vmem [shape: f32[2,2,128], index: 5, kind: output, shape index: {1}]   ;;  %s5363_s6 = inlined_call_operand.vmem [shape: f32[2,2,128], index: 6, kind: output, shape index: {2}]  }
   0x1 LB: > { %s3196_s22 = sadd.s32 4294967295, %s3965_s21   ;;  %p3200_p0 = scmp.ge.s32.totalorder %s3965_s21, 1  ;;  %s3965_s21 = sphi %s4004_s21, %s17_s21  }
   0x2   : > { %p217_p1 = scmp.lt.s32.totalorder %s3965_s21, 3 }
   0x4   : > { %p218_p2 = pnand %p3200_p0, %p217_p1 }
   0x5   : > { %v1247_v0 = vld [vmem:[%s5358_s1] sm:$0xff] (!%p218_p2)  ;;  %v1248_v1 = vld [vmem:[%s5358_s1 + $0x8] sm:$0xff] (!%p218_p2)  ;;  %v3967_v3 = vmov (!%p218_p2), 0.0|0.0   ;;  %v1249_v6 = vld [vmem:[%s5358_s1 + $0x10] sm:$0xff] (!%p218_p2)  ;;  %v3968_v8 = vmov (!%p218_p2), 0.0   ;;  %p255_p3 = scmp.lt.s32.totalorder (!%p218_p2), %s3196_s22, 1 }
   0x6   : > { %221 = sbr.rel (%p218_p2) target bundleno = 621 (0x26d), region = 36  ;;  %v1279_v2 = vld [vmem:[%s5358_s1 + $0x100] sm:$0xff] (!%p218_p2)  ;;  %3468 = vmatprep.subr.bf16.mxu1 (!%p218_p2), %v3967_v3  ;;  %3516 = vmatprep.subr.bf16.mxu0 (!%p218_p2), %v3967_v3  ;;  %v3469_v4 = vpack.c.bf16 (!%p218_p2), %v1248_v1, %v1247_v0  ;;  %v1280_v5 = vld [vmem:[%s5358_s1 + $0x108] sm:$0xff] (!%p218_p2)  ;;  %v1250_v7 = vld [vmem:[%s5358_s1 + $0x18] sm:$0xff] (!%p218_p2)  ;;  %273 = vst [vmem:[#allocation2] sm:$0xff] (!%p218_p2), %v3968_v8 }
   0x7   : > { %274 = vst [vmem:[#allocation2 + $0x8] sm:$0xff] (!%p218_p2), %v3968_v8  ;;  %275 = vst [vmem:[#allocation2 + $0x10] sm:$0x3] (!%p218_p2), %v3968_v8  ;;  %v4070_v9 = vpack.c.bf16 (!%p218_p2), %v1280_v5, %v1279_v2  ;;  %v1281_v10 = vld [vmem:[%s5358_s1 + $0x110] sm:$0xff] (!%p218_p2)  ;;  %v1282_v11 = vld [vmem:[%s5358_s1 + $0x118] sm:$0xff] (!%p218_p2)  ;;  %v3472_v12 = vpack.c.bf16 (!%p218_p2), %v1250_v7, %v1249_v6 }
   0x8   : > { %277 = vst [vmem:[#allocation2 + $0x198] sm:$0xff] (!%p218_p2), %v3968_v8  ;;  %278 = vst [vmem:[#allocation2 + $0x1a0] sm:$0xff] (!%p218_p2), %v3968_v8  ;;  %3470 = vmatpush1.bf16.msra.mxu1 (!%p218_p2), %v3469_v4  ;;  %v4084_v13 = vpack.c.bf16 (!%p218_p2), %v1282_v11, %v1281_v10  ;;  %v1251_v14 = vld [vmem:[%s5358_s1 + $0x20] sm:$0xff] (!%p218_p2)  ;;  %v1252_v15 = vld [vmem:[%s5358_s1 + $0x28] sm:$0xff] (!%p218_p2) }
   0x9   : > { %279 = vst [vmem:[#allocation2 + $0x1a8] sm:$0x3] (!%p218_p2), %v3968_v8  ;;  %281 = vst [vmem:[#allocation2 + $0x18] sm:$0x1] (!%p218_p2), %v3968_v8  ;;  %3518 = vmatpush1.bf16.msra.mxu0 (!%p218_p2), %v4070_v9  ;;  %3471 = vmatprep.subr.bf16.mxu1 (!%p218_p2), %v3967_v3  ;;  %v1283_v16 = vld [vmem:[%s5358_s1 + $0x120] sm:$0xff] (!%p218_p2)  ;;  %v1284_v17 = vld [vmem:[%s5358_s1 + $0x128] sm:$0xff] (!%p218_p2)  ;;  %v3475_v18 = vpack.c.bf16 (!%p218_p2), %v1252_v15, %v1251_v14 }
   0xa   : > { %282 = vst [vmem:[#allocation2 + $0x30] sm:$0x1] (!%p218_p2), %v3968_v8  ;;  %283 = vst [vmem:[#allocation2 + $0x48] sm:$0x1] (!%p218_p2), %v3968_v8  ;;  %3519 = vmatprep.subr.bf16.mxu0 (!%p218_p2), %v3967_v3  ;;  %v4103_v19 = vpack.c.bf16 (!%p218_p2), %v1284_v17, %v1283_v16  ;;  %v1253_v20 = vld [vmem:[%s5358_s1 + $0x30] sm:$0xff] (!%p218_p2)  ;;  %v1254_v21 = vld [vmem:[%s5358_s1 + $0x38] sm:$0xff] (!%p218_p2) }
   0xb   : > { %284 = vst [vmem:[#allocation2 + $0x60] sm:$0x1] (!%p218_p2), %v3968_v8  ;;  %285 = vst [vmem:[#allocation2 + $0x78] sm:$0x1] (!%p218_p2), %v3968_v8  ;;  %v1285_v22 = vld [vmem:[%s5358_s1 + $0x130] sm:$0xff] (!%p218_p2)  ;;  %v1286_v23 = vld [vmem:[%s5358_s1 + $0x138] sm:$0xff] (!%p218_p2)  ;;  %v3478_v24 = vpack.c.bf16 (!%p218_p2), %v1254_v21, %v1253_v20 }
   0xc   : > { %286 = vst [vmem:[#allocation2 + $0x90] sm:$0x1] (!%p218_p2), %v3968_v8  ;;  %287 = vst [vmem:[#allocation2 + $0xa8] sm:$0x1] (!%p218_p2), %v3968_v8  ;;  %3473 = vmatpush1.bf16.msra.mxu1 (!%p218_p2), %v3472_v12  ;;  %v4124_v25 = vpack.c.bf16 (!%p218_p2), %v1286_v23, %v1285_v22  ;;  %v1255_v26 = vld [vmem:[%s5358_s1 + $0x40] sm:$0xff] (!%p218_p2)  ;;  %v1256_v27 = vld [vmem:[%s5358_s1 + $0x48] sm:$0xff] (!%p218_p2) }
   0xd   : > { %288 = vst [vmem:[#allocation2 + $0xc0] sm:$0x1] %v3968_v8  ;;  %289 = vst [vmem:[#allocation2 + $0xd8] sm:$0x1] %v3968_v8  ;;  %3521 = vmatpush1.bf16.msra.mxu0 %v4084_v13  ;;  %3474 = vmatprep.subr.bf16.mxu1 %v3967_v3  ;;  %s5365_s22 = smov (!%p255_p3, %s3196_s22), 1  ;;  %v1287_v28 = vld [vmem:[%s5358_s1 + $0x140] sm:$0xff]  ;;  %v3481_v30 = vpack.c.bf16 %v1256_v27, %v1255_v26 }
   0xe   : > { %290 = vst [vmem:[#allocation2 + $0xf0] sm:$0x1] %v3968_v8  ;;  %291 = vst [vmem:[#allocation2 + $0x108] sm:$0x1] %v3968_v8  ;;  %3522 = vmatprep.subr.bf16.mxu0 %v3967_v3  ;;  %v1288_v29 = vld [vmem:[%s5358_s1 + $0x148] sm:$0xff]  ;;  %s3210_s17 = sshll.u32 %s5365_s22, 8 }
   0xf   : > { %292 = vst [vmem:[#allocation2 + $0x120] sm:$0x1] %v3968_v8  ;;  %293 = vst [vmem:[#allocation2 + $0x138] sm:$0x1] %v3968_v8  ;;  %v4142_v31 = vpack.c.bf16 %v1288_v29, %v1287_v28  ;;  %v1257_v32 = vld [vmem:[%s5358_s1 + $0x50] sm:$0xff]  ;;  %v1258_v33 = vld [vmem:[%s5358_s1 + $0x58] sm:$0xff]  ;;  %s4162_s30 = scalar_lea.vmem %s5357_s0, %s3210_s17  ;;  %s5181_s16 = scalar_lea.vmem %s5361_s4, %s3210_s17 }
  0x10   : > { %294 = vst [vmem:[#allocation2 + $0x150] sm:$0x1] %v3968_v8  ;;  %295 = vst [vmem:[#allocation2 + $0x168] sm:$0x1] %v3968_v8  ;;  %3476 = vmatpush1.bf16.msra.mxu1 %v3475_v18  ;;  %v1289_v34 = vld [vmem:[%s5358_s1 + $0x150] sm:$0xff]  ;;  %v1290_v35 = vld [vmem:[%s5358_s1 + $0x158] sm:$0xff]  ;;  %v3484_v36 = vpack.c.bf16 %v1258_v33, %v1257_v32 }
  0x11   : > { %296 = vst [vmem:[#allocation2 + $0x180] sm:$0x1] %v3968_v8  ;;  %299 = vst [vmem:[#allocation2 + $0x29] sm:$0x1] %v3968_v8  ;;  %3524 = vmatpush1.bf16.msra.mxu0 %v4103_v19  ;;  %3477 = vmatprep.subr.bf16.mxu1 %v3967_v3  ;;  %v4166_v37 = vpack.c.bf16 %v1290_v35, %v1289_v34  ;;  %v1259_v38 = vld [vmem:[%s5358_s1 + $0x60] sm:$0xff]  ;;  %v1260_v39 = vld [vmem:[%s5358_s1 + $0x68] sm:$0xff] }
  0x12   : > { %300 = vst [vmem:[#allocation2 + $0x41] sm:$0x1] %v3968_v8  ;;  %301 = vst [vmem:[#allocation2 + $0x59] sm:$0x1] %v3968_v8  ;;  %3525 = vmatprep.subr.bf16.mxu0 %v3967_v3  ;;  %v1291_v40 = vld [vmem:[%s5358_s1 + $0x160] sm:$0xff]  ;;  %v1292_v41 = vld [vmem:[%s5358_s1 + $0x168] sm:$0xff]  ;;  %v3487_v44 = vpack.c.bf16 %v1260_v39, %v1259_v38 }
  0x13   : > { %302 = vst [vmem:[#allocation2 + $0x71] sm:$0x1] %v3968_v8  ;;  %303 = vst [vmem:[#allocation2 + $0x89] sm:$0x1] %v3968_v8  ;;  %v446_v42 = vld [vmem:[#allocation2 + $0x1] sm:$0xff]  ;;  %v4190_v46 = vpack.c.bf16 %v1292_v41, %v1291_v40  ;;  %v1261_v47 = vld [vmem:[%s5358_s1 + $0x70] sm:$0xff] }
  0x14   : > { %304 = vst [vmem:[#allocation2 + $0xa1] sm:$0x1] %v3968_v8  ;;  %305 = vst [vmem:[#allocation2 + $0xb9] sm:$0x1] %v3968_v8  ;;  %3479 = vmatpush1.bf16.msra.mxu1 %v3478_v24  ;;  %v4182_v43 = vld [vmem:[%s4162_s30] sm:$0xff]  ;;  %1455 = vmatprep.mubr.f32.mxu1 %v446_v42  ;;  %v4186_v45 = vld [vmem:[%s4162_s30 + $0x8] sm:$0xff] }
  0x15   : > { %306 = vst [vmem:[#allocation2 + $0xd1] sm:$0x1] %v3968_v8  ;;  %307 = vst [vmem:[#allocation2 + $0xe9] sm:$0x1] %v3968_v8  ;;  %3527 = vmatpush1.bf16.msra.mxu0 %v4124_v25  ;;  %3480 = vmatprep.subr.bf16.mxu1 %v3967_v3  ;;  %v1262_v48 = vld [vmem:[%s5358_s1 + $0x78] sm:$0xff]  ;;  %v1293_v49 = vld [vmem:[%s5358_s1 + $0x170] sm:$0xff] }
  0x16   : > { %308 = vst [vmem:[#allocation2 + $0x101] sm:$0x1] %v3968_v8  ;;  %309 = vst [vmem:[#allocation2 + $0x119] sm:$0x1] %v3968_v8  ;;  %3528 = vmatprep.subr.bf16.mxu0 %v3967_v3  ;;  %v1294_v50 = vld [vmem:[%s5358_s1 + $0x178] sm:$0xff]  ;;  %v4207_v51 = vld [vmem:[%s4162_s30 + $0x10] sm:$0xff]  ;;  %v3490_v53 = vpack.c.bf16 %v1262_v48, %v1261_v47 }
  0x17   : > { %310 = vst [vmem:[#allocation2 + $0x131] sm:$0x1] %v3968_v8  ;;  %311 = vst [vmem:[#allocation2 + $0x149] sm:$0x1] %v3968_v8  ;;  %v4211_v52 = vld [vmem:[%s4162_s30 + $0x18] sm:$0xff]  ;;  %v1263_v54 = vld [vmem:[%s5358_s1 + $0x80] sm:$0xff]  ;;  %v4222_v56 = vpack.c.bf16 %v1294_v50, %v1293_v49 }
  0x18   : > { %312 = vst [vmem:[#allocation2 + $0x161] sm:$0x1] %v3968_v8  ;;  %313 = vst [vmem:[#allocation2 + $0x179] sm:$0x1] %v3968_v8  ;;  %3482 = vmatpush1.bf16.msra.mxu1 %v3481_v30  ;;  %v4218_v55 = vld [vmem:[%s4162_s30 + $0x20] sm:$0xff]  ;;  %v1264_v57 = vld [vmem:[%s5358_s1 + $0x88] sm:$0xff] }
  0x19   : > { %314 = vst [vmem:[#allocation2 + $0x191] sm:$0x1] %v3968_v8  ;;  %280 = vst [vmem:[#allocation2] sm:$0x1] %v3968_v8  ;;  %3530 = vmatpush1.bf16.msra.mxu0 %v4142_v31  ;;  %3483 = vmatprep.subr.bf16.mxu1 %v3967_v3  ;;  %v1295_v58 = vld [vmem:[%s5358_s1 + $0x180] sm:$0xff]  ;;  %v4232_v59 = vld [vmem:[%s4162_s30 + $0x28] sm:$0xff]  ;;  %v3493_v0 = vpack.c.bf16 %v1264_v57, %v1263_v54 }
  0x1a   : > { %297 = vst [vmem:[#allocation2 + $0x198] sm:$0x1] %v3968_v8  ;;  %298 = vst [vmem:[#allocation2 + $0x11] sm:$0x1] %v3968_v8  ;;  %3531 = vmatprep.subr.bf16.mxu0 %v3967_v3  ;;  %v1296_v60 = vld [vmem:[%s5358_s1 + $0x188] sm:$0xff]  ;;  %v4242_v62 = vld [vmem:[%s4162_s30 + $0x30] sm:$0xff] }
  0x1b   : > { %315 = vst [vmem:[#allocation2 + $0x1a9] sm:$0x1] %v3968_v8  ;;  %349 = vst [vmem:[#allocation2 + $0x19] sm:$0xff] %v4182_v43  ;;  %v4247_v63 = vld [vmem:[%s4162_s30 + $0x38] sm:$0xff]  ;;  %v4252_v1 = vpack.c.bf16 %v1296_v60, %v1295_v58  ;;  %v1265_v2 = vld [vmem:[%s5358_s1 + $0x90] sm:$0xff]  ;;  %s3205_s17 = sshll.u32 %s5365_s22, 1 }
  0x1c   : > { %3485 = vmatpush1.bf16.msra.mxu1 %v3484_v36  ;;  %350 = vst [vmem:[#allocation2 + $0x21] sm:$0xff] %v4186_v45  ;;  %351 = vst [vmem:[#allocation2 + $0x31] sm:$0xff] %v4207_v51  ;;  %v1266_v4 = vld [vmem:[%s5358_s1 + $0x98] sm:$0xff]  ;;  %v4261_v5 = vld [vmem:[%s4162_s30 + $0x40] sm:$0xff]  ;;  %s272_s20 = scalar_lea.vmem %s5363_s6, %s3205_s17  ;;  %s268_s25 = scalar_lea.vmem %s5362_s5, %s3205_s17 }
  0x1d   : > { %3533 = vmatpush1.bf16.msra.mxu0 %v4166_v37  ;;  %3486 = vmatprep.subr.bf16.mxu1 %v3967_v3  ;;  %352 = vst [vmem:[#allocation2 + $0x39] sm:$0xff] %v4211_v52  ;;  %353 = vst [vmem:[#allocation2 + $0x49] sm:$0xff] %v4218_v55  ;;  %v1297_v6 = vld [vmem:[%s5358_s1 + $0x190] sm:$0xff]  ;;  %v1298_v7 = vld [vmem:[%s5358_s1 + $0x198] sm:$0xff]  ;;  %v3496_v11 = vpack.c.bf16 %v1266_v4, %v1265_v2 }
  0x1e   : > { %3534 = vmatprep.subr.bf16.mxu0 %v3967_v3  ;;  %354 = vst [vmem:[#allocation2 + $0x51] sm:$0xff] %v4232_v59  ;;  %355 = vst [vmem:[#allocation2 + $0x61] sm:$0xff] %v4242_v62  ;;  %v4272_v10 = vld [vmem:[%s4162_s30 + $0x48] sm:$0xff]  ;;  %v4277_v12 = vpack.c.bf16 %v1298_v7, %v1297_v6  ;;  %v1267_v14 = vld [vmem:[%s5358_s1 + $0xa0] sm:$0xff] }
  0x1f   : > { %356 = vst [vmem:[#allocation2 + $0x69] sm:$0xff] %v4247_v63  ;;  %357 = vst [vmem:[#allocation2 + $0x79] sm:$0xff] %v4261_v5  ;;  %v1268_v15 = vld [vmem:[%s5358_s1 + $0xa8] sm:$0xff]  ;;  %v1299_v16 = vld [vmem:[%s5358_s1 + $0x1a0] sm:$0xff] }
  0x20   : > { %3488 = vmatpush1.bf16.msra.mxu1 %v3487_v44  ;;  %358 = vst [vmem:[#allocation2 + $0x81] sm:$0xff] %v4272_v10  ;;  %v1300_v17 = vld [vmem:[%s5358_s1 + $0x1a8] sm:$0xff]  ;;  %v4293_v18 = vld [vmem:[%s4162_s30 + $0x50] sm:$0xff]  ;;  %v3499_v20 = vpack.c.bf16 %v1268_v15, %v1267_v14  ;;  %v4297_v21 = vld [vmem:[%s4162_s30 + $0x58] sm:$0xff] }
  0x21   : > { %3536 = vmatpush1.bf16.msra.mxu0 %v4190_v46  ;;  %3489 = vmatprep.subr.bf16.mxu1 %v3967_v3  ;;  %359 = vst [vmem:[#allocation2 + $0x91] sm:$0xff] %v4293_v18  ;;  %v4301_v22 = vpack.c.bf16 %v1300_v17, %v1299_v16  ;;  %v1269_v23 = vld [vmem:[%s5358_s1 + $0xb0] sm:$0xff]  ;;  %v1270_v24 = vld [vmem:[%s5358_s1 + $0xb8] sm:$0xff]  ;;  %360 = vst [vmem:[#allocation2 + $0x99] sm:$0xff] %v4297_v21 }
  0x22   : > { %3537 = vmatprep.subr.bf16.mxu0 %v3967_v3  ;;  %v4238_v61 = vld [vmem:[#allocation2 + $0x18] sm:$0xff]  ;;  %v4311_v26 = vld [vmem:[%s4162_s30 + $0x60] sm:$0xff]  ;;  %v1301_v27 = vld [vmem:[%s5358_s1 + $0x1b0] sm:$0xff]  ;;  %v3502_v30 = vpack.c.bf16 %v1270_v24, %v1269_v23 }
  0x23   : > { %1680 = vmatprep.mubr.f32.mxu0 %v4238_v61  ;;  %v1302_v28 = vld [vmem:[%s5358_s1 + $0x1b8] sm:$0xff]  ;;  %361 = vst [vmem:[#allocation2 + $0xa9] sm:$0xff] %v4311_v26  ;;  %v4322_v29 = vld [vmem:[%s4162_s30 + $0x68] sm:$0xff]  ;;  %v4326_v32 = vld [vmem:[%s4162_s30 + $0x70] sm:$0xff] }
  0x24   : > { %3491 = vmatpush1.bf16.msra.mxu1 %v3490_v53  ;;  %362 = vst [vmem:[#allocation2 + $0xb1] sm:$0xff] %v4322_v29  ;;  %v4330_v33 = vpack.c.bf16 %v1302_v28, %v1301_v27  ;;  %v1271_v34 = vld [vmem:[%s5358_s1 + $0xc0] sm:$0xff]  ;;  %v1272_v35 = vld [vmem:[%s5358_s1 + $0xc8] sm:$0xff]  ;;  %363 = vst [vmem:[#allocation2 + $0xc1] sm:$0xff] %v4326_v32 }
  0x25   : > { %3539 = vmatpush1.bf16.msra.mxu0 %v4222_v56  ;;  %3492 = vmatprep.subr.bf16.mxu1 %v3967_v3  ;;  %v4340_v36 = vld [vmem:[%s4162_s30 + $0x78] sm:$0xff]  ;;  %v1303_v38 = vld [vmem:[%s5358_s1 + $0x1c0] sm:$0xff]  ;;  %v1304_v39 = vld [vmem:[%s5358_s1 + $0x1c8] sm:$0xff]  ;;  %v3505_v41 = vpack.c.bf16 %v1272_v35, %v1271_v34 }
  0x26   : > { %3540 = vmatprep.subr.bf16.mxu0 %v3967_v3  ;;  %364 = vst [vmem:[#allocation2 + $0xc9] sm:$0xff] %v4340_v36  ;;  %v4351_v40 = vld [vmem:[%s4162_s30 + $0x80] sm:$0xff]  ;;  %v4356_v42 = vpack.c.bf16 %v1304_v39, %v1303_v38  ;;  %v1273_v44 = vld [vmem:[%s5358_s1 + $0xd0] sm:$0xff]  ;;  %v1274_v47 = vld [vmem:[%s5358_s1 + $0xd8] sm:$0xff] }
  0x27   : > { %365 = vst [vmem:[#allocation2 + $0xd9] sm:$0xff] %v4351_v40  ;;  %v1305_v48 = vld [vmem:[%s5358_s1 + $0x1d0] sm:$0xff]  ;;  %v1306_v49 = vld [vmem:[%s5358_s1 + $0x1d8] sm:$0xff]  ;;  %v4372_v50 = vld [vmem:[%s4162_s30 + $0x88] sm:$0xff]  ;;  %v3508_v54 = vpack.c.bf16 %v1274_v47, %v1273_v44 }
  0x28   : > { %3494 = vmatpush1.bf16.msra.mxu1 %v3493_v0  ;;  %v4375_v53 = vld [vmem:[%s4162_s30 + $0x90] sm:$0xff]  ;;  %366 = vst [vmem:[#allocation2 + $0xe1] sm:$0xff] %v4372_v50  ;;  %v1275_v57 = vld [vmem:[%s5358_s1 + $0xe0] sm:$0xff]  ;;  %v4383_v58 = vld [vmem:[%s4162_s30 + $0x98] sm:$0xff]  ;;  %v4387_v60 = vpack.c.bf16 %v1306_v49, %v1305_v48 }
  0x29   : > { %3542 = vmatpush1.bf16.msra.mxu0 %v4252_v1  ;;  %3495 = vmatprep.subr.bf16.mxu1 %v3967_v3  ;;  %367 = vst [vmem:[#allocation2 + $0xf1] sm:$0xff] %v4375_v53  ;;  %v1276_v0 = vld [vmem:[%s5358_s1 + $0xe8] sm:$0xff]  ;;  %v1307_v2 = vld [vmem:[%s5358_s1 + $0x1e0] sm:$0xff]  ;;  %368 = vst [vmem:[#allocation2 + $0xf9] sm:$0xff] %v4383_v58 }
  0x2a   : > { %3543 = vmatprep.subr.bf16.mxu0 %v3967_v3  ;;  %v4397_v4 = vld [vmem:[%s4162_s30 + $0xa0] sm:$0xff]  ;;  %v1308_v6 = vld [vmem:[%s5358_s1 + $0x1e8] sm:$0xff]  ;;  %v3511_v14 = vpack.c.bf16 %v1276_v0, %v1275_v57  ;;  %v1277_v15 = vld [vmem:[%s5358_s1 + $0xf0] sm:$0xff] }
  0x2b   : > { %369 = vst [vmem:[#allocation2 + $0x109] sm:$0xff] %v4397_v4  ;;  %v4405_v7 = vld [vmem:[%s4162_s30 + $0xa8] sm:$0xff]  ;;  %v4416_v16 = vld [vmem:[%s4162_s30 + $0xb8] sm:$0xff]  ;;  %v4419_v17 = vld [vmem:[%s4162_s30 + $0xc0] sm:$0xff] }
  0x2c   : > { %3497 = vmatpush1.bf16.msra.mxu1 %v3496_v11  ;;  %v4408_v11 = vld [vmem:[%s4162_s30 + $0xb0] sm:$0xff]  ;;  %370 = vst [vmem:[#allocation2 + $0x111] sm:$0xff] %v4405_v7  ;;  %v1278_v23 = vld [vmem:[%s5358_s1 + $0xf8] sm:$0xff]  ;;  %372 = vst [vmem:[#allocation2 + $0x129] sm:$0xff] %v4416_v16 }
  0x2d   : > { %3545 = vmatpush1.bf16.msra.mxu0 %v4277_v12  ;;  %3498 = vmatprep.subr.bf16.mxu1 %v3967_v3  ;;  %371 = vst [vmem:[#allocation2 + $0x121] sm:$0xff] %v4408_v11  ;;  %373 = vst [vmem:[#allocation2 + $0x139] sm:$0xff] %v4419_v17  ;;  %v4431_v24 = vld [vmem:[%s4162_s30 + $0xc8] sm:$0xff]  ;;  %v4434_v27 = vld [vmem:[%s4162_s30 + $0xd0] sm:$0xff]  ;;  %v3514_v38 = vpack.c.bf16 %v1278_v23, %v1277_v15 }
  0x2e   : > { %3546 = vmatprep.subr.bf16.mxu0 %v3967_v3  ;;  %v1309_v28 = vld [vmem:[%s5358_s1 + $0x1f0] sm:$0xff]  ;;  %374 = vst [vmem:[#allocation2 + $0x141] sm:$0xff] %v4431_v24  ;;  %375 = vst [vmem:[#allocation2 + $0x151] sm:$0xff] %v4434_v27  ;;  %v4446_v34 = vld [vmem:[%s4162_s30 + $0xd8] sm:$0xff] }
  0x2f   : > { %v4449_v35 = vld [vmem:[%s4162_s30 + $0xe0] sm:$0xff]  ;;  %376 = vst [vmem:[#allocation2 + $0x159] sm:$0xff] %v4446_v34  ;;  %v1312_v47 = vld [vmem:[%s5358_s1 + $0x208] sm:$0xff]  ;;  %v1313_v0 = vld [vmem:[%s5358_s1 + $0x210] sm:$0xff] }
  0x30   : > { %3500 = vmatpush1.bf16.msra.mxu1 %v3499_v20  ;;  %v4423_v20 = vpack.c.bf16 %v1308_v6, %v1307_v2  ;;  %377 = vst [vmem:[#allocation2 + $0x169] sm:$0xff] %v4449_v35  ;;  %v1311_v44 = vld [vmem:[%s5358_s1 + $0x200] sm:$0xff]  ;;  %v447_v57 = vld [vmem:[#allocation2 + $0x9] sm:$0xff]  ;;  %v1314_v2 = vld [vmem:[%s5358_s1 + $0x218] sm:$0xff] }
  0x31   : > { %3548 = vmatpush1.bf16.msra.mxu0 %v4301_v22  ;;  %3501 = vmatprep.subr.bf16.mxu1 %v3967_v3  ;;  %v382_v48 = vld [vmem:[#allocation2] sm:$0xff]  ;;  %v3568_v15 = vpack.c.bf16 %v1314_v2, %v1313_v0  ;;  %v576_v23 = vld [vmem:[#allocation2 + $0x30] sm:$0xff] }
  0x32   : > { %3549 = vmatprep.subr.bf16.mxu0 %v3967_v3  ;;  %v510_v49 = vld [vmem:[#allocation2 + $0x2] sm:$0xff]  ;;  %v579_v2 = vld [vmem:[#allocation2 + $0x50] sm:$0xff] }
  0x33   : > { %v575_v6 = vld [vmem:[#allocation2 + $0x20] sm:$0xff] }
  0x34   : > { %3503 = vmatpush1.bf16.msra.mxu1 %v3502_v30  ;;  %v1310_v30 = vld [vmem:[%s5358_s1 + $0x1f8] sm:$0xff] }
  0x35   : > { %3551 = vmatpush1.bf16.msra.mxu0 %v4330_v33  ;;  %3504 = vmatprep.subr.bf16.mxu1 %v3967_v3  ;;  %v4455_v39 = vpack.c.bf16 %v1310_v30, %v1309_v28  ;;  %v1315_v28 = vld [vmem:[%s5358_s1 + $0x220] sm:$0xff]  ;;  %v1316_v30 = vld [vmem:[%s5358_s1 + $0x228] sm:$0xff] }
  0x36   : > { %3552 = vmatprep.subr.bf16.mxu0 %v3967_v3 }
  0x38   : > { %3506 = vmatpush1.bf16.msra.mxu1 %v3505_v41  ;;  %v4458_v41 = vld [vmem:[%s4162_s30 + $0xe8] sm:$0xff] }
  0x39   : > { %3554 = vmatpush1.bf16.msra.mxu0 %v4356_v42  ;;  %3507 = vmatprep.subr.bf16.mxu1 %v3967_v3  ;;  %378 = vst [vmem:[#allocation2 + $0x171] sm:$0xff] %v4458_v41 }
  0x3a   : > { %3555 = vmatprep.subr.bf16.mxu0 %v3967_v3 }
  0x3c   : > { %3509 = vmatpush1.bf16.msra.mxu1 %v3508_v54  ;;  %v3565_v54 = vpack.c.bf16 %v1312_v47, %v1311_v44  ;;  %v577_v44 = vld [vmem:[#allocation2 + $0x38] sm:$0xff]  ;;  %v1317_v47 = vld [vmem:[%s5358_s1 + $0x230] sm:$0xff] }
  0x3d   : > { %3557 = vmatpush1.bf16.msra.mxu0 %v4387_v60  ;;  %3510 = vmatprep.subr.bf16.mxu1 %v3967_v3 }
  0x3e   : > { %3558 = vmatprep.subr.bf16.mxu0 %v3967_v3 }
  0x40   : > { %3512 = vmatpush1.bf16.msra.mxu1 %v3511_v14  ;;  %v511_v14 = vld [vmem:[#allocation2 + $0xa] sm:$0xff] }
  0x41   : > { %3560 = vmatpush1.bf16.msra.mxu0 %v4423_v20  ;;  %3513 = vmatprep.subr.bf16.mxu1 %v3967_v3 }
  0x42   : > { %3561 = vmatprep.subr.bf16.mxu0 %v3967_v3 }
  0x44   : > { %3515 = vmatpush1.bf16.msra.mxu1 %v3514_v38  ;;  %v3571_v38 = vpack.c.bf16 %v1316_v30, %v1315_v28  ;;  %v580_v28 = vld [vmem:[#allocation2 + $0x60] sm:$0xff] }
  0x45   : > { %3563 = vmatpush1.bf16.msra.mxu0 %v4455_v39  ;;  %3724 = vmatprep.subr.bf16.mxu1 %v3967_v3  ;;  %v1323_v30 = vld [vmem:[%s5358_s1 + $0x260] sm:$0xff] }
  0x46   : > { %3564 = vmatprep.subr.bf16.mxu0 %v3967_v3 }
  0x47   : > { %1456 = vmatmul.mubr.f32.vlgmr.msra.gmra.mrb[0].mxu1 %v382_v48 }
  0x48   : > { %1681 = vmatmul.mubr.f32.vlgmr.msra.gmra.mrb[0].mxu0 %v510_v49  ;;  %3740 = vmatpush1.bf16.msra.mxu1 %v4070_v9  ;;  %v4488_v9 = vld [vmem:[#allocation2 + $0x1a] sm:$0xff]  ;;  %v578_v49 = vld [vmem:[#allocation2 + $0x48] sm:$0xff] }
  0x49   : > { %3566 = vmatpush1.bf16.msra.mxu0 %v3565_v54  ;;  %1460 = vmatprep.mubr.f32.mxu1 %v447_v57  ;;  %v1319_v54 = vld [vmem:[%s5358_s1 + $0x240] sm:$0xff]  ;;  %v4515_v57 = vld [vmem:[#allocation2 + $0x32] sm:$0xff] }
  0x4a   : > { %1685 = vmatprep.mubr.f32.mxu0 %v575_v6  ;;  %3567 = vmatprep.subr.bf16.mxu0 %v3967_v3 }
  0x4b   : > { %1461 = vmatmul.mubr.f32.gmra.mrb[2].mxu1 %v3968_v8  ;;  %3725 = vmatprep.subr.bf16.mxu1 %v3967_v3  ;;  %v1318_v8 = vld [vmem:[%s5358_s1 + $0x238] sm:$0xff] }
  0x4c   : > { %1686 = vmatmul.mubr.f32.gmra.mrb[2].mxu0 %v511_v14  ;;  %1465 = vmatprep.mubr.f32.mxu1 %v4182_v43  ;;  %v3574_v48 = vpack.c.bf16 %v1318_v8, %v1317_v47  ;;  %v1321_v14 = vld [vmem:[%s5358_s1 + $0x250] sm:$0xff]  ;;  %v581_v47 = vld [vmem:[#allocation2 + $0x68] sm:$0xff] }
  0x4d   : > { %3569 = vmatpush1.bf16.msra.mxu0 %v3568_v15  ;;  %1690 = vmatprep.mubr.f32.mxu0 %v576_v23  ;;  %v1325_v8 = vld [vmem:[%s5358_s1 + $0x270] sm:$0xff] }
  0x4e   : > { %3570 = vmatprep.subr.bf16.mxu0 %v3967_v3  ;;  %3741 = vmatpush1.bf16.msra.mxu1 %v4084_v13  ;;  %v4502_v13 = vld [vmem:[#allocation2 + $0x22] sm:$0xff] }
  0x4f   : > { %1466 = vmatmul.mubr.f32.gmra.mrb[4].mxu1 %v4238_v61  ;;  %3726 = vmatprep.subr.bf16.mxu1 %v3967_v3  ;;  %v1320_v61 = vld [vmem:[%s5358_s1 + $0x248] sm:$0xff] }
  0x50   : > { %1691 = vmatmul.mubr.f32.gmra.mrb[4].mxu0 %v4488_v9  ;;  %1470 = vmatprep.mubr.f32.mxu1 %v4186_v45  ;;  %v3577_v0 = vpack.c.bf16 %v1320_v61, %v1319_v54  ;;  %v582_v54 = vld [vmem:[#allocation2 + $0x78] sm:$0xff]  ;;  %v1327_v61 = vld [vmem:[%s5358_s1 + $0x280] sm:$0xff] }
  0x51   : > { %3572 = vmatpush1.bf16.msra.mxu0 %v3571_v38  ;;  %1695 = vmatprep.mubr.f32.mxu0 %v577_v44 }
  0x52   : > { %3573 = vmatprep.subr.bf16.mxu0 %v3967_v3  ;;  %3742 = vmatpush1.bf16.msra.mxu1 %v4103_v19  ;;  %v1322_v19 = vld [vmem:[%s5358_s1 + $0x258] sm:$0xff] }
  0x53   : > { %1471 = vmatmul.mubr.f32.gmra.mrb[6].mxu1 %v575_v6  ;;  %3727 = vmatprep.subr.bf16.mxu1 %v3967_v3  ;;  %v4528_v6 = vld [vmem:[#allocation2 + $0x3a] sm:$0xff]  ;;  %v3580_v15 = vpack.c.bf16 %v1322_v19, %v1321_v14  ;;  %v1329_v19 = vld [vmem:[%s5358_s1 + $0x290] sm:$0xff] }
  0x54   : > { %1696 = vmatmul.mubr.f32.gmra.mrb[6].mxu0 %v4502_v13  ;;  %1475 = vmatprep.mubr.f32.mxu1 %v4207_v51  ;;  %v583_v14 = vld [vmem:[#allocation2 + $0x80] sm:$0xff] }
  0x55   : > { %3575 = vmatpush1.bf16.msra.mxu0 %v3574_v48  ;;  %1700 = vmatprep.mubr.f32.mxu0 %v578_v49 }
  0x56   : > { %3576 = vmatprep.subr.bf16.mxu0 %v3967_v3  ;;  %3743 = vmatpush1.bf16.msra.mxu1 %v4124_v25  ;;  %v1324_v25 = vld [vmem:[%s5358_s1 + $0x268] sm:$0xff] }
  0x57   : > { %1476 = vmatmul.mubr.f32.gmra.mrb[8].mxu1 %v576_v23  ;;  %3728 = vmatprep.subr.bf16.mxu1 %v3967_v3  ;;  %v4541_v23 = vld [vmem:[#allocation2 + $0x4a] sm:$0xff]  ;;  %v3583_v38 = vpack.c.bf16 %v1324_v25, %v1323_v30  ;;  %v1331_v25 = vld [vmem:[%s5358_s1 + $0x2a0] sm:$0xff] }
  0x58   : > { %1701 = vmatmul.mubr.f32.gmra.mrb[8].mxu0 %v4515_v57  ;;  %1480 = vmatprep.mubr.f32.mxu1 %v4211_v52  ;;  %v584_v30 = vld [vmem:[#allocation2 + $0x90] sm:$0xff] }
  0x59   : > { %3578 = vmatpush1.bf16.msra.mxu0 %v3577_v0  ;;  %1705 = vmatprep.mubr.f32.mxu0 %v579_v2 }
  0x5a   : > { %3579 = vmatprep.subr.bf16.mxu0 %v3967_v3  ;;  %3744 = vmatpush1.bf16.msra.mxu1 %v4142_v31  ;;  %v1326_v31 = vld [vmem:[%s5358_s1 + $0x278] sm:$0xff] }
  0x5b   : > { %1481 = vmatmul.mubr.f32.gmra.mrb[10].mxu1 %v577_v44  ;;  %3729 = vmatprep.subr.bf16.mxu1 %v3967_v3  ;;  %v4554_v44 = vld [vmem:[#allocation2 + $0x52] sm:$0xff]  ;;  %v3586_v48 = vpack.c.bf16 %v1326_v31, %v1325_v8 }
  0x5c   : > { %1706 = vmatmul.mubr.f32.gmra.mrb[10].mxu0 %v4528_v6  ;;  %1485 = vmatprep.mubr.f32.mxu1 %v4218_v55  ;;  %v585_v8 = vld [vmem:[#allocation2 + $0x98] sm:$0xff]  ;;  %v1333_v31 = vld [vmem:[%s5358_s1 + $0x2b0] sm:$0xff] }
  0x5d   : > { %3581 = vmatpush1.bf16.msra.mxu0 %v3580_v15  ;;  %1710 = vmatprep.mubr.f32.mxu0 %v580_v28 }
  0x5e   : > { %3582 = vmatprep.subr.bf16.mxu0 %v3967_v3  ;;  %3745 = vmatpush1.bf16.msra.mxu1 %v4166_v37  ;;  %v1328_v37 = vld [vmem:[%s5358_s1 + $0x288] sm:$0xff] }
  0x5f   : > { %1486 = vmatmul.mubr.f32.gmra.mrb[12].mxu1 %v578_v49  ;;  %3730 = vmatprep.subr.bf16.mxu1 %v3967_v3  ;;  %v4567_v49 = vld [vmem:[#allocation2 + $0x62] sm:$0xff]  ;;  %v3589_v0 = vpack.c.bf16 %v1328_v37, %v1327_v61 }
  0x60   : > { %1711 = vmatmul.mubr.f32.gmra.mrb[12].mxu0 %v4541_v23  ;;  %1490 = vmatprep.mubr.f32.mxu1 %v4232_v59  ;;  %v586_v61 = vld [vmem:[#allocation2 + $0xa8] sm:$0xff]  ;;  %v1335_v37 = vld [vmem:[%s5358_s1 + $0x2c0] sm:$0xff] }
  0x61   : > { %3584 = vmatpush1.bf16.msra.mxu0 %v3583_v38  ;;  %1715 = vmatprep.mubr.f32.mxu0 %v581_v47 }
  0x62   : > { %3585 = vmatprep.subr.bf16.mxu0 %v3967_v3  ;;  %3746 = vmatpush1.bf16.msra.mxu1 %v4190_v46  ;;  %v1330_v46 = vld [vmem:[%s5358_s1 + $0x298] sm:$0xff] }
  0x63   : > { %1491 = vmatmul.mubr.f32.gmra.mrb[14].mxu1 %v579_v2  ;;  %3731 = vmatprep.subr.bf16.mxu1 %v3967_v3  ;;  %v4580_v2 = vld [vmem:[#allocation2 + $0x6a] sm:$0xff]  ;;  %v3592_v15 = vpack.c.bf16 %v1330_v46, %v1329_v19 }
  0x64   : > { %1716 = vmatmul.mubr.f32.gmra.mrb[14].mxu0 %v4554_v44  ;;  %1495 = vmatprep.mubr.f32.mxu1 %v4242_v62  ;;  %v1337_v19 = vld [vmem:[%s5358_s1 + $0x2d0] sm:$0xff] }
  0x65   : > { %3587 = vmatpush1.bf16.msra.mxu0 %v3586_v48  ;;  %1720 = vmatprep.mubr.f32.mxu0 %v582_v54  ;;  %v4630_v46 = vld [vmem:[%s4162_s30 + $0xf0] sm:$0xff] }
  0x66   : > { %3588 = vmatprep.subr.bf16.mxu0 %v3967_v3  ;;  %3747 = vmatpush1.bf16.msra.mxu1 %v4222_v56  ;;  %v1332_v56 = vld [vmem:[%s5358_s1 + $0x2a8] sm:$0xff]  ;;  %379 = vst [vmem:[#allocation2 + $0x181] sm:$0xff] %v4630_v46 }
  0x67   : > { %1496 = vmatmul.mubr.f32.gmra.mrb[16].mxu1 %v580_v28  ;;  %3732 = vmatprep.subr.bf16.mxu1 %v3967_v3  ;;  %v4593_v28 = vld [vmem:[#allocation2 + $0x7a] sm:$0xff]  ;;  %v3595_v38 = vpack.c.bf16 %v1332_v56, %v1331_v25 }
  0x68   : > { %1721 = vmatmul.mubr.f32.gmra.mrb[16].mxu0 %v4567_v49  ;;  %1500 = vmatprep.mubr.f32.mxu1 %v4247_v63  ;;  %v4640_v25 = vld [vmem:[#allocation2 + $0x9a] sm:$0xff] }
  0x69   : > { %3590 = vmatpush1.bf16.msra.mxu0 %v3589_v0  ;;  %1725 = vmatprep.mubr.f32.mxu0 %v583_v14  ;;  %v588_v56 = vld [vmem:[#allocation2 + $0xc0] sm:$0xff] }
  0x6a   : > { %3591 = vmatprep.subr.bf16.mxu0 %v3967_v3  ;;  %3748 = vmatpush1.bf16.msra.mxu1 %v4252_v1  ;;  %v1334_v1 = vld [vmem:[%s5358_s1 + $0x2b8] sm:$0xff] }
  0x6b   : > { %1501 = vmatmul.mubr.f32.gmra.mrb[18].mxu1 %v581_v47  ;;  %3733 = vmatprep.subr.bf16.mxu1 %v3967_v3  ;;  %v4606_v47 = vld [vmem:[#allocation2 + $0x82] sm:$0xff]  ;;  %v3598_v48 = vpack.c.bf16 %v1334_v1, %v1333_v31  ;;  %v4653_v31 = vld [vmem:[#allocation2 + $0xaa] sm:$0xff] }
  0x6c   : > { %1726 = vmatmul.mubr.f32.gmra.mrb[18].mxu0 %v4580_v2  ;;  %1505 = vmatprep.mubr.f32.mxu1 %v4261_v5 }
  0x6d   : > { %3593 = vmatpush1.bf16.msra.mxu0 %v3592_v15  ;;  %1730 = vmatprep.mubr.f32.mxu0 %v584_v30  ;;  %v4633_v15 = vld [vmem:[%s4162_s30 + $0xf8] sm:$0xff] }
  0x6e   : > { %3594 = vmatprep.subr.bf16.mxu0 %v3967_v3  ;;  %3749 = vmatpush1.bf16.msra.mxu1 %v4277_v12  ;;  %v1336_v12 = vld [vmem:[%s5358_s1 + $0x2c8] sm:$0xff]  ;;  %380 = vst [vmem:[#allocation2 + $0x189] sm:$0xff] %v4633_v15 }
  0x6f   : > { %1506 = vmatmul.mubr.f32.gmra.mrb[20].mxu1 %v582_v54  ;;  %3734 = vmatprep.subr.bf16.mxu1 %v3967_v3  ;;  %v4619_v54 = vld [vmem:[#allocation2 + $0x92] sm:$0xff]  ;;  %v3601_v0 = vpack.c.bf16 %v1336_v12, %v1335_v37  ;;  %v1376_v12 = vld [vmem:[%s5358_s1 + $0x408] sm:$0xff] }
  0x70   : > { %1731 = vmatmul.mubr.f32.gmra.mrb[20].mxu0 %v4593_v28  ;;  %1510 = vmatprep.mubr.f32.mxu1 %v4272_v10  ;;  %v1341_v37 = vld [vmem:[%s5358_s1 + $0x2f0] sm:$0xff] }
  0x71   : > { %3596 = vmatpush1.bf16.msra.mxu0 %v3595_v38  ;;  %1735 = vmatprep.mubr.f32.mxu0 %v585_v8  ;;  %v1340_v38 = vld [vmem:[%s5358_s1 + $0x2e8] sm:$0xff] }
  0x72   : > { %3597 = vmatprep.subr.bf16.mxu0 %v3967_v3  ;;  %3750 = vmatpush1.bf16.msra.mxu1 %v4301_v22  ;;  %v1338_v22 = vld [vmem:[%s5358_s1 + $0x2d8] sm:$0xff] }
  0x73   : > { %1511 = vmatmul.mubr.f32.gmra.mrb[22].mxu1 %v583_v14  ;;  %3735 = vmatprep.subr.bf16.mxu1 %v3967_v3  ;;  %v587_v14 = vld [vmem:[#allocation2 + $0xb0] sm:$0xff] }
  0x74   : > { %1736 = vmatmul.mubr.f32.gmra.mrb[22].mxu0 %v4606_v47  ;;  %1515 = vmatprep.mubr.f32.mxu1 %v4293_v18 }
  0x75   : > { %3599 = vmatpush1.bf16.msra.mxu0 %v3598_v48  ;;  %1740 = vmatprep.mubr.f32.mxu0 %v586_v61  ;;  %v589_v48 = vld [vmem:[#allocation2 + $0xc8] sm:$0xff] }
  0x76   : > { %3600 = vmatprep.subr.bf16.mxu0 %v3967_v3  ;;  %3751 = vmatpush1.bf16.msra.mxu1 %v4330_v33  ;;  %v3604_v33 = vpack.c.bf16 %v1338_v22, %v1337_v19  ;;  %v1344_v19 = vld [vmem:[%s5358_s1 + $0x308] sm:$0xff] }
  0x77   : > { %1516 = vmatmul.mubr.f32.gmra.mrb[24].mxu1 %v584_v30  ;;  %3736 = vmatprep.subr.bf16.mxu1 %v3967_v3  ;;  %v1339_v30 = vld [vmem:[%s5358_s1 + $0x2e0] sm:$0xff] }
  0x78   : > { %1741 = vmatmul.mubr.f32.gmra.mrb[24].mxu0 %v4619_v54  ;;  %1520 = vmatprep.mubr.f32.mxu1 %v4297_v21  ;;  %v3607_v1 = vpack.c.bf16 %v1340_v38, %v1339_v30  ;;  %v1345_v30 = vld [vmem:[%s5358_s1 + $0x310] sm:$0xff]  ;;  %v1350_v38 = vld [vmem:[%s5358_s1 + $0x338] sm:$0xff] }
  0x79   : > { %3602 = vmatpush1.bf16.msra.mxu0 %v3601_v0  ;;  %1745 = vmatprep.mubr.f32.mxu0 %v587_v14  ;;  %v4672_v0 = vld [vmem:[#allocation2 + $0xb2] sm:$0xff] }
  0x7a   : > { %3603 = vmatprep.subr.bf16.mxu0 %v3967_v3  ;;  %3752 = vmatpush1.bf16.msra.mxu1 %v4356_v42  ;;  %v1342_v42 = vld [vmem:[%s5358_s1 + $0x2f8] sm:$0xff] }
  0x7b   : > { %1521 = vmatmul.mubr.f32.gmra.mrb[26].mxu1 %v585_v8  ;;  %3737 = vmatprep.subr.bf16.mxu1 %v3967_v3  ;;  %v1375_v8 = vld [vmem:[%s5358_s1 + $0x400] sm:$0xff] }
  0x7c   : > { %1746 = vmatmul.mubr.f32.gmra.mrb[26].mxu0 %v4640_v25  ;;  %1525 = vmatprep.mubr.f32.mxu1 %v4311_v26  ;;  %v4683_v22 = vpack.c.bf16 %v1376_v12, %v1375_v8  ;;  %v1355_v8 = vld [vmem:[%s5358_s1 + $0x360] sm:$0xff]  ;;  %v1356_v12 = vld [vmem:[%s5358_s1 + $0x368] sm:$0xff] }
  0x7d   : > { %3605 = vmatpush1.bf16.msra.mxu0 %v3604_v33  ;;  %1750 = vmatprep.mubr.f32.mxu0 %v588_v56 }
  0x7e   : > { %3606 = vmatprep.subr.bf16.mxu0 %v3967_v3  ;;  %3753 = vmatpush1.bf16.msra.mxu1 %v4387_v60  ;;  %v3610_v60 = vpack.c.bf16 %v1342_v42, %v1341_v37  ;;  %v1353_v37 = vld [vmem:[%s5358_s1 + $0x350] sm:$0xff]  ;;  %v1354_v42 = vld [vmem:[%s5358_s1 + $0x358] sm:$0xff] }
  0x7f   : > { %1526 = vmatmul.mubr.f32.gmra.mrb[28].mxu1 %v586_v61  ;;  %3738 = vmatprep.subr.bf16.mxu1 %v3967_v3  ;;  %v1343_v61 = vld [vmem:[%s5358_s1 + $0x300] sm:$0xff] }
  0x80   : > { %1751 = vmatmul.mubr.f32.gmra.mrb[28].mxu0 %v4653_v31  ;;  %1530 = vmatprep.mubr.f32.mxu1 %v4322_v29  ;;  %v3613_v33 = vpack.c.bf16 %v1344_v19, %v1343_v61  ;;  %v1358_v61 = vld [vmem:[%s5358_s1 + $0x378] sm:$0xff]  ;;  %v1359_v19 = vld [vmem:[%s5358_s1 + $0x380] sm:$0xff] }
  0x81   : > { %3608 = vmatpush1.bf16.msra.mxu0 %v3607_v1  ;;  %1755 = vmatprep.mubr.f32.mxu0 %v589_v48  ;;  %v1351_v1 = vld [vmem:[%s5358_s1 + $0x340] sm:$0xff] }
  0x82   : > { %3609 = vmatprep.subr.bf16.mxu0 %v3967_v3  ;;  %3754 = vmatpush1.bf16.msra.mxu1 %v4423_v20  ;;  %v1346_v20 = vld [vmem:[%s5358_s1 + $0x318] sm:$0xff] }
  0x83   : > { %1531 = vmatmul.mubr.f32.gmra.mrb[30].mxu1 %v587_v14  ;;  %3739 = vmatprep.subr.bf16.mxu1 %v3967_v3  ;;  %v1347_v14 = vld [vmem:[%s5358_s1 + $0x320] sm:$0xff] }
  0x84   : > { %1756 = vmatmul.mubr.f32.gmra.mrb[30].mxu0 %v4672_v0  ;;  %1535 = vmatprep.mubr.f32.mxu1 %v4326_v32 }
  0x85   : > { %3611 = vmatpush1.bf16.msra.mxu0 %v3610_v60  ;;  %1905 = vmatprep.mubr.f32.mxu0 %v4488_v9  ;;  %v3616_v9 = vpack.c.bf16 %v1346_v20, %v1345_v30  ;;  %v1357_v60 = vld [vmem:[%s5358_s1 + $0x370] sm:$0xff]  ;;  %v1362_v20 = vld [vmem:[%s5358_s1 + $0x398] sm:$0xff] }
  0x86   : > { %3612 = vmatprep.subr.bf16.mxu0 %v3967_v3  ;;  %3755 = vmatpush1.bf16.msra.mxu1 %v4455_v39  ;;  %v1348_v39 = vld [vmem:[%s5358_s1 + $0x328] sm:$0xff]  ;;  %v1361_v30 = vld [vmem:[%s5358_s1 + $0x390] sm:$0xff] }
  0x87   : > { %1536 = vmatmul.mubr.f32.gmra.mrb[32].mxu1 %v588_v56  ;;  %3661 = vmatprep.subr.bf16.mxu1 %v4683_v22  ;;  %v1349_v56 = vld [vmem:[%s5358_s1 + $0x330] sm:$0xff] }
  0x88   : > { %1906 = vmatmul.mubr.f32.vlgmr.msra.gmra.mrb[0].mxu0 %v4182_v43  ;;  %1540 = vmatprep.mubr.f32.mxu1 %v4340_v36  ;;  %v4709_v43 = vld [vmem:[#allocation2 + $0xd8] sm:$0xff] }
  0x89   : > { %3614 = vmatpush1.bf16.msra.mxu0 %v3613_v33  ;;  %1910 = vmatprep.mubr.f32.mxu0 %v4502_v13  ;;  %v3619_v13 = vpack.c.bf16 %v1348_v39, %v1347_v14  ;;  %v1360_v33 = vld [vmem:[%s5358_s1 + $0x388] sm:$0xff]  ;;  %v1365_v39 = vld [vmem:[%s5358_s1 + $0x3b0] sm:$0xff] }
  0x8a   : > { %3615 = vmatprep.subr.bf16.mxu0 %v3967_v3  ;;  %v1364_v14 = vld [vmem:[%s5358_s1 + $0x3a8] sm:$0xff] }
  0x8b   : > { %1541 = vmatmul.mubr.f32.gmra.mrb[34].mxu1 %v589_v48  ;;  %v1352_v48 = vld [vmem:[%s5358_s1 + $0x348] sm:$0xff] }
  0x8c   : > { %1911 = vmatmul.mubr.f32.gmra.mrb[2].mxu0 %v4186_v45  ;;  %1545 = vmatprep.mubr.f32.mxu1 %v4351_v40  ;;  %v4722_v45 = vld [vmem:[#allocation2 + $0xe0] sm:$0xff] }
  0x8d   : > { %1915 = vmatprep.mubr.f32.mxu0 %v4515_v57  ;;  %3617 = vmatpush1.bf16.msra.mxu0 %v3616_v9  ;;  %v3622_v57 = vpack.c.bf16 %v1350_v38, %v1349_v56  ;;  %v1363_v9 = vld [vmem:[%s5358_s1 + $0x3a0] sm:$0xff]  ;;  %v1368_v38 = vld [vmem:[%s5358_s1 + $0x3c8] sm:$0xff] }
  0x8e   : > { %3618 = vmatprep.subr.bf16.mxu0 %v3967_v3  ;;  %v1367_v56 = vld [vmem:[%s5358_s1 + $0x3c0] sm:$0xff] }
  0x8f   : > { %1546 = vmatmul.mubr.f32.gmra.mrb[36].mxu1 %v4709_v43 }
  0x90   : > { %1916 = vmatmul.mubr.f32.gmra.mrb[4].mxu0 %v4207_v51  ;;  %1550 = vmatprep.mubr.f32.mxu1 %v4372_v50  ;;  %v4735_v51 = vld [vmem:[#allocation2 + $0xf0] sm:$0xff] }
  0x91   : > { %1920 = vmatprep.mubr.f32.mxu0 %v4528_v6  ;;  %3620 = vmatpush1.bf16.msra.mxu0 %v3619_v13  ;;  %v3625_v6 = vpack.c.bf16 %v1352_v48, %v1351_v1  ;;  %v1366_v13 = vld [vmem:[%s5358_s1 + $0x3b8] sm:$0xff]  ;;  %v1369_v1 = vld [vmem:[%s5358_s1 + $0x3d0] sm:$0xff] }
  0x92   : > { %3621 = vmatprep.subr.bf16.mxu0 %v3967_v3  ;;  %v1370_v48 = vld [vmem:[%s5358_s1 + $0x3d8] sm:$0xff] }
  0x93   : > { %1551 = vmatmul.mubr.f32.gmra.mrb[38].mxu1 %v4722_v45 }
  0x94   : > { %1921 = vmatmul.mubr.f32.gmra.mrb[6].mxu0 %v4211_v52  ;;  %1555 = vmatprep.mubr.f32.mxu1 %v4375_v53  ;;  %v4748_v52 = vld [vmem:[#allocation2 + $0xf8] sm:$0xff] }
  0x95   : > { %1925 = vmatprep.mubr.f32.mxu0 %v4541_v23  ;;  %3623 = vmatpush1.bf16.msra.mxu0 %v3622_v57  ;;  %v3628_v23 = vpack.c.bf16 %v1354_v42, %v1353_v37  ;;  %v3649_v57 = vpack.c.bf16 %v1368_v38, %v1367_v56  ;;  %v4855_v37 = vld [vmem:[#allocation2 + $0xc2] sm:$0xff]  ;;  %v1390_v56 = vld [vmem:[%s5358_s1 + $0x478] sm:$0xff] }
  0x96   : > { %3624 = vmatprep.subr.bf16.mxu0 %v3967_v3  ;;  %v1371_v42 = vld [vmem:[%s5358_s1 + $0x3e0] sm:$0xff] }
  0x97   : > { %1556 = vmatmul.mubr.f32.gmra.mrb[40].mxu1 %v4735_v51  ;;  %v2726_v38 = vld [vmem:[%s5360_s3] sm:$0xff] }
  0x98   : > { %1926 = vmatmul.mubr.f32.gmra.mrb[8].mxu0 %v4218_v55  ;;  %1560 = vmatprep.mubr.f32.mxu1 %v4383_v58  ;;  %v4761_v55 = vld [vmem:[#allocation2 + $0x108] sm:$0xff] }
  0x99   : > { %1930 = vmatprep.mubr.f32.mxu0 %v4554_v44  ;;  %3626 = vmatpush1.bf16.msra.mxu0 %v3625_v6  ;;  %v3631_v44 = vpack.c.bf16 %v1356_v12, %v1355_v8  ;;  %v3652_v6 = vpack.c.bf16 %v1370_v48, %v1369_v1  ;;  %v4870_v12 = vld [vmem:[#allocation2 + $0xca] sm:$0xff]  ;;  %v4989_v1 = vld [vmem:[#allocation2 + $0x142] sm:$0xff]  ;;  %v2729_v48 = vld [vmem:[%s5360_s3 + $0x18] sm:$0xff] }
  0x9a   : > { %3627 = vmatprep.subr.bf16.mxu0 %v3967_v3 }
  0x9b   : > { %1561 = vmatmul.mubr.f32.gmra.mrb[42].mxu1 %v4748_v52 }
  0x9c   : > { %1931 = vmatmul.mubr.f32.gmra.mrb[10].mxu0 %v4232_v59  ;;  %1565 = vmatprep.mubr.f32.mxu1 %v4397_v4  ;;  %v4774_v59 = vld [vmem:[#allocation2 + $0x110] sm:$0xff] }
  0x9d   : > { %1935 = vmatprep.mubr.f32.mxu0 %v4567_v49  ;;  %3629 = vmatpush1.bf16.msra.mxu0 %v3628_v23  ;;  %v3634_v49 = vpack.c.bf16 %v1358_v61, %v1357_v60  ;;  %v4867_v23 = vld [vmem:[#allocation2 + $0x168] sm:$0xff]  ;;  %v4882_v60 = vld [vmem:[#allocation2 + $0x170] sm:$0xff] }
  0x9e   : > { %3630 = vmatprep.subr.bf16.mxu0 %v3967_v3 }
  0x9f   : > { %1566 = vmatmul.mubr.f32.gmra.mrb[44].mxu1 %v4761_v55 }
  0xa0   : > { %1936 = vmatmul.mubr.f32.gmra.mrb[12].mxu0 %v4242_v62  ;;  %1570 = vmatprep.mubr.f32.mxu1 %v4405_v7  ;;  %v4787_v62 = vld [vmem:[#allocation2 + $0x120] sm:$0xff] }
  0xa1   : > { %1940 = vmatprep.mubr.f32.mxu0 %v4580_v2  ;;  %3632 = vmatpush1.bf16.msra.mxu0 %v3631_v44  ;;  %v3637_v2 = vpack.c.bf16 %v1360_v33, %v1359_v19  ;;  %v1373_v44 = vld [vmem:[%s5358_s1 + $0x3f0] sm:$0xff]  ;;  %v4898_v33 = vld [vmem:[#allocation2 + $0xe2] sm:$0xff] }
  0xa2   : > { %3633 = vmatprep.subr.bf16.mxu0 %v3967_v3  ;;  %v1377_v19 = vld [vmem:[%s5358_s1 + $0x410] sm:$0xff] }
  0xa3   : > { %1571 = vmatmul.mubr.f32.gmra.mrb[46].mxu1 %v4774_v59 }
  0xa4   : > { %1941 = vmatmul.mubr.f32.gmra.mrb[14].mxu0 %v4247_v63  ;;  %1575 = vmatprep.mubr.f32.mxu1 %v4408_v11  ;;  %v4800_v63 = vld [vmem:[#allocation2 + $0x128] sm:$0xff] }
  0xa5   : > { %1945 = vmatprep.mubr.f32.mxu0 %v4593_v28  ;;  %3635 = vmatpush1.bf16.msra.mxu0 %v3634_v49  ;;  %v3640_v28 = vpack.c.bf16 %v1362_v20, %v1361_v30  ;;  %v4885_v49 = vld [vmem:[#allocation2 + $0xda] sm:$0xff]  ;;  %v1380_v30 = vld [vmem:[%s5358_s1 + $0x428] sm:$0xff]  ;;  %v1381_v20 = vld [vmem:[%s5358_s1 + $0x430] sm:$0xff] }
  0xa6   : > { %3636 = vmatprep.subr.bf16.mxu0 %v3967_v3 }
  0xa7   : > { %1576 = vmatmul.mubr.f32.gmra.mrb[48].mxu1 %v4787_v62 }
  0xa8   : > { %1946 = vmatmul.mubr.f32.gmra.mrb[16].mxu0 %v4261_v5  ;;  %1580 = vmatprep.mubr.f32.mxu1 %v4416_v16  ;;  %v4813_v5 = vld [vmem:[#allocation2 + $0x138] sm:$0xff] }
  0xa9   : > { %1950 = vmatprep.mubr.f32.mxu0 %v4606_v47  ;;  %3638 = vmatpush1.bf16.msra.mxu0 %v3637_v2  ;;  %v3643_v47 = vpack.c.bf16 %v1364_v14, %v1363_v9  ;;  %v1379_v2 = vld [vmem:[%s5358_s1 + $0x420] sm:$0xff]  ;;  %v1384_v9 = vld [vmem:[%s5358_s1 + $0x448] sm:$0xff]  ;;  %v1385_v14 = vld [vmem:[%s5358_s1 + $0x450] sm:$0xff] }
  0xaa   : > { %3639 = vmatprep.subr.bf16.mxu0 %v3967_v3 }
  0xab   : > { %1581 = vmatmul.mubr.f32.gmra.mrb[50].mxu1 %v4800_v63 }
  0xac   : > { %1951 = vmatmul.mubr.f32.gmra.mrb[18].mxu0 %v4272_v10  ;;  %1585 = vmatprep.mubr.f32.mxu1 %v4419_v17  ;;  %v4826_v10 = vld [vmem:[#allocation2 + $0x140] sm:$0xff] }
  0xad   : > { %1955 = vmatprep.mubr.f32.mxu0 %v4619_v54  ;;  %3641 = vmatpush1.bf16.msra.mxu0 %v3640_v28  ;;  %v3646_v54 = vpack.c.bf16 %v1366_v13, %v1365_v39  ;;  %v1383_v28 = vld [vmem:[%s5358_s1 + $0x440] sm:$0xff]  ;;  %v1388_v13 = vld [vmem:[%s5358_s1 + $0x468] sm:$0xff] }
  0xae   : > { %3642 = vmatprep.subr.bf16.mxu0 %v3967_v3  ;;  %v1387_v39 = vld [vmem:[%s5358_s1 + $0x460] sm:$0xff] }
  0xaf   : > { %1586 = vmatmul.mubr.f32.gmra.mrb[52].mxu1 %v4813_v5 }
  0xb0   : > { %1956 = vmatmul.mubr.f32.gmra.mrb[20].mxu0 %v4293_v18  ;;  %1590 = vmatprep.mubr.f32.mxu1 %v4431_v24  ;;  %v4839_v18 = vld [vmem:[#allocation2 + $0x150] sm:$0xff] }
  0xb1   : > { %1960 = vmatprep.mubr.f32.mxu0 %v4640_v25  ;;  %3644 = vmatpush1.bf16.msra.mxu0 %v3643_v47  ;;  %v1386_v47 = vld [vmem:[%s5358_s1 + $0x458] sm:$0xff] }
  0xb2   : > { %3645 = vmatprep.subr.bf16.mxu0 %v3967_v3 }
  0xb3   : > { %1591 = vmatmul.mubr.f32.gmra.mrb[54].mxu1 %v4826_v10 }
  0xb4   : > { %1961 = vmatmul.mubr.f32.gmra.mrb[22].mxu0 %v4297_v21  ;;  %1595 = vmatprep.mubr.f32.mxu1 %v4434_v27  ;;  %v4852_v21 = vld [vmem:[#allocation2 + $0x158] sm:$0xff] }
  0xb5   : > { %1965 = vmatprep.mubr.f32.mxu0 %v4653_v31  ;;  %3647 = vmatpush1.bf16.msra.mxu0 %v3646_v54  ;;  %v1389_v54 = vld [vmem:[%s5358_s1 + $0x470] sm:$0xff] }
  0xb6   : > { %3648 = vmatprep.subr.bf16.mxu0 %v3967_v3 }
  0xb7   : > { %1596 = vmatmul.mubr.f32.gmra.mrb[56].mxu1 %v4839_v18 }
  0xb8   : > { %1966 = vmatmul.mubr.f32.gmra.mrb[24].mxu0 %v4311_v26  ;;  %1600 = vmatprep.mubr.f32.mxu1 %v4446_v34  ;;  %v1372_v26 = vld [vmem:[%s5358_s1 + $0x3e8] sm:$0xff] }
  0xb9   : > { %1970 = vmatprep.mubr.f32.mxu0 %v4672_v0  ;;  %3650 = vmatpush1.bf16.msra.mxu0 %v3649_v57  ;;  %v3655_v8 = vpack.c.bf16 %v1372_v26, %v1371_v42  ;;  %v2727_v57 = vld [vmem:[%s5360_s3 + $0x8] sm:$0xff]  ;;  %v832_v42 = vld [vmem:[#allocation2 + $0x39] sm:$0xff] }
  0xba   : > { %3651 = vmatprep.subr.bf16.mxu0 %v3967_v3  ;;  %v897_v26 = vld [vmem:[#allocation2 + $0x4a] sm:$0xff] }
  0xbb   : > { %1601 = vmatmul.mubr.f32.gmra.mrb[58].mxu1 %v4852_v21 }
  0xbc   : > { %1971 = vmatmul.mubr.f32.gmra.mrb[26].mxu0 %v4322_v29  ;;  %1605 = vmatprep.mubr.f32.mxu1 %v4449_v35  ;;  %v1374_v29 = vld [vmem:[%s5358_s1 + $0x3f8] sm:$0xff] }
  0xbd   : > { %1975 = vmatprep.mubr.f32.mxu0 %v4855_v37  ;;  %3653 = vmatpush1.bf16.msra.mxu0 %v3652_v6  ;;  %v3658_v61 = vpack.c.bf16 %v1374_v29, %v1373_v44  ;;  %v767_v6 = vld [vmem:[#allocation2 + $0x30] sm:$0xff]  ;;  %v2730_v44 = vld [vmem:[%s5360_s3 + $0x20] sm:$0xff]  ;;  %v2731_v29 = vld [vmem:[%s5360_s3 + $0x28] sm:$0xff] }
  0xbe   : > { %3654 = vmatprep.subr.bf16.mxu0 %v3967_v3 }
  0xbf   : > { %1606 = vmatmul.mubr.f32.gmra.mrb[60].mxu1 %v4867_v23 }
  0xc0   : > { %1976 = vmatmul.mubr.f32.gmra.mrb[28].mxu0 %v4326_v32  ;;  %1610 = vmatprep.mubr.f32.mxu1 %v4458_v41  ;;  %v1378_v32 = vld [vmem:[%s5358_s1 + $0x418] sm:$0xff] }
  0xc1   : > { %1980 = vmatprep.mubr.f32.mxu0 %v4870_v12  ;;  %3656 = vmatpush1.bf16.msra.mxu0 %v3655_v8 }
  0xc2   : > { %3657 = vmatprep.subr.bf16.mxu0 %v3967_v3  ;;  %v3664_v3 = vpack.c.bf16 %v1378_v32, %v1377_v19  ;;  %v899_v19 = vld [vmem:[#allocation2 + $0x62] sm:$0xff] }
  0xc3   : > { %1611 = vmatmul.mubr.f32.gmra.mrb[62].mxu1 %v4882_v60  ;;  %v833_v32 = vld [vmem:[#allocation2 + $0x49] sm:$0xff] }
  0xc4   : > { %1981 = vmatmul.mubr.f32.gmra.mrb[30].mxu0 %v4340_v36  ;;  %1760 = vmatprep.mubr.f32.mxu1 %v4709_v43  ;;  %v4911_v36 = vld [vmem:[#allocation2 + $0xf2] sm:$0xff]  ;;  %v3668_v43 = vpack.c.bf16 %v1380_v30, %v1379_v2 }
  0xc5   : > { %1985 = vmatprep.mubr.f32.mxu0 %v4885_v49  ;;  %3659 = vmatpush1.bf16.msra.mxu0 %v3658_v61  ;;  %v898_v61 = vld [vmem:[#allocation2 + $0x52] sm:$0xff] }
  0xc6   : > { %v2732_v2 = vld [vmem:[%s5360_s3 + $0x30] sm:$0xff]  ;;  %v2733_v30 = vld [vmem:[%s5360_s3 + $0x38] sm:$0xff] }
  0xc7   : > { %1761 = vmatmul.mubr.f32.vlgmr.msra.gmra.mrb[32].mxu1 %v4855_v37 }
  0xc8   : > { %1986 = vmatmul.mubr.f32.gmra.mrb[32].mxu0 %v4351_v40  ;;  %3663 = vmatpush3.bf16.msra.mxu1 %v4683_v22  ;;  %v1382_v40 = vld [vmem:[%s5358_s1 + $0x438] sm:$0xff] }
  0xc9   : > { %1765 = vmatprep.mubr.f32.mxu1 %v4722_v45  ;;  %1990 = vmatprep.mubr.f32.mxu0 %v4898_v33  ;;  %v4923_v22 = vld [vmem:[#allocation2 + $0xfa] sm:$0xff]  ;;  %v3672_v45 = vpack.c.bf16 %v1382_v40, %v1381_v20  ;;  %v769_v20 = vld [vmem:[#allocation2 + $0x48] sm:$0xff] }
  0xca   : > { %3665 = vmatprep.subr.bf16.mxu1 %v3664_v3  ;;  %v901_v40 = vld [vmem:[#allocation2 + $0x7a] sm:$0xff] }
  0xcb   : > { %1766 = vmatmul.mubr.f32.gmra.mrb[34].mxu1 %v4870_v12 }
  0xcc   : > { %1991 = vmatmul.mubr.f32.gmra.mrb[34].mxu0 %v4372_v50  ;;  %1770 = vmatprep.mubr.f32.mxu1 %v4735_v51  ;;  %v4935_v50 = vld [vmem:[#allocation2 + $0x10a] sm:$0xff]  ;;  %v3676_v51 = vpack.c.bf16 %v1384_v9, %v1383_v28  ;;  %v3704_v28 = vpack.c.bf16 %v2733_v30, %v2732_v2  ;;  %v2734_v9 = vld [vmem:[%s5360_s3 + $0x40] sm:$0xff] }
  0xcd   : > { %1995 = vmatprep.mubr.f32.mxu0 %v4911_v36  ;;  %3667 = vmatpush3.bf16.msra.mxu1 %v3664_v3  ;;  %v3700_v3 = vpack.c.bf16 %v2731_v29, %v2730_v44  ;;  %v774_v44 = vld [vmem:[#allocation2 + $0x80] sm:$0xff]  ;;  %v777_v2 = vld [vmem:[#allocation2 + $0xa8] sm:$0xff] }
  0xce   : > { %3669 = vmatprep.subr.bf16.mxu1 %v3668_v43 }
  0xcf   : > { %1771 = vmatmul.mubr.f32.gmra.mrb[36].mxu1 %v4885_v49 }
  0xd0   : > { %1996 = vmatmul.mubr.f32.gmra.mrb[36].mxu0 %v4375_v53  ;;  %1775 = vmatprep.mubr.f32.mxu1 %v4748_v52  ;;  %v4947_v53 = vld [vmem:[#allocation2 + $0x112] sm:$0xff]  ;;  %v3680_v52 = vpack.c.bf16 %v1386_v47, %v1385_v14  ;;  %v902_v14 = vld [vmem:[#allocation2 + $0x82] sm:$0xff] }
  0xd1   : > { %2000 = vmatprep.mubr.f32.mxu0 %v4923_v22  ;;  %3671 = vmatpush3.bf16.msra.mxu1 %v3668_v43  ;;  %v900_v43 = vld [vmem:[#allocation2 + $0x6a] sm:$0xff] }
  0xd2   : > { %3673 = vmatprep.subr.bf16.mxu1 %v3672_v45  ;;  %v770_v47 = vld [vmem:[#allocation2 + $0x50] sm:$0xff] }
  0xd3   : > { %1776 = vmatmul.mubr.f32.gmra.mrb[38].mxu1 %v4898_v33 }
  0xd4   : > { %2001 = vmatmul.mubr.f32.gmra.mrb[38].mxu0 %v4383_v58  ;;  %1780 = vmatprep.mubr.f32.mxu1 %v4761_v55  ;;  %v4959_v58 = vld [vmem:[#allocation2 + $0x122] sm:$0xff]  ;;  %v3684_v55 = vpack.c.bf16 %v1388_v13, %v1387_v39 }
  0xd5   : > { %2005 = vmatprep.mubr.f32.mxu0 %v4935_v50  ;;  %3675 = vmatpush3.bf16.msra.mxu1 %v3672_v45  ;;  %v834_v45 = vld [vmem:[#allocation2 + $0x51] sm:$0xff]  ;;  %v835_v39 = vld [vmem:[#allocation2 + $0x61] sm:$0xff] }
  0xd6   : > { %3677 = vmatprep.subr.bf16.mxu1 %v3676_v51 }
  0xd7   : > { %1781 = vmatmul.mubr.f32.gmra.mrb[40].mxu1 %v4911_v36 }
  0xd8   : > { %2006 = vmatmul.mubr.f32.gmra.mrb[40].mxu0 %v4397_v4  ;;  %1785 = vmatprep.mubr.f32.mxu1 %v4774_v59  ;;  %v4971_v4 = vld [vmem:[#allocation2 + $0x12a] sm:$0xff]  ;;  %v3688_v59 = vpack.c.bf16 %v1390_v56, %v1389_v54  ;;  %v2737_v54 = vld [vmem:[%s5360_s3 + $0x58] sm:$0xff]  ;;  %v771_v56 = vld [vmem:[#allocation2 + $0x60] sm:$0xff] }
  0xd9   : > { %2010 = vmatprep.mubr.f32.mxu0 %v4947_v53  ;;  %3679 = vmatpush3.bf16.msra.mxu1 %v3676_v51  ;;  %v2735_v51 = vld [vmem:[%s5360_s3 + $0x48] sm:$0xff] }
  0xda   : > { %3681 = vmatprep.subr.bf16.mxu1 %v3680_v52  ;;  %v3708_v13 = vpack.c.bf16 %v2735_v51, %v2734_v9 }
  0xdb   : > { %1786 = vmatmul.mubr.f32.gmra.mrb[42].mxu1 %v4923_v22 }
  0xdc   : > { %2011 = vmatmul.mubr.f32.gmra.mrb[42].mxu0 %v4405_v7  ;;  %1790 = vmatprep.mubr.f32.mxu1 %v4787_v62  ;;  %v4983_v7 = vld [vmem:[#allocation2 + $0x13a] sm:$0xff]  ;;  %v3692_v62 = vpack.c.bf16 %v2727_v57, %v2726_v38 }
  0xdd   : > { %2015 = vmatprep.mubr.f32.mxu0 %v4959_v58  ;;  %3683 = vmatpush3.bf16.msra.mxu1 %v3680_v52  ;;  %v903_v52 = vld [vmem:[#allocation2 + $0x92] sm:$0xff]  ;;  %v2738_v57 = vld [vmem:[%s5360_s3 + $0x60] sm:$0xff] }
  0xde   : > { %3685 = vmatprep.subr.bf16.mxu1 %v3684_v55 }
  0xdf   : > { %1791 = vmatmul.mubr.f32.gmra.mrb[44].mxu1 %v4935_v50 }
  0xe0   : > { %2016 = vmatmul.mubr.f32.gmra.mrb[44].mxu0 %v4408_v11  ;;  %1795 = vmatprep.mubr.f32.mxu1 %v4800_v63  ;;  %v4995_v11 = vld [vmem:[#allocation2 + $0x152] sm:$0xff]  ;;  %v5021_v63 = vld [vmem:[#allocation2 + $0x182] sm:$0xff] }
  0xe1   : > { %2020 = vmatprep.mubr.f32.mxu0 %v4971_v4  ;;  %3687 = vmatpush3.bf16.msra.mxu1 %v3684_v55  ;;  %v2736_v55 = vld [vmem:[%s5360_s3 + $0x50] sm:$0xff] }
  0xe2   : > { %3689 = vmatprep.subr.bf16.mxu1 %v3688_v59  ;;  %v3712_v38 = vpack.c.bf16 %v2737_v54, %v2736_v55  ;;  %v783_v54 = vld [vmem:[#allocation2 + $0xf0] sm:$0xff] }
  0xe3   : > { %1796 = vmatmul.mubr.f32.gmra.mrb[46].mxu1 %v4947_v53 }
  0xe4   : > { %2021 = vmatmul.mubr.f32.gmra.mrb[46].mxu0 %v4416_v16  ;;  %1800 = vmatprep.mubr.f32.mxu1 %v4813_v5  ;;  %v5001_v16 = vld [vmem:[#allocation2 + $0x15a] sm:$0xff]  ;;  %v5029_v5 = vld [vmem:[#allocation2 + $0x18a] sm:$0xff] }
  0xe5   : > { %2025 = vmatprep.mubr.f32.mxu0 %v4983_v7  ;;  %3691 = vmatpush3.bf16.msra.mxu1 %v3688_v59  ;;  %v836_v59 = vld [vmem:[#allocation2 + $0x69] sm:$0xff] }
  0xe6   : > { %3693 = vmatprep.subr.bf16.mxu1 %v3692_v62 }
  0xe7   : > { %1801 = vmatmul.mubr.f32.gmra.mrb[48].mxu1 %v4959_v58 }
  0xe8   : > { %2026 = vmatmul.mubr.f32.gmra.mrb[48].mxu0 %v4419_v17  ;;  %1805 = vmatprep.mubr.f32.mxu1 %v4826_v10  ;;  %v5007_v17 = vld [vmem:[#allocation2 + $0x16a] sm:$0xff] }
  0xe9   : > { %2030 = vmatprep.mubr.f32.mxu0 %v4989_v1  ;;  %v831_v10 = vld [vmem:[#allocation2 + $0x31] sm:$0xff] }
  0xeb   : > { %1806 = vmatmul.mubr.f32.gmra.mrb[50].mxu1 %v4971_v4 }
  0xec   : > { %2031 = vmatmul.mubr.f32.gmra.mrb[50].mxu0 %v4431_v24  ;;  %1810 = vmatprep.mubr.f32.mxu1 %v4839_v18  ;;  %v5013_v24 = vld [vmem:[#allocation2 + $0x172] sm:$0xff] }
  0xed   : > { %2035 = vmatprep.mubr.f32.mxu0 %v4995_v11 }
  0xef   : > { %1811 = vmatmul.mubr.f32.gmra.mrb[52].mxu1 %v4983_v7 }
  0xf0   : > { %2036 = vmatmul.mubr.f32.gmra.mrb[52].mxu0 %v4434_v27  ;;  %1815 = vmatprep.mubr.f32.mxu1 %v4852_v21  ;;  %v5019_v27 = vld [vmem:[#allocation2 + $0x180] sm:$0xff] }
  0xf1   : > { %2040 = vmatprep.mubr.f32.mxu0 %v5001_v16 }
  0xf3   : > { %1816 = vmatmul.mubr.f32.gmra.mrb[54].mxu1 %v4989_v1 }
  0xf4   : > { %2041 = vmatmul.mubr.f32.gmra.mrb[54].mxu0 %v4446_v34  ;;  %1820 = vmatprep.mubr.f32.mxu1 %v4867_v23  ;;  %v5027_v34 = vld [vmem:[#allocation2 + $0x188] sm:$0xff] }
  0xf5   : > { %2045 = vmatprep.mubr.f32.mxu0 %v5007_v17 }
  0xf7   : > { %1821 = vmatmul.mubr.f32.gmra.mrb[56].mxu1 %v4995_v11 }
  0xf8   : > { %2046 = vmatmul.mubr.f32.gmra.mrb[56].mxu0 %v4449_v35  ;;  %1825 = vmatprep.mubr.f32.mxu1 %v4882_v60  ;;  %v895_v35 = vld [vmem:[#allocation2 + $0x32] sm:$0xff] }
  0xf9   : > { %2050 = vmatprep.mubr.f32.mxu0 %v5013_v24 }
  0xfb   : > { %1826 = vmatmul.mubr.f32.gmra.mrb[58].mxu1 %v5001_v16 }
  0xfc   : > { %2051 = vmatmul.mubr.f32.gmra.mrb[58].mxu0 %v4458_v41  ;;  %1830 = vmatprep.mubr.f32.mxu1 %v5019_v27  ;;  %v2728_v41 = vld [vmem:[%s5360_s3 + $0x10] sm:$0xff] }
  0xfd   : > { %2055 = vmatprep.mubr.f32.mxu0 %v5021_v63  ;;  %v3696_v8 = vpack.c.bf16 %v2729_v48, %v2728_v41  ;;  %v837_v41 = vld [vmem:[#allocation2 + $0x79] sm:$0xff] }
  0xff   : > { %1831 = vmatmul.mubr.f32.gmra.mrb[60].mxu1 %v5007_v17 }
 0x100   : > { %2056 = vmatmul.mubr.f32.gmra.mrb[60].mxu0 %v4630_v46  ;;  %1835 = vmatprep.mubr.f32.mxu1 %v5027_v34  ;;  %v896_v46 = vld [vmem:[#allocation2 + $0x3a] sm:$0xff] }
 0x101   : > { %2060 = vmatprep.mubr.f32.mxu0 %v5029_v5 }
 0x103   : > { %1836 = vmatmul.mubr.f32.gmra.mrb[62].mxu1 %v5013_v24 }
 0x104   : > { %2061 = vmatmul.mubr.f32.gmra.mrb[62].mxu0 %v4633_v15  ;;  %3340 = vmatprep.mubr.f32.mxu1 %v895_v35  ;;  %v768_v15 = vld [vmem:[#allocation2 + $0x38] sm:$0xff]  ;;  %v772_v35 = vld [vmem:[#allocation2 + $0x68] sm:$0xff] }
 0x105   : > { %2130 = vmatprep.mubr.f32.mxu0 %v831_v10 }
 0x107   : > { %3341 = vmatmul.mubr.f32.vlgmr.msra.gmra.mrb[64].mxu1 %v896_v46  ;;  %v2740_v46 = vld [vmem:[%s5360_s3 + $0x70] sm:$0xff] }
 0x108   : > { %2131 = vmatmul.mubr.f32.vlgmr.msra.gmra.mrb[0].mxu0 %v767_v6  ;;  %3695 = vmatpush3.bf16.msra.mxu1 %v3692_v62  ;;  %v2739_v62 = vld [vmem:[%s5360_s3 + $0x68] sm:$0xff]  ;;  %v2741_v6 = vld [vmem:[%s5360_s3 + $0x78] sm:$0xff] }
 0x109   : > { %2135 = vmatprep.mubr.f32.mxu0 %v832_v42  ;;  %3343 = vmatprep.mubr.f32.mxu1 %v897_v26  ;;  %v3716_v48 = vpack.c.bf16 %v2739_v62, %v2738_v57  ;;  %v838_v26 = vld [vmem:[#allocation2 + $0x81] sm:$0xff]  ;;  %v3928_v57 = vld [vmem:[#allocation2 + $0x31] sm:$0xff] }
 0x10a   : > { %3697 = vmatprep.subr.bf16.mxu1 %v3696_v8  ;;  %v784_v62 = vld [vmem:[#allocation2 + $0xf8] sm:$0xff] }
 0x10b   : > { %3344 = vmatmul.mubr.f32.gmra.mrb[66].mxu1 %v898_v61 }
 0x10c   : > { %2136 = vmatmul.mubr.f32.gmra.mrb[2].mxu0 %v768_v15  ;;  %3346 = vmatprep.mubr.f32.mxu1 %v899_v19  ;;  %v775_v15 = vld [vmem:[#allocation2 + $0x90] sm:$0xff]  ;;  %v840_v19 = vld [vmem:[#allocation2 + $0x99] sm:$0xff] }
 0x10d   : > { %2140 = vmatprep.mubr.f32.mxu0 %v833_v32  ;;  %3699 = vmatpush3.bf16.msra.mxu1 %v3696_v8  ;;  %v776_v32 = vld [vmem:[#allocation2 + $0x98] sm:$0xff] }
 0x10e   : > { %3701 = vmatprep.subr.bf16.mxu1 %v3700_v3 }
 0x10f   : > { %3347 = vmatmul.mubr.f32.gmra.mrb[68].mxu1 %v900_v43 }
 0x110   : > { %2141 = vmatmul.mubr.f32.gmra.mrb[4].mxu0 %v769_v20  ;;  %3349 = vmatprep.mubr.f32.mxu1 %v901_v40 }
 0x111   : > { %2145 = vmatprep.mubr.f32.mxu0 %v834_v45  ;;  %3703 = vmatpush3.bf16.msra.mxu1 %v3700_v3 }
 0x112   : > { %3705 = vmatprep.subr.bf16.mxu1 %v3704_v28 }
 0x113   : > { %3350 = vmatmul.mubr.f32.gmra.mrb[70].mxu1 %v902_v14  ;;  %v925_v14 = vld [vmem:[#allocation2 + $0x19a] sm:$0xff] }
 0x114   : > { %2146 = vmatmul.mubr.f32.gmra.mrb[6].mxu0 %v770_v47  ;;  %3352 = vmatprep.mubr.f32.mxu1 %v903_v52  ;;  %v926_v52 = vld [vmem:[#allocation2 + $0x1a2] sm:$0xff] }
 0x115   : > { %2150 = vmatprep.mubr.f32.mxu0 %v835_v39  ;;  %3707 = vmatpush3.bf16.msra.mxu1 %v3704_v28  ;;  %v782_v39 = vld [vmem:[#allocation2 + $0xe0] sm:$0xff] }
 0x116   : > { %3709 = vmatprep.subr.bf16.mxu1 %v3708_v13 }
 0x117   : > { %3353 = vmatmul.mubr.f32.gmra.mrb[72].mxu1 %v4640_v25 }
 0x118   : > { %2151 = vmatmul.mubr.f32.gmra.mrb[8].mxu0 %v771_v56  ;;  %3355 = vmatprep.mubr.f32.mxu1 %v4653_v31  ;;  %v773_v31 = vld [vmem:[#allocation2 + $0x78] sm:$0xff] }
 0x119   : > { %2155 = vmatprep.mubr.f32.mxu0 %v836_v59  ;;  %3711 = vmatpush3.bf16.msra.mxu1 %v3708_v13  ;;  %v848_v59 = vld [vmem:[#allocation2 + $0xf9] sm:$0xff] }
 0x11a   : > { %v5075_v10 = vpop.f32.mrb[0].mxu1  ;;  %3713 = vmatprep.subr.bf16.mxu1 %v3712_v38 }
 0x11b   : > { %3356 = vmatmul.mubr.f32.gmra.mrb[74].mxu1 %v4672_v0  ;;  %v1459_v25 = vpop.f32.mrb[1].mxu1  ;;  %v3720_v0 = vpack.c.bf16 %v2741_v6, %v2740_v46  ;;  %v3930_v46 = vld [vmem:[#allocation2 + $0x49] sm:$0xff] }
 0x11c   : > { %2156 = vmatmul.mubr.f32.gmra.mrb[10].mxu0 %v772_v35  ;;  %3358 = vmatprep.mubr.f32.mxu1 %v4855_v37  ;;  %v839_v37 = vld [vmem:[#allocation2 + $0x91] sm:$0xff]  ;;  %v785_v6 = vld [vmem:[#allocation2 + $0x108] sm:$0xff] }
 0x11d   : > { %2160 = vmatprep.mubr.f32.mxu0 %v837_v41  ;;  %3715 = vmatpush3.bf16.msra.mxu1 %v3712_v38  ;;  %v849_v41 = vld [vmem:[#allocation2 + $0x109] sm:$0xff] }
 0x11e   : > { %v5085_v42 = vpop.f32.mrb[2].mxu1  ;;  %3717 = vmatprep.subr.bf16.mxu1 %v3716_v48 }
 0x11f   : > { %3359 = vmatmul.mubr.f32.gmra.mrb[76].mxu1 %v4870_v12  ;;  %v1464_v8 = vpop.f32.mrb[3].mxu1 }
 0x120   : > { %2161 = vmatmul.mubr.f32.gmra.mrb[12].mxu0 %v773_v31  ;;  %3361 = vmatprep.mubr.f32.mxu1 %v4885_v49 }
 0x121   : > { %2165 = vmatprep.mubr.f32.mxu0 %v838_v26  ;;  %3719 = vmatpush3.bf16.msra.mxu1 %v3716_v48  ;;  %v3929_v48 = vld [vmem:[#allocation2 + $0x39] sm:$0xff]  ;;  %v850_v26 = vld [vmem:[#allocation2 + $0x111] sm:$0xff] }
 0x122   : > { %v5089_v29 = vpop.f32.mrb[4].mxu1  ;;  %3721 = vmatprep.subr.bf16.mxu1 %v3720_v0 }
 0x123   : > { %3362 = vmatmul.mubr.f32.gmra.mrb[78].mxu1 %v4898_v33  ;;  %v1469_v61 = vpop.f32.mrb[5].mxu1  ;;  %v841_v33 = vld [vmem:[#allocation2 + $0xa9] sm:$0xff] }
 0x124   : > { %2166 = vmatmul.mubr.f32.gmra.mrb[14].mxu0 %v774_v44  ;;  %3364 = vmatprep.mubr.f32.mxu1 %v4911_v36  ;;  %v3932_v44 = vld [vmem:[#allocation2 + $0x61] sm:$0xff] }
 0x125   : > { %2170 = vmatprep.mubr.f32.mxu0 %v839_v37  ;;  %3723 = vmatpush3.bf16.msra.mxu1 %v3720_v0  ;;  %v3931_v0 = vld [vmem:[#allocation2 + $0x51] sm:$0xff] }
 0x126   : > { %v5093_v12 = vpop.f32.mrb[6].mxu1  ;;  %v786_v37 = vld [vmem:[#allocation2 + $0x110] sm:$0xff] }
 0x127   : > { %3365 = vmatmul.mubr.f32.gmra.mrb[80].mxu1 %v4923_v22  ;;  %v1474_v49 = vpop.f32.mrb[7].mxu1  ;;  %v842_v22 = vld [vmem:[#allocation2 + $0xb1] sm:$0xff] }
 0x128   : > { %2171 = vmatmul.mubr.f32.gmra.mrb[16].mxu0 %v775_v15  ;;  %3367 = vmatprep.mubr.f32.mxu1 %v4935_v50  ;;  %v778_v50 = vld [vmem:[#allocation2 + $0xb0] sm:$0xff]  ;;  %v851_v15 = vld [vmem:[#allocation2 + $0x121] sm:$0xff] }
 0x129   : > { %2175 = vmatprep.mubr.f32.mxu0 %v840_v19  ;;  %v3933_v19 = vld [vmem:[#allocation2 + $0x69] sm:$0xff] }
 0x12a   : > { %v5097_v3 = vpop.f32.mrb[8].mxu1 }
 0x12b   : > { %3368 = vmatmul.mubr.f32.gmra.mrb[82].mxu1 %v4947_v53  ;;  %v1479_v36 = vpop.f32.mrb[9].mxu1  ;;  %v843_v53 = vld [vmem:[#allocation2 + $0xc1] sm:$0xff] }
 0x12c   : > { %2176 = vmatmul.mubr.f32.gmra.mrb[18].mxu0 %v776_v32  ;;  %3370 = vmatprep.mubr.f32.mxu1 %v4959_v58  ;;  %v779_v58 = vld [vmem:[#allocation2 + $0xc0] sm:$0xff] }
 0x12d   : > { %2180 = vmatprep.mubr.f32.mxu0 %v841_v33  ;;  %v3934_v32 = vld [vmem:[#allocation2 + $0x79] sm:$0xff] }
 0x12e   : > { %v5101_v30 = vpop.f32.mrb[10].mxu1  ;;  %v787_v33 = vld [vmem:[#allocation2 + $0x120] sm:$0xff] }
 0x12f   : > { %3371 = vmatmul.mubr.f32.gmra.mrb[84].mxu1 %v4971_v4  ;;  %v1484_v43 = vpop.f32.mrb[11].mxu1  ;;  %v844_v4 = vld [vmem:[#allocation2 + $0xc9] sm:$0xff] }
 0x130   : > { %2181 = vmatmul.mubr.f32.gmra.mrb[20].mxu0 %v777_v2  ;;  %3373 = vmatprep.mubr.f32.mxu1 %v4983_v7  ;;  %v780_v7 = vld [vmem:[#allocation2 + $0xc8] sm:$0xff] }
 0x131   : > { %2185 = vmatprep.mubr.f32.mxu0 %v842_v22  ;;  %v852_v2 = vld [vmem:[#allocation2 + $0x129] sm:$0xff]  ;;  %v3935_v22 = vld [vmem:[#allocation2 + $0x81] sm:$0xff] }
 0x132   : > { %v5105_v20 = vpop.f32.mrb[12].mxu1 }
 0x133   : > { %3374 = vmatmul.mubr.f32.gmra.mrb[86].mxu1 %v4989_v1  ;;  %v1489_v40 = vpop.f32.mrb[13].mxu1  ;;  %v845_v1 = vld [vmem:[#allocation2 + $0xd9] sm:$0xff] }
 0x134   : > { %2186 = vmatmul.mubr.f32.gmra.mrb[22].mxu0 %v778_v50  ;;  %3376 = vmatprep.mubr.f32.mxu1 %v4995_v11  ;;  %v781_v11 = vld [vmem:[#allocation2 + $0xd8] sm:$0xff] }
 0x135   : > { %2190 = vmatprep.mubr.f32.mxu0 %v843_v53  ;;  %v3936_v50 = vld [vmem:[#allocation2 + $0x91] sm:$0xff]  ;;  %v788_v53 = vld [vmem:[#allocation2 + $0x128] sm:$0xff]  ;;  %v853_v40 = vld [vmem:[#allocation2 + $0x139] sm:$0xff] }
 0x136   : > { %v5109_v45 = vpop.f32.mrb[14].mxu1 }
 0x137   : > { %3377 = vmatmul.mubr.f32.gmra.mrb[88].mxu1 %v5001_v16  ;;  %v1494_v28 = vpop.f32.mrb[15].mxu1  ;;  %v846_v16 = vld [vmem:[#allocation2 + $0xe1] sm:$0xff] }
 0x138   : > { %2191 = vmatmul.mubr.f32.gmra.mrb[24].mxu0 %v779_v58  ;;  %3379 = vmatprep.mubr.f32.mxu1 %v5007_v17  ;;  %v3937_v58 = vld [vmem:[#allocation2 + $0x99] sm:$0xff] }
 0x139   : > { %2195 = vmatprep.mubr.f32.mxu0 %v844_v4  ;;  %v3938_v4 = vld [vmem:[#allocation2 + $0xa9] sm:$0xff]  ;;  %v789_v28 = vld [vmem:[#allocation2 + $0x138] sm:$0xff] }
 0x13a   : > { %v5113_v9 = vpop.f32.mrb[16].mxu1 }
 0x13b   : > { %3380 = vmatmul.mubr.f32.gmra.mrb[90].mxu1 %v5013_v24  ;;  %v1499_v51 = vpop.f32.mrb[17].mxu1  ;;  %v847_v24 = vld [vmem:[#allocation2 + $0xf1] sm:$0xff] }
 0x13c   : > { %2196 = vmatmul.mubr.f32.gmra.mrb[26].mxu0 %v780_v7  ;;  %3382 = vmatprep.mubr.f32.mxu1 %v5021_v63  ;;  %v3926_v63 = vld [vmem:[#allocation2 + $0x19] sm:$0xff]  ;;  %v854_v7 = vld [vmem:[#allocation2 + $0x141] sm:$0xff] }
 0x13d   : > { %2200 = vmatprep.mubr.f32.mxu0 %v845_v1  ;;  %v3939_v1 = vld [vmem:[#allocation2 + $0xb1] sm:$0xff]  ;;  %v3940_v51 = vld [vmem:[#allocation2 + $0xc1] sm:$0xff] }
 0x13e   : > { %v5117_v47 = vpop.f32.mrb[18].mxu1 }
 0x13f   : > { %3383 = vmatmul.mubr.f32.gmra.mrb[92].mxu1 %v5029_v5  ;;  %v1504_v17 = vpop.f32.mrb[19].mxu1  ;;  %v3927_v5 = vld [vmem:[#allocation2 + $0x21] sm:$0xff] }
 0x140   : > { %2201 = vmatmul.mubr.f32.gmra.mrb[28].mxu0 %v781_v11  ;;  %3385 = vmatprep.mubr.f32.mxu1 %v925_v14  ;;  %v790_v11 = vld [vmem:[#allocation2 + $0x140] sm:$0xff]  ;;  %v855_v14 = vld [vmem:[#allocation2 + $0x151] sm:$0xff] }
 0x141   : > { %2205 = vmatprep.mubr.f32.mxu0 %v846_v16  ;;  %v3941_v16 = vld [vmem:[#allocation2 + $0xc9] sm:$0xff]  ;;  %v3942_v17 = vld [vmem:[#allocation2 + $0xd9] sm:$0xff] }
 0x142   : > { %v5120_v13 = vpop.f32.mrb[20].mxu1 }
 0x143   : > { %3386 = vmatmul.mubr.f32.gmra.mrb[94].mxu1 %v926_v52  ;;  %v1509_v55 = vpop.f32.mrb[21].mxu1  ;;  %v3943_v52 = vld [vmem:[#allocation2 + $0xe1] sm:$0xff] }
 0x144   : > { %2206 = vmatmul.mubr.f32.gmra.mrb[30].mxu0 %v782_v39  ;;  %3420 = vmatprep.mubr.f32.mxu1 %v3926_v63  ;;  %v3944_v39 = vld [vmem:[#allocation2 + $0xf1] sm:$0xff]  ;;  %v3946_v55 = vld [vmem:[#allocation2 + $0xf9] sm:$0xff]  ;;  %v3947_v63 = vld [vmem:[#allocation2 + $0x109] sm:$0xff] }
 0x145   : > { %2210 = vmatprep.mubr.f32.mxu0 %v847_v24  ;;  %v3945_v24 = vld [vmem:[#allocation2 + $0x159] sm:$0xff] }
 0x146   : > { %v5122_v56 = vpop.f32.mrb[22].mxu1 }
 0x147   : > { %3421 = vmatmul.mubr.f32.vlgmr.msra.gmra.mrb[96].mxu1 %v3927_v5  ;;  %v1514_v38 = vpop.f32.mrb[23].mxu1  ;;  %v3950_v5 = vld [vmem:[#allocation2 + $0x121] sm:$0xff] }
 0x148   : > { %2211 = vmatmul.mubr.f32.gmra.mrb[32].mxu0 %v783_v54  ;;  %3423 = vmatprep.mubr.f32.mxu1 %v3928_v57  ;;  %v3948_v54 = vld [vmem:[#allocation2 + $0x169] sm:$0xff]  ;;  %v3951_v38 = vld [vmem:[#allocation2 + $0x171] sm:$0xff]  ;;  %v3953_v57 = vld [vmem:[#allocation2 + $0x139] sm:$0xff] }
 0x149   : > { %2215 = vmatprep.mubr.f32.mxu0 %v848_v59  ;;  %v3949_v59 = vld [vmem:[#allocation2 + $0x111] sm:$0xff] }
 0x14a   : > { %v5124_v35 = vpop.f32.mrb[24].mxu1 }
 0x14b   : > { %3424 = vmatmul.mubr.f32.gmra.mrb[98].mxu1 %v3929_v48  ;;  %v1519_v25 = vpop.f32.mrb[25].mxu1  ;;  %v3957_v48 = vld [vmem:[#allocation2 + $0x189] sm:$0xff] }
 0x14c   : > { %2216 = vmatmul.mubr.f32.gmra.mrb[34].mxu0 %v784_v62  ;;  %3426 = vmatprep.mubr.f32.mxu1 %v3930_v46  ;;  %v3954_v62 = vld [vmem:[#allocation2 + $0x181] sm:$0xff]  ;;  %v797_v25 = vld [vmem:[#allocation2 + $0x198] sm:$0xff] }
 0x14d   : > { %2220 = vmatprep.mubr.f32.mxu0 %v849_v41  ;;  %v3956_v41 = vld [vmem:[#allocation2 + $0x151] sm:$0xff]  ;;  %v3958_v46 = vld [vmem:[#allocation2 + $0x8] sm:$0xff] }
 0x14e   : > { %v5126_v31 = vpop.f32.mrb[26].mxu1 }
 0x14f   : > { %3427 = vmatmul.mubr.f32.gmra.mrb[100].mxu1 %v3931_v0  ;;  %v1524_v8 = vpop.f32.mrb[27].mxu1 }
 0x150   : > { %2221 = vmatmul.mubr.f32.gmra.mrb[36].mxu0 %v785_v6  ;;  %3429 = vmatprep.mubr.f32.mxu1 %v3932_v44 }
 0x151   : > { %2225 = vmatprep.mubr.f32.mxu0 %v850_v26 }
 0x152   : > { %v5128_v61 = vpop.f32.mrb[28].mxu1 }
 0x153   : > { %3430 = vmatmul.mubr.f32.gmra.mrb[102].mxu1 %v3933_v19  ;;  %v1529_v49 = vpop.f32.mrb[29].mxu1 }
 0x154   : > { %2226 = vmatmul.mubr.f32.gmra.mrb[38].mxu0 %v786_v37  ;;  %3432 = vmatprep.mubr.f32.mxu1 %v3934_v32 }
 0x155   : > { %2230 = vmatprep.mubr.f32.mxu0 %v851_v15 }
 0x156   : > { %v5130_v36 = vpop.f32.mrb[30].mxu1 }
 0x157   : > { %3433 = vmatmul.mubr.f32.gmra.mrb[104].mxu1 %v3935_v22  ;;  %v1534_v43 = vpop.f32.mrb[31].mxu1 }
 0x158   : > { %2231 = vmatmul.mubr.f32.gmra.mrb[40].mxu0 %v787_v33  ;;  %3435 = vmatprep.mubr.f32.mxu1 %v3936_v50 }
 0x159   : > { %2235 = vmatprep.mubr.f32.mxu0 %v852_v2 }
 0x15b   : > { %3436 = vmatmul.mubr.f32.gmra.mrb[106].mxu1 %v3937_v58 }
 0x15c   : > { %2236 = vmatmul.mubr.f32.gmra.mrb[42].mxu0 %v788_v53  ;;  %3438 = vmatprep.mubr.f32.mxu1 %v3938_v4 }
 0x15d   : > { %2240 = vmatprep.mubr.f32.mxu0 %v853_v40 }
 0x15f   : > { %3439 = vmatmul.mubr.f32.gmra.mrb[108].mxu1 %v3939_v1 }
 0x160   : > { %2241 = vmatmul.mubr.f32.gmra.mrb[44].mxu0 %v789_v28  ;;  %3441 = vmatprep.mubr.f32.mxu1 %v3940_v51 }
 0x161   : > { %2245 = vmatprep.mubr.f32.mxu0 %v854_v7 }
 0x163   : > { %3442 = vmatmul.mubr.f32.gmra.mrb[110].mxu1 %v3941_v16 }
 0x164   : > { %2246 = vmatmul.mubr.f32.gmra.mrb[46].mxu0 %v790_v11  ;;  %3444 = vmatprep.mubr.f32.mxu1 %v3942_v17 }
 0x165   : > { %2250 = vmatprep.mubr.f32.mxu0 %v855_v14 }
 0x167   : > { %3445 = vmatmul.mubr.f32.gmra.mrb[112].mxu1 %v3943_v52 }
 0x168   : > { %2251 = vmatmul.mubr.f32.gmra.mrb[48].mxu0 %v4839_v18  ;;  %3447 = vmatprep.mubr.f32.mxu1 %v3944_v39  ;;  %v3952_v18 = vld [vmem:[#allocation2 + $0x129] sm:$0xff] }
 0x169   : > { %2255 = vmatprep.mubr.f32.mxu0 %v3945_v24 }
 0x16b   : > { %3448 = vmatmul.mubr.f32.gmra.mrb[114].mxu1 %v3946_v55 }
 0x16c   : > { %2256 = vmatmul.mubr.f32.gmra.mrb[50].mxu0 %v4852_v21  ;;  %3450 = vmatprep.mubr.f32.mxu1 %v3947_v63  ;;  %v3955_v21 = vld [vmem:[#allocation2 + $0x141] sm:$0xff] }
 0x16d   : > { %2260 = vmatprep.mubr.f32.mxu0 %v3948_v54 }
 0x16f   : > { %3451 = vmatmul.mubr.f32.gmra.mrb[116].mxu1 %v3949_v59 }
 0x170   : > { %2261 = vmatmul.mubr.f32.gmra.mrb[52].mxu0 %v4867_v23  ;;  %3453 = vmatprep.mubr.f32.mxu1 %v3950_v5  ;;  %v861_v23 = vld [vmem:[#allocation2 + $0x199] sm:$0xff] }
 0x171   : > { %2265 = vmatprep.mubr.f32.mxu0 %v3951_v38 }
 0x173   : > { %3454 = vmatmul.mubr.f32.gmra.mrb[118].mxu1 %v3952_v18 }
 0x174   : > { %2266 = vmatmul.mubr.f32.gmra.mrb[54].mxu0 %v4882_v60  ;;  %3456 = vmatprep.mubr.f32.mxu1 %v3953_v57  ;;  %v862_v60 = vld [vmem:[#allocation2 + $0x1a1] sm:$0xff] }
 0x175   : > { %2270 = vmatprep.mubr.f32.mxu0 %v3954_v62 }
 0x177   : > { %3457 = vmatmul.mubr.f32.gmra.mrb[120].mxu1 %v3955_v21 }
 0x178   : > { %2271 = vmatmul.mubr.f32.gmra.mrb[56].mxu0 %v5019_v27  ;;  %3459 = vmatprep.mubr.f32.mxu1 %v3956_v41 }
 0x179   : > { %2275 = vmatprep.mubr.f32.mxu0 %v3957_v48 }
 0x17b   : > { %3460 = vmatmul.mubr.f32.gmra.mrb[122].mxu1 %v3945_v24 }
 0x17c   : > { %2276 = vmatmul.mubr.f32.gmra.mrb[58].mxu0 %v5027_v34  ;;  %3462 = vmatprep.mubr.f32.mxu1 %v3948_v54 }
 0x17d   : > { %2280 = vmatprep.mubr.f32.mxu0 %v861_v23 }
 0x17f   : > { %3463 = vmatmul.mubr.f32.gmra.mrb[124].mxu1 %v3951_v38  ;;  %v5174_v38 = vld [vmem:[%s5359_s2] ss:$0 sm:$0xff] }
 0x180   : > { %2281 = vmatmul.mubr.f32.gmra.mrb[60].mxu0 %v797_v25  ;;  %3465 = vmatprep.mubr.f32.mxu1 %v3954_v62 }
 0x181   : > { %2285 = vmatprep.mubr.f32.mxu0 %v862_v60 }
 0x183   : > { %3466 = vmatmul.mubr.f32.gmra.mrb[126].mxu1 %v3957_v48 }
 0x184   : > { %2286 = vmatmul.mubr.f32.gmra.mrb[62].mxu0 %v3958_v46 }
 0x19a   : > { %v5138_v27 = vpop.f32.mrb[32].mxu1 }
 0x19b   : > { %v1764_v6 = vpop.f32.mrb[33].mxu1 }
 0x19e   : > { %v5140_v26 = vpop.f32.mrb[34].mxu1 }
 0x19f   : > { %v1769_v0 = vpop.f32.mrb[35].mxu1 }
 0x1a2   : > { %v5142_v8 = vpop.f32.mrb[36].mxu1 }
 0x1a3   : > { %v1774_v34 = vpop.f32.mrb[37].mxu1 }
 0x1a6   : > { %v5144_v44 = vpop.f32.mrb[38].mxu1 }
 0x1a7   : > { %v1779_v37 = vpop.f32.mrb[39].mxu1 }
 0x1aa   : > { %v5146_v15 = vpop.f32.mrb[40].mxu1 }
 0x1ab   : > { %v1784_v19 = vpop.f32.mrb[41].mxu1 }
 0x1ae   : > { %v5148_v49 = vpop.f32.mrb[42].mxu1 }
 0x1af   : > { %v1789_v32 = vpop.f32.mrb[43].mxu1 }
 0x1b2   : > { %v5150_v33 = vpop.f32.mrb[44].mxu1 }
 0x1b3   : > { %v1794_v2 = vpop.f32.mrb[45].mxu1 }
 0x1b6   : > { %v5152_v22 = vpop.f32.mrb[46].mxu1 }
 0x1b7   : > { %v1799_v43 = vpop.f32.mrb[47].mxu1 }
 0x1ba   : > { %v5154_v50 = vpop.f32.mrb[48].mxu1 }
 0x1bb   : > { %v1804_v53 = vpop.f32.mrb[49].mxu1 }
 0x1be   : > { %v5156_v40 = vpop.f32.mrb[50].mxu1 }
 0x1bf   : > { %v1809_v58 = vpop.f32.mrb[51].mxu1 }
 0x1c2   : > { %v5158_v4 = vpop.f32.mrb[52].mxu1 }
 0x1c3   : > { %v1814_v28 = vpop.f32.mrb[53].mxu1 }
 0x1c6   : > { %v5160_v7 = vpop.f32.mrb[54].mxu1 }
 0x1c7   : > { %v1819_v1 = vpop.f32.mrb[55].mxu1 }
 0x1ca   : > { %v5162_v51 = vpop.f32.mrb[56].mxu1 }
 0x1cb   : > { %v1824_v11 = vpop.f32.mrb[57].mxu1 }
 0x1ce   : > { %v5164_v14 = vpop.f32.mrb[58].mxu1 }
 0x1cf   : > { %v1829_v16 = vpop.f32.mrb[59].mxu1 }
 0x1d2   : > { %v5166_v17 = vpop.f32.mrb[60].mxu1 }
 0x1d3   : > { %v1834_v52 = vpop.f32.mrb[61].mxu1 }
 0x1d6   : > { %v5168_v39 = vpop.f32.mrb[62].mxu1 }
 0x1d7   : > { %v1839_v24 = vpop.f32.mrb[63].mxu1 }
 0x1da   : > { %v3342_v55 = vpop.f32.mrb[64].mxu1 }
 0x1db   : > { %v2132_v63 = vpop.f32.mrb[0].mxu0  ;;  %v2357_v54 = vpop.f32.mrb[65].mxu1 }
 0x1dc   : > { %v3756_v59 = vadd.f32 %v2132_v63, %v5075_v10  ;;  %v2134_v5 = vpop.f32.mrb[1].mxu0 }
 0x1de   : > { %v2358_v18 = vadd.f32 %v3756_v59, %v2357_v54  ;;  %v3345_v57 = vpop.f32.mrb[66].mxu1 }
 0x1df   : > { %v2137_v62 = vpop.f32.mrb[2].mxu0  ;;  %v2367_v21 = vpop.f32.mrb[67].mxu1 }
 0x1e0   : > { %v2522_v10 = vadd.f32 %v5174_v38, %v2358_v18  ;;  %v3757_v41 = vadd.f32 %v2137_v62, %v5085_v42  ;;  %v2139_v48 = vpop.f32.mrb[3].mxu0  ;;  %v2624_v60 = vmul.f32 %v2358_v18, %v2358_v18 }
 0x1e2   : > { %2554 = vst [vmem:[%s5181_s16] sm:$0xff] %v2522_v10  ;;  %v2363_v23 = vadd.f32 %v3757_v41, %v3342_v55  ;;  %v3348_v25 = vpop.f32.mrb[68].mxu1 }
 0x1e3   : > { %v2142_v46 = vpop.f32.mrb[4].mxu0  ;;  %v2377_v6 = vpop.f32.mrb[69].mxu1 }
 0x1e4   : > { %v2523_v0 = vadd.f32 %v5174_v38, %v2363_v23  ;;  %v2586_v34 = vadd.f32 %v2363_v23, %v2358_v18  ;;  %v2625_v37 = vmul.f32 %v2363_v23, %v2363_v23  ;;  %v3758_v19 = vadd.f32 %v2142_v46, %v5089_v29  ;;  %v2144_v32 = vpop.f32.mrb[5].mxu0 }
 0x1e6   : > { %2555 = vst [vmem:[%s5181_s16 + $0x8] sm:$0xff] %v2523_v0  ;;  %v2656_v2 = vadd.f32 %v2625_v37, %v2624_v60  ;;  %v2368_v43 = vadd.f32 %v3758_v19, %v2367_v21  ;;  %v3351_v53 = vpop.f32.mrb[70].mxu1 }
 0x1e7   : > { %v2147_v42 = vpop.f32.mrb[6].mxu0  ;;  %v2387_v58 = vpop.f32.mrb[71].mxu1 }
 0x1e8   : > { %v2524_v28 = vadd.f32 %v5174_v38, %v2368_v43  ;;  %v2587_v1 = vadd.f32 %v2586_v34, %v2368_v43  ;;  %v2626_v11 = vmul.f32 %v2368_v43, %v2368_v43  ;;  %v3759_v16 = vadd.f32 %v2147_v42, %v5093_v12  ;;  %v2149_v52 = vpop.f32.mrb[7].mxu0 }
 0x1ea   : > { %2556 = vst [vmem:[%s5181_s16 + $0x10] sm:$0xff] %v2524_v28  ;;  %v2657_v24 = vadd.f32 %v2656_v2, %v2626_v11  ;;  %v2373_v55 = vadd.f32 %v3759_v16, %v3345_v57  ;;  %v5192_v63 = vpop.f32.mrb[72].mxu1 }
 0x1eb   : > { %v2152_v29 = vpop.f32.mrb[8].mxu0  ;;  %v2397_v54 = vpop.f32.mrb[73].mxu1 }
 0x1ec   : > { %v2525_v59 = vadd.f32 %v5174_v38, %v2373_v55  ;;  %v2588_v5 = vadd.f32 %v2587_v1, %v2373_v55  ;;  %v2627_v18 = vmul.f32 %v2373_v55, %v2373_v55  ;;  %v3760_v62 = vadd.f32 %v2152_v29, %v5097_v3  ;;  %v2154_v21 = vpop.f32.mrb[9].mxu0 }
 0x1ee   : > { %2557 = vst [vmem:[%s5181_s16 + $0x18] sm:$0xff] %v2525_v59  ;;  %v2658_v10 = vadd.f32 %v2657_v24, %v2627_v18  ;;  %v2378_v41 = vadd.f32 %v3760_v62, %v2377_v6  ;;  %v5197_v12 = vpop.f32.mrb[74].mxu1 }
 0x1ef   : > { %v2157_v48 = vpop.f32.mrb[10].mxu0  ;;  %v5199_v23 = vpop.f32.mrb[75].mxu1 }
 0x1f0   : > { %v2526_v57 = vadd.f32 %v5174_v38, %v2378_v41  ;;  %v2589_v60 = vadd.f32 %v2588_v5, %v2378_v41  ;;  %v2628_v46 = vmul.f32 %v2378_v41, %v2378_v41  ;;  %v3761_v0 = vadd.f32 %v2157_v48, %v5101_v30  ;;  %v2159_v34 = vpop.f32.mrb[11].mxu0 }
 0x1f2   : > { %2558 = vst [vmem:[%s5181_s16 + $0x20] sm:$0xff] %v2526_v57  ;;  %v2659_v37 = vadd.f32 %v2658_v10, %v2628_v46  ;;  %v2383_v3 = vadd.f32 %v3761_v0, %v3348_v25  ;;  %v5204_v19 = vpop.f32.mrb[76].mxu1 }
 0x1f3   : > { %v2162_v32 = vpop.f32.mrb[12].mxu0  ;;  %v5206_v6 = vpop.f32.mrb[77].mxu1 }
 0x1f4   : > { %v2527_v2 = vadd.f32 %v5174_v38, %v2383_v3  ;;  %v2590_v43 = vadd.f32 %v2589_v60, %v2383_v3  ;;  %v2629_v42 = vmul.f32 %v2383_v3, %v2383_v3  ;;  %v3762_v28 = vadd.f32 %v2162_v32, %v5105_v20  ;;  %v2164_v1 = vpop.f32.mrb[13].mxu0 }
 0x1f6   : > { %2559 = vst [vmem:[%s5181_s16 + $0x28] sm:$0xff] %v2527_v2  ;;  %v2660_v11 = vadd.f32 %v2659_v37, %v2629_v42  ;;  %v2388_v30 = vadd.f32 %v3762_v28, %v2387_v58  ;;  %v5211_v16 = vpop.f32.mrb[78].mxu1 }
 0x1f7   : > { %v2167_v52 = vpop.f32.mrb[14].mxu0  ;;  %v5213_v25 = vpop.f32.mrb[79].mxu1 }
 0x1f8   : > { %v2528_v24 = vadd.f32 %v5174_v38, %v2388_v30  ;;  %v2591_v55 = vadd.f32 %v2590_v43, %v2388_v30  ;;  %v2630_v29 = vmul.f32 %v2388_v30, %v2388_v30  ;;  %v3763_v59 = vadd.f32 %v2167_v52, %v5109_v45  ;;  %v2169_v5 = vpop.f32.mrb[15].mxu0 }
 0x1fa   : > { %2560 = vst [vmem:[%s5181_s16 + $0x30] sm:$0xff] %v2528_v24  ;;  %v2661_v18 = vadd.f32 %v2660_v11, %v2630_v29  ;;  %v2393_v20 = vadd.f32 %v3763_v59, %v3351_v53  ;;  %v5218_v62 = vpop.f32.mrb[80].mxu1 }
 0x1fb   : > { %v2172_v21 = vpop.f32.mrb[16].mxu0  ;;  %v5220_v58 = vpop.f32.mrb[81].mxu1 }
 0x1fc   : > { %v2529_v10 = vadd.f32 %v5174_v38, %v2393_v20  ;;  %v2592_v41 = vadd.f32 %v2591_v55, %v2393_v20  ;;  %v2631_v48 = vmul.f32 %v2393_v20, %v2393_v20  ;;  %v3764_v57 = vadd.f32 %v2172_v21, %v5113_v9  ;;  %v2174_v60 = vpop.f32.mrb[17].mxu0 }
 0x1fe   : > { %2561 = vst [vmem:[%s5181_s16 + $0x38] sm:$0xff] %v2529_v10  ;;  %v2662_v46 = vadd.f32 %v2661_v18, %v2631_v48  ;;  %v2398_v45 = vadd.f32 %v3764_v57, %v2397_v54  ;;  %v5225_v0 = vpop.f32.mrb[82].mxu1 }
 0x1ff   : > { %v2177_v34 = vpop.f32.mrb[18].mxu0  ;;  %v5227_v53 = vpop.f32.mrb[83].mxu1 }
 0x200   : > { %v2530_v37 = vadd.f32 %v5174_v38, %v2398_v45  ;;  %v2593_v3 = vadd.f32 %v2592_v41, %v2398_v45  ;;  %v2632_v32 = vmul.f32 %v2398_v45, %v2398_v45  ;;  %v3765_v2 = vadd.f32 %v2177_v34, %v5117_v47  ;;  %v2179_v43 = vpop.f32.mrb[19].mxu0 }
 0x202   : > { %2562 = vst [vmem:[%s5181_s16 + $0x40] sm:$0xff] %v2530_v37  ;;  %v2663_v42 = vadd.f32 %v2662_v46, %v2632_v32  ;;  %v2403_v9 = vadd.f32 %v3765_v2, %v5192_v63  ;;  %v5233_v28 = vpop.f32.mrb[84].mxu1 }
 0x203   : > { %v2182_v54 = vpop.f32.mrb[20].mxu0  ;;  %v5235_v1 = vpop.f32.mrb[85].mxu1 }
 0x204   : > { %v2531_v11 = vadd.f32 %v5174_v38, %v2403_v9  ;;  %v2594_v30 = vadd.f32 %v2593_v3, %v2403_v9  ;;  %v2633_v52 = vmul.f32 %v2403_v9, %v2403_v9  ;;  %v3766_v24 = vadd.f32 %v2182_v54, %v5120_v13  ;;  %v2184_v55 = vpop.f32.mrb[21].mxu0 }
 0x206   : > { %2563 = vst [vmem:[%s5181_s16 + $0x48] sm:$0xff] %v2531_v11  ;;  %v2664_v47 = vadd.f32 %v2663_v42, %v2633_v52  ;;  %v2408_v29 = vadd.f32 %v3766_v24, %v5199_v23  ;;  %v5241_v59 = vpop.f32.mrb[86].mxu1 }
 0x207   : > { %v2187_v63 = vpop.f32.mrb[22].mxu0  ;;  %v5243_v5 = vpop.f32.mrb[87].mxu1 }
 0x208   : > { %v2532_v18 = vadd.f32 %v5174_v38, %v2408_v29  ;;  %v2595_v20 = vadd.f32 %v2594_v30, %v2408_v29  ;;  %v2634_v21 = vmul.f32 %v2408_v29, %v2408_v29  ;;  %v3767_v10 = vadd.f32 %v2187_v63, %v5122_v56  ;;  %v2189_v41 = vpop.f32.mrb[23].mxu0 }
 0x20a   : > { %2564 = vst [vmem:[%s5181_s16 + $0x50] sm:$0xff] %v2532_v18  ;;  %v2665_v13 = vadd.f32 %v2664_v47, %v2634_v21  ;;  %v2413_v48 = vadd.f32 %v3767_v10, %v5197_v12  ;;  %v5249_v57 = vpop.f32.mrb[88].mxu1 }
 0x20b   : > { %v2192_v23 = vpop.f32.mrb[24].mxu0  ;;  %v5251_v60 = vpop.f32.mrb[89].mxu1 }
 0x20c   : > { %v2533_v46 = vadd.f32 %v5174_v38, %v2413_v48  ;;  %v2596_v45 = vadd.f32 %v2595_v20, %v2413_v48  ;;  %v2635_v34 = vmul.f32 %v2413_v48, %v2413_v48  ;;  %v3768_v37 = vadd.f32 %v2192_v23, %v5124_v35  ;;  %v2194_v3 = vpop.f32.mrb[25].mxu0 }
 0x20e   : > { %2565 = vst [vmem:[%s5181_s16 + $0x58] sm:$0xff] %v2533_v46  ;;  %v2666_v56 = vadd.f32 %v2665_v13, %v2635_v34  ;;  %v2418_v32 = vadd.f32 %v3768_v37, %v5206_v6  ;;  %v5257_v2 = vpop.f32.mrb[90].mxu1 }
 0x20f   : > { %v2197_v12 = vpop.f32.mrb[26].mxu0  ;;  %v5259_v43 = vpop.f32.mrb[91].mxu1 }
 0x210   : > { %v2534_v42 = vadd.f32 %v5174_v38, %v2418_v32  ;;  %v2597_v9 = vadd.f32 %v2596_v45, %v2418_v32  ;;  %v2636_v54 = vmul.f32 %v2418_v32, %v2418_v32  ;;  %v3769_v11 = vadd.f32 %v2197_v12, %v5126_v31  ;;  %v2199_v30 = vpop.f32.mrb[27].mxu0 }
 0x212   : > { %2566 = vst [vmem:[%s5181_s16 + $0x60] sm:$0xff] %v2534_v42  ;;  %v2667_v35 = vadd.f32 %v2666_v56, %v2636_v54  ;;  %v2423_v52 = vadd.f32 %v3769_v11, %v5204_v19  ;;  %v5265_v24 = vpop.f32.mrb[92].mxu1 }
 0x213   : > { %v2202_v6 = vpop.f32.mrb[28].mxu0  ;;  %v5267_v55 = vpop.f32.mrb[93].mxu1 }
 0x214   : > { %v2535_v47 = vadd.f32 %v5174_v38, %v2423_v52  ;;  %v2598_v29 = vadd.f32 %v2597_v9, %v2423_v52  ;;  %v2637_v63 = vmul.f32 %v2423_v52, %v2423_v52  ;;  %v3770_v18 = vadd.f32 %v2202_v6, %v5128_v61  ;;  %v2204_v20 = vpop.f32.mrb[29].mxu0 }
 0x216   : > { %2567 = vst [vmem:[%s5181_s16 + $0x68] sm:$0xff] %v2535_v47  ;;  %v2668_v31 = vadd.f32 %v2667_v35, %v2637_v63  ;;  %v2428_v21 = vadd.f32 %v3770_v18, %v5213_v25  ;;  %v5273_v10 = vpop.f32.mrb[94].mxu1 }
 0x217   : > { %v2207_v19 = vpop.f32.mrb[30].mxu0  ;;  %v5275_v41 = vpop.f32.mrb[95].mxu1 }
 0x218   : > { %v2536_v13 = vadd.f32 %v5174_v38, %v2428_v21  ;;  %v2599_v48 = vadd.f32 %v2598_v29, %v2428_v21  ;;  %v2638_v23 = vmul.f32 %v2428_v21, %v2428_v21  ;;  %v3771_v46 = vadd.f32 %v2207_v19, %v5130_v36  ;;  %v2209_v45 = vpop.f32.mrb[31].mxu0 }
 0x21a   : > { %2568 = vst [vmem:[%s5181_s16 + $0x70] sm:$0xff] %v2536_v13  ;;  %v2669_v61 = vadd.f32 %v2668_v31, %v2638_v23  ;;  %v2433_v34 = vadd.f32 %v3771_v46, %v5211_v16  ;;  %v3422_v37 = vpop.f32.mrb[96].mxu1 }
 0x21b   : > { %v2212_v3 = vpop.f32.mrb[32].mxu0  ;;  %v3006_v25 = vmul.f32 %v3422_v37, %v3422_v37  ;;  %v2808_v56 = vpop.f32.mrb[97].mxu1 }
 0x21c   : > { %v2537_v32 = vadd.f32 %v5174_v38, %v2433_v34  ;;  %v2600_v12 = vadd.f32 %v2599_v48, %v2433_v34  ;;  %v2639_v42 = vmul.f32 %v2433_v34, %v2433_v34  ;;  %v3772_v9 = vadd.f32 %v2212_v3, %v5138_v27  ;;  %v2214_v54 = vpop.f32.mrb[33].mxu0 }
 0x21d   : > { %v2967_v11 = vadd.f32 %v3422_v37, %v2808_v56  ;;  %v3005_v36 = vmul.f32 %v2808_v56, %v2808_v56 }
 0x21e   : > { %2569 = vst [vmem:[%s5181_s16 + $0x78] sm:$0xff] %v2537_v32  ;;  %v2670_v30 = vadd.f32 %v2669_v61, %v2639_v42  ;;  %v2438_v35 = vadd.f32 %v3772_v9, %v5220_v58  ;;  %v3425_v52 = vpop.f32.mrb[98].mxu1 }
 0x21f   : > { %v3037_v16 = vadd.f32 %v3006_v25, %v3005_v36  ;;  %v2217_v6 = vpop.f32.mrb[34].mxu0  ;;  %v2818_v47 = vpop.f32.mrb[99].mxu1  ;;  %v3008_v58 = vmul.f32 %v3425_v52, %v3425_v52 }
 0x220   : > { %v2538_v29 = vadd.f32 %v5174_v38, %v2438_v35  ;;  %v2601_v63 = vadd.f32 %v2600_v12, %v2438_v35  ;;  %v2640_v18 = vmul.f32 %v2438_v35, %v2438_v35  ;;  %v3773_v20 = vadd.f32 %v2217_v6, %v5140_v26  ;;  %v2219_v31 = vpop.f32.mrb[35].mxu0 }
 0x221   : > { %v2968_v27 = vadd.f32 %v2967_v11, %v2818_v47  ;;  %v3007_v21 = vmul.f32 %v2818_v47, %v2818_v47 }
 0x222   : > { %2570 = vst [vmem:[%s5181_s16 + $0x80] sm:$0xff] %v2538_v29  ;;  %v2671_v19 = vadd.f32 %v2670_v30, %v2640_v18  ;;  %v2443_v13 = vadd.f32 %v3773_v20, %v5218_v62  ;;  %v3428_v48 = vpop.f32.mrb[100].mxu1 }
 0x223   : > { %v3038_v23 = vadd.f32 %v3037_v16, %v3007_v21  ;;  %v2222_v46 = vpop.f32.mrb[36].mxu0  ;;  %v2828_v45 = vpop.f32.mrb[101].mxu1  ;;  %v2969_v61 = vadd.f32 %v3425_v52, %v2968_v27  ;;  %v3010_v54 = vmul.f32 %v3428_v48, %v3428_v48 }
 0x224   : > { %v2539_v34 = vadd.f32 %v5174_v38, %v2443_v13  ;;  %v2602_v37 = vadd.f32 %v2601_v63, %v2443_v13  ;;  %v2641_v3 = vmul.f32 %v2443_v13, %v2443_v13  ;;  %v3774_v26 = vadd.f32 %v2222_v46, %v5142_v8  ;;  %v2224_v25 = vpop.f32.mrb[37].mxu0 }
 0x225   : > { %v2970_v56 = vadd.f32 %v2969_v61, %v2828_v45  ;;  %v3009_v32 = vmul.f32 %v2828_v45, %v2828_v45  ;;  %v3039_v12 = vadd.f32 %v3038_v23, %v3008_v58 }
 0x226   : > { %2571 = vst [vmem:[%s5181_s16 + $0x88] sm:$0xff] %v2539_v34  ;;  %v2672_v42 = vadd.f32 %v2671_v19, %v2641_v3  ;;  %v2448_v62 = vadd.f32 %v3774_v26, %v5227_v53  ;;  %v3431_v9 = vpop.f32.mrb[102].mxu1 }
 0x227   : > { %v3040_v11 = vadd.f32 %v3039_v12, %v3009_v32  ;;  %v2227_v36 = vpop.f32.mrb[38].mxu0  ;;  %v2838_v30 = vpop.f32.mrb[103].mxu1  ;;  %v2971_v35 = vadd.f32 %v3428_v48, %v2970_v56  ;;  %v3012_v27 = vmul.f32 %v3431_v9, %v3431_v9 }
 0x228   : > { %v2540_v52 = vadd.f32 %v5174_v38, %v2448_v62  ;;  %v2603_v16 = vadd.f32 %v2602_v37, %v2448_v62  ;;  %v2642_v6 = vmul.f32 %v2448_v62, %v2448_v62  ;;  %v3775_v8 = vadd.f32 %v2227_v36, %v5144_v44  ;;  %v2229_v47 = vpop.f32.mrb[39].mxu0 }
 0x229   : > { %v2972_v29 = vadd.f32 %v2971_v35, %v2838_v30  ;;  %v3011_v63 = vmul.f32 %v2838_v30, %v2838_v30  ;;  %v3041_v18 = vadd.f32 %v3040_v11, %v3010_v54 }
 0x22a   : > { %2572 = vst [vmem:[%s5181_s16 + $0x90] sm:$0xff] %v2540_v52  ;;  %v2673_v20 = vadd.f32 %v2672_v42, %v2642_v6  ;;  %v2453_v53 = vadd.f32 %v3775_v8, %v5225_v0  ;;  %v3434_v31 = vpop.f32.mrb[104].mxu1 }
 0x22b   : > { %v3042_v21 = vadd.f32 %v3041_v18, %v3011_v63  ;;  %v2232_v19 = vpop.f32.mrb[40].mxu0  ;;  %v2848_v13 = vpop.f32.mrb[105].mxu1  ;;  %v2973_v48 = vadd.f32 %v3431_v9, %v2972_v29  ;;  %v3014_v25 = vmul.f32 %v3434_v31, %v3434_v31 }
 0x22c   : > { %v2541_v58 = vadd.f32 %v5174_v38, %v2453_v53  ;;  %v2604_v23 = vadd.f32 %v2603_v16, %v2453_v53  ;;  %v2643_v46 = vmul.f32 %v2453_v53, %v2453_v53  ;;  %v3776_v44 = vadd.f32 %v2232_v19, %v5146_v15  ;;  %v2234_v45 = vpop.f32.mrb[41].mxu0 }
 0x22d   : > { %v2974_v61 = vadd.f32 %v2973_v48, %v2848_v13  ;;  %v3013_v34 = vmul.f32 %v2848_v13, %v2848_v13  ;;  %v3043_v37 = vadd.f32 %v3042_v21, %v3012_v27 }
 0x22e   : > { %2573 = vst [vmem:[%s5181_s16 + $0x98] sm:$0xff] %v2541_v58  ;;  %v2674_v3 = vadd.f32 %v2673_v20, %v2643_v46  ;;  %v2458_v0 = vadd.f32 %v3776_v44, %v5235_v1  ;;  %v3437_v26 = vpop.f32.mrb[106].mxu1 }
 0x22f   : > { %v3044_v56 = vadd.f32 %v3043_v37, %v3013_v34  ;;  %v2237_v32 = vpop.f32.mrb[42].mxu0  ;;  %v2858_v12 = vpop.f32.mrb[107].mxu1  ;;  %v2975_v42 = vadd.f32 %v3434_v31, %v2974_v61  ;;  %v3016_v6 = vmul.f32 %v3437_v26, %v3437_v26 }
 0x230   : > { %v2542_v62 = vadd.f32 %v5174_v38, %v2458_v0  ;;  %v2605_v9 = vadd.f32 %v2604_v23, %v2458_v0  ;;  %v2644_v54 = vmul.f32 %v2458_v0, %v2458_v0  ;;  %v3777_v15 = vadd.f32 %v2237_v32, %v5148_v49  ;;  %v2239_v11 = vpop.f32.mrb[43].mxu0 }
 0x231   : > { %v2976_v36 = vadd.f32 %v2975_v42, %v2858_v12  ;;  %v3015_v30 = vmul.f32 %v2858_v12, %v2858_v12  ;;  %v3045_v35 = vadd.f32 %v3044_v56, %v3014_v25 }
 0x232   : > { %2574 = vst [vmem:[%s5181_s16 + $0xa0] sm:$0xff] %v2542_v62  ;;  %v2675_v52 = vadd.f32 %v2674_v3, %v2644_v54  ;;  %v2463_v1 = vadd.f32 %v3777_v15, %v5233_v28  ;;  %v3440_v16 = vpop.f32.mrb[108].mxu1 }
 0x233   : > { %v3046_v8 = vadd.f32 %v3045_v35, %v3015_v30  ;;  %v2242_v47 = vpop.f32.mrb[44].mxu0  ;;  %v2868_v29 = vpop.f32.mrb[109].mxu1  ;;  %v2977_v63 = vadd.f32 %v3437_v26, %v2976_v36  ;;  %v3018_v58 = vmul.f32 %v3440_v16, %v3440_v16 }
 0x234   : > { %v2543_v18 = vadd.f32 %v5174_v38, %v2463_v1  ;;  %v2606_v20 = vadd.f32 %v2605_v9, %v2463_v1  ;;  %v2645_v53 = vmul.f32 %v2463_v1, %v2463_v1  ;;  %v3778_v49 = vadd.f32 %v2242_v47, %v5150_v33  ;;  %v2244_v31 = vpop.f32.mrb[45].mxu0 }
 0x235   : > { %v2978_v27 = vadd.f32 %v2977_v63, %v2868_v29  ;;  %v3017_v21 = vmul.f32 %v2868_v29, %v2868_v29  ;;  %v3047_v19 = vadd.f32 %v3046_v8, %v3016_v6 }
 0x236   : > { %2575 = vst [vmem:[%s5181_s16 + $0xa8] sm:$0xff] %v2543_v18  ;;  %v2676_v13 = vadd.f32 %v2675_v52, %v2645_v53  ;;  %v2468_v28 = vadd.f32 %v3778_v49, %v5243_v5  ;;  %v3443_v48 = vpop.f32.mrb[110].mxu1 }
 0x237   : > { %v3048_v23 = vadd.f32 %v3047_v19, %v3017_v21  ;;  %v2247_v46 = vpop.f32.mrb[46].mxu0  ;;  %v2878_v44 = vpop.f32.mrb[111].mxu1  ;;  %v2979_v45 = vadd.f32 %v3440_v16, %v2978_v27  ;;  %v3020_v12 = vmul.f32 %v3443_v48, %v3443_v48 }
 0x238   : > { %v2544_v61 = vadd.f32 %v5174_v38, %v2468_v28  ;;  %v2607_v34 = vadd.f32 %v2606_v20, %v2468_v28  ;;  %v2646_v37 = vmul.f32 %v2468_v28, %v2468_v28  ;;  %v3779_v33 = vadd.f32 %v2247_v46, %v5152_v22  ;;  %v2249_v3 = vpop.f32.mrb[47].mxu0 }
 0x239   : > { %v2980_v0 = vadd.f32 %v2979_v45, %v2878_v44  ;;  %v3019_v26 = vmul.f32 %v2878_v44, %v2878_v44  ;;  %v3049_v25 = vadd.f32 %v3048_v23, %v3018_v58 }
 0x23a   : > { %2576 = vst [vmem:[%s5181_s16 + $0xb0] sm:$0xff] %v2544_v61  ;;  %v2677_v56 = vadd.f32 %v2676_v13, %v2646_v37  ;;  %v2473_v5 = vadd.f32 %v3779_v33, %v5241_v59  ;;  %v3446_v32 = vpop.f32.mrb[112].mxu1 }
 0x23b   : > { %v3050_v42 = vadd.f32 %v3049_v25, %v3019_v26  ;;  %v2252_v62 = vpop.f32.mrb[48].mxu0  ;;  %v2888_v9 = vpop.f32.mrb[113].mxu1  ;;  %v2981_v54 = vadd.f32 %v3443_v48, %v2980_v0  ;;  %v3022_v8 = vmul.f32 %v3446_v32, %v3446_v32 }
 0x23c   : > { %v2545_v15 = vadd.f32 %v5174_v38, %v2473_v5  ;;  %v2608_v11 = vadd.f32 %v2607_v34, %v2473_v5  ;;  %v2647_v36 = vmul.f32 %v2473_v5, %v2473_v5  ;;  %v3780_v22 = vadd.f32 %v2252_v62, %v5154_v50  ;;  %v2254_v30 = vpop.f32.mrb[49].mxu0 }
 0x23d   : > { %v2982_v35 = vadd.f32 %v2981_v54, %v2888_v9  ;;  %v3021_v52 = vmul.f32 %v2888_v9, %v2888_v9  ;;  %v3051_v1 = vadd.f32 %v3050_v42, %v3020_v12 }
 0x23e   : > { %2577 = vst [vmem:[%s5181_s16 + $0xb8] sm:$0xff] %v2545_v15  ;;  %v2678_v16 = vadd.f32 %v2677_v56, %v2647_v36  ;;  %v2478_v59 = vadd.f32 %v3780_v22, %v5251_v60  ;;  %v3449_v6 = vpop.f32.mrb[114].mxu1 }
 0x23f   : > { %v3052_v47 = vadd.f32 %v3051_v1, %v3021_v52  ;;  %v2257_v29 = vpop.f32.mrb[50].mxu0  ;;  %v2898_v63 = vpop.f32.mrb[115].mxu1  ;;  %v2983_v18 = vadd.f32 %v3446_v32, %v2982_v35  ;;  %v3024_v48 = vmul.f32 %v3449_v6, %v3449_v6 }
 0x240   : > { %v2546_v20 = vadd.f32 %v5174_v38, %v2478_v59  ;;  %v2609_v53 = vadd.f32 %v2608_v11, %v2478_v59  ;;  %v2648_v49 = vmul.f32 %v2478_v59, %v2478_v59  ;;  %v3781_v50 = vadd.f32 %v2257_v29, %v5156_v40  ;;  %v2259_v31 = vpop.f32.mrb[51].mxu0 }
 0x241   : > { %v2984_v27 = vadd.f32 %v2983_v18, %v2898_v63  ;;  %v3023_v21 = vmul.f32 %v2898_v63, %v2898_v63  ;;  %v3053_v19 = vadd.f32 %v3052_v47, %v3022_v8 }
 0x242   : > { %2578 = vst [vmem:[%s5181_s16 + $0xc0] sm:$0xff] %v2546_v20  ;;  %v2679_v13 = vadd.f32 %v2678_v16, %v2648_v49  ;;  %v2483_v60 = vadd.f32 %v3781_v50, %v5249_v57  ;;  %v3452_v28 = vpop.f32.mrb[116].mxu1 }
 0x243   : > { %v3054_v58 = vadd.f32 %v3053_v19, %v3023_v21  ;;  %v2262_v23 = vpop.f32.mrb[52].mxu0  ;;  %v2908_v46 = vpop.f32.mrb[117].mxu1  ;;  %v2985_v44 = vadd.f32 %v3449_v6, %v2984_v27  ;;  %v3026_v56 = vmul.f32 %v3452_v28, %v3452_v28 }
 0x244   : > { %v2547_v45 = vadd.f32 %v5174_v38, %v2483_v60  ;;  %v2610_v61 = vadd.f32 %v2609_v53, %v2483_v60  ;;  %v2649_v34 = vmul.f32 %v2483_v60, %v2483_v60  ;;  %v3782_v40 = vadd.f32 %v2262_v23, %v5158_v4  ;;  %v2264_v37 = vpop.f32.mrb[53].mxu0 }
 0x245   : > { %v2986_v33 = vadd.f32 %v2985_v44, %v2908_v46  ;;  %v3025_v3 = vmul.f32 %v2908_v46, %v2908_v46  ;;  %v3055_v0 = vadd.f32 %v3054_v58, %v3024_v48 }
 0x246   : > { %2579 = vst [vmem:[%s5181_s16 + $0xc8] sm:$0xff] %v2547_v45  ;;  %v2680_v26 = vadd.f32 %v2679_v13, %v2649_v34  ;;  %v2488_v57 = vadd.f32 %v3782_v40, %v5259_v43  ;;  %v3455_v25 = vpop.f32.mrb[118].mxu1 }
 0x247   : > { %v3056_v5 = vadd.f32 %v3055_v0, %v3025_v3  ;;  %v2267_v32 = vpop.f32.mrb[54].mxu0  ;;  %v2918_v12 = vpop.f32.mrb[119].mxu1  ;;  %v2987_v42 = vadd.f32 %v3452_v28, %v2986_v33  ;;  %v3028_v52 = vmul.f32 %v3455_v25, %v3455_v25 }
 0x248   : > { %v2548_v62 = vadd.f32 %v5174_v38, %v2488_v57  ;;  %v2611_v9 = vadd.f32 %v2610_v61, %v2488_v57  ;;  %v2650_v54 = vmul.f32 %v2488_v57, %v2488_v57  ;;  %v3783_v4 = vadd.f32 %v2267_v32, %v5160_v7  ;;  %v2269_v15 = vpop.f32.mrb[55].mxu0 }
 0x249   : > { %v2988_v11 = vadd.f32 %v2987_v42, %v2918_v12  ;;  %v3027_v36 = vmul.f32 %v2918_v12, %v2918_v12  ;;  %v3057_v22 = vadd.f32 %v3056_v5, %v3026_v56 }
 0x24a   : > { %2580 = vst [vmem:[%s5181_s16 + $0xd0] sm:$0xff] %v2548_v62  ;;  %v2681_v30 = vadd.f32 %v2680_v26, %v2650_v54  ;;  %v2493_v43 = vadd.f32 %v3783_v4, %v5257_v2  ;;  %v3458_v35 = vpop.f32.mrb[120].mxu1 }
 0x24b   : > { %v3058_v1 = vadd.f32 %v3057_v22, %v3027_v36  ;;  %v2272_v16 = vpop.f32.mrb[56].mxu0  ;;  %v2928_v59 = vpop.f32.mrb[121].mxu1  ;;  %v2989_v6 = vadd.f32 %v3455_v25, %v2988_v11  ;;  %v3030_v31 = vmul.f32 %v3458_v35, %v3458_v35 }
 0x24c   : > { %v2549_v8 = vadd.f32 %v5174_v38, %v2493_v43  ;;  %v2612_v47 = vadd.f32 %v2611_v9, %v2493_v43  ;;  %v2651_v29 = vmul.f32 %v2493_v43, %v2493_v43  ;;  %v3784_v7 = vadd.f32 %v2272_v16, %v5162_v51  ;;  %v2274_v63 = vpop.f32.mrb[57].mxu0 }
 0x24d   : > { %v2990_v18 = vadd.f32 %v2989_v6, %v2928_v59  ;;  %v3029_v20 = vmul.f32 %v2928_v59, %v2928_v59  ;;  %v3059_v53 = vadd.f32 %v3058_v1, %v3028_v52 }
 0x24e   : > { %2581 = vst [vmem:[%s5181_s16 + $0xd8] sm:$0xff] %v2549_v8  ;;  %v2682_v49 = vadd.f32 %v2681_v30, %v2651_v29  ;;  %v2498_v2 = vadd.f32 %v3784_v7, %v5267_v55  ;;  %v3461_v50 = vpop.f32.mrb[122].mxu1 }
 0x24f   : > { %v3060_v27 = vadd.f32 %v3059_v53, %v3029_v20  ;;  %v2277_v21 = vpop.f32.mrb[58].mxu0  ;;  %v2938_v19 = vpop.f32.mrb[123].mxu1  ;;  %v2991_v13 = vadd.f32 %v3458_v35, %v2990_v18  ;;  %v3032_v34 = vmul.f32 %v3461_v50, %v3461_v50 }
 0x250   : > { %v2550_v60 = vadd.f32 %v5174_v38, %v2498_v2  ;;  %v2613_v28 = vadd.f32 %v2612_v47, %v2498_v2  ;;  %v2652_v48 = vmul.f32 %v2498_v2, %v2498_v2  ;;  %v3785_v51 = vadd.f32 %v2277_v21, %v5164_v14  ;;  %v2279_v58 = vpop.f32.mrb[59].mxu0 }
 0x251   : > { %v2992_v23 = vadd.f32 %v2991_v13, %v2938_v19  ;;  %v3031_v46 = vmul.f32 %v2938_v19, %v2938_v19  ;;  %v3061_v44 = vadd.f32 %v3060_v27, %v3030_v31 }
 0x252   : > { %2582 = vst [vmem:[%s5181_s16 + $0xe0] sm:$0xff] %v2550_v60  ;;  %v2683_v45 = vadd.f32 %v2682_v49, %v2652_v48  ;;  %v2503_v55 = vadd.f32 %v3785_v51, %v5265_v24  ;;  %v3464_v61 = vpop.f32.mrb[124].mxu1 }
 0x253   : > { %v3062_v40 = vadd.f32 %v3061_v44, %v3031_v46  ;;  %v2282_v37 = vpop.f32.mrb[60].mxu0  ;;  %v2948_v33 = vpop.f32.mrb[125].mxu1  ;;  %v2993_v3 = vadd.f32 %v3461_v50, %v2992_v23  ;;  %v3034_v62 = vmul.f32 %v3464_v61, %v3464_v61 }
 0x254   : > { %v2551_v0 = vadd.f32 %v5174_v38, %v2503_v55  ;;  %v2614_v26 = vadd.f32 %v2613_v28, %v2503_v55  ;;  %v2653_v57 = vmul.f32 %v2503_v55, %v2503_v55  ;;  %v3786_v14 = vadd.f32 %v2282_v37, %v5166_v17  ;;  %v2284_v25 = vpop.f32.mrb[61].mxu0 }
 0x255   : > { %v2994_v56 = vadd.f32 %v2993_v3, %v2948_v33  ;;  %v3033_v5 = vmul.f32 %v2948_v33, %v2948_v33  ;;  %v3063_v32 = vadd.f32 %v3062_v40, %v3032_v34 }
 0x256   : > { %2583 = vst [vmem:[%s5181_s16 + $0xe8] sm:$0xff] %v2551_v0  ;;  %v2684_v12 = vadd.f32 %v2683_v45, %v2653_v57  ;;  %v2508_v24 = vadd.f32 %v3786_v14, %v5275_v41  ;;  %v3467_v42 = vpop.f32.mrb[126].mxu1 }
 0x257   : > { %v3064_v9 = vadd.f32 %v3063_v32, %v3033_v5  ;;  %v2287_v54 = vpop.f32.mrb[62].mxu0  ;;  %v2958_v4 = vpop.f32.mrb[127].mxu1  ;;  %v2995_v15 = vadd.f32 %v3464_v61, %v2994_v56  ;;  %v3036_v16 = vmul.f32 %v3467_v42, %v3467_v42 }
 0x258   : > { %v2552_v11 = vadd.f32 %v5174_v38, %v2508_v24  ;;  %v2615_v36 = vadd.f32 %v2614_v26, %v2508_v24  ;;  %v2654_v22 = vmul.f32 %v2508_v24, %v2508_v24  ;;  %v3787_v17 = vadd.f32 %v2287_v54, %v5168_v39  ;;  %v2289_v30 = vpop.f32.mrb[63].mxu0 }
 0x259   : > { %v2996_v43 = vadd.f32 %v2995_v15, %v2958_v4  ;;  %v3035_v35 = vmul.f32 %v2958_v4, %v2958_v4  ;;  %v3065_v52 = vadd.f32 %v3064_v9, %v3034_v62 }
 0x25a   : > { %2584 = vst [vmem:[%s5181_s16 + $0xf0] sm:$0xff] %v2552_v11  ;;  %v2685_v1 = vadd.f32 %v2684_v12, %v2654_v22  ;;  %v2513_v41 = vadd.f32 %v3787_v17, %v5273_v10 }
 0x25b   : > { %v2997_v59 = vadd.f32 %v3467_v42, %v2996_v43  ;;  %v3066_v6 = vadd.f32 %v3065_v52, %v3035_v35 }
 0x25c   : > { %v2553_v8 = vadd.f32 %v5174_v38, %v2513_v41  ;;  %v2616_v47 = vadd.f32 %v2615_v36, %v2513_v41  ;;  %v2655_v29 = vmul.f32 %v2513_v41, %v2513_v41 }
 0x25d   : > { %v2998_v7 = vrot.slane %v2997_v59, 4  ;;  %v3067_v63 = vadd.f32 %v3066_v6, %v3036_v16 }
 0x25e   : > { %2585 = vst [vmem:[%s5181_s16 + $0xf8] sm:$0xff] %v2553_v8  ;;  %v2617_v39 = vrot.slane %v2616_v47, 4  ;;  %v2686_v18 = vadd.f32 %v2685_v1, %v2655_v29 }
 0x25f   : > { %v2999_v20 = vadd.f32 %v2998_v7, %v2997_v59  ;;  %v3068_v53 = vrot.slane %v3067_v63, 4 }
 0x260   : > { %v2618_v49 = vadd.f32 %v2617_v39, %v2616_v47  ;;  %v2687_v2 = vrot.slane %v2686_v18, 4 }
 0x261   : > { %v3000_v50 = vrot.slane %v2999_v20, 2  ;;  %v3069_v31 = vadd.f32 %v3068_v53, %v3067_v63 }
 0x262   : > { %v2619_v10 = vrot.slane %v2618_v49, 2  ;;  %v2688_v27 = vadd.f32 %v2687_v2, %v2686_v18 }
 0x263   : > { %v3001_v21 = vadd.f32 %v3000_v50, %v2999_v20  ;;  %v3070_v19 = vrot.slane %v3069_v31, 2 }
 0x264   : > { %v2620_v38 = vadd.f32 %v2619_v10, %v2618_v49  ;;  %v2689_v13 = vrot.slane %v2688_v27, 2 }
 0x265   : > { %v3002_v60 = vrot.slane %v3001_v21, 1  ;;  %v3071_v28 = vadd.f32 %v3070_v19, %v3069_v31 }
 0x266   : > { %v2621_v48 = vrot.slane %v2620_v38, 1  ;;  %v2690_v51 = vadd.f32 %v2689_v13, %v2688_v27 }
 0x267   : > { %v3003_v58 = vadd.f32 %v3002_v60, %v3001_v21  ;;  %v3072_v23 = vrot.slane %v3071_v28, 1 }
 0x268   : > { %v2622_v46 = vadd.f32 %v2621_v48, %v2620_v38  ;;  %v2691_v44 = vrot.slane %v2690_v51, 1 }
 0x269   : > { %v3073_v45 = vadd.f32 %v3072_v23, %v3071_v28  ;;  %3077 = vst [vmem:[%s272_s20] sm:$0x1] %v3003_v58 }
 0x26a   : > { %v2692_v55 = vadd.f32 %v2691_v44, %v2690_v51  ;;  %3075 = vst [vmem:[%s268_s25] sm:$0x1] %v2622_v46 }
 0x26b   : > { %3078 = vst [vmem:[%s272_s20 + $0x1] sm:$0x1] %v3073_v45 }
 0x26c   : > { %3076 = vst [vmem:[%s268_s25 + $0x1] sm:$0x1] %v2692_v55 }
 0x26d PF: > { %s17_s21 = sadd.s32 1, %s3965_s21  }
 0x26e   : > { %p14_p4 = scmp.ge.s32.totalorder %s17_s21, 4  }
 0x270   :  { %16 = sbr.rel (!%p14_p4) target bundleno = 1 (0x1), region = 93 }

// kernel: resblk_forward.4
= control target key start
LH: loop header
LB: loop body
LE: loop exit
PB: predicated region body
PF: predicated region fallthrough
CT: control target
= control target key end

     0   :  { %s3497_s21 = smov 0   ;;  %s5200_s0 = inlined_call_operand.vmem [shape: f32[2,256,128], index: 0, kind: input, shape index: {}]   ;;  %s5201_s1 = inlined_call_operand.vmem [shape: f32[1,128], index: 1, kind: input, shape index: {}]   ;;  %s5202_s2 = inlined_call_operand.vmem [shape: f32[1,128], index: 2, kind: input, shape index: {}]   ;;  %s5203_s3 = inlined_call_operand.vmem [shape: f32[1152,128], index: 3, kind: input, shape index: {}]   ;;  %s5204_s4 = inlined_call_operand.vmem [shape: f32[1,128], index: 4, kind: input, shape index: {}]   ;;  %s5205_s5 = inlined_call_operand.vmem [shape: f32[2,256,128], index: 5, kind: output, shape index: {0}]   ;;  %s5206_s6 = inlined_call_operand.vmem [shape: f32[2,2,128], index: 6, kind: output, shape index: {1}]  }
   0x1 LB: > { %s2882_s22 = sadd.s32 4294967295, %s3458_s21   ;;  %p2886_p0 = scmp.ge.s32.totalorder %s3458_s21, 1  ;;  %s3458_s21 = sphi %s3497_s21, %s17_s21  }
   0x2   : > { %p215_p1 = scmp.lt.s32.totalorder %s3458_s21, 3 }
   0x4   : > { %p216_p2 = pnand %p2886_p0, %p215_p1 }
   0x6   : > { %219 = sbr.rel (%p216_p2) target bundleno = 645 (0x285), region = 40 }
   0xd   : > { %v1347_v0 = vld [vmem:[%s5203_s3] sm:$0xff]  ;;  %v1348_v1 = vld [vmem:[%s5203_s3 + $0x8] sm:$0xff]  ;;  %v5218_v3 = vmov 0.0|0.0   ;;  %v1349_v6 = vld [vmem:[%s5203_s3 + $0x10] sm:$0xff]  ;;  %v3461_v8 = vmov 0.0   ;;  %p249_p3 = scmp.lt.s32.totalorder %s2882_s22, 1 }
   0xe   : > { %v1379_v2 = vld [vmem:[%s5203_s3 + $0x100] sm:$0xff]  ;;  %3027 = vmatprep.subr.bf16.mxu1 %v5218_v3  ;;  %3075 = vmatprep.subr.bf16.mxu0 %v5218_v3  ;;  %v3028_v4 = vpack.c.bf16 %v1348_v1, %v1347_v0  ;;  %v1380_v5 = vld [vmem:[%s5203_s3 + $0x108] sm:$0xff]  ;;  %v1350_v7 = vld [vmem:[%s5203_s3 + $0x18] sm:$0xff]  ;;  %263 = vst [vmem:[#allocation2] sm:$0xff] %v3461_v8 }
   0xf   : > { %264 = vst [vmem:[#allocation2 + $0x8] sm:$0xff] %v3461_v8  ;;  %265 = vst [vmem:[#allocation2 + $0x10] sm:$0x3] %v3461_v8  ;;  %v3076_v9 = vpack.c.bf16 %v1380_v5, %v1379_v2  ;;  %v1381_v10 = vld [vmem:[%s5203_s3 + $0x110] sm:$0xff]  ;;  %v1382_v11 = vld [vmem:[%s5203_s3 + $0x118] sm:$0xff]  ;;  %v3031_v12 = vpack.c.bf16 %v1350_v7, %v1349_v6  ;;  %s5304_s22 = smov (!%p249_p3, %s2882_s22), 1 }
  0x10   : > { %267 = vst [vmem:[#allocation2 + $0x198] sm:$0xff] %v3461_v8  ;;  %268 = vst [vmem:[#allocation2 + $0x1a0] sm:$0xff] %v3461_v8  ;;  %3029 = vmatpush1.bf16.msra.mxu1 %v3028_v4  ;;  %v3079_v13 = vpack.c.bf16 %v1382_v11, %v1381_v10  ;;  %v1351_v14 = vld [vmem:[%s5203_s3 + $0x20] sm:$0xff]  ;;  %v1352_v15 = vld [vmem:[%s5203_s3 + $0x28] sm:$0xff]  ;;  %s2897_s23 = sshll.u32 %s5304_s22, 8 }
  0x11   : > { %269 = vst [vmem:[#allocation2 + $0x1a8] sm:$0x3] %v3461_v8  ;;  %271 = vst [vmem:[#allocation2 + $0x18] sm:$0x1] %v3461_v8  ;;  %3077 = vmatpush1.bf16.msra.mxu0 %v3076_v9  ;;  %3030 = vmatprep.subr.bf16.mxu1 %v5218_v3  ;;  %v1383_v16 = vld [vmem:[%s5203_s3 + $0x120] sm:$0xff]  ;;  %v1384_v17 = vld [vmem:[%s5203_s3 + $0x128] sm:$0xff]  ;;  %v3034_v18 = vpack.c.bf16 %v1352_v15, %v1351_v14  ;;  %s3641_s30 = scalar_lea.vmem %s5200_s0, %s2897_s23  ;;  %s4932_s8 = scalar_lea.vmem %s5205_s5, %s2897_s23 }
  0x12   : > { %272 = vst [vmem:[#allocation2 + $0x30] sm:$0x1] %v3461_v8  ;;  %273 = vst [vmem:[#allocation2 + $0x48] sm:$0x1] %v3461_v8  ;;  %3078 = vmatprep.subr.bf16.mxu0 %v5218_v3  ;;  %v3082_v19 = vpack.c.bf16 %v1384_v17, %v1383_v16  ;;  %v1353_v20 = vld [vmem:[%s5203_s3 + $0x30] sm:$0xff]  ;;  %v1354_v21 = vld [vmem:[%s5203_s3 + $0x38] sm:$0xff] }
  0x13   : > { %274 = vst [vmem:[#allocation2 + $0x60] sm:$0x1] %v3461_v8  ;;  %275 = vst [vmem:[#allocation2 + $0x78] sm:$0x1] %v3461_v8  ;;  %v1385_v22 = vld [vmem:[%s5203_s3 + $0x130] sm:$0xff]  ;;  %v1386_v23 = vld [vmem:[%s5203_s3 + $0x138] sm:$0xff]  ;;  %v3037_v24 = vpack.c.bf16 %v1354_v21, %v1353_v20 }
  0x14   : > { %276 = vst [vmem:[#allocation2 + $0x90] sm:$0x1] %v3461_v8  ;;  %277 = vst [vmem:[#allocation2 + $0xa8] sm:$0x1] %v3461_v8  ;;  %3032 = vmatpush1.bf16.msra.mxu1 %v3031_v12  ;;  %v3085_v25 = vpack.c.bf16 %v1386_v23, %v1385_v22  ;;  %v1355_v26 = vld [vmem:[%s5203_s3 + $0x40] sm:$0xff]  ;;  %v1356_v27 = vld [vmem:[%s5203_s3 + $0x48] sm:$0xff] }
  0x15   : > { %278 = vst [vmem:[#allocation2 + $0xc0] sm:$0x1] %v3461_v8  ;;  %279 = vst [vmem:[#allocation2 + $0xd8] sm:$0x1] %v3461_v8  ;;  %3080 = vmatpush1.bf16.msra.mxu0 %v3079_v13  ;;  %3033 = vmatprep.subr.bf16.mxu1 %v5218_v3  ;;  %v1387_v28 = vld [vmem:[%s5203_s3 + $0x140] sm:$0xff]  ;;  %v1388_v29 = vld [vmem:[%s5203_s3 + $0x148] sm:$0xff]  ;;  %v3040_v30 = vpack.c.bf16 %v1356_v27, %v1355_v26 }
  0x16   : > { %280 = vst [vmem:[#allocation2 + $0xf0] sm:$0x1] %v3461_v8  ;;  %281 = vst [vmem:[#allocation2 + $0x108] sm:$0x1] %v3461_v8  ;;  %3081 = vmatprep.subr.bf16.mxu0 %v5218_v3  ;;  %v3088_v31 = vpack.c.bf16 %v1388_v29, %v1387_v28  ;;  %v1357_v32 = vld [vmem:[%s5203_s3 + $0x50] sm:$0xff]  ;;  %v1358_v33 = vld [vmem:[%s5203_s3 + $0x58] sm:$0xff] }
  0x17   : > { %282 = vst [vmem:[#allocation2 + $0x120] sm:$0x1] %v3461_v8  ;;  %283 = vst [vmem:[#allocation2 + $0x138] sm:$0x1] %v3461_v8  ;;  %v1389_v34 = vld [vmem:[%s5203_s3 + $0x150] sm:$0xff]  ;;  %v1390_v35 = vld [vmem:[%s5203_s3 + $0x158] sm:$0xff]  ;;  %v3043_v36 = vpack.c.bf16 %v1358_v33, %v1357_v32 }
  0x18   : > { %284 = vst [vmem:[#allocation2 + $0x150] sm:$0x1] %v3461_v8  ;;  %285 = vst [vmem:[#allocation2 + $0x168] sm:$0x1] %v3461_v8  ;;  %3035 = vmatpush1.bf16.msra.mxu1 %v3034_v18  ;;  %v3091_v37 = vpack.c.bf16 %v1390_v35, %v1389_v34  ;;  %v1359_v38 = vld [vmem:[%s5203_s3 + $0x60] sm:$0xff]  ;;  %v1360_v39 = vld [vmem:[%s5203_s3 + $0x68] sm:$0xff] }
  0x19   : > { %286 = vst [vmem:[#allocation2 + $0x180] sm:$0x1] %v3461_v8  ;;  %289 = vst [vmem:[#allocation2 + $0x29] sm:$0x1] %v3461_v8  ;;  %3083 = vmatpush1.bf16.msra.mxu0 %v3082_v19  ;;  %3036 = vmatprep.subr.bf16.mxu1 %v5218_v3  ;;  %v1391_v40 = vld [vmem:[%s5203_s3 + $0x160] sm:$0xff]  ;;  %v1392_v41 = vld [vmem:[%s5203_s3 + $0x168] sm:$0xff]  ;;  %v3046_v46 = vpack.c.bf16 %v1360_v39, %v1359_v38 }
  0x1a   : > { %290 = vst [vmem:[#allocation2 + $0x41] sm:$0x1] %v3461_v8  ;;  %291 = vst [vmem:[#allocation2 + $0x59] sm:$0x1] %v3461_v8  ;;  %3084 = vmatprep.subr.bf16.mxu0 %v5218_v3  ;;  %v546_v42 = vld [vmem:[#allocation2 + $0x1] sm:$0xff]  ;;  %v1361_v47 = vld [vmem:[%s5203_s3 + $0x70] sm:$0xff]  ;;  %v3094_v50 = vpack.c.bf16 %v1392_v41, %v1391_v40 }
  0x1b   : > { %292 = vst [vmem:[#allocation2 + $0x71] sm:$0x1] %v3461_v8  ;;  %293 = vst [vmem:[#allocation2 + $0x89] sm:$0x1] %v3461_v8  ;;  %v3660_v43 = vld [vmem:[%s5201_s1] ss:$0 sm:$0xff]  ;;  %1555 = vmatprep.mubr.f32.mxu1 %v546_v42 }
  0x1c   : > { %294 = vst [vmem:[#allocation2 + $0xa1] sm:$0x1] %v3461_v8  ;;  %295 = vst [vmem:[#allocation2 + $0xb9] sm:$0x1] %v3461_v8  ;;  %3038 = vmatpush1.bf16.msra.mxu1 %v3037_v24  ;;  %v3665_v44 = vld [vmem:[%s5202_s2] ss:$0 sm:$0xff] }
  0x1d   : > { %296 = vst [vmem:[#allocation2 + $0xd1] sm:$0x1] %v3461_v8  ;;  %297 = vst [vmem:[#allocation2 + $0xe9] sm:$0x1] %v3461_v8  ;;  %3086 = vmatpush1.bf16.msra.mxu0 %v3085_v25  ;;  %3039 = vmatprep.subr.bf16.mxu1 %v5218_v3  ;;  %v308_v45 = vld [vmem:[%s3641_s30] sm:$0xff]  ;;  %v1362_v48 = vld [vmem:[%s5203_s3 + $0x78] sm:$0xff] }
  0x1e   : > { %298 = vst [vmem:[#allocation2 + $0x101] sm:$0x1] %v3461_v8  ;;  %299 = vst [vmem:[#allocation2 + $0x119] sm:$0x1] %v3461_v8  ;;  %3087 = vmatprep.subr.bf16.mxu0 %v5218_v3  ;;  %v346_v49 = vmul.f32 %v3660_v43, %v308_v45  ;;  %v309_v51 = vld [vmem:[%s3641_s30 + $0x8] sm:$0xff]  ;;  %v1393_v52 = vld [vmem:[%s5203_s3 + $0x170] sm:$0xff]  ;;  %v3049_v57 = vpack.c.bf16 %v1362_v48, %v1361_v47 }
  0x1f   : > { %300 = vst [vmem:[#allocation2 + $0x131] sm:$0x1] %v3461_v8  ;;  %301 = vst [vmem:[#allocation2 + $0x149] sm:$0x1] %v3461_v8  ;;  %v1394_v53 = vld [vmem:[%s5203_s3 + $0x178] sm:$0xff]  ;;  %v347_v55 = vmul.f32 %v3660_v43, %v309_v51  ;;  %v310_v56 = vld [vmem:[%s3641_s30 + $0x10] sm:$0xff] }
  0x20   : > { %302 = vst [vmem:[#allocation2 + $0x161] sm:$0x1] %v3461_v8  ;;  %303 = vst [vmem:[#allocation2 + $0x179] sm:$0x1] %v3461_v8  ;;  %3041 = vmatpush1.bf16.msra.mxu1 %v3040_v30  ;;  %v3685_v54 = vadd.f32 %v3665_v44, %v346_v49  ;;  %v3692_v58 = vld [vmem:[%s5203_s3 + $0x80] sm:$0xff]  ;;  %v348_v59 = vmul.f32 %v3660_v43, %v310_v56  ;;  %v311_v60 = vld [vmem:[%s3641_s30 + $0x18] sm:$0xff]  ;;  %v3097_v6 = vpack.c.bf16 %v1394_v53, %v1393_v52 }
  0x21   : > { %304 = vst [vmem:[#allocation2 + $0x191] sm:$0x1] %v3461_v8  ;;  %270 = vst [vmem:[#allocation2] sm:$0x1] %v3461_v8  ;;  %3089 = vmatpush1.bf16.msra.mxu0 %v3088_v31  ;;  %3042 = vmatprep.subr.bf16.mxu1 %v5218_v3  ;;  %v312_v61 = vld [vmem:[%s3641_s30 + $0x20] sm:$0xff]  ;;  %v1364_v62 = vld [vmem:[%s5203_s3 + $0x88] sm:$0xff]  ;;  %v3702_v0 = vadd.f32 %v3665_v44, %v347_v55  ;;  %v349_v1 = vmul.f32 %v3660_v43, %v311_v60 }
  0x22   : > { %287 = vst [vmem:[#allocation2 + $0x198] sm:$0x1] %v3461_v8  ;;  %288 = vst [vmem:[#allocation2 + $0x11] sm:$0x1] %v3461_v8  ;;  %3090 = vmatprep.subr.bf16.mxu0 %v5218_v3  ;;  %v416_v63 = vmax.f32 %v3685_v54, 0.0  ;;  %v350_v2 = vmul.f32 %v3660_v43, %v312_v61  ;;  %v313_v4 = vld [vmem:[%s3641_s30 + $0x28] sm:$0xff]  ;;  %v3710_v7 = vadd.f32 %v3665_v44, %v348_v59 }
  0x23   : > { %305 = vst [vmem:[#allocation2 + $0x1a9] sm:$0x1] %v3461_v8  ;;  %v314_v5 = vld [vmem:[%s3641_s30 + $0x30] sm:$0xff]  ;;  %v351_v9 = vmul.f32 %v3660_v43, %v313_v4  ;;  %v315_v10 = vld [vmem:[%s3641_s30 + $0x38] sm:$0xff]  ;;  %v1395_v11 = vld [vmem:[%s5203_s3 + $0x180] sm:$0xff]  ;;  %v417_v13 = vmax.f32 %v3702_v0, 0.0  ;;  %v3725_v14 = vadd.f32 %v3665_v44, %v349_v1  ;;  %v3052_v18 = vpack.c.bf16 %v1364_v62, %v3692_v58 }
  0x24   : > { %3044 = vmatpush1.bf16.msra.mxu1 %v3043_v36  ;;  %v1396_v12 = vld [vmem:[%s5203_s3 + $0x188] sm:$0xff]  ;;  %449 = vst [vmem:[#allocation2 + $0x19] sm:$0xff] %v416_v63  ;;  %v3728_v15 = vadd.f32 %v3665_v44, %v350_v2  ;;  %v352_v16 = vmul.f32 %v3660_v43, %v314_v5  ;;  %v316_v17 = vld [vmem:[%s3641_s30 + $0x40] sm:$0xff]  ;;  %v418_v19 = vmax.f32 %v3710_v7, 0.0  ;;  %v353_v21 = vmul.f32 %v3660_v43, %v315_v10  ;;  %v318_v23 = vld [vmem:[%s3641_s30 + $0x50] sm:$0xff]  ;;  %s2891_s23 = sshll.u32 %s5304_s22, 1 }
  0x25   : > { %3092 = vmatpush1.bf16.msra.mxu0 %v3091_v37  ;;  %3045 = vmatprep.subr.bf16.mxu1 %v5218_v3  ;;  %v3735_v20 = vadd.f32 %v3665_v44, %v351_v9  ;;  %v317_v22 = vld [vmem:[%s3641_s30 + $0x48] sm:$0xff]  ;;  %v1365_v24 = vld [vmem:[%s5203_s3 + $0x90] sm:$0xff]  ;;  %450 = vst [vmem:[#allocation2 + $0x21] sm:$0xff] %v417_v13  ;;  %v419_v25 = vmax.f32 %v3725_v14, 0.0  ;;  %v354_v28 = vmul.f32 %v3660_v43, %v316_v17  ;;  %v319_v29 = vld [vmem:[%s3641_s30 + $0x58] sm:$0xff]  ;;  %s262_s11 = scalar_lea.vmem %s5206_s6, %s2891_s23 }
  0x26   : > { %3093 = vmatprep.subr.bf16.mxu0 %v5218_v3  ;;  %v420_v26 = vmax.f32 %v3728_v15, 0.0  ;;  %v3748_v27 = vadd.f32 %v3665_v44, %v352_v16  ;;  %v320_v30 = vld [vmem:[%s3641_s30 + $0x60] sm:$0xff]  ;;  %v3100_v31 = vpack.c.bf16 %v1396_v12, %v1395_v11  ;;  %v1366_v32 = vld [vmem:[%s5203_s3 + $0x98] sm:$0xff]  ;;  %v1397_v33 = vld [vmem:[%s5203_s3 + $0x190] sm:$0xff]  ;;  %451 = vst [vmem:[#allocation2 + $0x31] sm:$0xff] %v418_v19  ;;  %v3767_v36 = vadd.f32 %v3665_v44, %v353_v21 }
  0x27   : > { %v1398_v34 = vld [vmem:[%s5203_s3 + $0x198] sm:$0xff]  ;;  %v421_v35 = vmax.f32 %v3735_v20, 0.0  ;;  %v355_v37 = vmul.f32 %v3660_v43, %v317_v22  ;;  %452 = vst [vmem:[#allocation2 + $0x39] sm:$0xff] %v419_v25  ;;  %v3777_v39 = vadd.f32 %v3665_v44, %v354_v28  ;;  %v356_v40 = vmul.f32 %v3660_v43, %v318_v23  ;;  %v321_v41 = vld [vmem:[%s3641_s30 + $0x68] sm:$0xff]  ;;  %v3784_v42 = vld [vmem:[%s5203_s3 + $0xa0] sm:$0xff] }
  0x28   : > { %3047 = vmatpush1.bf16.msra.mxu1 %v3046_v46  ;;  %453 = vst [vmem:[#allocation2 + $0x49] sm:$0xff] %v420_v26  ;;  %v422_v38 = vmax.f32 %v3748_v27, 0.0  ;;  %v423_v45 = vmax.f32 %v3767_v36, 0.0  ;;  %v357_v47 = vmul.f32 %v3660_v43, %v319_v29  ;;  %v358_v48 = vmul.f32 %v3660_v43, %v320_v30  ;;  %v322_v49 = vld [vmem:[%s3641_s30 + $0x70] sm:$0xff]  ;;  %v1368_v52 = vld [vmem:[%s5203_s3 + $0xa8] sm:$0xff]  ;;  %v1399_v53 = vld [vmem:[%s5203_s3 + $0x1a0] sm:$0xff] }
  0x29   : > { %3095 = vmatpush1.bf16.msra.mxu0 %v3094_v50  ;;  %3048 = vmatprep.subr.bf16.mxu1 %v5218_v3  ;;  %454 = vst [vmem:[#allocation2 + $0x51] sm:$0xff] %v421_v35  ;;  %v3790_v46 = vadd.f32 %v3665_v44, %v355_v37  ;;  %v3055_v50 = vpack.c.bf16 %v1366_v32, %v1365_v24  ;;  %v424_v55 = vmax.f32 %v3777_v39, 0.0  ;;  %v1400_v58 = vld [vmem:[%s5203_s3 + $0x1a8] sm:$0xff]  ;;  %v324_v2 = vld [vmem:[%s3641_s30 + $0x80] sm:$0xff]  ;;  %v326_v22 = vld [vmem:[%s3641_s30 + $0x90] sm:$0xff] }
  0x2a   : > { %3096 = vmatprep.subr.bf16.mxu0 %v5218_v3  ;;  %v3103_v51 = vpack.c.bf16 %v1398_v34, %v1397_v33  ;;  %455 = vst [vmem:[#allocation2 + $0x61] sm:$0xff] %v422_v38  ;;  %v394_v56 = vadd.f32 %v3665_v44, %v356_v40  ;;  %456 = vst [vmem:[#allocation2 + $0x69] sm:$0xff] %v423_v45  ;;  %v395_v61 = vadd.f32 %v3665_v44, %v357_v47  ;;  %v1369_v23 = vld [vmem:[%s5203_s3 + $0xb0] sm:$0xff]  ;;  %v1370_v24 = vld [vmem:[%s5203_s3 + $0xb8] sm:$0xff] }
  0x2b   : > { %v3810_v59 = vld [vmem:[#allocation2 + $0x18] sm:$0xff]  ;;  %v425_v60 = vmax.f32 %v3790_v46, 0.0  ;;  %v3817_v62 = vadd.f32 %v3665_v44, %v358_v48  ;;  %v359_v1 = vmul.f32 %v3660_v43, %v321_v41  ;;  %457 = vst [vmem:[#allocation2 + $0x79] sm:$0xff] %v424_v55  ;;  %v360_v5 = vmul.f32 %v3660_v43, %v322_v49  ;;  %v1401_v32 = vld [vmem:[%s5203_s3 + $0x1b0] sm:$0xff]  ;;  %v1455_v14 = vld [vmem:[%s5203_s3 + $0x360] sm:$0xff] }
  0x2c   : > { %3050 = vmatpush1.bf16.msra.mxu1 %v3049_v57  ;;  %v323_v57 = vld [vmem:[%s3641_s30 + $0x78] sm:$0xff]  ;;  %1780 = vmatprep.mubr.f32.mxu0 %v3810_v59  ;;  %v3825_v4 = vmax.f32 %v394_v56, 0.0  ;;  %v3831_v9 = vmax.f32 %v395_v61, 0.0  ;;  %v3058_v16 = vpack.c.bf16 %v1368_v52, %v3784_v42  ;;  %v3106_v17 = vpack.c.bf16 %v1400_v58, %v1399_v53  ;;  %v1403_v56 = vld [vmem:[%s5203_s3 + $0x1c0] sm:$0xff]  ;;  %v1453_v7 = vld [vmem:[%s5203_s3 + $0x350] sm:$0xff] }
  0x2d   : > { %3098 = vmatpush1.bf16.msra.mxu0 %v3097_v6  ;;  %3051 = vmatprep.subr.bf16.mxu1 %v5218_v3  ;;  %v325_v6 = vld [vmem:[%s3641_s30 + $0x88] sm:$0xff]  ;;  %458 = vst [vmem:[#allocation2 + $0x81] sm:$0xff] %v425_v60  ;;  %v428_v10 = vmax.f32 %v3817_v62, 0.0  ;;  %v3835_v11 = vadd.f32 %v3665_v44, %v359_v1  ;;  %v361_v12 = vmul.f32 %v3660_v43, %v323_v57  ;;  %v1402_v33 = vld [vmem:[%s5203_s3 + $0x1b8] sm:$0xff]  ;;  %v328_v61 = vld [vmem:[%s3641_s30 + $0xa0] sm:$0xff] }
  0x2e   : > { %3099 = vmatprep.subr.bf16.mxu0 %v5218_v3  ;;  %459 = vst [vmem:[#allocation2 + $0x91] sm:$0xff] %v3825_v4  ;;  %v362_v21 = vmul.f32 %v3660_v43, %v324_v2  ;;  %460 = vst [vmem:[#allocation2 + $0x99] sm:$0xff] %v3831_v9  ;;  %v363_v30 = vmul.f32 %v3660_v43, %v325_v6  ;;  %v3061_v47 = vpack.c.bf16 %v1370_v24, %v1369_v23  ;;  %v1404_v57 = vld [vmem:[%s5203_s3 + $0x1c8] sm:$0xff]  ;;  %v327_v58 = vld [vmem:[%s3641_s30 + $0x98] sm:$0xff] }
  0x2f   : > { %461 = vst [vmem:[#allocation2 + $0xa9] sm:$0xff] %v428_v10  ;;  %v429_v28 = vmax.f32 %v3835_v11, 0.0  ;;  %v3857_v29 = vadd.f32 %v3665_v44, %v361_v12  ;;  %v3109_v49 = vpack.c.bf16 %v1402_v33, %v1401_v32  ;;  %v365_v2 = vmul.f32 %v3660_v43, %v327_v58  ;;  %v1373_v12 = vld [vmem:[%s5203_s3 + $0xd0] sm:$0xff]  ;;  %v1375_v33 = vld [vmem:[%s5203_s3 + $0xe0] sm:$0xff]  ;;  %v1418_v54 = vld [vmem:[%s5203_s3 + $0x238] sm:$0xff] }
  0x30   : > { %3053 = vmatpush1.bf16.msra.mxu1 %v3052_v18  ;;  %v3841_v18 = vadd.f32 %v3665_v44, %v360_v5  ;;  %v3870_v37 = vadd.f32 %v3665_v44, %v362_v21  ;;  %v3876_v41 = vadd.f32 %v3665_v44, %v363_v30  ;;  %v366_v5 = vmul.f32 %v3660_v43, %v328_v61  ;;  %v1406_v21 = vld [vmem:[%s5203_s3 + $0x1d8] sm:$0xff] }
  0x31   : > { %3101 = vmatpush1.bf16.msra.mxu0 %v3100_v31  ;;  %3054 = vmatprep.subr.bf16.mxu1 %v5218_v3  ;;  %v364_v31 = vmul.f32 %v3660_v43, %v326_v22  ;;  %462 = vst [vmem:[#allocation2 + $0xb1] sm:$0xff] %v429_v28  ;;  %v5214_v40 = vmax.f32 %v3857_v29, 0.0  ;;  %v3112_v6 = vpack.c.bf16 %v1404_v57, %v1403_v56  ;;  %v330_v57 = vld [vmem:[%s3641_s30 + $0xb0] sm:$0xff]  ;;  %v1442_v62 = vld [vmem:[%s5203_s3 + $0x2f8] sm:$0xff] }
  0x32   : > { %3102 = vmatprep.subr.bf16.mxu0 %v5218_v3  ;;  %v5215_v34 = vmax.f32 %v3841_v18, 0.0  ;;  %v5213_v48 = vmax.f32 %v3870_v37, 0.0  ;;  %v5212_v52 = vmax.f32 %v3876_v41, 0.0  ;;  %v3927_v22 = vadd.f32 %v3665_v44, %v365_v2 }
  0x33   : > { %v3879_v42 = vadd.f32 %v3665_v44, %v364_v31  ;;  %464 = vst [vmem:[#allocation2 + $0xc9] sm:$0xff] %v5214_v40  ;;  %v3930_v23 = vadd.f32 %v3665_v44, %v366_v5  ;;  %v1377_v5 = vld [vmem:[%s5203_s3 + $0xf0] sm:$0xff] }
  0x34   : > { %3056 = vmatpush1.bf16.msra.mxu1 %v3055_v50  ;;  %463 = vst [vmem:[#allocation2 + $0xc1] sm:$0xff] %v5215_v34  ;;  %v1371_v50 = vld [vmem:[%s5203_s3 + $0xc0] sm:$0xff]  ;;  %465 = vst [vmem:[#allocation2 + $0xd9] sm:$0xff] %v5213_v48  ;;  %v5210_v30 = vmax.f32 %v3927_v22, 0.0  ;;  %v677_v34 = vld [vmem:[#allocation2 + $0x38] sm:$0xff] }
  0x35   : > { %3104 = vmatpush1.bf16.msra.mxu0 %v3103_v51  ;;  %3057 = vmatprep.subr.bf16.mxu1 %v5218_v3  ;;  %v1372_v51 = vld [vmem:[%s5203_s3 + $0xc8] sm:$0xff]  ;;  %v5211_v53 = vmax.f32 %v3879_v42, 0.0  ;;  %466 = vst [vmem:[#allocation2 + $0xe1] sm:$0xff] %v5212_v52  ;;  %v5209_v31 = vmax.f32 %v3930_v23, 0.0 }
  0x36   : > { %3105 = vmatprep.subr.bf16.mxu0 %v5218_v3  ;;  %v3064_v1 = vpack.c.bf16 %v1372_v51, %v1371_v50  ;;  %v1407_v50 = vld [vmem:[%s5203_s3 + $0x1e0] sm:$0xff]  ;;  %v1408_v51 = vld [vmem:[%s5203_s3 + $0x1e8] sm:$0xff]  ;;  %468 = vst [vmem:[#allocation2 + $0xf9] sm:$0xff] %v5210_v30 }
  0x37   : > { %467 = vst [vmem:[#allocation2 + $0xf1] sm:$0xff] %v5211_v53  ;;  %469 = vst [vmem:[#allocation2 + $0x109] sm:$0xff] %v5209_v31  ;;  %v3118_v2 = vpack.c.bf16 %v1408_v51, %v1407_v50  ;;  %v547_v31 = vld [vmem:[#allocation2 + $0x9] sm:$0xff]  ;;  %v336_v30 = vld [vmem:[%s3641_s30 + $0xe0] sm:$0xff] }
  0x38   : > { %3059 = vmatpush1.bf16.msra.mxu1 %v3058_v16  ;;  %v1374_v16 = vld [vmem:[%s5203_s3 + $0xd8] sm:$0xff]  ;;  %v374_v53 = vmul.f32 %v3660_v43, %v336_v30 }
  0x39   : > { %3107 = vmatpush1.bf16.msra.mxu0 %v3106_v17  ;;  %3060 = vmatprep.subr.bf16.mxu1 %v5218_v3  ;;  %v1405_v17 = vld [vmem:[%s5203_s3 + $0x1d0] sm:$0xff]  ;;  %v3067_v24 = vpack.c.bf16 %v1374_v16, %v1373_v12  ;;  %v331_v12 = vld [vmem:[%s3641_s30 + $0xb8] sm:$0xff] }
  0x3a   : > { %3108 = vmatprep.subr.bf16.mxu0 %v5218_v3  ;;  %v3115_v32 = vpack.c.bf16 %v1406_v21, %v1405_v17  ;;  %v1409_v16 = vld [vmem:[%s5203_s3 + $0x1f0] sm:$0xff]  ;;  %v1410_v17 = vld [vmem:[%s5203_s3 + $0x1f8] sm:$0xff]  ;;  %v412_v30 = vadd.f32 %v3665_v44, %v374_v53 }
  0x3b   : > { %v4055_v53 = vld [vmem:[#allocation2 + $0x30] sm:$0xff] }
  0x3c   : > { %3062 = vmatpush1.bf16.msra.mxu1 %v3061_v47  ;;  %v1376_v47 = vld [vmem:[%s5203_s3 + $0xe8] sm:$0xff] }
  0x3d   : > { %3110 = vmatpush1.bf16.msra.mxu0 %v3109_v49  ;;  %3063 = vmatprep.subr.bf16.mxu1 %v5218_v3  ;;  %v329_v49 = vld [vmem:[%s3641_s30 + $0xa8] sm:$0xff]  ;;  %v3070_v58 = vpack.c.bf16 %v1376_v47, %v1375_v33  ;;  %v332_v33 = vld [vmem:[%s3641_s30 + $0xc0] sm:$0xff] }
  0x3e   : > { %3111 = vmatprep.subr.bf16.mxu0 %v5218_v3  ;;  %v367_v56 = vmul.f32 %v3660_v43, %v329_v49  ;;  %v370_v47 = vmul.f32 %v3660_v43, %v332_v33 }
  0x40   : > { %3065 = vmatpush1.bf16.msra.mxu1 %v3064_v1  ;;  %v3956_v61 = vadd.f32 %v3665_v44, %v367_v56  ;;  %v368_v1 = vmul.f32 %v3660_v43, %v330_v57  ;;  %v333_v56 = vld [vmem:[%s3641_s30 + $0xc8] sm:$0xff]  ;;  %v3121_v57 = vpack.c.bf16 %v1410_v17, %v1409_v16  ;;  %v1443_v16 = vld [vmem:[%s5203_s3 + $0x300] sm:$0xff] }
  0x41   : > { %3113 = vmatpush1.bf16.msra.mxu0 %v3112_v6  ;;  %3066 = vmatprep.subr.bf16.mxu1 %v5218_v3  ;;  %v1378_v6 = vld [vmem:[%s5203_s3 + $0xf8] sm:$0xff]  ;;  %v1444_v17 = vld [vmem:[%s5203_s3 + $0x308] sm:$0xff] }
  0x42   : > { %3114 = vmatprep.subr.bf16.mxu0 %v5218_v3  ;;  %v5208_v21 = vmax.f32 %v3956_v61, 0.0  ;;  %v3073_v49 = vpack.c.bf16 %v1378_v6, %v1377_v5  ;;  %v1412_v5 = vld [vmem:[%s5203_s3 + $0x208] sm:$0xff]  ;;  %v334_v6 = vld [vmem:[%s3641_s30 + $0xd0] sm:$0xff] }
  0x44   : > { %3068 = vmatpush1.bf16.msra.mxu1 %v3067_v24  ;;  %v3976_v24 = vadd.f32 %v3665_v44, %v368_v1  ;;  %470 = vst [vmem:[#allocation2 + $0x111] sm:$0xff] %v5208_v21  ;;  %v408_v1 = vadd.f32 %v3665_v44, %v370_v47  ;;  %v372_v47 = vmul.f32 %v3660_v43, %v334_v6 }
  0x45   : > { %3116 = vmatpush1.bf16.msra.mxu0 %v3115_v32  ;;  %3069 = vmatprep.subr.bf16.mxu1 %v5218_v3  ;;  %v369_v32 = vmul.f32 %v3660_v43, %v331_v12  ;;  %v371_v12 = vmul.f32 %v3660_v43, %v333_v56  ;;  %v482_v56 = vld [vmem:[#allocation2] sm:$0xff] }
  0x46   : > { %3117 = vmatprep.subr.bf16.mxu0 %v5218_v3  ;;  %v5207_v50 = vmax.f32 %v3976_v24, 0.0 }
  0x47   : > { %v407_v51 = vadd.f32 %v3665_v44, %v369_v32  ;;  %v4007_v32 = vmax.f32 %v408_v1, 0.0  ;;  %v409_v33 = vadd.f32 %v3665_v44, %v371_v12  ;;  %v1413_v1 = vld [vmem:[%s5203_s3 + $0x210] sm:$0xff] }
  0x48   : > { %3071 = vmatpush1.bf16.msra.mxu1 %v3070_v58  ;;  %v1411_v58 = vld [vmem:[%s5203_s3 + $0x200] sm:$0xff]  ;;  %471 = vst [vmem:[#allocation2 + $0x121] sm:$0xff] %v5207_v50  ;;  %v335_v50 = vld [vmem:[%s3641_s30 + $0xd8] sm:$0xff] }
  0x49   : > { %3119 = vmatpush1.bf16.msra.mxu0 %v3118_v2  ;;  %3072 = vmatprep.subr.bf16.mxu1 %v5218_v3  ;;  %v3998_v2 = vmax.f32 %v407_v51, 0.0  ;;  %v610_v51 = vld [vmem:[#allocation2 + $0x2] sm:$0xff]  ;;  %v3124_v21 = vpack.c.bf16 %v1412_v5, %v1411_v58  ;;  %473 = vst [vmem:[#allocation2 + $0x139] sm:$0xff] %v4007_v32  ;;  %v4018_v12 = vmax.f32 %v409_v33, 0.0  ;;  %v373_v6 = vmul.f32 %v3660_v43, %v335_v50  ;;  %v1414_v58 = vld [vmem:[%s5203_s3 + $0x218] sm:$0xff]  ;;  %v1445_v50 = vld [vmem:[%s5203_s3 + $0x310] sm:$0xff] }
  0x4a   : > { %3120 = vmatprep.subr.bf16.mxu0 %v5218_v3  ;;  %v4029_v5 = vpack.c.bf16 %v1444_v17, %v1443_v16  ;;  %v337_v33 = vld [vmem:[%s3641_s30 + $0xe8] sm:$0xff]  ;;  %v338_v17 = vld [vmem:[%s3641_s30 + $0xf0] sm:$0xff]  ;;  %v3127_v40 = vpack.c.bf16 %v1414_v58, %v1413_v1  ;;  %v4064_v58 = vmax.f32 %v412_v30, 0.0 }
  0x4b   : > { %472 = vst [vmem:[#allocation2 + $0x129] sm:$0xff] %v3998_v2  ;;  %474 = vst [vmem:[#allocation2 + $0x141] sm:$0xff] %v4018_v12  ;;  %v411_v48 = vadd.f32 %v3665_v44, %v373_v6  ;;  %v375_v16 = vmul.f32 %v3660_v43, %v337_v33  ;;  %v1447_v33 = vld [vmem:[%s5203_s3 + $0x320] sm:$0xff] }
  0x4c   : > { %3074 = vmatpush1.bf16.msra.mxu1 %v3073_v49  ;;  %v410_v49 = vadd.f32 %v3665_v44, %v372_v47  ;;  %v1446_v47 = vld [vmem:[%s5203_s3 + $0x318] sm:$0xff]  ;;  %477 = vst [vmem:[#allocation2 + $0x169] sm:$0xff] %v4064_v58 }
  0x4d   : > { %3122 = vmatpush1.bf16.msra.mxu0 %v3121_v57  ;;  %3251 = vmatprep.subr.bf16.mxu1 %v5218_v3  ;;  %v4024_v57 = vld [vmem:[#allocation2 + $0x20] sm:$0xff]  ;;  %v4051_v6 = vmax.f32 %v411_v48, 0.0  ;;  %v4062_v1 = vpack.c.bf16 %v1446_v47, %v1445_v50  ;;  %v339_v48 = vld [vmem:[%s3641_s30 + $0xf8] sm:$0xff] }
  0x4e   : > { %3123 = vmatprep.subr.bf16.mxu0 %v5218_v3  ;;  %v4040_v52 = vmax.f32 %v410_v49, 0.0  ;;  %v1415_v49 = vld [vmem:[%s5203_s3 + $0x220] sm:$0xff]  ;;  %v377_v47 = vmul.f32 %v3660_v43, %v339_v48 }
  0x4f   : > { %1556 = vmatmul.mubr.f32.vlgmr.msra.gmra.mrb[0].mxu1 %v482_v56  ;;  %v611_v56 = vld [vmem:[#allocation2 + $0xa] sm:$0xff]  ;;  %476 = vst [vmem:[#allocation2 + $0x159] sm:$0xff] %v4051_v6  ;;  %v1419_v48 = vld [vmem:[%s5203_s3 + $0x240] sm:$0xff] }
  0x50   : > { %1781 = vmatmul.mubr.f32.vlgmr.msra.gmra.mrb[0].mxu0 %v610_v51  ;;  %1560 = vmatprep.mubr.f32.mxu1 %v547_v31  ;;  %475 = vst [vmem:[#allocation2 + $0x151] sm:$0xff] %v4040_v52  ;;  %v413_v51 = vadd.f32 %v3665_v44, %v375_v16  ;;  %v376_v31 = vmul.f32 %v3660_v43, %v338_v17  ;;  %v1448_v16 = vld [vmem:[%s5203_s3 + $0x328] sm:$0xff]  ;;  %v1417_v43 = vld [vmem:[%s5203_s3 + $0x230] sm:$0xff] }
  0x51   : > { %3125 = vmatpush1.bf16.msra.mxu0 %v3124_v21  ;;  %1785 = vmatprep.mubr.f32.mxu0 %v4024_v57  ;;  %v1416_v21 = vld [vmem:[%s5203_s3 + $0x228] sm:$0xff] }
  0x52   : > { %3126 = vmatprep.subr.bf16.mxu0 %v5218_v3  ;;  %3267 = vmatpush1.bf16.msra.mxu1 %v4029_v5  ;;  %v4076_v17 = vmax.f32 %v413_v51, 0.0  ;;  %v4079_v50 = vadd.f32 %v3665_v44, %v376_v31  ;;  %v3130_v30 = vpack.c.bf16 %v1416_v21, %v1415_v49  ;;  %v4089_v31 = vadd.f32 %v3665_v44, %v377_v47  ;;  %v1449_v44 = vld [vmem:[%s5203_s3 + $0x330] sm:$0xff]  ;;  %v678_v21 = vld [vmem:[#allocation2 + $0x48] sm:$0xff] }
  0x53   : > { %1561 = vmatmul.mubr.f32.gmra.mrb[2].mxu1 %v3461_v8  ;;  %3252 = vmatprep.subr.bf16.mxu1 %v5218_v3  ;;  %v612_v8 = vld [vmem:[#allocation2 + $0x1a] sm:$0xff]  ;;  %v3133_v49 = vpack.c.bf16 %v1418_v54, %v1417_v43  ;;  %v614_v47 = vld [vmem:[#allocation2 + $0x32] sm:$0xff] }
  0x54   : > { %5249 = vst [vmem:[#allocation4_spill] sm:$0xff] %v4076_v17  ;;  %5250 = vst [vmem:[#allocation5_spill] sm:$0xff] %v4079_v50  ;;  %1786 = vmatmul.mubr.f32.gmra.mrb[2].mxu0 %v611_v56  ;;  %1565 = vmatprep.mubr.f32.mxu1 %v416_v63  ;;  %v5217_v51 = vmax.f32 %v4079_v50, 0.0  ;;  %v4099_v63 = vpack.c.bf16 %v1448_v16, %v1447_v33  ;;  %v5216_v56 = vmax.f32 %v4089_v31, 0.0  ;;  %v1420_v33 = vld [vmem:[%s5203_s3 + $0x248] sm:$0xff]  ;;  %v1422_v43 = vld [vmem:[%s5203_s3 + $0x258] sm:$0xff] }
  0x55   : > { %1790 = vmatprep.mubr.f32.mxu0 %v4055_v53  ;;  %3128 = vmatpush1.bf16.msra.mxu0 %v3127_v40  ;;  %478 = vst [vmem:[#allocation2 + $0x171] sm:$0xff] %v4076_v17  ;;  %5251 = vst [vmem:[#allocation6_spill] sm:$0xff] %v4089_v31  ;;  %v1450_v40 = vld [vmem:[%s5203_s3 + $0x338] sm:$0xff]  ;;  %v1452_v16 = vld [vmem:[%s5203_s3 + $0x348] sm:$0xff] }
  0x56   : > { %3129 = vmatprep.subr.bf16.mxu0 %v5218_v3  ;;  %3268 = vmatpush1.bf16.msra.mxu1 %v4062_v1  ;;  %479 = vst [vmem:[#allocation2 + $0x181] sm:$0xff] %v5217_v51  ;;  %480 = vst [vmem:[#allocation2 + $0x189] sm:$0xff] %v5216_v56  ;;  %v4124_v0 = vpack.c.bf16 %v1450_v40, %v1449_v44  ;;  %v615_v44 = vld [vmem:[#allocation2 + $0x3a] sm:$0xff]  ;;  %v5252_v51 = vmax.f32 %v3841_v18, 0.0  ;;  %v5253_v18 = vmax.f32 %v3857_v29, 0.0  ;;  %v5255_v29 = vmax.f32 %v3876_v41, 0.0 }
  0x57   : > { %1566 = vmatmul.mubr.f32.gmra.mrb[4].mxu1 %v3810_v59  ;;  %3253 = vmatprep.subr.bf16.mxu1 %v5218_v3  ;;  %v613_v59 = vld [vmem:[#allocation2 + $0x22] sm:$0xff]  ;;  %v4400_v56 = vld [vmem:[#allocation2 + $0xd8] sm:$0xff]  ;;  %v5259_v41 = vmax.f32 %v3927_v22, 0.0  ;;  %v5263_v22 = vmax.f32 %v3956_v61, 0.0  ;;  %v4497_v61 = vld [vmem:[#allocation2 + $0x12a] sm:$0xff] }
  0x58   : > { %1791 = vmatmul.mubr.f32.gmra.mrb[4].mxu0 %v612_v8  ;;  %1570 = vmatprep.mubr.f32.mxu1 %v417_v13  ;;  %v1451_v13 = vld [vmem:[%s5203_s3 + $0x340] sm:$0xff]  ;;  %v3136_v8 = vpack.c.bf16 %v1420_v33, %v1419_v48  ;;  %v4175_v33 = vld [vmem:[#allocation2 + $0x4a] sm:$0xff]  ;;  %v4482_v50 = vld [vmem:[#allocation2 + $0x138] sm:$0xff]  ;;  %5267 = vst [vmem:[#allocation13_spill] sm:$0xff] %v4497_v61 }
  0x59   : > { %1795 = vmatprep.mubr.f32.mxu0 %v677_v34  ;;  %3131 = vmatpush1.bf16.msra.mxu0 %v3130_v30  ;;  %v679_v30 = vld [vmem:[#allocation2 + $0x50] sm:$0xff]  ;;  %v4144_v54 = vpack.c.bf16 %v1452_v16, %v1451_v13  ;;  %v4473_v31 = vld [vmem:[#allocation2 + $0x128] sm:$0xff] }
  0x5a   : > { %3132 = vmatprep.subr.bf16.mxu0 %v5218_v3  ;;  %3269 = vmatpush1.bf16.msra.mxu1 %v4099_v63  ;;  %v1425_v16 = vld [vmem:[%s5203_s3 + $0x270] sm:$0xff] }
  0x5b   : > { %1571 = vmatmul.mubr.f32.gmra.mrb[6].mxu1 %v4024_v57  ;;  %3254 = vmatprep.subr.bf16.mxu1 %v5218_v3  ;;  %v1421_v57 = vld [vmem:[%s5203_s3 + $0x250] sm:$0xff] }
  0x5c   : > { %1796 = vmatmul.mubr.f32.gmra.mrb[6].mxu0 %v613_v59  ;;  %1575 = vmatprep.mubr.f32.mxu1 %v418_v19  ;;  %v1454_v19 = vld [vmem:[%s5203_s3 + $0x358] sm:$0xff]  ;;  %v3139_v40 = vpack.c.bf16 %v1422_v43, %v1421_v57  ;;  %v680_v59 = vld [vmem:[#allocation2 + $0x60] sm:$0xff] }
  0x5d   : > { %1800 = vmatprep.mubr.f32.mxu0 %v678_v21  ;;  %3134 = vmatpush1.bf16.msra.mxu0 %v3133_v49  ;;  %v1424_v49 = vld [vmem:[%s5203_s3 + $0x268] sm:$0xff]  ;;  %v4164_v48 = vpack.c.bf16 %v1454_v19, %v1453_v7  ;;  %v4197_v57 = vld [vmem:[#allocation2 + $0x52] sm:$0xff]  ;;  %v1427_v7 = vld [vmem:[%s5203_s3 + $0x280] sm:$0xff] }
  0x5e   : > { %3135 = vmatprep.subr.bf16.mxu0 %v5218_v3  ;;  %3270 = vmatpush1.bf16.msra.mxu1 %v4124_v0  ;;  %v682_v43 = vld [vmem:[#allocation2 + $0x78] sm:$0xff]  ;;  %v1428_v19 = vld [vmem:[%s5203_s3 + $0x288] sm:$0xff] }
  0x5f   : > { %1576 = vmatmul.mubr.f32.gmra.mrb[8].mxu1 %v4055_v53  ;;  %3255 = vmatprep.subr.bf16.mxu1 %v5218_v3  ;;  %v1423_v53 = vld [vmem:[%s5203_s3 + $0x260] sm:$0xff] }
  0x60   : > { %1801 = vmatmul.mubr.f32.gmra.mrb[8].mxu0 %v614_v47  ;;  %1580 = vmatprep.mubr.f32.mxu1 %v419_v25  ;;  %v1456_v25 = vld [vmem:[%s5203_s3 + $0x368] sm:$0xff]  ;;  %v3142_v13 = vpack.c.bf16 %v1424_v49, %v1423_v53  ;;  %v1426_v47 = vld [vmem:[%s5203_s3 + $0x278] sm:$0xff]  ;;  %v683_v53 = vld [vmem:[#allocation2 + $0x80] sm:$0xff] }
  0x61   : > { %1805 = vmatprep.mubr.f32.mxu0 %v679_v30  ;;  %3137 = vmatpush1.bf16.msra.mxu0 %v3136_v8  ;;  %v4185_v15 = vpack.c.bf16 %v1456_v25, %v1455_v14  ;;  %v1458_v8 = vld [vmem:[%s5203_s3 + $0x378] sm:$0xff]  ;;  %v1429_v49 = vld [vmem:[%s5203_s3 + $0x290] sm:$0xff] }
  0x62   : > { %3138 = vmatprep.subr.bf16.mxu0 %v5218_v3  ;;  %3271 = vmatpush1.bf16.msra.mxu1 %v4144_v54  ;;  %v1430_v14 = vld [vmem:[%s5203_s3 + $0x298] sm:$0xff] }
  0x63   : > { %1581 = vmatmul.mubr.f32.gmra.mrb[10].mxu1 %v677_v34  ;;  %3256 = vmatprep.subr.bf16.mxu1 %v5218_v3  ;;  %v681_v34 = vld [vmem:[#allocation2 + $0x68] sm:$0xff]  ;;  %v1462_v25 = vld [vmem:[%s5203_s3 + $0x398] sm:$0xff] }
  0x64   : > { %1806 = vmatmul.mubr.f32.gmra.mrb[10].mxu0 %v615_v44  ;;  %1585 = vmatprep.mubr.f32.mxu1 %v420_v26  ;;  %v1457_v26 = vld [vmem:[%s5203_s3 + $0x370] sm:$0xff]  ;;  %v1460_v44 = vld [vmem:[%s5203_s3 + $0x388] sm:$0xff] }
  0x65   : > { %1810 = vmatprep.mubr.f32.mxu0 %v680_v59  ;;  %3140 = vmatpush1.bf16.msra.mxu0 %v3139_v40  ;;  %v4207_v20 = vpack.c.bf16 %v1458_v8, %v1457_v26  ;;  %v4219_v40 = vld [vmem:[#allocation2 + $0x62] sm:$0xff] }
  0x66   : > { %3141 = vmatprep.subr.bf16.mxu0 %v5218_v3  ;;  %3272 = vmatpush1.bf16.msra.mxu1 %v4164_v48  ;;  %v1432_v26 = vld [vmem:[%s5203_s3 + $0x2a8] sm:$0xff] }
  0x67   : > { %1586 = vmatmul.mubr.f32.gmra.mrb[12].mxu1 %v678_v21  ;;  %3257 = vmatprep.subr.bf16.mxu1 %v5218_v3  ;;  %v3145_v21 = vpack.c.bf16 %v1426_v47, %v1425_v16  ;;  %v4243_v16 = vld [vmem:[#allocation2 + $0x90] sm:$0xff]  ;;  %v1431_v47 = vld [vmem:[%s5203_s3 + $0x2a0] sm:$0xff]  ;;  %v1464_v8 = vld [vmem:[%s5203_s3 + $0x3a8] sm:$0xff] }
  0x68   : > { %1811 = vmatmul.mubr.f32.gmra.mrb[12].mxu0 %v4175_v33  ;;  %1590 = vmatprep.mubr.f32.mxu1 %v421_v35  ;;  %v1459_v35 = vld [vmem:[%s5203_s3 + $0x380] sm:$0xff] }
  0x69   : > { %1815 = vmatprep.mubr.f32.mxu0 %v681_v34  ;;  %3143 = vmatpush1.bf16.msra.mxu0 %v3142_v13  ;;  %v4229_v27 = vpack.c.bf16 %v1460_v44, %v1459_v35  ;;  %v4241_v13 = vld [vmem:[#allocation2 + $0x6a] sm:$0xff]  ;;  %v1434_v35 = vld [vmem:[%s5203_s3 + $0x2b8] sm:$0xff] }
  0x6a   : > { %3144 = vmatprep.subr.bf16.mxu0 %v5218_v3  ;;  %3273 = vmatpush1.bf16.msra.mxu1 %v4185_v15  ;;  %v1466_v44 = vld [vmem:[%s5203_s3 + $0x3b8] sm:$0xff] }
  0x6b   : > { %1591 = vmatmul.mubr.f32.gmra.mrb[14].mxu1 %v679_v30  ;;  %3258 = vmatprep.subr.bf16.mxu1 %v5218_v3  ;;  %v3148_v30 = vpack.c.bf16 %v1428_v19, %v1427_v7  ;;  %v4268_v7 = vld [vmem:[#allocation2 + $0x98] sm:$0xff]  ;;  %v1433_v19 = vld [vmem:[%s5203_s3 + $0x2b0] sm:$0xff] }
  0x6c   : > { %1816 = vmatmul.mubr.f32.gmra.mrb[14].mxu0 %v4197_v57  ;;  %1595 = vmatprep.mubr.f32.mxu1 %v422_v38  ;;  %v1461_v38 = vld [vmem:[%s5203_s3 + $0x390] sm:$0xff] }
  0x6d   : > { %1820 = vmatprep.mubr.f32.mxu0 %v682_v43  ;;  %3146 = vmatpush1.bf16.msra.mxu0 %v3145_v21  ;;  %v4253_v36 = vpack.c.bf16 %v1462_v25, %v1461_v38  ;;  %v4266_v21 = vld [vmem:[#allocation2 + $0x7a] sm:$0xff]  ;;  %v1436_v38 = vld [vmem:[%s5203_s3 + $0x2c8] sm:$0xff] }
  0x6e   : > { %3147 = vmatprep.subr.bf16.mxu0 %v5218_v3  ;;  %3274 = vmatpush1.bf16.msra.mxu1 %v4207_v20  ;;  %v1468_v25 = vld [vmem:[%s5203_s3 + $0x3c8] sm:$0xff] }
  0x6f   : > { %1596 = vmatmul.mubr.f32.gmra.mrb[16].mxu1 %v680_v59  ;;  %3259 = vmatprep.subr.bf16.mxu1 %v5218_v3  ;;  %v3151_v59 = vpack.c.bf16 %v1430_v14, %v1429_v49  ;;  %v4293_v49 = vld [vmem:[#allocation2 + $0xa8] sm:$0xff]  ;;  %v1435_v14 = vld [vmem:[%s5203_s3 + $0x2c0] sm:$0xff] }
  0x70   : > { %1821 = vmatmul.mubr.f32.gmra.mrb[16].mxu0 %v4219_v40  ;;  %1600 = vmatprep.mubr.f32.mxu1 %v423_v45  ;;  %v1463_v45 = vld [vmem:[%s5203_s3 + $0x3a0] sm:$0xff] }
  0x71   : > { %1825 = vmatprep.mubr.f32.mxu0 %v683_v53  ;;  %3149 = vmatpush1.bf16.msra.mxu0 %v3148_v30  ;;  %v4278_v39 = vpack.c.bf16 %v1464_v8, %v1463_v45  ;;  %v4291_v30 = vld [vmem:[#allocation2 + $0x82] sm:$0xff]  ;;  %v1438_v45 = vld [vmem:[%s5203_s3 + $0x2d8] sm:$0xff] }
  0x72   : > { %3150 = vmatprep.subr.bf16.mxu0 %v5218_v3  ;;  %3275 = vmatpush1.bf16.msra.mxu1 %v4229_v27 }
  0x73   : > { %1601 = vmatmul.mubr.f32.gmra.mrb[18].mxu1 %v681_v34  ;;  %3260 = vmatprep.subr.bf16.mxu1 %v5218_v3  ;;  %v3154_v34 = vpack.c.bf16 %v1432_v26, %v1431_v47  ;;  %v4317_v47 = vld [vmem:[#allocation2 + $0xb0] sm:$0xff] }
  0x74   : > { %1826 = vmatmul.mubr.f32.gmra.mrb[18].mxu0 %v4241_v13  ;;  %1605 = vmatprep.mubr.f32.mxu1 %v424_v55  ;;  %v1465_v55 = vld [vmem:[%s5203_s3 + $0x3b0] sm:$0xff] }
  0x75   : > { %1830 = vmatprep.mubr.f32.mxu0 %v4243_v16  ;;  %3152 = vmatpush1.bf16.msra.mxu0 %v3151_v59  ;;  %v4303_v46 = vpack.c.bf16 %v1466_v44, %v1465_v55  ;;  %v4315_v59 = vld [vmem:[#allocation2 + $0x92] sm:$0xff]  ;;  %v4342_v44 = vld [vmem:[#allocation2 + $0xc0] sm:$0xff] }
  0x76   : > { %3153 = vmatprep.subr.bf16.mxu0 %v5218_v3  ;;  %3276 = vmatpush1.bf16.msra.mxu1 %v4253_v36  ;;  %v1437_v26 = vld [vmem:[%s5203_s3 + $0x2d0] sm:$0xff] }
  0x77   : > { %1606 = vmatmul.mubr.f32.gmra.mrb[20].mxu1 %v682_v43  ;;  %3261 = vmatprep.subr.bf16.mxu1 %v5218_v3  ;;  %v3157_v43 = vpack.c.bf16 %v1434_v35, %v1433_v19  ;;  %v1470_v19 = vld [vmem:[%s5203_s3 + $0x3d8] sm:$0xff]  ;;  %v3163_v55 = vpack.c.bf16 %v1438_v45, %v1437_v26  ;;  %v4368_v45 = vld [vmem:[#allocation2 + $0xc8] sm:$0xff] }
  0x78   : > { %1831 = vmatmul.mubr.f32.gmra.mrb[20].mxu0 %v4266_v21  ;;  %1610 = vmatprep.mubr.f32.mxu1 %v425_v60  ;;  %v1467_v60 = vld [vmem:[%s5203_s3 + $0x3c0] sm:$0xff] }
  0x79   : > { %1835 = vmatprep.mubr.f32.mxu0 %v4268_v7  ;;  %3155 = vmatpush1.bf16.msra.mxu0 %v3154_v34  ;;  %v4327_v8 = vpack.c.bf16 %v1468_v25, %v1467_v60  ;;  %v1469_v34 = vld [vmem:[%s5203_s3 + $0x3d0] sm:$0xff]  ;;  %v4340_v35 = vld [vmem:[#allocation2 + $0x9a] sm:$0xff]  ;;  %v1472_v25 = vld [vmem:[%s5203_s3 + $0x3e8] sm:$0xff] }
  0x7a   : > { %3156 = vmatprep.subr.bf16.mxu0 %v5218_v3  ;;  %3277 = vmatpush1.bf16.msra.mxu1 %v4278_v39  ;;  %v1471_v60 = vld [vmem:[%s5203_s3 + $0x3e0] sm:$0xff] }
  0x7b   : > { %1611 = vmatmul.mubr.f32.gmra.mrb[22].mxu1 %v683_v53  ;;  %3262 = vmatprep.subr.bf16.mxu1 %v5218_v3  ;;  %v3160_v53 = vpack.c.bf16 %v1436_v38, %v1435_v14  ;;  %v1440_v14 = vld [vmem:[%s5203_s3 + $0x2e8] sm:$0xff]  ;;  %v4352_v38 = vpack.c.bf16 %v1470_v19, %v1469_v34  ;;  %v1441_v34 = vld [vmem:[%s5203_s3 + $0x2f0] sm:$0xff] }
  0x7c   : > { %1836 = vmatmul.mubr.f32.gmra.mrb[22].mxu0 %v4291_v30  ;;  %1615 = vmatprep.mubr.f32.mxu1 %v3825_v4  ;;  %v1473_v19 = vld [vmem:[%s5203_s3 + $0x3f0] sm:$0xff] }
  0x7d   : > { %1840 = vmatprep.mubr.f32.mxu0 %v4293_v49  ;;  %3158 = vmatpush1.bf16.msra.mxu0 %v3157_v43  ;;  %v1439_v43 = vld [vmem:[%s5203_s3 + $0x2e0] sm:$0xff] }
  0x7e   : > { %3159 = vmatprep.subr.bf16.mxu0 %v5218_v3  ;;  %3278 = vmatpush1.bf16.msra.mxu1 %v4303_v46  ;;  %v3166_v26 = vpack.c.bf16 %v1440_v14, %v1439_v43  ;;  %v1475_v43 = vld [vmem:[%s5203_s3 + $0x400] sm:$0xff]  ;;  %v1476_v14 = vld [vmem:[%s5203_s3 + $0x408] sm:$0xff] }
  0x7f   : > { %1616 = vmatmul.mubr.f32.gmra.mrb[24].mxu1 %v4243_v16  ;;  %3263 = vmatprep.subr.bf16.mxu1 %v5218_v3 }
  0x80   : > { %1841 = vmatmul.mubr.f32.gmra.mrb[24].mxu0 %v4315_v59  ;;  %1620 = vmatprep.mubr.f32.mxu1 %v3831_v9 }
  0x81   : > { %1845 = vmatprep.mubr.f32.mxu0 %v4317_v47  ;;  %3161 = vmatpush1.bf16.msra.mxu0 %v3160_v53  ;;  %v4366_v53 = vld [vmem:[#allocation2 + $0xaa] sm:$0xff] }
  0x82   : > { %3162 = vmatprep.subr.bf16.mxu0 %v5218_v3  ;;  %3279 = vmatpush1.bf16.msra.mxu1 %v4327_v8 }
  0x83   : > { %1621 = vmatmul.mubr.f32.gmra.mrb[26].mxu1 %v4268_v7  ;;  %3264 = vmatprep.subr.bf16.mxu1 %v5218_v3 }
  0x84   : > { %1846 = vmatmul.mubr.f32.gmra.mrb[26].mxu0 %v4340_v35  ;;  %1625 = vmatprep.mubr.f32.mxu1 %v428_v10  ;;  %v4378_v10 = vpack.c.bf16 %v1472_v25, %v1471_v60  ;;  %v4398_v60 = vld [vmem:[#allocation2 + $0xb2] sm:$0xff]  ;;  %v3169_v25 = vpack.c.bf16 %v1442_v62, %v1441_v34  ;;  %v4416_v34 = vld [vmem:[#allocation2 + $0xe0] sm:$0xff] }
  0x85   : > { %1850 = vmatprep.mubr.f32.mxu0 %v4342_v44  ;;  %3164 = vmatpush1.bf16.msra.mxu0 %v3163_v55  ;;  %v1474_v55 = vld [vmem:[%s5203_s3 + $0x3f8] sm:$0xff]  ;;  %v4428_v62 = vld [vmem:[#allocation2 + $0xf0] sm:$0xff] }
  0x86   : > { %3165 = vmatprep.subr.bf16.mxu0 %v5218_v3  ;;  %3280 = vmatpush1.bf16.msra.mxu1 %v4352_v38  ;;  %v4404_v11 = vpack.c.bf16 %v1474_v55, %v1473_v19  ;;  %v5254_v19 = vmax.f32 %v3870_v37, 0.0  ;;  %v4435_v55 = vld [vmem:[#allocation2 + $0xda] sm:$0xff]  ;;  %v5257_v37 = vmax.f32 %v3879_v42, 0.0  ;;  %v5261_v42 = vmax.f32 %v3930_v23, 0.0 }
  0x87   : > { %1626 = vmatmul.mubr.f32.gmra.mrb[28].mxu1 %v4293_v49  ;;  %3265 = vmatprep.subr.bf16.mxu1 %v5218_v3  ;;  %v5265_v23 = vmax.f32 %v3976_v24, 0.0  ;;  %v4505_v24 = vld [vmem:[#allocation2 + $0x13a] sm:$0xff] }
  0x88   : > { %1851 = vmatmul.mubr.f32.gmra.mrb[28].mxu0 %v4366_v53  ;;  %1630 = vmatprep.mubr.f32.mxu1 %v429_v28  ;;  %v4408_v28 = vpack.c.bf16 %v1476_v14, %v1475_v43  ;;  %v4437_v43 = vld [vmem:[#allocation2 + $0xf8] sm:$0xff]  ;;  %v4444_v14 = vld [vmem:[#allocation2 + $0xe2] sm:$0xff]  ;;  %5268 = vst [vmem:[#allocation14_spill] sm:$0xff] %v4505_v24 }
  0x89   : > { %1855 = vmatprep.mubr.f32.mxu0 %v4368_v45  ;;  %3167 = vmatpush1.bf16.msra.mxu0 %v3166_v26  ;;  %v4414_v26 = vld [vmem:[#allocation2 + $0xc2] sm:$0xff]  ;;  %5256 = vst [vmem:[#allocation7_spill] sm:$0xff] %v4444_v14 }
  0x8a   : > { %3168 = vmatprep.subr.bf16.mxu0 %v5218_v3  ;;  %3281 = vmatpush1.bf16.msra.mxu1 %v4378_v10 }
  0x8b   : > { %1631 = vmatmul.mubr.f32.gmra.mrb[30].mxu1 %v4317_v47  ;;  %3266 = vmatprep.subr.bf16.mxu1 %v5218_v3 }
  0x8c   : > { %1856 = vmatmul.mubr.f32.gmra.mrb[30].mxu0 %v4398_v60  ;;  %1635 = vmatprep.mubr.f32.mxu1 %v5252_v51  ;;  %v4426_v51 = vld [vmem:[#allocation2 + $0xca] sm:$0xff] }
  0x8d   : > { %1860 = vmatprep.mubr.f32.mxu0 %v4400_v56  ;;  %3170 = vmatpush1.bf16.msra.mxu0 %v3169_v25  ;;  %v4446_v25 = vld [vmem:[#allocation2 + $0x108] sm:$0xff] }
  0x8e   : > { %3282 = vmatpush1.bf16.msra.mxu1 %v4404_v11  ;;  %3171 = vmatprep.subr.bf16.mxu0 %v5218_v3  ;;  %v4464_v3 = vld [vmem:[#allocation2 + $0x120] sm:$0xff] }
  0x8f   : > { %1636 = vmatmul.mubr.f32.gmra.mrb[32].mxu1 %v4342_v44  ;;  %3220 = vmatprep.subr.bf16.mxu1 %v4408_v28 }
  0x90   : > { %1861 = vmatmul.mubr.f32.gmra.mrb[32].mxu0 %v4414_v26  ;;  %1640 = vmatprep.mubr.f32.mxu1 %v5253_v18  ;;  %v4453_v18 = vld [vmem:[#allocation2 + $0xf2] sm:$0xff] }
  0x91   : > { %1865 = vmatprep.mubr.f32.mxu0 %v4416_v34  ;;  %5258 = vst [vmem:[#allocation8_spill] sm:$0xff] %v4453_v18 }
  0x93   : > { %1641 = vmatmul.mubr.f32.gmra.mrb[34].mxu1 %v4368_v45 }
  0x94   : > { %1866 = vmatmul.mubr.f32.gmra.mrb[34].mxu0 %v4426_v51  ;;  %1645 = vmatprep.mubr.f32.mxu1 %v5254_v19  ;;  %v4455_v19 = vld [vmem:[#allocation2 + $0x110] sm:$0xff] }
  0x95   : > { %1870 = vmatprep.mubr.f32.mxu0 %v4428_v62 }
  0x97   : > { %1646 = vmatmul.mubr.f32.gmra.mrb[36].mxu1 %v4400_v56 }
  0x98   : > { %1871 = vmatmul.mubr.f32.gmra.mrb[36].mxu0 %v4435_v55  ;;  %1650 = vmatprep.mubr.f32.mxu1 %v5255_v29  ;;  %v4462_v29 = vld [vmem:[#allocation2 + $0xfa] sm:$0xff] }
  0x99   : > { %1875 = vmatprep.mubr.f32.mxu0 %v4437_v43  ;;  %5260 = vst [vmem:[#allocation9_spill] sm:$0xff] %v4462_v29 }
  0x9b   : > { %1651 = vmatmul.mubr.f32.gmra.mrb[38].mxu1 %v4416_v34 }
  0x9c   : > { %1876 = vmatmul.mubr.f32.gmra.mrb[38].mxu0 %v4444_v14  ;;  %1655 = vmatprep.mubr.f32.mxu1 %v5257_v37  ;;  %v4471_v37 = vld [vmem:[#allocation2 + $0x10a] sm:$0xff] }
  0x9d   : > { %1880 = vmatprep.mubr.f32.mxu0 %v4446_v25  ;;  %5262 = vst [vmem:[#allocation10_spill] sm:$0xff] %v4471_v37  ;;  %v4539_v14 = vld [vmem:[#allocation2 + $0x188] sm:$0xff] }
  0x9e   : > { %5277 = vst [vmem:[#allocation23_spill] sm:$0xff] %v4539_v14 }
  0x9f   : > { %1656 = vmatmul.mubr.f32.gmra.mrb[40].mxu1 %v4428_v62 }
  0xa0   : > { %1881 = vmatmul.mubr.f32.gmra.mrb[40].mxu0 %v4453_v18  ;;  %1660 = vmatprep.mubr.f32.mxu1 %v5259_v41  ;;  %v4480_v41 = vld [vmem:[#allocation2 + $0x112] sm:$0xff]  ;;  %v4531_v18 = vld [vmem:[#allocation2 + $0x180] sm:$0xff] }
  0xa1   : > { %1885 = vmatprep.mubr.f32.mxu0 %v4455_v19  ;;  %5264 = vst [vmem:[#allocation11_spill] sm:$0xff] %v4480_v41  ;;  %5275 = vst [vmem:[#allocation21_spill] sm:$0xff] %v4531_v18 }
  0xa3   : > { %1661 = vmatmul.mubr.f32.gmra.mrb[42].mxu1 %v4437_v43 }
  0xa4   : > { %1886 = vmatmul.mubr.f32.gmra.mrb[42].mxu0 %v4462_v29  ;;  %1665 = vmatprep.mubr.f32.mxu1 %v5261_v42  ;;  %v4489_v42 = vld [vmem:[#allocation2 + $0x122] sm:$0xff]  ;;  %v4523_v29 = vld [vmem:[#allocation2 + $0x170] sm:$0xff] }
  0xa5   : > { %1890 = vmatprep.mubr.f32.mxu0 %v4464_v3  ;;  %5266 = vst [vmem:[#allocation12_spill] sm:$0xff] %v4489_v42  ;;  %5273 = vst [vmem:[#allocation19_spill] sm:$0xff] %v4523_v29 }
  0xa7   : > { %1666 = vmatmul.mubr.f32.gmra.mrb[44].mxu1 %v4446_v25 }
  0xa8   : > { %1891 = vmatmul.mubr.f32.gmra.mrb[44].mxu0 %v4471_v37  ;;  %1670 = vmatprep.mubr.f32.mxu1 %v5263_v22  ;;  %v4491_v37 = vld [vmem:[#allocation2 + $0x140] sm:$0xff]  ;;  %v4499_v22 = vld [vmem:[#allocation2 + $0x150] sm:$0xff] }
  0xa9   : > { %1895 = vmatprep.mubr.f32.mxu0 %v4473_v31 }
  0xab   : > { %1671 = vmatmul.mubr.f32.gmra.mrb[46].mxu1 %v4455_v19 }
  0xac   : > { %1896 = vmatmul.mubr.f32.gmra.mrb[46].mxu0 %v4480_v41  ;;  %1675 = vmatprep.mubr.f32.mxu1 %v5265_v23  ;;  %v4507_v23 = vld [vmem:[#allocation2 + $0x158] sm:$0xff]  ;;  %v4515_v41 = vld [vmem:[#allocation2 + $0x168] sm:$0xff] }
  0xad   : > { %1900 = vmatprep.mubr.f32.mxu0 %v4482_v50  ;;  %5269 = vst [vmem:[#allocation15_spill] sm:$0xff] %v4507_v23  ;;  %5271 = vst [vmem:[#allocation17_spill] sm:$0xff] %v4515_v41 }
  0xaf   : > { %1676 = vmatmul.mubr.f32.gmra.mrb[48].mxu1 %v4464_v3 }
  0xb0   : > { %1901 = vmatmul.mubr.f32.gmra.mrb[48].mxu0 %v4489_v42  ;;  %1680 = vmatprep.mubr.f32.mxu1 %v3998_v2  ;;  %v4513_v42 = vld [vmem:[#allocation2 + $0x142] sm:$0xff] }
  0xb1   : > { %1905 = vmatprep.mubr.f32.mxu0 %v4491_v37  ;;  %5270 = vst [vmem:[#allocation16_spill] sm:$0xff] %v4513_v42 }
  0xb3   : > { %1681 = vmatmul.mubr.f32.gmra.mrb[50].mxu1 %v4473_v31 }
  0xb4   : > { %1906 = vmatmul.mubr.f32.gmra.mrb[50].mxu0 %v4497_v61  ;;  %1685 = vmatprep.mubr.f32.mxu1 %v4007_v32  ;;  %v4521_v61 = vld [vmem:[#allocation2 + $0x152] sm:$0xff] }
  0xb5   : > { %1910 = vmatprep.mubr.f32.mxu0 %v4499_v22  ;;  %5272 = vst [vmem:[#allocation18_spill] sm:$0xff] %v4521_v61 }
  0xb7   : > { %1686 = vmatmul.mubr.f32.gmra.mrb[52].mxu1 %v4482_v50 }
  0xb8   : > { %1911 = vmatmul.mubr.f32.gmra.mrb[52].mxu0 %v4505_v24  ;;  %1690 = vmatprep.mubr.f32.mxu1 %v4018_v12  ;;  %v4529_v24 = vld [vmem:[#allocation2 + $0x15a] sm:$0xff] }
  0xb9   : > { %1915 = vmatprep.mubr.f32.mxu0 %v4507_v23  ;;  %5274 = vst [vmem:[#allocation20_spill] sm:$0xff] %v4529_v24 }
  0xbb   : > { %1691 = vmatmul.mubr.f32.gmra.mrb[54].mxu1 %v4491_v37 }
  0xbc   : > { %1916 = vmatmul.mubr.f32.gmra.mrb[54].mxu0 %v4513_v42  ;;  %1695 = vmatprep.mubr.f32.mxu1 %v4040_v52  ;;  %v4537_v42 = vld [vmem:[#allocation2 + $0x16a] sm:$0xff] }
  0xbd   : > { %1920 = vmatprep.mubr.f32.mxu0 %v4515_v41  ;;  %5276 = vst [vmem:[#allocation22_spill] sm:$0xff] %v4537_v42 }
  0xbf   : > { %1696 = vmatmul.mubr.f32.gmra.mrb[56].mxu1 %v4499_v22 }
  0xc0   : > { %1921 = vmatmul.mubr.f32.gmra.mrb[56].mxu0 %v4521_v61  ;;  %1700 = vmatprep.mubr.f32.mxu1 %v4051_v6  ;;  %v4545_v61 = vld [vmem:[#allocation2 + $0x172] sm:$0xff] }
  0xc1   : > { %1925 = vmatprep.mubr.f32.mxu0 %v4523_v29  ;;  %5278 = vst [vmem:[#allocation24_spill] sm:$0xff] %v4545_v61 }
  0xc3   : > { %1701 = vmatmul.mubr.f32.gmra.mrb[58].mxu1 %v4507_v23  ;;  %v802_v23 = vld [vmem:[#allocation2 + $0x1a] sm:$0xff] }
  0xc4   : > { %1926 = vmatmul.mubr.f32.gmra.mrb[58].mxu0 %v4529_v24  ;;  %1705 = vmatprep.mubr.f32.mxu1 %v4064_v58  ;;  %v1477_v24 = vld [vmem:[%s5203_s3 + $0x410] sm:$0xff] }
  0xc5   : > { %1930 = vmatprep.mubr.f32.mxu0 %v4531_v18  ;;  %v738_v18 = vld [vmem:[#allocation2 + $0x19] sm:$0xff] }
  0xc7   : > { %1706 = vmatmul.mubr.f32.gmra.mrb[60].mxu1 %v4515_v41  ;;  %v5279_v41 = vmov 0.0|0.0  }
  0xc8   : > { %1931 = vmatmul.mubr.f32.gmra.mrb[60].mxu0 %v4537_v42  ;;  %1710 = vmatprep.mubr.f32.mxu1 %v4076_v17  ;;  %v1478_v42 = vld [vmem:[%s5203_s3 + $0x418] sm:$0xff] }
  0xc9   : > { %1935 = vmatprep.mubr.f32.mxu0 %v4539_v14  ;;  %v803_v14 = vld [vmem:[#allocation2 + $0x22] sm:$0xff]  ;;  %v3223_v17 = vpack.c.bf16 %v1478_v42, %v1477_v24  ;;  %v4588_v42 = vld [vmem:[#allocation2 + $0xb1] sm:$0xff] }
  0xca   : > { %v4604_v24 = vld [vmem:[#allocation2 + $0xc1] sm:$0xff] }
  0xcb   : > { %1711 = vmatmul.mubr.f32.gmra.mrb[62].mxu1 %v4523_v29  ;;  %v4565_v29 = vld [vmem:[#allocation2 + $0x32] sm:$0xff] }
  0xcc   : > { %1936 = vmatmul.mubr.f32.gmra.mrb[62].mxu0 %v4545_v61  ;;  %2270 = vmatprep.mubr.f32.mxu1 %v3825_v4  ;;  %v1479_v4 = vld [vmem:[%s5203_s3 + $0x420] sm:$0xff]  ;;  %v1480_v61 = vld [vmem:[%s5203_s3 + $0x428] sm:$0xff] }
  0xcd   : > { %2005 = vmatprep.mubr.f32.mxu0 %v802_v23  ;;  %v739_v23 = vld [vmem:[#allocation2 + $0x21] sm:$0xff] }
  0xcf   : > { %2271 = vmatmul.mubr.f32.vlgmr.msra.gmra.mrb[64].mxu1 %v4243_v16  ;;  %v4570_v16 = vld [vmem:[#allocation2 + $0xa9] sm:$0xff] }
  0xd0   : > { %2006 = vmatmul.mubr.f32.vlgmr.msra.gmra.mrb[0].mxu0 %v738_v18  ;;  %2275 = vmatprep.mubr.f32.mxu1 %v3831_v9  ;;  %v3227_v9 = vpack.c.bf16 %v1480_v61, %v1479_v4  ;;  %v1483_v61 = vld [vmem:[%s5203_s3 + $0x440] sm:$0xff]  ;;  %v1485_v4 = vld [vmem:[%s5203_s3 + $0x450] sm:$0xff] }
  0xd1   : > { %3173 = vmatpush1.bf16.msra.mxu0 %v4029_v5  ;;  %2010 = vmatprep.mubr.f32.mxu0 %v803_v14  ;;  %v1481_v5 = vld [vmem:[%s5203_s3 + $0x430] sm:$0xff]  ;;  %v1482_v14 = vld [vmem:[%s5203_s3 + $0x438] sm:$0xff] }
  0xd2   : > { %3174 = vmatprep.subr.bf16.mxu0 %v5279_v41  ;;  %3222 = vmatpush3.bf16.msra.mxu1 %v4408_v28  ;;  %v4580_v28 = vld [vmem:[#allocation2 + $0x31] sm:$0xff]  ;;  %v3231_v18 = vpack.c.bf16 %v1482_v14, %v1481_v5  ;;  %v4636_v14 = vld [vmem:[#allocation2 + $0xd9] sm:$0xff] }
  0xd3   : > { %2276 = vmatmul.mubr.f32.gmra.mrb[66].mxu1 %v4268_v7  ;;  %3224 = vmatprep.subr.bf16.mxu1 %v3223_v17  ;;  %v4583_v7 = vld [vmem:[#allocation2 + $0x3a] sm:$0xff]  ;;  %v4630_v5 = vld [vmem:[#allocation2 + $0x51] sm:$0xff] }
  0xd4   : > { %2011 = vmatmul.mubr.f32.gmra.mrb[2].mxu0 %v739_v23  ;;  %2280 = vmatprep.mubr.f32.mxu1 %v4570_v16  ;;  %v4614_v23 = vld [vmem:[#allocation2 + $0x49] sm:$0xff] }
  0xd5   : > { %2015 = vmatprep.mubr.f32.mxu0 %v4565_v29  ;;  %3176 = vmatpush1.bf16.msra.mxu0 %v4062_v1  ;;  %v1484_v1 = vld [vmem:[%s5203_s3 + $0x448] sm:$0xff] }
  0xd6   : > { %3177 = vmatprep.subr.bf16.mxu0 %v5279_v41  ;;  %3226 = vmatpush3.bf16.msra.mxu1 %v3223_v17  ;;  %v4598_v17 = vld [vmem:[#allocation2 + $0x39] sm:$0xff] }
  0xd7   : > { %2281 = vmatmul.mubr.f32.gmra.mrb[68].mxu1 %v4293_v49  ;;  %3228 = vmatprep.subr.bf16.mxu1 %v3227_v9  ;;  %v3235_v49 = vpack.c.bf16 %v1484_v1, %v1483_v61  ;;  %v4652_v61 = vld [vmem:[#allocation2 + $0xe1] sm:$0xff]  ;;  %v3444_v1 = vld [vmem:[#allocation2 + $0x139] sm:$0xff] }
  0xd8   : > { %2016 = vmatmul.mubr.f32.gmra.mrb[4].mxu0 %v4580_v28  ;;  %2285 = vmatprep.mubr.f32.mxu1 %v4588_v42 }
  0xd9   : > { %2020 = vmatprep.mubr.f32.mxu0 %v4583_v7  ;;  %3179 = vmatpush1.bf16.msra.mxu0 %v4099_v63  ;;  %v1486_v63 = vld [vmem:[%s5203_s3 + $0x458] sm:$0xff] }
  0xda   : > { %3180 = vmatprep.subr.bf16.mxu0 %v5279_v41  ;;  %3230 = vmatpush3.bf16.msra.mxu1 %v3227_v9  ;;  %v4620_v9 = vld [vmem:[#allocation2 + $0xc9] sm:$0xff] }
  0xdb   : > { %2286 = vmatmul.mubr.f32.gmra.mrb[70].mxu1 %v4317_v47  ;;  %3232 = vmatprep.subr.bf16.mxu1 %v3231_v18  ;;  %v3239_v47 = vpack.c.bf16 %v1486_v63, %v1485_v4  ;;  %v999_v4 = vld [vmem:[#allocation2 + $0x62] sm:$0xff] }
  0xdc   : > { %2021 = vmatmul.mubr.f32.gmra.mrb[6].mxu0 %v4598_v17  ;;  %2290 = vmatprep.mubr.f32.mxu1 %v4604_v24 }
  0xdd   : > { %2025 = vmatprep.mubr.f32.mxu0 %v4175_v33  ;;  %3182 = vmatpush1.bf16.msra.mxu0 %v4124_v0  ;;  %v1487_v33 = vld [vmem:[%s5203_s3 + $0x460] sm:$0xff]  ;;  %v1488_v0 = vld [vmem:[%s5203_s3 + $0x468] sm:$0xff] }
  0xde   : > { %3183 = vmatprep.subr.bf16.mxu0 %v5279_v41  ;;  %3234 = vmatpush3.bf16.msra.mxu1 %v3231_v18  ;;  %v4646_v18 = vld [vmem:[#allocation2 + $0x61] sm:$0xff] }
  0xdf   : > { %2291 = vmatmul.mubr.f32.gmra.mrb[72].mxu1 %v4342_v44  ;;  %3236 = vmatprep.subr.bf16.mxu1 %v3235_v49  ;;  %v3243_v44 = vpack.c.bf16 %v1488_v0, %v1487_v33  ;;  %v5299_v33 = vld [vmem:[#allocation18_spill] sm:$0xff] }
  0xe0   : > { %2026 = vmatmul.mubr.f32.gmra.mrb[8].mxu0 %v4614_v23  ;;  %2295 = vmatprep.mubr.f32.mxu1 %v4620_v9  ;;  %v1001_v0 = vld [vmem:[#allocation2 + $0x7a] sm:$0xff] }
  0xe1   : > { %2030 = vmatprep.mubr.f32.mxu0 %v4197_v57  ;;  %3185 = vmatpush1.bf16.msra.mxu0 %v4144_v54  ;;  %v1489_v57 = vld [vmem:[%s5203_s3 + $0x470] sm:$0xff]  ;;  %v1490_v54 = vld [vmem:[%s5203_s3 + $0x478] sm:$0xff] }
  0xe2   : > { %3186 = vmatprep.subr.bf16.mxu0 %v5279_v41  ;;  %3238 = vmatpush3.bf16.msra.mxu1 %v3235_v49  ;;  %v998_v49 = vld [vmem:[#allocation2 + $0x52] sm:$0xff] }
  0xe3   : > { %2296 = vmatmul.mubr.f32.gmra.mrb[74].mxu1 %v4368_v45  ;;  %3240 = vmatprep.subr.bf16.mxu1 %v3239_v47  ;;  %v3247_v45 = vpack.c.bf16 %v1490_v54, %v1489_v57  ;;  %v1002_v57 = vld [vmem:[#allocation2 + $0x82] sm:$0xff]  ;;  %v5300_v54 = vld [vmem:[#allocation20_spill] sm:$0xff] }
  0xe4   : > { %2031 = vmatmul.mubr.f32.gmra.mrb[10].mxu0 %v4630_v5  ;;  %2300 = vmatprep.mubr.f32.mxu1 %v4636_v14 }
  0xe5   : > { %2035 = vmatprep.mubr.f32.mxu0 %v4219_v40  ;;  %3188 = vmatpush1.bf16.msra.mxu0 %v4164_v48  ;;  %v4656_v40 = vld [vmem:[#allocation2 + $0x69] sm:$0xff]  ;;  %v4666_v48 = vld [vmem:[#allocation2 + $0x79] sm:$0xff] }
  0xe6   : > { %3189 = vmatprep.subr.bf16.mxu0 %v5279_v41  ;;  %3242 = vmatpush3.bf16.msra.mxu1 %v3239_v47 }
  0xe7   : > { %2301 = vmatmul.mubr.f32.gmra.mrb[76].mxu1 %v4400_v56  ;;  %3244 = vmatprep.subr.bf16.mxu1 %v3243_v44  ;;  %v4662_v56 = vld [vmem:[#allocation2 + $0xf1] sm:$0xff] }
  0xe8   : > { %2036 = vmatmul.mubr.f32.gmra.mrb[12].mxu0 %v4646_v18  ;;  %2305 = vmatprep.mubr.f32.mxu1 %v4652_v61 }
  0xe9   : > { %2040 = vmatprep.mubr.f32.mxu0 %v4241_v13  ;;  %3191 = vmatpush1.bf16.msra.mxu0 %v4185_v15  ;;  %v4672_v15 = vld [vmem:[#allocation2 + $0xf9] sm:$0xff]  ;;  %v4676_v13 = vld [vmem:[#allocation2 + $0x81] sm:$0xff] }
  0xea   : > { %3192 = vmatprep.subr.bf16.mxu0 %v5279_v41  ;;  %3246 = vmatpush3.bf16.msra.mxu1 %v3243_v44 }
  0xeb   : > { %2306 = vmatmul.mubr.f32.gmra.mrb[78].mxu1 %v4416_v34  ;;  %3248 = vmatprep.subr.bf16.mxu1 %v3247_v45  ;;  %v962_v34 = vld [vmem:[#allocation2 + $0x1a1] sm:$0xff] }
  0xec   : > { %2041 = vmatmul.mubr.f32.gmra.mrb[14].mxu0 %v4656_v40  ;;  %2310 = vmatprep.mubr.f32.mxu1 %v4662_v56 }
  0xed   : > { %2045 = vmatprep.mubr.f32.mxu0 %v4266_v21  ;;  %3194 = vmatpush1.bf16.msra.mxu0 %v4207_v20  ;;  %v3437_v20 = vld [vmem:[#allocation2 + $0x109] sm:$0xff]  ;;  %v3438_v21 = vld [vmem:[#allocation2 + $0x91] sm:$0xff] }
  0xee   : > { %3195 = vmatprep.subr.bf16.mxu0 %v5279_v41  ;;  %3250 = vmatpush3.bf16.msra.mxu1 %v3247_v45  ;;  %v1003_v45 = vld [vmem:[#allocation2 + $0x92] sm:$0xff] }
  0xef   : > { %2311 = vmatmul.mubr.f32.gmra.mrb[80].mxu1 %v4428_v62 }
  0xf0   : > { %2046 = vmatmul.mubr.f32.gmra.mrb[16].mxu0 %v4666_v48  ;;  %2315 = vmatprep.mubr.f32.mxu1 %v4672_v15 }
  0xf1   : > { %2050 = vmatprep.mubr.f32.mxu0 %v4291_v30  ;;  %3197 = vmatpush1.bf16.msra.mxu0 %v4229_v27  ;;  %v3439_v30 = vld [vmem:[#allocation2 + $0x111] sm:$0xff]  ;;  %v3440_v27 = vld [vmem:[#allocation2 + $0x99] sm:$0xff] }
  0xf2   : > { %3198 = vmatprep.subr.bf16.mxu0 %v5279_v41 }
  0xf3   : > { %2316 = vmatmul.mubr.f32.gmra.mrb[82].mxu1 %v4437_v43 }
  0xf4   : > { %2051 = vmatmul.mubr.f32.gmra.mrb[18].mxu0 %v4676_v13  ;;  %2320 = vmatprep.mubr.f32.mxu1 %v3437_v20 }
  0xf5   : > { %2055 = vmatprep.mubr.f32.mxu0 %v4315_v59  ;;  %3200 = vmatpush1.bf16.msra.mxu0 %v4253_v36  ;;  %v3441_v59 = vld [vmem:[#allocation2 + $0x121] sm:$0xff] }
  0xf6   : > { %3201 = vmatprep.subr.bf16.mxu0 %v5279_v41 }
  0xf7   : > { %2321 = vmatmul.mubr.f32.gmra.mrb[84].mxu1 %v4446_v25  ;;  %v3442_v25 = vld [vmem:[#allocation2 + $0x8] sm:$0xff] }
  0xf8   : > { %2056 = vmatmul.mubr.f32.gmra.mrb[20].mxu0 %v3438_v21  ;;  %2325 = vmatprep.mubr.f32.mxu1 %v3439_v30  ;;  %v5301_v21 = vld [vmem:[#allocation22_spill] sm:$0xff] }
  0xf9   : > { %2060 = vmatprep.mubr.f32.mxu0 %v4340_v35  ;;  %3203 = vmatpush1.bf16.msra.mxu0 %v4278_v39  ;;  %v5289_v39 = vld [vmem:[#allocation10_spill] sm:$0xff]  ;;  %v5293_v35 = vld [vmem:[#allocation11_spill] sm:$0xff] }
  0xfa   : > { %3204 = vmatprep.subr.bf16.mxu0 %v5279_v41 }
  0xfb   : > { %2326 = vmatmul.mubr.f32.gmra.mrb[86].mxu1 %v4455_v19 }
  0xfc   : > { %2061 = vmatmul.mubr.f32.gmra.mrb[22].mxu0 %v3440_v27  ;;  %2330 = vmatprep.mubr.f32.mxu1 %v3441_v59 }
  0xfd   : > { %2065 = vmatprep.mubr.f32.mxu0 %v4366_v53  ;;  %3206 = vmatpush1.bf16.msra.mxu0 %v4303_v46  ;;  %v5291_v46 = vld [vmem:[#allocation6_spill] sm:$0xff] }
  0xfe   : > { %3207 = vmatprep.subr.bf16.mxu0 %v5279_v41 }
  0xff   : > { %2331 = vmatmul.mubr.f32.gmra.mrb[88].mxu1 %v4464_v3  ;;  %v5280_v3 = vld [vmem:[#allocation7_spill] sm:$0xff] }
 0x100   : > { %2066 = vmatmul.mubr.f32.gmra.mrb[24].mxu0 %v4570_v16  ;;  %2335 = vmatprep.mubr.f32.mxu1 %v3998_v2  ;;  %v5281_v2 = vld [vmem:[#allocation15_spill] sm:$0xff] }
 0x101   : > { %2070 = vmatprep.mubr.f32.mxu0 %v4398_v60  ;;  %3209 = vmatpush1.bf16.msra.mxu0 %v4327_v8  ;;  %v5292_v8 = vmax.f32 %v5291_v46, 0.0 }
 0x102   : > { %3210 = vmatprep.subr.bf16.mxu0 %v5279_v41 }
 0x103   : > { %2336 = vmatmul.mubr.f32.gmra.mrb[90].mxu1 %v4473_v31  ;;  %v5286_v31 = vld [vmem:[#allocation19_spill] sm:$0xff] }
 0x104   : > { %2071 = vmatmul.mubr.f32.gmra.mrb[26].mxu0 %v4588_v42  ;;  %2340 = vmatprep.mubr.f32.mxu1 %v4007_v32  ;;  %v5282_v32 = vld [vmem:[#allocation8_spill] sm:$0xff] }
 0x105   : > { %2075 = vmatprep.mubr.f32.mxu0 %v4414_v26  ;;  %3212 = vmatpush1.bf16.msra.mxu0 %v4352_v38  ;;  %v961_v38 = vld [vmem:[#allocation2 + $0x199] sm:$0xff]  ;;  %v5295_v26 = vld [vmem:[#allocation12_spill] sm:$0xff] }
 0x106   : > { %3213 = vmatprep.subr.bf16.mxu0 %v5279_v41 }
 0x107   : > { %2341 = vmatmul.mubr.f32.gmra.mrb[92].mxu1 %v4482_v50  ;;  %v5285_v50 = vld [vmem:[#allocation9_spill] sm:$0xff] }
 0x108   : > { %2076 = vmatmul.mubr.f32.gmra.mrb[28].mxu0 %v4604_v24  ;;  %2345 = vmatprep.mubr.f32.mxu1 %v4018_v12  ;;  %v5284_v12 = vld [vmem:[#allocation4_spill] sm:$0xff] }
 0x109   : > { %2080 = vmatprep.mubr.f32.mxu0 %v4426_v51  ;;  %3215 = vmatpush1.bf16.msra.mxu0 %v4378_v10  ;;  %v5294_v10 = vld [vmem:[#allocation23_spill] sm:$0xff]  ;;  %v5298_v24 = vld [vmem:[#allocation16_spill] sm:$0xff] }
 0x10a   : > { %3216 = vmatprep.subr.bf16.mxu0 %v5279_v41  ;;  %v5297_v41 = vld [vmem:[#allocation14_spill] sm:$0xff] }
 0x10b   : > { %2346 = vmatmul.mubr.f32.gmra.mrb[94].mxu1 %v4491_v37  ;;  %v3443_v37 = vld [vmem:[#allocation2 + $0x129] sm:$0xff] }
 0x10c   : > { %2081 = vmatmul.mubr.f32.gmra.mrb[30].mxu0 %v4620_v9  ;;  %2350 = vmatprep.mubr.f32.mxu1 %v4040_v52  ;;  %v5283_v52 = vld [vmem:[#allocation17_spill] sm:$0xff]  ;;  %v1000_v9 = vld [vmem:[#allocation2 + $0x6a] sm:$0xff] }
 0x10d   : > { %2085 = vmatprep.mubr.f32.mxu0 %v4435_v55  ;;  %3218 = vmatpush1.bf16.msra.mxu0 %v4404_v11  ;;  %v897_v11 = vld [vmem:[#allocation2 + $0x198] sm:$0xff] }
 0x10e   : > { %v5296_v55 = vld [vmem:[#allocation13_spill] sm:$0xff] }
 0x10f   : > { %2351 = vmatmul.mubr.f32.gmra.mrb[96].mxu1 %v4499_v22  ;;  %v997_v22 = vld [vmem:[#allocation2 + $0x4a] sm:$0xff] }
 0x110   : > { %2086 = vmatmul.mubr.f32.gmra.mrb[32].mxu0 %v4636_v14  ;;  %2355 = vmatprep.mubr.f32.mxu1 %v4051_v6  ;;  %v5287_v6 = vld [vmem:[#allocation5_spill] sm:$0xff] }
 0x111   : > { %2090 = vmatprep.mubr.f32.mxu0 %v5280_v3  ;;  %v5288_v36 = vmax.f32 %v5287_v6, 0.0  ;;  %v3446_v14 = vld [vmem:[#allocation2 + $0x151] sm:$0xff]  ;;  %v3448_v3 = vld [vmem:[#allocation2 + $0x169] sm:$0xff] }
 0x112   : > { %v3449_v6 = vld [vmem:[#allocation2 + $0x171] sm:$0xff] }
 0x113   : > { %2356 = vmatmul.mubr.f32.gmra.mrb[98].mxu1 %v5281_v2  ;;  %v1006_v2 = vld [vmem:[#allocation2 + $0xb2] sm:$0xff] }
 0x114   : > { %2091 = vmatmul.mubr.f32.gmra.mrb[34].mxu0 %v4652_v61  ;;  %2360 = vmatprep.mubr.f32.mxu1 %v4064_v58  ;;  %v5290_v58 = vld [vmem:[#allocation21_spill] sm:$0xff] }
 0x115   : > { %2095 = vmatprep.mubr.f32.mxu0 %v5282_v32  ;;  %v5302_v32 = vld [vmem:[#allocation24_spill] sm:$0xff] }
 0x117   : > { %2361 = vmatmul.mubr.f32.gmra.mrb[100].mxu1 %v5283_v52  ;;  %v1007_v52 = vld [vmem:[#allocation2 + $0xc2] sm:$0xff] }
 0x118   : > { %2096 = vmatmul.mubr.f32.gmra.mrb[36].mxu0 %v4662_v56  ;;  %2365 = vmatprep.mubr.f32.mxu1 %v5284_v12  ;;  %v4764_v12 = vld [vmem:[#allocation2 + $0x182] sm:$0xff] }
 0x119   : > { %2100 = vmatprep.mubr.f32.mxu0 %v5285_v50 }
 0x11b   : > { %2366 = vmatmul.mubr.f32.gmra.mrb[102].mxu1 %v5286_v31 }
 0x11c   : > { %2101 = vmatmul.mubr.f32.gmra.mrb[38].mxu0 %v4672_v15  ;;  %2370 = vmatprep.mubr.f32.mxu1 %v5288_v36  ;;  %v3447_v15 = vld [vmem:[#allocation2 + $0x159] sm:$0xff]  ;;  %v1008_v36 = vld [vmem:[#allocation2 + $0xca] sm:$0xff] }
 0x11d   : > { %2105 = vmatprep.mubr.f32.mxu0 %v5289_v39  ;;  %v1009_v39 = vld [vmem:[#allocation2 + $0xda] sm:$0xff] }
 0x11f   : > { %2371 = vmatmul.mubr.f32.gmra.mrb[104].mxu1 %v5290_v58  ;;  %v4769_v58 = vld [vmem:[#allocation2 + $0x18a] sm:$0xff] }
 0x120   : > { %2106 = vmatmul.mubr.f32.gmra.mrb[40].mxu0 %v3437_v20  ;;  %2375 = vmatprep.mubr.f32.mxu1 %v5292_v8  ;;  %v1004_v20 = vld [vmem:[#allocation2 + $0x9a] sm:$0xff] }
 0x121   : > { %2110 = vmatprep.mubr.f32.mxu0 %v5293_v35  ;;  %v3450_v35 = vld [vmem:[#allocation2 + $0x181] sm:$0xff] }
 0x122   : > { %v4737_v53 = vpop.f32.mrb[0].mxu1 }
 0x123   : > { %2376 = vmatmul.mubr.f32.gmra.mrb[106].mxu1 %v5294_v10  ;;  %v1559_v60 = vpop.f32.mrb[1].mxu1  ;;  %v1011_v10 = vld [vmem:[#allocation2 + $0xf2] sm:$0xff] }
 0x124   : > { %2111 = vmatmul.mubr.f32.gmra.mrb[42].mxu0 %v3439_v30  ;;  %2380 = vmatprep.mubr.f32.mxu1 %v961_v38  ;;  %v1005_v30 = vld [vmem:[#allocation2 + $0xaa] sm:$0xff]  ;;  %v1010_v38 = vld [vmem:[#allocation2 + $0xe2] sm:$0xff] }
 0x125   : > { %2115 = vmatprep.mubr.f32.mxu0 %v5295_v26 }
 0x126   : > { %v4741_v51 = vpop.f32.mrb[2].mxu1 }
 0x127   : > { %2381 = vmatmul.mubr.f32.gmra.mrb[108].mxu1 %v897_v11  ;;  %v1564_v62 = vpop.f32.mrb[3].mxu1 }
 0x128   : > { %2116 = vmatmul.mubr.f32.gmra.mrb[44].mxu0 %v3441_v59  ;;  %2385 = vmatprep.mubr.f32.mxu1 %v962_v34  ;;  %v3451_v34 = vld [vmem:[#allocation2 + $0x189] sm:$0xff]  ;;  %v1012_v62 = vld [vmem:[#allocation2 + $0xfa] sm:$0xff] }
 0x129   : > { %2120 = vmatprep.mubr.f32.mxu0 %v5296_v55 }
 0x12a   : > { %v4744_v43 = vpop.f32.mrb[4].mxu1 }
 0x12b   : > { %2386 = vmatmul.mubr.f32.gmra.mrb[110].mxu1 %v3442_v25  ;;  %v1569_v19 = vpop.f32.mrb[5].mxu1  ;;  %v867_v25 = vld [vmem:[#allocation2 + $0x30] sm:$0xff] }
 0x12c   : > { %2121 = vmatmul.mubr.f32.gmra.mrb[46].mxu0 %v3443_v37  ;;  %2979 = vmatprep.mubr.f32.mxu1 %v4565_v29  ;;  %v3445_v29 = vld [vmem:[#allocation2 + $0x141] sm:$0xff]  ;;  %v1013_v19 = vld [vmem:[#allocation2 + $0x10a] sm:$0xff] }
 0x12d   : > { %2125 = vmatprep.mubr.f32.mxu0 %v5297_v41 }
 0x12e   : > { %v4748_v16 = vpop.f32.mrb[6].mxu1 }
 0x12f   : > { %2980 = vmatmul.mubr.f32.vlgmr.msra.gmra.mrb[112].mxu1 %v4583_v7  ;;  %v1574_v42 = vpop.f32.mrb[7].mxu1 }
 0x130   : > { %2126 = vmatmul.mubr.f32.gmra.mrb[48].mxu0 %v3444_v1  ;;  %2982 = vmatprep.mubr.f32.mxu1 %v997_v22  ;;  %v1014_v42 = vld [vmem:[#allocation2 + $0x112] sm:$0xff] }
 0x131   : > { %2130 = vmatprep.mubr.f32.mxu0 %v5298_v24  ;;  %v868_v1 = vld [vmem:[#allocation2 + $0x38] sm:$0xff] }
 0x132   : > { %v4752_v63 = vpop.f32.mrb[8].mxu1 }
 0x133   : > { %2983 = vmatmul.mubr.f32.gmra.mrb[114].mxu1 %v998_v49  ;;  %v1579_v47 = vpop.f32.mrb[9].mxu1 }
 0x134   : > { %2131 = vmatmul.mubr.f32.gmra.mrb[50].mxu0 %v3445_v29  ;;  %2985 = vmatprep.mubr.f32.mxu1 %v999_v4 }
 0x135   : > { %2135 = vmatprep.mubr.f32.mxu0 %v5299_v33 }
 0x136   : > { %v4755_v7 = vpop.f32.mrb[10].mxu1 }
 0x137   : > { %2986 = vmatmul.mubr.f32.gmra.mrb[116].mxu1 %v1000_v9  ;;  %v1584_v44 = vpop.f32.mrb[11].mxu1 }
 0x138   : > { %2136 = vmatmul.mubr.f32.gmra.mrb[52].mxu0 %v3446_v14  ;;  %2988 = vmatprep.mubr.f32.mxu1 %v1001_v0 }
 0x139   : > { %2140 = vmatprep.mubr.f32.mxu0 %v5300_v54 }
 0x13a   : > { %v4758_v61 = vpop.f32.mrb[12].mxu1 }
 0x13b   : > { %2989 = vmatmul.mubr.f32.gmra.mrb[118].mxu1 %v1002_v57  ;;  %v1589_v56 = vpop.f32.mrb[13].mxu1  ;;  %v874_v57 = vld [vmem:[#allocation2 + $0x80] sm:$0xff] }
 0x13c   : > { %2141 = vmatmul.mubr.f32.gmra.mrb[54].mxu0 %v3447_v15  ;;  %2991 = vmatprep.mubr.f32.mxu1 %v1003_v45 }
 0x13d   : > { %2145 = vmatprep.mubr.f32.mxu0 %v5301_v21 }
 0x13e   : > { %v4761_v27 = vpop.f32.mrb[14].mxu1 }
 0x13f   : > { %2992 = vmatmul.mubr.f32.gmra.mrb[120].mxu1 %v1004_v20  ;;  %v1594_v59 = vpop.f32.mrb[15].mxu1 }
 0x140   : > { %2146 = vmatmul.mubr.f32.gmra.mrb[56].mxu0 %v3448_v3  ;;  %2994 = vmatprep.mubr.f32.mxu1 %v1005_v30 }
 0x141   : > { %2150 = vmatprep.mubr.f32.mxu0 %v5302_v32 }
 0x142   : > { %v4766_v50 = vpop.f32.mrb[16].mxu1 }
 0x143   : > { %2995 = vmatmul.mubr.f32.gmra.mrb[122].mxu1 %v1006_v2  ;;  %v1599_v31 = vpop.f32.mrb[17].mxu1 }
 0x144   : > { %2151 = vmatmul.mubr.f32.gmra.mrb[58].mxu0 %v3449_v6  ;;  %2997 = vmatprep.mubr.f32.mxu1 %v1007_v52 }
 0x145   : > { %2155 = vmatprep.mubr.f32.mxu0 %v4764_v12 }
 0x146   : > { %v4771_v46 = vpop.f32.mrb[18].mxu1 }
 0x147   : > { %2998 = vmatmul.mubr.f32.gmra.mrb[124].mxu1 %v1008_v36  ;;  %v1604_v8 = vpop.f32.mrb[19].mxu1 }
 0x148   : > { %2156 = vmatmul.mubr.f32.gmra.mrb[60].mxu0 %v3450_v35  ;;  %3000 = vmatprep.mubr.f32.mxu1 %v1009_v39 }
 0x149   : > { %2160 = vmatprep.mubr.f32.mxu0 %v4769_v58 }
 0x14a   : > { %v4774_v60 = vpop.f32.mrb[20].mxu1 }
 0x14b   : > { %3001 = vmatmul.mubr.f32.gmra.mrb[126].mxu1 %v1010_v38  ;;  %v1609_v11 = vpop.f32.mrb[21].mxu1 }
 0x14c   : > { %2161 = vmatmul.mubr.f32.gmra.mrb[62].mxu0 %v3451_v34  ;;  %3003 = vmatprep.mubr.f32.mxu1 %v1011_v10 }
 0x14d   : > { %2230 = vmatprep.mubr.f32.mxu0 %v4580_v28  ;;  %v869_v28 = vld [vmem:[#allocation2 + $0x48] sm:$0xff] }
 0x14e   : > { %v4777_v37 = vpop.f32.mrb[22].mxu1 }
 0x14f   : > { %3004 = vmatmul.mubr.f32.gmra.mrb[128].mxu1 %v1012_v62  ;;  %v1614_v22 = vpop.f32.mrb[23].mxu1 }
 0x150   : > { %2231 = vmatmul.mubr.f32.vlgmr.msra.gmra.mrb[0].mxu0 %v867_v25  ;;  %3006 = vmatprep.mubr.f32.mxu1 %v1013_v19 }
 0x151   : > { %2235 = vmatprep.mubr.f32.mxu0 %v4598_v17  ;;  %v870_v17 = vld [vmem:[#allocation2 + $0x50] sm:$0xff] }
 0x152   : > { %v4780_v49 = vpop.f32.mrb[24].mxu1 }
 0x153   : > { %3007 = vmatmul.mubr.f32.gmra.mrb[130].mxu1 %v1014_v42  ;;  %v1619_v4 = vpop.f32.mrb[25].mxu1 }
 0x154   : > { %2236 = vmatmul.mubr.f32.gmra.mrb[2].mxu0 %v868_v1  ;;  %3009 = vmatprep.mubr.f32.mxu1 %v5295_v26 }
 0x155   : > { %2240 = vmatprep.mubr.f32.mxu0 %v4614_v23  ;;  %v871_v23 = vld [vmem:[#allocation2 + $0x60] sm:$0xff] }
 0x156   : > { %v4784_v47 = vpop.f32.mrb[26].mxu1 }
 0x157   : > { %3010 = vmatmul.mubr.f32.gmra.mrb[132].mxu1 %v5296_v55  ;;  %v1624_v29 = vpop.f32.mrb[27].mxu1 }
 0x158   : > { %2241 = vmatmul.mubr.f32.gmra.mrb[4].mxu0 %v869_v28  ;;  %3012 = vmatprep.mubr.f32.mxu1 %v5297_v41 }
 0x159   : > { %2245 = vmatprep.mubr.f32.mxu0 %v4630_v5  ;;  %v872_v5 = vld [vmem:[#allocation2 + $0x68] sm:$0xff] }
 0x15a   : > { %v4789_v9 = vpop.f32.mrb[28].mxu1 }
 0x15b   : > { %3013 = vmatmul.mubr.f32.gmra.mrb[134].mxu1 %v5298_v24  ;;  %v1629_v0 = vpop.f32.mrb[29].mxu1 }
 0x15c   : > { %2246 = vmatmul.mubr.f32.gmra.mrb[6].mxu0 %v870_v17  ;;  %3015 = vmatprep.mubr.f32.mxu1 %v5299_v33  ;;  %v1025_v33 = vld [vmem:[#allocation2 + $0x19a] sm:$0xff] }
 0x15d   : > { %2250 = vmatprep.mubr.f32.mxu0 %v4646_v18  ;;  %v873_v18 = vld [vmem:[#allocation2 + $0x78] sm:$0xff] }
 0x15e   : > { %v4794_v26 = vpop.f32.mrb[30].mxu1 }
 0x15f   : > { %3016 = vmatmul.mubr.f32.gmra.mrb[136].mxu1 %v5300_v54  ;;  %v1634_v55 = vpop.f32.mrb[31].mxu1 }
 0x160   : > { %2251 = vmatmul.mubr.f32.gmra.mrb[8].mxu0 %v871_v23  ;;  %3018 = vmatprep.mubr.f32.mxu1 %v5301_v21 }
 0x161   : > { %2255 = vmatprep.mubr.f32.mxu0 %v4656_v40  ;;  %v1026_v40 = vld [vmem:[#allocation2 + $0x1a2] sm:$0xff] }
 0x162   : > { %v4799_v41 = vpop.f32.mrb[32].mxu1 }
 0x163   : > { %3019 = vmatmul.mubr.f32.gmra.mrb[138].mxu1 %v5302_v32  ;;  %v1639_v24 = vpop.f32.mrb[33].mxu1 }
 0x164   : > { %2256 = vmatmul.mubr.f32.gmra.mrb[10].mxu0 %v872_v5  ;;  %3021 = vmatprep.mubr.f32.mxu1 %v4764_v12 }
 0x165   : > { %2260 = vmatprep.mubr.f32.mxu0 %v4666_v48 }
 0x166   : > { %v4804_v44 = vpop.f32.mrb[34].mxu1 }
 0x167   : > { %3022 = vmatmul.mubr.f32.gmra.mrb[140].mxu1 %v4769_v58  ;;  %v1644_v14 = vpop.f32.mrb[35].mxu1 }
 0x168   : > { %2261 = vmatmul.mubr.f32.gmra.mrb[12].mxu0 %v873_v18  ;;  %3024 = vmatprep.mubr.f32.mxu1 %v1025_v33 }
 0x169   : > { %2265 = vmatprep.mubr.f32.mxu0 %v4676_v13 }
 0x16a   : > { %v4808_v54 = vpop.f32.mrb[36].mxu1 }
 0x16b   : > { %3025 = vmatmul.mubr.f32.gmra.mrb[142].mxu1 %v1026_v40  ;;  %v1649_v45 = vpop.f32.mrb[37].mxu1 }
 0x16c   : > { %2266 = vmatmul.mubr.f32.gmra.mrb[14].mxu0 %v874_v57 }
 0x16e   : > { %v4810_v56 = vpop.f32.mrb[38].mxu1 }
 0x16f   : > { %v1654_v48 = vpop.f32.mrb[39].mxu1 }
 0x172   : > { %v4812_v15 = vpop.f32.mrb[40].mxu1 }
 0x173   : > { %v1659_v20 = vpop.f32.mrb[41].mxu1 }
 0x176   : > { %v4814_v21 = vpop.f32.mrb[42].mxu1 }
 0x177   : > { %v1664_v30 = vpop.f32.mrb[43].mxu1 }
 0x17a   : > { %v4816_v59 = vpop.f32.mrb[44].mxu1 }
 0x17b   : > { %v1669_v3 = vpop.f32.mrb[45].mxu1 }
 0x17e   : > { %v4818_v2 = vpop.f32.mrb[46].mxu1 }
 0x17f   : > { %v1674_v13 = vpop.f32.mrb[47].mxu1 }
 0x182   : > { %v4820_v32 = vpop.f32.mrb[48].mxu1 }
 0x183   : > { %v1679_v52 = vpop.f32.mrb[49].mxu1 }
 0x186   : > { %v4822_v12 = vpop.f32.mrb[50].mxu1 }
 0x187   : > { %v1684_v31 = vpop.f32.mrb[51].mxu1 }
 0x18a   : > { %v4824_v6 = vpop.f32.mrb[52].mxu1 }
 0x18b   : > { %v1689_v36 = vpop.f32.mrb[53].mxu1 }
 0x18e   : > { %v4826_v39 = vpop.f32.mrb[54].mxu1 }
 0x18f   : > { %v1694_v58 = vpop.f32.mrb[55].mxu1 }
 0x192   : > { %v4828_v8 = vpop.f32.mrb[56].mxu1 }
 0x193   : > { %v1699_v35 = vpop.f32.mrb[57].mxu1 }
 0x196   : > { %v4830_v38 = vpop.f32.mrb[58].mxu1 }
 0x197   : > { %v1704_v10 = vpop.f32.mrb[59].mxu1 }
 0x19a   : > { %v4832_v11 = vpop.f32.mrb[60].mxu1 }
 0x19b   : > { %v1709_v34 = vpop.f32.mrb[61].mxu1 }
 0x19e   : > { %v4834_v62 = vpop.f32.mrb[62].mxu1 }
 0x19f   : > { %v1714_v25 = vpop.f32.mrb[63].mxu1 }
 0x1a2   : > { %v2272_v19 = vpop.f32.mrb[64].mxu1 }
 0x1a3   : > { %v2274_v22 = vpop.f32.mrb[65].mxu1 }
 0x1a6   : > { %v2277_v42 = vpop.f32.mrb[66].mxu1 }
 0x1a7   : > { %v2279_v1 = vpop.f32.mrb[67].mxu1 }
 0x1aa   : > { %v2282_v4 = vpop.f32.mrb[68].mxu1 }
 0x1ab   : > { %v2284_v28 = vpop.f32.mrb[69].mxu1 }
 0x1ae   : > { %v2287_v29 = vpop.f32.mrb[70].mxu1 }
 0x1af   : > { %v2289_v17 = vpop.f32.mrb[71].mxu1 }
 0x1b2   : > { %v2292_v0 = vpop.f32.mrb[72].mxu1 }
 0x1b3   : > { %v2294_v23 = vpop.f32.mrb[73].mxu1 }
 0x1b6   : > { %v2297_v55 = vpop.f32.mrb[74].mxu1 }
 0x1b7   : > { %v2299_v5 = vpop.f32.mrb[75].mxu1 }
 0x1ba   : > { %v2302_v24 = vpop.f32.mrb[76].mxu1 }
 0x1bb   : > { %v2304_v18 = vpop.f32.mrb[77].mxu1 }
 0x1be   : > { %v2307_v33 = vpop.f32.mrb[78].mxu1 }
 0x1bf   : > { %v2309_v14 = vpop.f32.mrb[79].mxu1 }
 0x1c2   : > { %v2312_v40 = vpop.f32.mrb[80].mxu1 }
 0x1c3   : > { %v2047_v57 = vpop.f32.mrb[16].mxu0  ;;  %v2314_v45 = vpop.f32.mrb[81].mxu1 }
 0x1c4   : > { %v3291_v48 = vadd.f32 %v2047_v57, %v4766_v50  ;;  %v2049_v20 = vpop.f32.mrb[17].mxu0 }
 0x1c6   : > { %v4837_v30 = vadd.f32 %v3291_v48, %v2272_v19  ;;  %v2317_v3 = vpop.f32.mrb[82].mxu1 }
 0x1c7   : > { %v2052_v13 = vpop.f32.mrb[18].mxu0  ;;  %v2319_v52 = vpop.f32.mrb[83].mxu1 }
 0x1c8   : > { %v3293_v31 = vadd.f32 %v2052_v13, %v4771_v46  ;;  %v2054_v36 = vpop.f32.mrb[19].mxu0 }
 0x1ca   : > { %v4840_v58 = vadd.f32 %v3293_v31, %v2277_v42  ;;  %v2322_v35 = vpop.f32.mrb[84].mxu1 }
 0x1cb   : > { %v2057_v10 = vpop.f32.mrb[20].mxu0  ;;  %v2324_v34 = vpop.f32.mrb[85].mxu1 }
 0x1cc   : > { %v3295_v25 = vadd.f32 %v2057_v10, %v4774_v60  ;;  %v2059_v22 = vpop.f32.mrb[21].mxu0 }
 0x1ce   : > { %v4843_v1 = vadd.f32 %v3295_v25, %v2282_v4  ;;  %v2327_v50 = vpop.f32.mrb[86].mxu1 }
 0x1cf   : > { %v2062_v28 = vpop.f32.mrb[22].mxu0  ;;  %v2329_v19 = vpop.f32.mrb[87].mxu1 }
 0x1d0   : > { %v3297_v17 = vadd.f32 %v2062_v28, %v4777_v37  ;;  %v2064_v23 = vpop.f32.mrb[23].mxu0 }
 0x1d2   : > { %v4846_v5 = vadd.f32 %v3297_v17, %v2287_v29  ;;  %v2332_v46 = vpop.f32.mrb[88].mxu1 }
 0x1d3   : > { %v2067_v18 = vpop.f32.mrb[24].mxu0  ;;  %v2334_v42 = vpop.f32.mrb[89].mxu1 }
 0x1d4   : > { %v3299_v14 = vadd.f32 %v2067_v18, %v4780_v49  ;;  %v2069_v57 = vpop.f32.mrb[25].mxu0 }
 0x1d6   : > { %v4849_v45 = vadd.f32 %v3299_v14, %v2292_v0  ;;  %v2337_v60 = vpop.f32.mrb[90].mxu1 }
 0x1d7   : > { %v2072_v48 = vpop.f32.mrb[26].mxu0  ;;  %v2339_v4 = vpop.f32.mrb[91].mxu1 }
 0x1d8   : > { %v3301_v20 = vadd.f32 %v2072_v48, %v4784_v47  ;;  %v2074_v13 = vpop.f32.mrb[27].mxu0 }
 0x1da   : > { %v4852_v52 = vadd.f32 %v3301_v20, %v2297_v55  ;;  %v2342_v37 = vpop.f32.mrb[92].mxu1 }
 0x1db   : > { %v2077_v31 = vpop.f32.mrb[28].mxu0  ;;  %v2344_v29 = vpop.f32.mrb[93].mxu1 }
 0x1dc   : > { %v3303_v36 = vadd.f32 %v2077_v31, %v4789_v9  ;;  %v2079_v10 = vpop.f32.mrb[29].mxu0 }
 0x1de   : > { %v4855_v34 = vadd.f32 %v3303_v36, %v2302_v24  ;;  %v2347_v49 = vpop.f32.mrb[94].mxu1 }
 0x1df   : > { %v2082_v25 = vpop.f32.mrb[30].mxu0  ;;  %v2349_v0 = vpop.f32.mrb[95].mxu1 }
 0x1e0   : > { %v3305_v22 = vadd.f32 %v2082_v25, %v4794_v26  ;;  %v2084_v28 = vpop.f32.mrb[31].mxu0 }
 0x1e2   : > { %v4858_v19 = vadd.f32 %v3305_v22, %v2307_v33  ;;  %v2352_v47 = vpop.f32.mrb[96].mxu1 }
 0x1e3   : > { %v2087_v17 = vpop.f32.mrb[32].mxu0  ;;  %v2354_v55 = vpop.f32.mrb[97].mxu1 }
 0x1e4   : > { %v3307_v23 = vadd.f32 %v2087_v17, %v4799_v41  ;;  %v2089_v18 = vpop.f32.mrb[33].mxu0 }
 0x1e6   : > { %v4861_v42 = vadd.f32 %v3307_v23, %v2312_v40  ;;  %v2357_v9 = vpop.f32.mrb[98].mxu1 }
 0x1e7   : > { %v2092_v14 = vpop.f32.mrb[34].mxu0  ;;  %v2359_v24 = vpop.f32.mrb[99].mxu1 }
 0x1e8   : > { %v3309_v57 = vadd.f32 %v2092_v14, %v4804_v44  ;;  %v2094_v48 = vpop.f32.mrb[35].mxu0 }
 0x1ea   : > { %v4864_v4 = vadd.f32 %v3309_v57, %v2317_v3  ;;  %v2362_v26 = vpop.f32.mrb[100].mxu1 }
 0x1eb   : > { %v2097_v20 = vpop.f32.mrb[36].mxu0  ;;  %v2364_v33 = vpop.f32.mrb[101].mxu1 }
 0x1ec   : > { %v3311_v13 = vadd.f32 %v2097_v20, %v4808_v54  ;;  %v2099_v31 = vpop.f32.mrb[37].mxu0 }
 0x1ee   : > { %v4867_v29 = vadd.f32 %v3311_v13, %v2322_v35  ;;  %v2367_v41 = vpop.f32.mrb[102].mxu1 }
 0x1ef   : > { %v2102_v36 = vpop.f32.mrb[38].mxu0  ;;  %v2369_v40 = vpop.f32.mrb[103].mxu1 }
 0x1f0   : > { %v3313_v10 = vadd.f32 %v2102_v36, %v4810_v56  ;;  %v2104_v25 = vpop.f32.mrb[39].mxu0 }
 0x1f2   : > { %v4870_v0 = vadd.f32 %v3313_v10, %v2327_v50  ;;  %v2372_v44 = vpop.f32.mrb[104].mxu1 }
 0x1f3   : > { %v2107_v22 = vpop.f32.mrb[40].mxu0  ;;  %v2374_v3 = vpop.f32.mrb[105].mxu1 }
 0x1f4   : > { %v3315_v28 = vadd.f32 %v2107_v22, %v4812_v15  ;;  %v2109_v17 = vpop.f32.mrb[41].mxu0 }
 0x1f6   : > { %v4873_v55 = vadd.f32 %v3315_v28, %v2332_v46  ;;  %v4875_v54 = vpop.f32.mrb[106].mxu1 }
 0x1f7   : > { %v2112_v35 = vpop.f32.mrb[42].mxu0  ;;  %v2379_v23 = vpop.f32.mrb[107].mxu1 }
 0x1f8   : > { %v3317_v18 = vadd.f32 %v2112_v35, %v4814_v21  ;;  %v2114_v14 = vpop.f32.mrb[43].mxu0 }
 0x1fa   : > { %v4878_v24 = vpop.f32.mrb[108].mxu1  ;;  %v4880_v56 = vadd.f32 %v3317_v18, %v2337_v60 }
 0x1fb   : > { %v2117_v50 = vpop.f32.mrb[44].mxu0  ;;  %v2384_v57 = vpop.f32.mrb[109].mxu1 }
 0x1fc   : > { %v3319_v48 = vadd.f32 %v2117_v50, %v4816_v59  ;;  %v2119_v20 = vpop.f32.mrb[45].mxu0 }
 0x1fe   : > { %v4883_v15 = vpop.f32.mrb[110].mxu1  ;;  %v4885_v46 = vadd.f32 %v3319_v48, %v2342_v37 }
 0x1ff   : > { %v2122_v33 = vpop.f32.mrb[46].mxu0  ;;  %v2389_v13 = vpop.f32.mrb[111].mxu1 }
 0x200   : > { %v3321_v31 = vadd.f32 %v2122_v33, %v4818_v2  ;;  %v2124_v36 = vpop.f32.mrb[47].mxu0 }
 0x202   : > { %v4888_v21 = vpop.f32.mrb[112].mxu1  ;;  %v4890_v40 = vadd.f32 %v3321_v31, %v2347_v49 }
 0x203   : > { %v2127_v60 = vpop.f32.mrb[48].mxu0  ;;  %v4892_v10 = vpop.f32.mrb[113].mxu1 }
 0x204   : > { %v3323_v25 = vadd.f32 %v2127_v60, %v4820_v32  ;;  %v2129_v59 = vpop.f32.mrb[49].mxu0 }
 0x206   : > { %v4895_v22 = vpop.f32.mrb[114].mxu1  ;;  %v4897_v3 = vadd.f32 %v3323_v25, %v2352_v47 }
 0x207   : > { %v2132_v37 = vpop.f32.mrb[50].mxu0  ;;  %v4899_v28 = vpop.f32.mrb[115].mxu1 }
 0x208   : > { %v3325_v2 = vadd.f32 %v2132_v37, %v4822_v12  ;;  %v2134_v17 = vpop.f32.mrb[51].mxu0 }
 0x20a   : > { %v4902_v35 = vpop.f32.mrb[116].mxu1  ;;  %v4904_v49 = vadd.f32 %v3325_v2, %v2357_v9  ;;  %v4919_v9 = vld [vmem:[%s5204_s4] ss:$0 sm:$0xff] }
 0x20b   : > { %v2137_v23 = vpop.f32.mrb[52].mxu0  ;;  %v4906_v18 = vpop.f32.mrb[117].mxu1 }
 0x20c   : > { %v3327_v32 = vadd.f32 %v2137_v23, %v4824_v6  ;;  %v2139_v14 = vpop.f32.mrb[53].mxu0 }
 0x20e   : > { %v4909_v50 = vpop.f32.mrb[118].mxu1  ;;  %v4911_v47 = vadd.f32 %v3327_v32, %v2362_v26 }
 0x20f   : > { %v2142_v57 = vpop.f32.mrb[54].mxu0  ;;  %v4913_v48 = vpop.f32.mrb[119].mxu1 }
 0x210   : > { %v3329_v12 = vadd.f32 %v2142_v57, %v4826_v39  ;;  %v2144_v20 = vpop.f32.mrb[55].mxu0 }
 0x212   : > { %v2993_v33 = vpop.f32.mrb[120].mxu1  ;;  %v4921_v13 = vadd.f32 %v3329_v12, %v2367_v41 }
 0x213   : > { %v2147_v6 = vpop.f32.mrb[56].mxu0  ;;  %v4924_v31 = vadd.f32 %v4840_v58, %v2993_v33  ;;  %v2497_v26 = vpop.f32.mrb[121].mxu1 }
 0x214   : > { %v3331_v36 = vadd.f32 %v2147_v6, %v4828_v8  ;;  %v2149_v39 = vpop.f32.mrb[57].mxu0  ;;  %v4935_v60 = vadd.f32 %v4837_v30, %v2497_v26 }
 0x215   : > { %v2631_v41 = vadd.f32 %v4919_v9, %v4924_v31 }
 0x216   : > { %v2630_v58 = vadd.f32 %v4919_v9, %v4935_v60  ;;  %v2996_v8 = vpop.f32.mrb[122].mxu1  ;;  %v4941_v25 = vadd.f32 %v3331_v36, %v2372_v44 }
 0x217   : > { %2663 = vst [vmem:[%s4932_s8 + $0x48] sm:$0xff] %v2631_v41  ;;  %v2152_v59 = vpop.f32.mrb[58].mxu0  ;;  %v4945_v37 = vadd.f32 %v4846_v5, %v2996_v8  ;;  %v2507_v2 = vpop.f32.mrb[123].mxu1 }
 0x218   : > { %2662 = vst [vmem:[%s4932_s8 + $0x40] sm:$0xff] %v2630_v58  ;;  %v3333_v30 = vadd.f32 %v2152_v59, %v4830_v38  ;;  %v2154_v17 = vpop.f32.mrb[59].mxu0  ;;  %v4950_v23 = vadd.f32 %v4843_v1, %v2507_v2 }
 0x219   : > { %v2633_v32 = vadd.f32 %v4919_v9, %v4945_v37 }
 0x21a   : > { %v2632_v44 = vadd.f32 %v4919_v9, %v4950_v23  ;;  %v2999_v14 = vpop.f32.mrb[124].mxu1  ;;  %v4957_v57 = vadd.f32 %v3333_v30, %v4875_v54 }
 0x21b   : > { %2665 = vst [vmem:[%s4932_s8 + $0x58] sm:$0xff] %v2633_v32  ;;  %v2157_v5 = vpop.f32.mrb[60].mxu0  ;;  %v4961_v38 = vadd.f32 %v4852_v52, %v2999_v14  ;;  %v2517_v12 = vpop.f32.mrb[125].mxu1 }
 0x21c   : > { %2664 = vst [vmem:[%s4932_s8 + $0x50] sm:$0xff] %v2632_v44  ;;  %v3335_v1 = vadd.f32 %v2157_v5, %v4832_v11  ;;  %v2159_v20 = vpop.f32.mrb[61].mxu0  ;;  %v4966_v33 = vadd.f32 %v4849_v45, %v2517_v12 }
 0x21d   : > { %v2635_v6 = vadd.f32 %v4919_v9, %v4961_v38 }
 0x21e   : > { %v2634_v54 = vadd.f32 %v4919_v9, %v4966_v33  ;;  %v3002_v26 = vpop.f32.mrb[126].mxu1  ;;  %v4973_v36 = vadd.f32 %v3335_v1, %v4878_v24 }
 0x21f   : > { %2667 = vst [vmem:[%s4932_s8 + $0x68] sm:$0xff] %v2635_v6  ;;  %v2162_v52 = vpop.f32.mrb[62].mxu0  ;;  %v4977_v11 = vadd.f32 %v4858_v19, %v3002_v26  ;;  %v2527_v39 = vpop.f32.mrb[127].mxu1 }
 0x220   : > { %2666 = vst [vmem:[%s4932_s8 + $0x60] sm:$0xff] %v2634_v54  ;;  %v3337_v45 = vadd.f32 %v2162_v52, %v4834_v62  ;;  %v2164_v41 = vpop.f32.mrb[63].mxu0  ;;  %v4982_v58 = vadd.f32 %v4855_v34, %v2527_v39 }
 0x221   : > { %v2637_v8 = vadd.f32 %v4919_v9, %v4977_v11 }
 0x222   : > { %v2636_v24 = vadd.f32 %v4919_v9, %v4982_v58  ;;  %v3005_v59 = vpop.f32.mrb[128].mxu1  ;;  %v4989_v2 = vadd.f32 %v3337_v45, %v4883_v15 }
 0x223   : > { %2669 = vst [vmem:[%s4932_s8 + $0x78] sm:$0xff] %v2637_v8  ;;  %v2232_v19 = vpop.f32.mrb[0].mxu0  ;;  %v4993_v62 = vadd.f32 %v4864_v4, %v3005_v59  ;;  %v2537_v30 = vpop.f32.mrb[129].mxu1 }
 0x224   : > { %2668 = vst [vmem:[%s4932_s8 + $0x70] sm:$0xff] %v2636_v24  ;;  %v3283_v34 = vadd.f32 %v2232_v19, %v4737_v53  ;;  %v2234_v17 = vpop.f32.mrb[1].mxu0  ;;  %v4998_v32 = vadd.f32 %v4861_v42, %v2537_v30 }
 0x225   : > { %v2639_v44 = vadd.f32 %v4919_v9, %v4993_v62 }
 0x226   : > { %v2458_v15 = vadd.f32 %v3283_v34, %v4892_v10  ;;  %v2638_v14 = vadd.f32 %v4919_v9, %v4998_v32  ;;  %v3008_v5 = vpop.f32.mrb[130].mxu1 }
 0x227   : > { %2671 = vst [vmem:[%s4932_s8 + $0x88] sm:$0xff] %v2639_v44  ;;  %v2237_v4 = vpop.f32.mrb[2].mxu0  ;;  %v5007_v12 = vadd.f32 %v4870_v0, %v3008_v5  ;;  %v2547_v53 = vpop.f32.mrb[131].mxu1 }
 0x228   : > { %v2622_v1 = vadd.f32 %v4919_v9, %v2458_v15  ;;  %2670 = vst [vmem:[%s4932_s8 + $0x80] sm:$0xff] %v2638_v14  ;;  %v3284_v42 = vadd.f32 %v2237_v4, %v4741_v51  ;;  %v2239_v20 = vpop.f32.mrb[3].mxu0  ;;  %v5013_v10 = vadd.f32 %v4867_v29, %v2547_v53  ;;  %v2724_v52 = vmul.f32 %v2458_v15, %v2458_v15 }
 0x229   : > { %v2641_v6 = vadd.f32 %v4919_v9, %v5007_v12 }
 0x22a   : > { %2654 = vst [vmem:[%s4932_s8] sm:$0xff] %v2622_v1  ;;  %v2463_v54 = vadd.f32 %v3284_v42, %v4888_v21  ;;  %v2640_v0 = vadd.f32 %v4919_v9, %v5013_v10  ;;  %v3011_v26 = vpop.f32.mrb[132].mxu1 }
 0x22b   : > { %2673 = vst [vmem:[%s4932_s8 + $0x98] sm:$0xff] %v2641_v6  ;;  %v2242_v51 = vpop.f32.mrb[4].mxu0  ;;  %v5023_v39 = vadd.f32 %v4880_v56, %v3011_v26  ;;  %v2557_v29 = vpop.f32.mrb[133].mxu1 }
 0x22c   : > { %v2623_v45 = vadd.f32 %v4919_v9, %v2463_v54  ;;  %v2686_v41 = vadd.f32 %v2463_v54, %v2458_v15  ;;  %v2725_v8 = vmul.f32 %v2463_v54, %v2463_v54  ;;  %2672 = vst [vmem:[%s4932_s8 + $0x90] sm:$0xff] %v2640_v0  ;;  %v3285_v21 = vadd.f32 %v2242_v51, %v4744_v43  ;;  %v2244_v24 = vpop.f32.mrb[5].mxu0 }
 0x22d   : > { %v2643_v59 = vadd.f32 %v4919_v9, %v5023_v39  ;;  %v5031_v19 = vadd.f32 %v4873_v55, %v2557_v29 }
 0x22e   : > { %2655 = vst [vmem:[%s4932_s8 + $0x8] sm:$0xff] %v2623_v45  ;;  %v2756_v30 = vadd.f32 %v2725_v8, %v2724_v52  ;;  %v2468_v56 = vadd.f32 %v3285_v21, %v4899_v28  ;;  %v3014_v34 = vpop.f32.mrb[134].mxu1 }
 0x22f   : > { %2675 = vst [vmem:[%s4932_s8 + $0xa8] sm:$0xff] %v2643_v59  ;;  %v2642_v17 = vadd.f32 %v4919_v9, %v5031_v19  ;;  %v2247_v43 = vpop.f32.mrb[6].mxu0  ;;  %v5039_v44 = vadd.f32 %v4890_v40, %v3014_v34  ;;  %v2567_v15 = vpop.f32.mrb[135].mxu1 }
 0x230   : > { %v2624_v14 = vadd.f32 %v4919_v9, %v2468_v56  ;;  %v2687_v55 = vadd.f32 %v2686_v41, %v2468_v56  ;;  %v2726_v5 = vmul.f32 %v2468_v56, %v2468_v56  ;;  %v3286_v4 = vadd.f32 %v2247_v43, %v4748_v16  ;;  %v2249_v53 = vpop.f32.mrb[7].mxu0 }
 0x231   : > { %2674 = vst [vmem:[%s4932_s8 + $0xa0] sm:$0xff] %v2642_v17  ;;  %v2645_v28 = vadd.f32 %v4919_v9, %v5039_v44  ;;  %v5047_v1 = vadd.f32 %v4885_v46, %v2567_v15 }
 0x232   : > { %2656 = vst [vmem:[%s4932_s8 + $0x10] sm:$0xff] %v2624_v14  ;;  %v2757_v42 = vadd.f32 %v2756_v30, %v2726_v5  ;;  %v2473_v40 = vadd.f32 %v3286_v4, %v4895_v22  ;;  %v3017_v20 = vpop.f32.mrb[136].mxu1 }
 0x233   : > { %2677 = vst [vmem:[%s4932_s8 + $0xb8] sm:$0xff] %v2645_v28  ;;  %v2644_v6 = vadd.f32 %v4919_v9, %v5047_v1  ;;  %v2252_v16 = vpop.f32.mrb[8].mxu0  ;;  %v5055_v54 = vadd.f32 %v4904_v49, %v3017_v20  ;;  %v2577_v0 = vpop.f32.mrb[137].mxu1 }
 0x234   : > { %v2625_v26 = vadd.f32 %v4919_v9, %v2473_v40  ;;  %v2688_v46 = vadd.f32 %v2687_v55, %v2473_v40  ;;  %v2727_v52 = vmul.f32 %v2473_v40, %v2473_v40  ;;  %v3287_v51 = vadd.f32 %v2252_v16, %v4752_v63  ;;  %v2254_v29 = vpop.f32.mrb[9].mxu0 }
 0x235   : > { %2676 = vst [vmem:[%s4932_s8 + $0xb0] sm:$0xff] %v2644_v6  ;;  %v2647_v22 = vadd.f32 %v4919_v9, %v5055_v54  ;;  %v5063_v45 = vadd.f32 %v4897_v3, %v2577_v0 }
 0x236   : > { %2657 = vst [vmem:[%s4932_s8 + $0x18] sm:$0xff] %v2625_v26  ;;  %v2758_v41 = vadd.f32 %v2757_v42, %v2727_v52  ;;  %v2478_v49 = vadd.f32 %v3287_v51, %v4906_v18  ;;  %v3020_v8 = vpop.f32.mrb[138].mxu1 }
 0x237   : > { %2679 = vst [vmem:[%s4932_s8 + $0xc8] sm:$0xff] %v2647_v22  ;;  %v2646_v21 = vadd.f32 %v4919_v9, %v5063_v45  ;;  %v2257_v63 = vpop.f32.mrb[10].mxu0  ;;  %v5071_v24 = vadd.f32 %v4921_v13, %v3020_v8  ;;  %v2587_v59 = vpop.f32.mrb[139].mxu1 }
 0x238   : > { %v2626_v30 = vadd.f32 %v4919_v9, %v2478_v49  ;;  %v2689_v3 = vadd.f32 %v2688_v46, %v2478_v49  ;;  %v2728_v56 = vmul.f32 %v2478_v49, %v2478_v49  ;;  %v3288_v34 = vadd.f32 %v2257_v63, %v4755_v7  ;;  %v2259_v17 = vpop.f32.mrb[11].mxu0 }
 0x239   : > { %2678 = vst [vmem:[%s4932_s8 + $0xc0] sm:$0xff] %v2646_v21  ;;  %v2649_v18 = vadd.f32 %v4919_v9, %v5071_v24  ;;  %v5079_v43 = vadd.f32 %v4911_v47, %v2587_v59  ;;  %v2732_v59 = vmul.f32 %v4935_v60, %v4935_v60 }
 0x23a   : > { %2658 = vst [vmem:[%s4932_s8 + $0x20] sm:$0xff] %v2626_v30  ;;  %v2759_v15 = vadd.f32 %v2758_v41, %v2728_v56  ;;  %v2483_v13 = vadd.f32 %v3288_v34, %v4902_v35  ;;  %v3023_v14 = vpop.f32.mrb[140].mxu1  ;;  %v2734_v34 = vmul.f32 %v4950_v23, %v4950_v23 }
 0x23b   : > { %2681 = vst [vmem:[%s4932_s8 + $0xd8] sm:$0xff] %v2649_v18  ;;  %v2648_v55 = vadd.f32 %v4919_v9, %v5079_v43  ;;  %v2262_v7 = vpop.f32.mrb[12].mxu0  ;;  %v5087_v5 = vadd.f32 %v4957_v57, %v3023_v14  ;;  %v2597_v4 = vpop.f32.mrb[141].mxu1  ;;  %v2735_v18 = vmul.f32 %v4945_v37, %v4945_v37 }
 0x23c   : > { %v2627_v53 = vadd.f32 %v4919_v9, %v2483_v13  ;;  %v2690_v47 = vadd.f32 %v2689_v3, %v2483_v13  ;;  %v2729_v28 = vmul.f32 %v2483_v13, %v2483_v13  ;;  %v3289_v42 = vadd.f32 %v2262_v7, %v4758_v61  ;;  %v2264_v40 = vpop.f32.mrb[13].mxu0 }
 0x23d   : > { %2680 = vst [vmem:[%s4932_s8 + $0xd0] sm:$0xff] %v2648_v55  ;;  %v2651_v35 = vadd.f32 %v4919_v9, %v5087_v5  ;;  %v5095_v20 = vadd.f32 %v4941_v25, %v2597_v4  ;;  %v2733_v3 = vmul.f32 %v4924_v31, %v4924_v31 }
 0x23e   : > { %2659 = vst [vmem:[%s4932_s8 + $0x28] sm:$0xff] %v2627_v53  ;;  %v2760_v6 = vadd.f32 %v2759_v15, %v2729_v28  ;;  %v2488_v57 = vadd.f32 %v3289_v42, %v4913_v48  ;;  %v3026_v16 = vpop.f32.mrb[142].mxu1 }
 0x23f   : > { %2683 = vst [vmem:[%s4932_s8 + $0xe8] sm:$0xff] %v2651_v35  ;;  %v2650_v61 = vadd.f32 %v4919_v9, %v5095_v20  ;;  %v2267_v0 = vpop.f32.mrb[14].mxu0  ;;  %v5103_v26 = vadd.f32 %v4989_v2, %v3026_v16  ;;  %v2607_v46 = vpop.f32.mrb[143].mxu1 }
 0x240   : > { %v2628_v52 = vadd.f32 %v4919_v9, %v2488_v57  ;;  %v2691_v25 = vadd.f32 %v2690_v47, %v2488_v57  ;;  %v2730_v51 = vmul.f32 %v2488_v57, %v2488_v57  ;;  %v3290_v29 = vadd.f32 %v2267_v0, %v4761_v27  ;;  %v2269_v48 = vpop.f32.mrb[15].mxu0 }
 0x241   : > { %2682 = vst [vmem:[%s4932_s8 + $0xe0] sm:$0xff] %v2650_v61  ;;  %v2653_v22 = vadd.f32 %v4919_v9, %v5103_v26  ;;  %v5111_v41 = vadd.f32 %v4973_v36, %v2607_v46 }
 0x242   : > { %2660 = vst [vmem:[%s4932_s8 + $0x30] sm:$0xff] %v2628_v52  ;;  %v2761_v2 = vadd.f32 %v2760_v6, %v2730_v51  ;;  %v2493_v49 = vadd.f32 %v3290_v29, %v4909_v50 }
 0x243   : > { %2685 = vst [vmem:[%s4932_s8 + $0xf8] sm:$0xff] %v2653_v22  ;;  %v2652_v8 = vadd.f32 %v4919_v9, %v5111_v41 }
 0x244   : > { %v2629_v21 = vadd.f32 %v4919_v9, %v2493_v49  ;;  %v2692_v63 = vadd.f32 %v2691_v25, %v2493_v49  ;;  %v2731_v27 = vmul.f32 %v2493_v49, %v2493_v49 }
 0x245   : > { %2684 = vst [vmem:[%s4932_s8 + $0xf0] sm:$0xff] %v2652_v8 }
 0x246   : > { %2661 = vst [vmem:[%s4932_s8 + $0x38] sm:$0xff] %v2629_v21  ;;  %v2693_v36 = vadd.f32 %v2692_v63, %v4935_v60  ;;  %v2762_v30 = vadd.f32 %v2761_v2, %v2731_v27  ;;  %v2736_v60 = vmul.f32 %v4966_v33, %v4966_v33 }
 0x248   : > { %v2694_v50 = vadd.f32 %v2693_v36, %v4924_v31  ;;  %v2763_v56 = vadd.f32 %v2762_v30, %v2732_v59  ;;  %v2737_v31 = vmul.f32 %v4961_v38, %v4961_v38 }
 0x24a   : > { %v2695_v9 = vadd.f32 %v2694_v50, %v4950_v23  ;;  %v2764_v17 = vadd.f32 %v2763_v56, %v2733_v3  ;;  %v2738_v23 = vmul.f32 %v4982_v58, %v4982_v58 }
 0x24c   : > { %v2696_v15 = vadd.f32 %v2695_v9, %v4945_v37  ;;  %v2765_v13 = vadd.f32 %v2764_v17, %v2734_v34  ;;  %v2739_v37 = vmul.f32 %v4977_v11, %v4977_v11  ;;  %v2754_v17 = vmul.f32 %v5111_v41, %v5111_v41 }
 0x24e   : > { %v2697_v14 = vadd.f32 %v2696_v15, %v4966_v33  ;;  %v2766_v55 = vadd.f32 %v2765_v13, %v2735_v18  ;;  %v2740_v33 = vmul.f32 %v4998_v32, %v4998_v32  ;;  %v2755_v18 = vmul.f32 %v5103_v26, %v5103_v26 }
 0x250   : > { %v2698_v7 = vadd.f32 %v2697_v14, %v4961_v38  ;;  %v2767_v4 = vadd.f32 %v2766_v55, %v2736_v60  ;;  %v2741_v38 = vmul.f32 %v4993_v62, %v4993_v62 }
 0x252   : > { %v2699_v53 = vadd.f32 %v2698_v7, %v4982_v58  ;;  %v2768_v47 = vadd.f32 %v2767_v4, %v2737_v31  ;;  %v2742_v58 = vmul.f32 %v5013_v10, %v5013_v10 }
 0x254   : > { %v2700_v28 = vadd.f32 %v2699_v53, %v4977_v11  ;;  %v2769_v42 = vadd.f32 %v2768_v47, %v2738_v23  ;;  %v2743_v11 = vmul.f32 %v5007_v12, %v5007_v12 }
 0x256   : > { %v2701_v40 = vadd.f32 %v2700_v28, %v4998_v32  ;;  %v2770_v35 = vadd.f32 %v2769_v42, %v2739_v37  ;;  %v2744_v32 = vmul.f32 %v5031_v19, %v5031_v19 }
 0x258   : > { %v2702_v6 = vadd.f32 %v2701_v40, %v4993_v62  ;;  %v2771_v57 = vadd.f32 %v2770_v35, %v2740_v33  ;;  %v2745_v62 = vmul.f32 %v5023_v39, %v5023_v39 }
 0x25a   : > { %v2772_v16 = vadd.f32 %v2771_v57, %v2741_v38  ;;  %v2703_v61 = vadd.f32 %v2702_v6, %v5013_v10  ;;  %v2746_v10 = vmul.f32 %v5047_v1, %v5047_v1 }
 0x25c   : > { %v2704_v0 = vadd.f32 %v2703_v61, %v5007_v12  ;;  %v2773_v46 = vadd.f32 %v2772_v16, %v2742_v58  ;;  %v2747_v12 = vmul.f32 %v5039_v44, %v5039_v44 }
 0x25e   : > { %v2705_v52 = vadd.f32 %v2704_v0, %v5031_v19  ;;  %v2774_v25 = vadd.f32 %v2773_v46, %v2743_v11  ;;  %v2748_v19 = vmul.f32 %v5063_v45, %v5063_v45 }
 0x260   : > { %v2706_v51 = vadd.f32 %v2705_v52, %v5023_v39  ;;  %v2775_v29 = vadd.f32 %v2774_v25, %v2744_v32  ;;  %v2749_v39 = vmul.f32 %v5055_v54, %v5055_v54 }
 0x262   : > { %v2707_v48 = vadd.f32 %v2706_v51, %v5047_v1  ;;  %v2776_v22 = vadd.f32 %v2775_v29, %v2745_v62  ;;  %v2750_v1 = vmul.f32 %v5079_v43, %v5079_v43 }
 0x264   : > { %v2708_v2 = vadd.f32 %v2707_v48, %v5039_v44  ;;  %v2777_v49 = vadd.f32 %v2776_v22, %v2746_v10  ;;  %v2751_v44 = vmul.f32 %v5071_v24, %v5071_v24 }
 0x266   : > { %v2709_v8 = vadd.f32 %v2708_v2, %v5063_v45  ;;  %v2778_v21 = vadd.f32 %v2777_v49, %v2747_v12  ;;  %v2752_v45 = vmul.f32 %v5095_v20, %v5095_v20 }
 0x268   : > { %v2710_v63 = vadd.f32 %v2709_v8, %v5055_v54  ;;  %v2779_v27 = vadd.f32 %v2778_v21, %v2748_v19  ;;  %v2753_v54 = vmul.f32 %v5087_v5, %v5087_v5 }
 0x26a   : > { %v2711_v59 = vadd.f32 %v2710_v63, %v5079_v43  ;;  %v2780_v36 = vadd.f32 %v2779_v27, %v2749_v39 }
 0x26c   : > { %v2712_v30 = vadd.f32 %v2711_v59, %v5071_v24  ;;  %v2781_v3 = vadd.f32 %v2780_v36, %v2750_v1 }
 0x26e   : > { %v2713_v50 = vadd.f32 %v2712_v30, %v5095_v20  ;;  %v2782_v56 = vadd.f32 %v2781_v3, %v2751_v44 }
 0x270   : > { %v2714_v34 = vadd.f32 %v2713_v50, %v5087_v5  ;;  %v2783_v43 = vadd.f32 %v2782_v56, %v2752_v45 }
 0x272   : > { %v2715_v9 = vadd.f32 %v2714_v34, %v5111_v41  ;;  %v2784_v24 = vadd.f32 %v2783_v43, %v2753_v54 }
 0x274   : > { %v2716_v15 = vadd.f32 %v2715_v9, %v5103_v26  ;;  %v2785_v20 = vadd.f32 %v2784_v24, %v2754_v17 }
 0x276   : > { %v2717_v13 = vrot.slane %v2716_v15, 4  ;;  %v2786_v60 = vadd.f32 %v2785_v20, %v2755_v18 }
 0x278   : > { %v2718_v14 = vadd.f32 %v2717_v13, %v2716_v15  ;;  %v2787_v55 = vrot.slane %v2786_v60, 4 }
 0x27a   : > { %v2719_v31 = vrot.slane %v2718_v14, 2  ;;  %v2788_v7 = vadd.f32 %v2787_v55, %v2786_v60 }
 0x27c   : > { %v2720_v5 = vadd.f32 %v2719_v31, %v2718_v14  ;;  %v2789_v4 = vrot.slane %v2788_v7, 2 }
 0x27e   : > { %v2721_v23 = vrot.slane %v2720_v5, 1  ;;  %v2790_v53 = vadd.f32 %v2789_v4, %v2788_v7 }
 0x280   : > { %v2722_v41 = vadd.f32 %v2721_v23, %v2720_v5  ;;  %v2791_v47 = vrot.slane %v2790_v53, 1 }
 0x282   : > { %v2792_v37 = vadd.f32 %v2791_v47, %v2790_v53  ;;  %2794 = vst [vmem:[%s262_s11] sm:$0x1] %v2722_v41 }
 0x284   : > { %2795 = vst [vmem:[%s262_s11 + $0x1] sm:$0x1] %v2792_v37 }
 0x285 PF: > { %s17_s21 = sadd.s32 1, %s3458_s21  }
 0x286   : > { %p14_p4 = scmp.ge.s32.totalorder %s17_s21, 4  }
 0x288   :  { %16 = sbr.rel (!%p14_p4) target bundleno = 1 (0x1), region = 85 }

</bundles_post_ra>
